<compile_context>
chip_gen: v7x
topology: tpu7x:2x2x1
jax: 0.10.0
libtpu: 0.0.40
codegen_flags: <defaults>
</compile_context>

<pallas_src>
import jax
import jax.numpy as jnp
from jax.experimental import pallas as pl
from jax.experimental.pallas import tpu as pltpu


def _mlp_kernel(meta_ref, w1_ref, b1_ref, w2_ref, scale_ref, b2_ref, out_ref):
    c = pl.program_id(0)          # TensorCore-parallel axis (partial-sum slab index)
    k = pl.program_id(1)          # hidden-dim reduction step within this core

    @pl.when(k == 0)
    def _():
        out_ref[...] = jnp.zeros_like(out_ref)

    # First linear + ReLU on this hidden chunk, f32 end-to-end (tiny matmul; the
    # kernel is HBM-bound on W2, so this is free filler under the DMA).
    h = jnp.dot(meta_ref[...], w1_ref[...], preferred_element_type=jnp.float32)
    h = jnp.maximum(h + b1_ref[...], 0.0)

    # Second linear: int8 weights are exact in bf16; bf16 x bf16 -> f32 MXU
    # accumulation directly into the resident output block.
    out_ref[...] += jnp.dot(h.astype(jnp.bfloat16),
                            w2_ref[...].astype(jnp.bfloat16),
                            preferred_element_type=jnp.float32)

    @pl.when(k == pl.num_programs(1) - 1)
    def _():
        # Per-output-channel dequant scale; b2 is added by core 0 only so that the
        # cross-core partial sums add up to exactly one bias.
        bias = jnp.where(c == 0, b2_ref[...], jnp.zeros_like(b2_ref[...]))
        out_ref[...] = out_ref[...] * scale_ref[...] + bias


def quantize_w2_per_channel(w2):
    """Symmetric per-output-channel int8 quantization of W2 [hidden, out_dim].

    Returns (w2_q int8 [hidden, out_dim], scale f32 [1, out_dim]).  Build this once,
    outside the hot path.
    """
    amax = jnp.max(jnp.abs(w2), axis=0, keepdims=True)
    scale = (jnp.maximum(amax, 1e-30) / 127.0).astype(jnp.float32)
    q = jnp.clip(jnp.round(w2.astype(jnp.float32) / scale), -127.0, 127.0).astype(jnp.int8)
    return q, scale


def _detect_num_cores():
    """2 TensorCores per chip on v7x; 1 on v5e/v6e.  Default to 1 on any doubt."""
    try:
        kind = jax.devices()[0].device_kind.lower()
    except Exception:
        return 1
    return 2 if "v7" in kind else 1


def metadata_encoder_forward(meta, w1, b1, w2_q, w2_scale, b2, *, tk=1536, num_cores=None):
    """meta: [B, in_dim] f32; w1: [in_dim, hidden]; b1: [hidden];
    w2_q: [hidden, out_dim] int8 (per-output-channel quantized); w2_scale: [1, out_dim] f32;
    b2: [out_dim].  Output: [B, out_dim] f32.
    """
    B, in_dim = meta.shape
    hidden = w1.shape[1]
    out_dim = w2_q.shape[1]

    # Fail loudly instead of silently re-casting 25 MB of weights every call.
    assert w2_q.dtype == jnp.int8, "pass the int8 master copy of W2 (see quantize_w2_per_channel)"
    assert hidden % tk == 0, "hidden dim must be divisible by the K tile"
    assert tk % 128 == 0, "K tile must be lane-aligned"

    if num_cores is None:
        num_cores = _detect_num_cores()
    if hidden % (num_cores * tk) != 0:
        num_cores = 1
    kpc = hidden // (num_cores * tk)           # K steps per core

    meta = meta.astype(jnp.float32)
    w1 = w1.astype(jnp.float32)
    b1_2d = b1.reshape(1, hidden).astype(jnp.float32)
    b2_2d = b2.reshape(1, out_dim).astype(jnp.float32)
    scale_2d = w2_scale.reshape(1, out_dim).astype(jnp.float32)

    grid = (num_cores, kpc)

    flops = 2 * B * in_dim * hidden + 2 * B * hidden * out_dim
    bytes_accessed = (
        B * in_dim * 4              # meta
        + in_dim * hidden * 4       # W1 (f32, read once)
        + hidden * 4                # b1
        + hidden * out_dim * 1      # W2 (int8, streamed - dominant term)
        + out_dim * 4 * 2           # scale + b2
        + num_cores * B * out_dim * 4  # partial-sum output slabs
    )

    partials = pl.pallas_call(
        _mlp_kernel,
        out_shape=jax.ShapeDtypeStruct((num_cores, B, out_dim), jnp.float32),
        grid_spec=pltpu.PrefetchScalarGridSpec(
            num_scalar_prefetch=0,
            grid=grid,
            in_specs=[
                pl.BlockSpec((B, in_dim), lambda c, k: (0, 0)),            # meta (resident)
                pl.BlockSpec((in_dim, tk), lambda c, k: (0, c * kpc + k)),  # W1 hidden-chunk
                pl.BlockSpec((1, tk), lambda c, k: (0, c * kpc + k)),       # b1 hidden-chunk
                pl.BlockSpec((tk, out_dim), lambda c, k: (c * kpc + k, 0)),  # W2 int8 chunk (streamed)
                pl.BlockSpec((1, out_dim), lambda c, k: (0, 0)),            # per-channel scale (resident)
                pl.BlockSpec((1, out_dim), lambda c, k: (0, 0)),            # b2 (resident)
            ],
            out_specs=pl.BlockSpec((None, B, out_dim), lambda c, k: (c, 0, 0)),  # per-core partial sum
        ),
        compiler_params=pltpu.CompilerParams(
            dimension_semantics=("parallel", "arbitrary"),
            vmem_limit_bytes=32 * 1024 * 1024,   # footprint ~8 MB; legal on v7x's 64 MiB too
        ),
        cost_estimate=pl.CostEstimate(
            flops=flops, transcendentals=0, bytes_accessed=bytes_accessed),
    )(meta, w1, b1_2d, w2_q, scale_2d, b2_2d)

    if num_cores == 1:
        return partials[0]
    return jnp.sum(partials, axis=0)   # tiny (B x out_dim) cross-core reduction


def _init_params(key, in_dim, hidden, out_dim, dtype=jnp.float32):
    """Deterministic init mimicking torch.nn.Linear default (U(-1/sqrt(fan_in), 1/sqrt(fan_in)))."""
    k1, k2, k3, k4 = jax.random.split(key, 4)
    bound1 = 1.0 / (in_dim ** 0.5)
    bound2 = 1.0 / (hidden ** 0.5)
    w1 = jax.random.uniform(k1, (in_dim, hidden), dtype, -bound1, bound1)
    b1 = jax.random.uniform(k2, (hidden,), dtype, -bound1, bound1)
    w2 = jax.random.uniform(k3, (hidden, out_dim), dtype, -bound2, bound2)
    b2 = jax.random.uniform(k4, (out_dim,), dtype, -bound2, bound2)
    return w1, b1, w2, b2


if __name__ == "__main__":
    IN_DIM, HIDDEN, OUT_DIM = 23, 3072, 2080   # matches MetadataEncoder defaults
    BATCH = 4

    key = jax.random.PRNGKey(0)
    k_meta, k_params = jax.random.split(key)
    meta = jax.random.normal(k_meta, (BATCH, IN_DIM), jnp.float32)
    w1, b1, w2, b2 = _init_params(k_params, IN_DIM, HIDDEN, OUT_DIM)

    # int8 master copy of the streamed weight + per-output-channel scale (built once,
    # outside the hot path).
    w2_q, w2_scale = quantize_w2_per_channel(w2)

    out = metadata_encoder_forward(meta, w1, b1, w2_q, w2_scale, b2)
    out = jax.block_until_ready(out)

    # Matched-precision reference: f32 first layer + ReLU, then bf16 activations x
    # int8-as-bf16 weights with f32 accumulation, per-channel scale, bias.
    h_ref = jnp.maximum(
        jnp.dot(meta, w1, precision=jax.lax.Precision.HIGHEST) + b1, 0.0)
    ref_q = (jnp.dot(h_ref.astype(jnp.bfloat16), w2_q.astype(jnp.bfloat16),
                     preferred_element_type=jnp.float32) * w2_scale + b2)
    # Unquantized f32 reference (sanity check on the int8 numerics).
    ref_f32 = jnp.dot(h_ref, w2, precision=jax.lax.Precision.HIGHEST) + b2

    assert out.shape == (BATCH, OUT_DIM)
    assert jnp.allclose(out, ref_q, rtol=1e-2, atol=1e-2), "mismatch vs matched-precision reference"
    assert jnp.allclose(out, ref_f32, rtol=5e-2, atol=5e-2), "int8 quantization drift vs f32 reference"

    print("KERNEL_OK")
</pallas_src>

<mosaic_0001>
module attributes {stable_mosaic.version = 11 : i64} {
  func.func @_mlp_kernel(%arg0: i32, %arg1: i32, %arg2: memref<4x23xf32, #tpu.memory_space<vmem>>, %arg3: memref<23x1536xf32, #tpu.memory_space<vmem>>, %arg4: memref<1x1536xf32, #tpu.memory_space<vmem>>, %arg5: memref<1536x2080xi8, #tpu.memory_space<vmem>>, %arg6: memref<1x2080xf32, #tpu.memory_space<vmem>>, %arg7: memref<1x2080xf32, #tpu.memory_space<vmem>>, %arg8: memref<1x4x2080xf32, #tpu.memory_space<vmem>>) attributes {dimension_semantics = [#tpu.dimension_semantics<parallel>, #tpu.dimension_semantics<arbitrary>], iteration_bounds = array<i64: 1, 2>, scalar_prefetch = 0 : i64, scratch_operands = 0 : i64, tpu.core_type = #tpu.core_type<tc>, window_params = [{pipeline_mode = #tpu.pipeline_mode<synchronous>, transform_indices = @transform_0, window_bounds = array<i64: 4, 23>}, {transform_indices = @transform_1, window_bounds = array<i64: 23, 1536>}, {transform_indices = @transform_2, window_bounds = array<i64: 1, 1536>}, {transform_indices = @transform_3, window_bounds = array<i64: 1536, 2080>}, {pipeline_mode = #tpu.pipeline_mode<synchronous>, transform_indices = @transform_4, window_bounds = array<i64: 1, 2080>}, {pipeline_mode = #tpu.pipeline_mode<synchronous>, transform_indices = @transform_5, window_bounds = array<i64: 1, 2080>}, {transform_indices = @transform_6, window_bounds = array<i64: 1, 4, 2080>}]} {
    %c0_i32 = arith.constant 0 : i32
    %0 = arith.cmpi eq, %arg1, %c0_i32 : i32
    %1 = arith.extui %0 : i1 to i32
    %c0_i32_0 = arith.constant 0 : i32
    %2 = arith.cmpi ne, %1, %c0_i32_0 : i32
    scf.if %2 {
      %cst_17 = arith.constant 0.000000e+00 : f32
      %24 = vector.broadcast %cst_17 : f32 to vector<4x2080xf32>
      %c0_18 = arith.constant 0 : index
      %c0_19 = arith.constant 0 : index
      %c0_20 = arith.constant 0 : index
      %25 = vector.load %arg8[%c0_18, %c0_19, %c0_20] : memref<1x4x2080xf32, #tpu.memory_space<vmem>>, vector<1x4x2080xf32>
      %26 = vector.shape_cast %25 : vector<1x4x2080xf32> to vector<4x2080xf32>
      %27 = vector.shape_cast %24 : vector<4x2080xf32> to vector<1x4x2080xf32>
      tpu.vector_store %arg8[%c0_18, %c0_19, %c0_20], %27 {strides = array<i32>} : memref<1x4x2080xf32, #tpu.memory_space<vmem>>, vector<1x4x2080xf32>,
    } else {
    }
    %c0 = arith.constant 0 : index
    %c0_1 = arith.constant 0 : index
    %3 = vector.load %arg2[%c0, %c0_1] : memref<4x23xf32, #tpu.memory_space<vmem>>, vector<4x23xf32>
    %c0_2 = arith.constant 0 : index
    %c0_3 = arith.constant 0 : index
    %4 = vector.load %arg3[%c0_2, %c0_3] : memref<23x1536xf32, #tpu.memory_space<vmem>>, vector<23x1536xf32>
    %cst = arith.constant dense<0.000000e+00> : vector<4x1536xf32>
    %5 = tpu.matmul %3, %4, %cst {dimension_numbers = #tpu.dot_dimension_numbers<[1], [0], [0], [1], [0, 0, 1, 1], [], []>} : vector<4x23xf32>, vector<23x1536xf32>, vector<4x1536xf32> -> vector<4x1536xf32>
    %c0_4 = arith.constant 0 : index
    %c0_5 = arith.constant 0 : index
    %6 = vector.load %arg4[%c0_4, %c0_5] : memref<1x1536xf32, #tpu.memory_space<vmem>>, vector<1x1536xf32>
    %7 = vector.broadcast %6 : vector<1x1536xf32> to vector<4x1536xf32>
    %8 = arith.addf %5, %7 : vector<4x1536xf32>
    %cst_6 = arith.constant 0.000000e+00 : f32
    %9 = vector.broadcast %cst_6 : f32 to vector<4x1536xf32>
    %10 = arith.maximumf %8, %9 : vector<4x1536xf32>
    %c0_7 = arith.constant 0 : index
    %c0_8 = arith.constant 0 : index
    %c0_9 = arith.constant 0 : index
    %11 = vector.load %arg8[%c0_7, %c0_8, %c0_9] : memref<1x4x2080xf32, #tpu.memory_space<vmem>>, vector<1x4x2080xf32>
    %12 = vector.shape_cast %11 : vector<1x4x2080xf32> to vector<4x2080xf32>
    %13 = arith.truncf %10 : vector<4x1536xf32> to vector<4x1536xbf16>
    %c0_10 = arith.constant 0 : index
    %c0_11 = arith.constant 0 : index
    %14 = vector.load %arg5[%c0_10, %c0_11] : memref<1536x2080xi8, #tpu.memory_space<vmem>>, vector<1536x2080xi8>
    %15 = arith.sitofp %14 : vector<1536x2080xi8> to vector<1536x2080xbf16>
    %cst_12 = arith.constant dense<0.000000e+00> : vector<4x2080xf32>
    %16 = tpu.matmul %13, %15, %cst_12 {dimension_numbers = #tpu.dot_dimension_numbers<[1], [0], [0], [1], [0, 0, 1, 1], [], []>} : vector<4x1536xbf16>, vector<1536x2080xbf16>, vector<4x2080xf32> -> vector<4x2080xf32>
    %17 = arith.addf %12, %16 : vector<4x2080xf32>
    %c0_13 = arith.constant 0 : index
    %c0_14 = arith.constant 0 : index
    %c0_15 = arith.constant 0 : index
    %18 = vector.load %arg8[%c0_13, %c0_14, %c0_15] : memref<1x4x2080xf32, #tpu.memory_space<vmem>>, vector<1x4x2080xf32>
    %19 = vector.shape_cast %18 : vector<1x4x2080xf32> to vector<4x2080xf32>
    %20 = vector.shape_cast %17 : vector<4x2080xf32> to vector<1x4x2080xf32>
    tpu.vector_store %arg8[%c0_13, %c0_14, %c0_15], %20 {strides = array<i32>} : memref<1x4x2080xf32, #tpu.memory_space<vmem>>, vector<1x4x2080xf32>,
    %c1_i32 = arith.constant 1 : i32
    %21 = arith.cmpi eq, %arg1, %c1_i32 : i32
    %22 = arith.extui %21 : i1 to i32
    %c0_i32_16 = arith.constant 0 : i32
    %23 = arith.cmpi ne, %22, %c0_i32_16 : i32
    scf.if %23 {
      %c0_i32_17 = arith.constant 0 : i32
      %24 = arith.cmpi eq, %arg0, %c0_i32_17 : i32
      %c0_18 = arith.constant 0 : index
      %c0_19 = arith.constant 0 : index
      %25 = vector.load %arg7[%c0_18, %c0_19] : memref<1x2080xf32, #tpu.memory_space<vmem>>, vector<1x2080xf32>
      %cst_20 = arith.constant 0.000000e+00 : f32
      %26 = vector.broadcast %cst_20 : f32 to vector<1x2080xf32>
      %27 = arith.select %24, %25, %26 : vector<1x2080xf32>
      %c0_21 = arith.constant 0 : index
      %c0_22 = arith.constant 0 : index
      %c0_23 = arith.constant 0 : index
      %28 = vector.load %arg8[%c0_21, %c0_22, %c0_23] : memref<1x4x2080xf32, #tpu.memory_space<vmem>>, vector<1x4x2080xf32>
      %29 = vector.shape_cast %28 : vector<1x4x2080xf32> to vector<4x2080xf32>
      %c0_24 = arith.constant 0 : index
      %c0_25 = arith.constant 0 : index
      %30 = vector.load %arg6[%c0_24, %c0_25] : memref<1x2080xf32, #tpu.memory_space<vmem>>, vector<1x2080xf32>
      %31 = vector.broadcast %30 : vector<1x2080xf32> to vector<4x2080xf32>
      %32 = arith.mulf %29, %31 : vector<4x2080xf32>
      %33 = vector.broadcast %27 : vector<1x2080xf32> to vector<4x2080xf32>
      %34 = arith.addf %32, %33 : vector<4x2080xf32>
      %c0_26 = arith.constant 0 : index
      %c0_27 = arith.constant 0 : index
      %c0_28 = arith.constant 0 : index
      %35 = vector.load %arg8[%c0_26, %c0_27, %c0_28] : memref<1x4x2080xf32, #tpu.memory_space<vmem>>, vector<1x4x2080xf32>
      %36 = vector.shape_cast %35 : vector<1x4x2080xf32> to vector<4x2080xf32>
      %37 = vector.shape_cast %34 : vector<4x2080xf32> to vector<1x4x2080xf32>
      tpu.vector_store %arg8[%c0_26, %c0_27, %c0_28], %37 {strides = array<i32>} : memref<1x4x2080xf32, #tpu.memory_space<vmem>>, vector<1x4x2080xf32>,
    } else {
    }
    return
  }
  func.func @transform_0(%arg0: i32, %arg1: i32) -> (i32, i32) {
    %c0_i32 = arith.constant 0 : i32
    %c0_i32_0 = arith.constant 0 : i32
    %c0_i32_1 = arith.constant 0 : i32
    return %c0_i32, %c0_i32_0 : i32, i32
  }
  func.func @transform_1(%arg0: i32, %arg1: i32) -> (i32, i32) {
    %c2_i32 = arith.constant 2 : i32
    %0 = arith.muli %arg0, %c2_i32 : i32
    %1 = arith.addi %0, %arg1 : i32
    %c0_i32 = arith.constant 0 : i32
    %c0_i32_0 = arith.constant 0 : i32
    return %c0_i32, %1 : i32, i32
  }
  func.func @transform_2(%arg0: i32, %arg1: i32) -> (i32, i32) {
    %c2_i32 = arith.constant 2 : i32
    %0 = arith.muli %arg0, %c2_i32 : i32
    %1 = arith.addi %0, %arg1 : i32
    %c0_i32 = arith.constant 0 : i32
    %c0_i32_0 = arith.constant 0 : i32
    return %c0_i32, %1 : i32, i32
  }
  func.func @transform_3(%arg0: i32, %arg1: i32) -> (i32, i32) {
    %c2_i32 = arith.constant 2 : i32
    %0 = arith.muli %arg0, %c2_i32 : i32
    %1 = arith.addi %0, %arg1 : i32
    %c0_i32 = arith.constant 0 : i32
    %c0_i32_0 = arith.constant 0 : i32
    return %1, %c0_i32 : i32, i32
  }
  func.func @transform_4(%arg0: i32, %arg1: i32) -> (i32, i32) {
    %c0_i32 = arith.constant 0 : i32
    %c0_i32_0 = arith.constant 0 : i32
    %c0_i32_1 = arith.constant 0 : i32
    return %c0_i32, %c0_i32_0 : i32, i32
  }
  func.func @transform_5(%arg0: i32, %arg1: i32) -> (i32, i32) {
    %c0_i32 = arith.constant 0 : i32
    %c0_i32_0 = arith.constant 0 : i32
    %c0_i32_1 = arith.constant 0 : i32
    return %c0_i32, %c0_i32_0 : i32, i32
  }
  func.func @transform_6(%arg0: i32, %arg1: i32) -> (i32, i32, i32) {
    %c0_i32 = arith.constant 0 : i32
    %c0_i32_0 = arith.constant 0 : i32
    %c0_i32_1 = arith.constant 0 : i32
    return %arg0, %c0_i32, %c0_i32_0 : i32, i32, i32
  }
}

</mosaic_0001>

<bundles_post_ra>
// kernel: tpu_custom_call.1
= control target key start
LH: loop header
LB: loop body
LE: loop exit
PB: predicated region body
PF: predicated region fallthrough
CT: control target
= control target key end

     0   :  { %11 = vsyncpa [#allocation4], 0  ;;  %s6578_s21 = smov 0   ;;  %s6580_s22 = smov 0   ;;  %s7914_s0 = inlined_call_operand.vmem [shape: f32[4,23], index: 0, kind: input, shape index: {}]   ;;  %s7915_s1 = inlined_call_operand.vmem [shape: f32[23,3072], index: 1, kind: input, shape index: {}]   ;;  %s7916_s2 = inlined_call_operand.vmem [shape: f32[1,3072], index: 2, kind: input, shape index: {}]   ;;  %s7917_s3 = inlined_call_operand.vmem [shape: s8[3072,2080], index: 3, kind: input, shape index: {}]   ;;  %s7918_s4 = inlined_call_operand.vmem [shape: f32[1,2080], index: 4, kind: input, shape index: {}]   ;;  %s7919_s5 = inlined_call_operand.vmem [shape: f32[1,2080], index: 5, kind: input, shape index: {}]   ;;  %s7920_s6 = inlined_call_operand.hbm [shape: f32[1,4,2080], index: 6, kind: output, shape index: {}]  }
   0x1   :  { %s6582_s23 = smov 0   ;;  %s6584_s24 = smov 0  }
   0x2   :  { %s6586_s25 = smov 0  }
   0x3 LB: > { %s6067_s26 = sadd.s32 4294967295, %s6538_s25   ;;  %s26_s27 = sadd.s32 1, %s6534_s24  ;;  %s6538_s25 = sphi %s6586_s25, %s17_s25   ;;  %s6534_s24 = sphi %s6584_s24, %s7925_s24   ;;  %s6530_s23 = sphi %s6582_s23, %s7924_s23   ;;  %s6526_s22 = sphi %s6580_s22, %s7923_s22   ;;  %s6522_s21 = sphi %s6578_s21, %s7922_s21  }
   0x4   : > { %p27_p0 = scmp.ge.s32.totalorder %s26_s27, 2  ;;  %p68_p1 = scmp.ne.s32.totalorder %s6526_s22, %s6522_s21 }
   0x5   : > { %p69_p2 = scmp.eq.s32.totalorder %s6538_s25, 0  ;;  %s61_s29 = sadd.s32 1, %s6526_s22 }
   0x6   : > { %s7927_s27 = smov (%p27_p0, %s26_s27), 0  ;;  %p6069_p5 = scmp.ge.s32.totalorder %s6538_s25, 2 }
   0x7   : > { %p70_p3 = por %p69_p2, %p68_p1  ;;  %s58_s28 = ssub.s32 %s6534_s24, %s7927_s27 }
   0x8   : > { %p59_p4 = scmp.eq.s32.totalorder %s58_s28, 0  ;;  %231 = sbr.rel (%p6069_p5) target bundleno = 38 (0x26), region = 28 }
   0xa   : > { %s6614_s30 = scalar_select %p59_p4, %s6526_s22, %s61_s29  }
   0xf   : > { %234 = sbr.rel (!%p70_p3) target bundleno = 38 (0x26), region = 32  ;;  %s236_s7 = sand.u32 (%p70_p3), 1, %s6526_s22  }
  0x10   : > { %s6099_s8 = smul.u32 (%p70_p3), 96, %s6534_s24 }
  0x11   : > { %s6416_s9 = smul.u32 (%p70_p3), 288, %s236_s7 }
  0x12   : > { %s6622_s12 = scalar_lea.vmem (%p70_p3), %s7915_s1, %s6099_s8 }
  0x13   : > { %v256_v0 = vld [vmem:[%s6622_s12] sm:$0xff] (%p70_p3)  ;;  %v258_v1 = vld [vmem:[%s6622_s12 + $0x8] sm:$0xff] (%p70_p3)  ;;  %v260_v2 = vld [vmem:[%s6622_s12 + $0x10] sm:$0xff] (%p70_p3)  ;;  %s6627_s13 = scalar_lea.vmem (%p70_p3), [#allocation2], %s6416_s9 }
  0x14   : > { %257 = vst [vmem:[%s6627_s13] sm:$0xff] (%p70_p3), %v256_v0  ;;  %259 = vst [vmem:[%s6627_s13 + $0x8] sm:$0xff] (%p70_p3), %v258_v1  ;;  %v262_v3 = vld [vmem:[%s6622_s12 + $0x18] sm:$0xff] (%p70_p3)  ;;  %v264_v4 = vld [vmem:[%s6622_s12 + $0x20] sm:$0xff] (%p70_p3) }
  0x15   : > { %261 = vst [vmem:[%s6627_s13 + $0x10] sm:$0xff] (%p70_p3), %v260_v2  ;;  %v266_v5 = vld [vmem:[%s6622_s12 + $0x28] sm:$0xff] (%p70_p3)  ;;  %263 = vst [vmem:[%s6627_s13 + $0x18] sm:$0xff] (%p70_p3), %v262_v3  ;;  %v268_v6 = vld [vmem:[%s6622_s12 + $0x30] sm:$0xff] (%p70_p3) }
  0x16   : > { %265 = vst [vmem:[%s6627_s13 + $0x20] sm:$0xff] %v264_v4  ;;  %267 = vst [vmem:[%s6627_s13 + $0x28] sm:$0xff] %v266_v5  ;;  %v270_v7 = vld [vmem:[%s6622_s12 + $0x38] sm:$0xff]  ;;  %v272_v8 = vld [vmem:[%s6622_s12 + $0x40] sm:$0xff] }
  0x17   : > { %269 = vst [vmem:[%s6627_s13 + $0x30] sm:$0xff] %v268_v6  ;;  %271 = vst [vmem:[%s6627_s13 + $0x38] sm:$0xff] %v270_v7  ;;  %v274_v9 = vld [vmem:[%s6622_s12 + $0x48] sm:$0xff]  ;;  %v276_v10 = vld [vmem:[%s6622_s12 + $0x50] sm:$0xff] }
  0x18   : > { %273 = vst [vmem:[%s6627_s13 + $0x40] sm:$0xff] %v272_v8  ;;  %v278_v11 = vld [vmem:[%s6622_s12 + $0x58] sm:$0xff]  ;;  %275 = vst [vmem:[%s6627_s13 + $0x48] sm:$0xff] %v274_v9  ;;  %v280_v12 = vld [vmem:[%s6622_s12 + $0xc0] sm:$0xff] }
  0x19   : > { %277 = vst [vmem:[%s6627_s13 + $0x50] sm:$0xff] %v276_v10  ;;  %279 = vst [vmem:[%s6627_s13 + $0x58] sm:$0xff] %v278_v11  ;;  %v282_v13 = vld [vmem:[%s6622_s12 + $0xc8] sm:$0xff]  ;;  %v284_v14 = vld [vmem:[%s6622_s12 + $0xd0] sm:$0xff] }
  0x1a   : > { %281 = vst [vmem:[%s6627_s13 + $0x60] sm:$0xff] %v280_v12  ;;  %283 = vst [vmem:[%s6627_s13 + $0x68] sm:$0xff] %v282_v13  ;;  %v286_v15 = vld [vmem:[%s6622_s12 + $0xd8] sm:$0xff]  ;;  %v288_v16 = vld [vmem:[%s6622_s12 + $0xe0] sm:$0xff] }
  0x1b   : > { %285 = vst [vmem:[%s6627_s13 + $0x70] sm:$0xff] %v284_v14  ;;  %v290_v17 = vld [vmem:[%s6622_s12 + $0xe8] sm:$0xff]  ;;  %287 = vst [vmem:[%s6627_s13 + $0x78] sm:$0xff] %v286_v15  ;;  %v292_v18 = vld [vmem:[%s6622_s12 + $0xf0] sm:$0xff] }
  0x1c   : > { %289 = vst [vmem:[%s6627_s13 + $0x80] sm:$0xff] %v288_v16  ;;  %291 = vst [vmem:[%s6627_s13 + $0x88] sm:$0xff] %v290_v17  ;;  %v294_v19 = vld [vmem:[%s6622_s12 + $0xf8] sm:$0xff]  ;;  %v296_v20 = vld [vmem:[%s6622_s12 + $0x100] sm:$0xff] }
  0x1d   : > { %293 = vst [vmem:[%s6627_s13 + $0x90] sm:$0xff] %v292_v18  ;;  %295 = vst [vmem:[%s6627_s13 + $0x98] sm:$0xff] %v294_v19  ;;  %v298_v21 = vld [vmem:[%s6622_s12 + $0x108] sm:$0xff]  ;;  %v300_v22 = vld [vmem:[%s6622_s12 + $0x110] sm:$0xff] }
  0x1e   : > { %297 = vst [vmem:[%s6627_s13 + $0xa0] sm:$0xff] %v296_v20  ;;  %v302_v23 = vld [vmem:[%s6622_s12 + $0x118] sm:$0xff]  ;;  %299 = vst [vmem:[%s6627_s13 + $0xa8] sm:$0xff] %v298_v21  ;;  %v304_v24 = vld [vmem:[%s6622_s12 + $0x180] sm:$0xff] }
  0x1f   : > { %301 = vst [vmem:[%s6627_s13 + $0xb0] sm:$0xff] %v300_v22  ;;  %303 = vst [vmem:[%s6627_s13 + $0xb8] sm:$0xff] %v302_v23  ;;  %v306_v25 = vld [vmem:[%s6622_s12 + $0x188] sm:$0xff]  ;;  %v308_v26 = vld [vmem:[%s6622_s12 + $0x190] sm:$0xff] }
  0x20   : > { %305 = vst [vmem:[%s6627_s13 + $0xc0] sm:$0xff] %v304_v24  ;;  %307 = vst [vmem:[%s6627_s13 + $0xc8] sm:$0xff] %v306_v25  ;;  %v310_v27 = vld [vmem:[%s6622_s12 + $0x198] sm:$0xff]  ;;  %v312_v28 = vld [vmem:[%s6622_s12 + $0x1a0] sm:$0xff] }
  0x21   : > { %309 = vst [vmem:[%s6627_s13 + $0xd0] sm:$0xff] %v308_v26  ;;  %v314_v29 = vld [vmem:[%s6622_s12 + $0x1a8] sm:$0xff]  ;;  %311 = vst [vmem:[%s6627_s13 + $0xd8] sm:$0xff] %v310_v27  ;;  %v316_v30 = vld [vmem:[%s6622_s12 + $0x1b0] sm:$0xff] }
  0x22   : > { %313 = vst [vmem:[%s6627_s13 + $0xe0] sm:$0xff] %v312_v28  ;;  %315 = vst [vmem:[%s6627_s13 + $0xe8] sm:$0xff] %v314_v29  ;;  %v318_v31 = vld [vmem:[%s6622_s12 + $0x1b8] sm:$0xff]  ;;  %v320_v32 = vld [vmem:[%s6622_s12 + $0x1c0] sm:$0xff] }
  0x23   : > { %317 = vst [vmem:[%s6627_s13 + $0xf0] sm:$0xff] %v316_v30  ;;  %319 = vst [vmem:[%s6627_s13 + $0xf8] sm:$0xff] %v318_v31  ;;  %v322_v33 = vld [vmem:[%s6622_s12 + $0x1c8] sm:$0xff]  ;;  %v324_v34 = vld [vmem:[%s6622_s12 + $0x1d0] sm:$0xff] }
  0x24   : > { %321 = vst [vmem:[%s6627_s13 + $0x100] sm:$0xff] %v320_v32  ;;  %v326_v35 = vld [vmem:[%s6622_s12 + $0x1d8] sm:$0xff]  ;;  %323 = vst [vmem:[%s6627_s13 + $0x108] sm:$0xff] %v322_v33 }
  0x25   : > { %325 = vst [vmem:[%s6627_s13 + $0x110] sm:$0xff] %v324_v34  ;;  %327 = vst [vmem:[%s6627_s13 + $0x118] sm:$0xff] %v326_v35 }
  0x26 PF: > { %p6071_p6 = scmp.ge.s32.totalorder %s6538_s25, 1  ;;  %p358_p7 = scmp.lt.s32.totalorder %s6538_s25, 3 }
  0x28   : > { %p359_p8 = pnand %p6071_p6, %p358_p7 }
  0x29   : > { %s365_s14 = sand.u32 (!%p359_p8), 1, %s6522_s21   ;;  %s408_s15 = smul.u32 (!%p359_p8), 12, %s6530_s23 }
  0x2a   : > { %362 = sbr.rel (%p359_p8) target bundleno = 2115 (0x843), region = 63  ;;  %p6073_p11 = scmp.ne.s32.totalorder (!%p359_p8), %s6530_s23, 0 }
  0x2b   : > { %s6417_s16 = smul.u32 (!%p359_p8), 288, %s365_s14  ;;  %p409_p9 = scmp.lt.s32.totalorder (!%p359_p8), %s408_s15, 23 }
  0x2c   : > { %s417_s17 = smul.u32 (!%p359_p8), 48, %s6530_s23 }
  0x2d   : > { %s6713_s9 = scalar_lea.vmem (!%p359_p8), [#allocation2], %s6417_s16 }
  0x2e   : > { %p418_p10 = scmp.lt.s32.totalorder (!%p359_p8), %s417_s17, 95 }
  0x31   : > { %s7929_s15 = smov (!%p409_p9, %s408_s15), 23  ;;  %s7931_s17 = smov (!%p418_p10, %s417_s17), 95 }
  0x32   : > { %s6706_s20 = scalar_lea.vmem %s7916_s2, %s7929_s15  ;;  %s6418_s28 = smul.u32 136, %s7931_s17  ;;  %vm439_vm0 = vcmask (!%p6073_p11), 257024   ;;  %v6540_v36 = vmov (!%p6073_p11), 0.0  }
  0x33   : > { %430 = sbr.rel (%p6073_p11) target bundleno = 58 (0x3a), region = 71  ;;  %431 = vst [vmem:[#allocation3] sm:$0xff] (!%p6073_p11), %v6540_v36  ;;  %432 = vst [vmem:[#allocation3 + $0x8] sm:$0xff] (!%p6073_p11), %v6540_v36 }
  0x34   : > { %s6711_s8 = scalar_lea.vmem %s7917_s3, %s6418_s28  ;;  %433 = vst [vmem:[#allocation3 + $0x10] sm:$0xff] (!%p6073_p11), %v6540_v36  ;;  %434 = vst [vmem:[#allocation3 + $0x18] sm:$0xff] (!%p6073_p11), %v6540_v36 }
  0x35   : > { %435 = vst [vmem:[#allocation3 + $0x20] sm:$0xff] (!%p6073_p11), %v6540_v36  ;;  %436 = vst [vmem:[#allocation3 + $0x28] sm:$0xff] (!%p6073_p11), %v6540_v36 }
  0x36   : > { %437 = vst [vmem:[#allocation3 + $0x30] sm:$0xff] (!%p6073_p11), %v6540_v36  ;;  %438 = vst [vmem:[#allocation3 + $0x38] sm:$0xff] (!%p6073_p11), %v6540_v36 }
  0x37   : > { %440 = vst.msk [vmem:[#allocation3 + $0x40] sm:$0xf] (!%p6073_p11), %vm439_vm0, %v6540_v36 }
  0x3a PF: > { %v443_v37 = vld [vmem:[%s6713_s9 + $0x8] sm:$0xff]  ;;  %v442_v39 = vld [vmem:[%s6713_s9] sm:$0xff]  ;;  %v6541_v42 = vmov 0.0   ;;  %vm546_vm1 = vcmask 1046528   ;;  %v445_v45 = vld [vmem:[%s6713_s9 + $0x18] sm:$0xff]  ;;  %vm542_vm2 = vcmask 187392  }
  0x3b   : > { %v455_v38 = vld [vmem:[%s6713_s9 + $0x68] sm:$0xff]  ;;  %v454_v41 = vld [vmem:[%s6713_s9 + $0x60] sm:$0xff]  ;;  %647 = vmatprep.mubr.f32.mxu0 %v6541_v42  ;;  %718 = vmatprep.mubr.f32.mxu1 %v6541_v42  ;;  %v457_v46 = vld [vmem:[%s6713_s9 + $0x78] sm:$0xff]  ;;  %vm5747_vm3 = vcmask 257024   ;;  %p6092_p12 = scmp.ne.s32.totalorder %s6530_s23, 1 }
  0x3c   : > { %v6232_v40 = vpack.c.bf16 %v455_v38, %v443_v37  ;;  %v6234_v43 = vpack.c.bf16 %v454_v41, %v442_v39  ;;  %v467_v44 = vld [vmem:[%s6713_s9 + $0xc8] sm:$0x7f]  ;;  %v6236_v47 = vpack.c.bf16 %v457_v46, %v445_v45  ;;  %v444_v48 = vld [vmem:[%s6713_s9 + $0x10] sm:$0xff]  ;;  %v469_v51 = vld [vmem:[%s6713_s9 + $0xd8] sm:$0x7f] }
  0x3d   : > { %v456_v49 = vld [vmem:[%s6713_s9 + $0x70] sm:$0xff]  ;;  %v447_v52 = vld [vmem:[%s6713_s9 + $0x28] sm:$0xff]  ;;  %v466_v54 = vld [vmem:[%s6713_s9 + $0xc0] sm:$0x7f] }
  0x3e   : > { %6233 = vmatprep.subr.bf16.mxu0 %v6232_v40  ;;  %v6238_v50 = vpack.c.bf16 %v456_v49, %v444_v48  ;;  %v459_v53 = vld [vmem:[%s6713_s9 + $0x88] sm:$0xff]  ;;  %6237 = vmatprep.subr.bf16.mxu1 %v6236_v47  ;;  %v446_v56 = vld [vmem:[%s6713_s9 + $0x20] sm:$0xff]  ;;  %v449_v60 = vld [vmem:[%s6713_s9 + $0x38] sm:$0xff] }
  0x3f   : > { %6235 = vmatpush1.bf16.msra.mxu0 %v6234_v43  ;;  %v6240_v55 = vpack.c.bf16 %v459_v53, %v447_v52  ;;  %v458_v57 = vld [vmem:[%s6713_s9 + $0x80] sm:$0xff]  ;;  %v461_v61 = vld [vmem:[%s6713_s9 + $0x98] sm:$0xff]  ;;  %v468_v62 = vld [vmem:[%s6713_s9 + $0xd0] sm:$0x7f] }
  0x40   : > { %6074 = vmatprep.subr.msk.mxu0 %vm546_vm1, %v467_v44  ;;  %v6737_v58 = vld [vmem:[%s7914_s0] sm:$0xf]  ;;  %6239 = vmatpush1.bf16.msra.mxu1 %v6238_v50  ;;  %v6242_v59 = vpack.c.bf16 %v458_v57, %v446_v56  ;;  %v448_v63 = vld [vmem:[%s6713_s9 + $0x30] sm:$0xff]  ;;  %v471_v1 = vld [vmem:[%s6713_s9 + $0xe8] sm:$0x7f]  ;;  %v6244_v2 = vpack.c.bf16 %v461_v61, %v449_v60 }
  0x41   : > { %6077 = vmatprep.subr.msk.mxu1 %vm546_vm1, %v469_v51  ;;  %v460_v0 = vld [vmem:[%s6713_s9 + $0x90] sm:$0xff]  ;;  %v451_v3 = vld [vmem:[%s6713_s9 + $0x48] sm:$0xff]  ;;  %v450_v6 = vld [vmem:[%s6713_s9 + $0x40] sm:$0xff] }
  0x42   : > { %v463_v4 = vld [vmem:[%s6713_s9 + $0xa8] sm:$0xff]  ;;  %v6246_v5 = vpack.c.bf16 %v460_v0, %v448_v63  ;;  %v470_v7 = vld [vmem:[%s6713_s9 + $0xe0] sm:$0x7f]  ;;  %v473_v9 = vld [vmem:[%s6713_s9 + $0xf8] sm:$0x7f] }
  0x43   : > { %6075 = vmatpush1.msk.msra.mxu0 %vm546_vm1, %v466_v54  ;;  %v462_v8 = vld [vmem:[%s6713_s9 + $0xa0] sm:$0xff]  ;;  %v6248_v10 = vpack.c.bf16 %v463_v4, %v451_v3  ;;  %v453_v11 = vld [vmem:[%s6713_s9 + $0x58] sm:$0xff]  ;;  %v452_v14 = vld [vmem:[%s6713_s9 + $0x50] sm:$0xff] }
  0x44   : > { %6076 = vmatmul.mubr.msk.f32.vlgmr.msra.gmra.mrb[0].mxu0 %vm542_vm2, %v6737_v58  ;;  %6241 = vmatprep.subr.bf16.mxu0 %v6240_v55  ;;  %v465_v12 = vld [vmem:[%s6713_s9 + $0xb8] sm:$0xff]  ;;  %v6250_v13 = vpack.c.bf16 %v462_v8, %v450_v6  ;;  %v464_v15 = vld [vmem:[%s6713_s9 + $0xb0] sm:$0xff]  ;;  %v475_v18 = vld [vmem:[%s6713_s9 + $0x108] sm:$0x7f] }
  0x45   : > { %6078 = vmatpush1.msk.msra.mxu1 %vm546_vm1, %v468_v62  ;;  %6243 = vmatpush1.bf16.msra.mxu0 %v6242_v59  ;;  %v472_v16 = vld [vmem:[%s6713_s9 + $0xf0] sm:$0x7f]  ;;  %v6252_v17 = vpack.c.bf16 %v465_v12, %v453_v11  ;;  %v1043_v19 = vld [vmem:[%s6711_s8 + $0x8] sm:$0xff]  ;;  %v6254_v20 = vpack.c.bf16 %v464_v15, %v452_v14  ;;  %v1042_v21 = vld [vmem:[%s6711_s8] sm:$0xff] }
  0x46   : > { %6079 = vmatmul.mubr.msk.f32.vlgmr.msra.gmra.mrb[0].mxu1 %vm542_vm2, %v6737_v58  ;;  %6080 = vmatprep.subr.msk.mxu0 %vm546_vm1, %v471_v1  ;;  %v477_v22 = vld [vmem:[%s6713_s9 + $0x118] sm:$0x7f]  ;;  %v474_v23 = vld [vmem:[%s6713_s9 + $0x100] sm:$0x7f]  ;;  %v1859_v24 = vunpack.c.l.s8.bf16 %v1043_v19  ;;  %v1858_v26 = vunpack.c.l.s8.bf16 %v1042_v21  ;;  %v1044_v27 = vld [vmem:[%s6711_s8 + $0x10] sm:$0xff]  ;;  %v1876_v28 = vunpack.c.h.s8.bf16 %v1043_v19  ;;  %v1875_v34 = vunpack.c.h.s8.bf16 %v1042_v21 }
  0x47   : > { %789 = vmatprep.mubr.f32.mxu0 %v6541_v42  ;;  %6245 = vmatprep.subr.bf16.mxu1 %v6244_v2  ;;  %v1045_v25 = vld [vmem:[%s6711_s8 + $0x18] sm:$0xff]  ;;  %v476_v29 = vld [vmem:[%s6713_s9 + $0x110] sm:$0x7f]  ;;  %v1860_v32 = vunpack.c.l.s8.bf16 %v1044_v27  ;;  %v1062_v36 = vld [vmem:[%s6711_s8 + $0xa0] sm:$0xff]  ;;  %v1877_v38 = vunpack.c.h.s8.bf16 %v1044_v27 }
  0x48   : > { %6247 = vmatpush1.bf16.msra.mxu1 %v6246_v5  ;;  %860 = vmatprep.mubr.f32.mxu1 %v6541_v42  ;;  %v1861_v30 = vunpack.c.l.s8.bf16 %v1045_v25  ;;  %v1060_v31 = vld [vmem:[%s6711_s8 + $0x90] sm:$0xff]  ;;  %v1878_v33 = vunpack.c.h.s8.bf16 %v1045_v25  ;;  %v1059_v37 = vld [vmem:[%s6711_s8 + $0x88] sm:$0xff]  ;;  %v1895_v39 = vunpack.c.l.s8.bf16 %v1062_v36  ;;  %v1061_v41 = vld [vmem:[%s6711_s8 + $0x98] sm:$0xff]  ;;  %v1912_v45 = vunpack.c.h.s8.bf16 %v1062_v36 }
  0x49   : > { %6081 = vmatpush1.msk.msra.mxu0 %vm546_vm1, %v470_v7  ;;  %6083 = vmatprep.subr.msk.mxu1 %vm546_vm1, %v473_v9  ;;  %v1893_v35 = vunpack.c.l.s8.bf16 %v1060_v31  ;;  %v1892_v40 = vunpack.c.l.s8.bf16 %v1059_v37  ;;  %v1077_v43 = vld [vmem:[%s6711_s8 + $0x118] sm:$0xff]  ;;  %v1894_v44 = vunpack.c.l.s8.bf16 %v1061_v41  ;;  %v1909_v46 = vunpack.c.h.s8.bf16 %v1059_v37  ;;  %v1079_v48 = vld [vmem:[%s6711_s8 + $0x128] sm:$0xff]  ;;  %v1076_v49 = vld [vmem:[%s6711_s8 + $0x110] sm:$0xff] }
  0x4a   : > { %6082 = vmatmul.mubr.msk.f32.vlgmr.msra.gmra.mrb[2].mxu0 %vm542_vm2, %v6737_v58  ;;  %6249 = vmatprep.subr.bf16.mxu0 %v6248_v10  ;;  %v1927_v47 = vunpack.c.l.s8.bf16 %v1077_v43  ;;  %v1911_v50 = vunpack.c.h.s8.bf16 %v1061_v41  ;;  %v1929_v51 = vunpack.c.l.s8.bf16 %v1079_v48  ;;  %v1926_v52 = vunpack.c.l.s8.bf16 %v1076_v49  ;;  %v1078_v53 = vld [vmem:[%s6711_s8 + $0x120] sm:$0xff]  ;;  %v1096_v60 = vld [vmem:[%s6711_s8 + $0x1b0] sm:$0xff]  ;;  %v1093_v61 = vld [vmem:[%s6711_s8 + $0x198] sm:$0xff] }
  0x4b   : > { %6251 = vmatpush1.bf16.msra.mxu0 %v6250_v13  ;;  %931 = vmatprep.mubr.f32.mxu0 %v6541_v42  ;;  %v1944_v54 = vunpack.c.h.s8.bf16 %v1077_v43  ;;  %v1094_v55 = vld [vmem:[%s6711_s8 + $0x1a0] sm:$0xff]  ;;  %v1928_v56 = vunpack.c.l.s8.bf16 %v1078_v53  ;;  %v1946_v57 = vunpack.c.h.s8.bf16 %v1079_v48  ;;  %v1945_v62 = vunpack.c.h.s8.bf16 %v1078_v53  ;;  %v1095_v1 = vld [vmem:[%s6711_s8 + $0x1a8] sm:$0xff]  ;;  %v1113_v8 = vld [vmem:[%s6711_s8 + $0x238] sm:$0xff] }
  0x4c   : > { %6084 = vmatpush1.msk.msra.mxu1 %vm546_vm1, %v472_v16  ;;  %6086 = vmatprep.subr.msk.mxu0 %vm546_vm1, %v475_v18  ;;  %v1961_v59 = vunpack.c.l.s8.bf16 %v1094_v55  ;;  %v1963_v63 = vunpack.c.l.s8.bf16 %v1096_v60  ;;  %v1960_v0 = vunpack.c.l.s8.bf16 %v1093_v61  ;;  %v1978_v2 = vunpack.c.h.s8.bf16 %v1094_v55  ;;  %v1111_v3 = vld [vmem:[%s6711_s8 + $0x228] sm:$0xff]  ;;  %v1110_v9 = vld [vmem:[%s6711_s8 + $0x220] sm:$0xff]  ;;  %v1112_v13 = vld [vmem:[%s6711_s8 + $0x230] sm:$0xff] }
  0x4d   : > { %6253 = vmatprep.subr.bf16.mxu1 %v6252_v17  ;;  %6085 = vmatmul.mubr.msk.f32.vlgmr.msra.gmra.mrb[2].mxu1 %vm542_vm2, %v6737_v58  ;;  %v1962_v4 = vunpack.c.l.s8.bf16 %v1095_v1  ;;  %v1980_v5 = vunpack.c.h.s8.bf16 %v1096_v60  ;;  %v1977_v6 = vunpack.c.h.s8.bf16 %v1093_v61  ;;  %v1995_v7 = vunpack.c.l.s8.bf16 %v1111_v3  ;;  %v1128_v15 = vld [vmem:[%s6711_s8 + $0x2b0] sm:$0xff]  ;;  %v1127_v21 = vld [vmem:[%s6711_s8 + $0x2a8] sm:$0xff]  ;;  %v1129_v25 = vld [vmem:[%s6711_s8 + $0x2b8] sm:$0xff] }
  0x4e   : > { %6255 = vmatpush1.bf16.msra.mxu1 %v6254_v20  ;;  %1002 = vmatprep.mubr.f32.mxu1 %v6541_v42  ;;  %v1910_v42 = vunpack.c.h.s8.bf16 %v1060_v31  ;;  %v1979_v10 = vunpack.c.h.s8.bf16 %v1095_v1  ;;  %v1997_v11 = vunpack.c.l.s8.bf16 %v1113_v8  ;;  %v1994_v12 = vunpack.c.l.s8.bf16 %v1110_v9  ;;  %v1130_v20 = vld [vmem:[%s6711_s8 + $0x2c0] sm:$0xff]  ;;  %v1145_v27 = vld [vmem:[%s6711_s8 + $0x338] sm:$0xff]  ;;  %v1163_v48 = vld [vmem:[%s6711_s8 + $0x3c8] sm:$0xff] }
  0x4f   : > { %6089 = vmatprep.subr.msk.mxu1 %vm546_vm1, %v477_v22  ;;  %6087 = vmatpush1.msk.msra.mxu0 %vm546_vm1, %v474_v23  ;;  %v2012_v14 = vunpack.c.h.s8.bf16 %v1111_v3  ;;  %v1996_v16 = vunpack.c.l.s8.bf16 %v1112_v13  ;;  %v2014_v17 = vunpack.c.h.s8.bf16 %v1113_v8  ;;  %v2011_v18 = vunpack.c.h.s8.bf16 %v1110_v9  ;;  %v1146_v37 = vld [vmem:[%s6711_s8 + $0x340] sm:$0xff]  ;;  %v1179_v55 = vld [vmem:[%s6711_s8 + $0x448] sm:$0xff] }
  0x50   : > { %6088 = vmatmul.mubr.msk.f32.vlgmr.msra.gmra.mrb[4].mxu0 %vm542_vm2, %v6737_v58  ;;  %3490 = vmatprep.subr.bf16.mxu0 %v1859_v24  ;;  %v2029_v19 = vunpack.c.l.s8.bf16 %v1128_v15  ;;  %v2013_v22 = vunpack.c.h.s8.bf16 %v1112_v13  ;;  %v2031_v23 = vunpack.c.l.s8.bf16 %v1130_v20  ;;  %v2028_v24 = vunpack.c.l.s8.bf16 %v1127_v21  ;;  %v1162_v43 = vld [vmem:[%s6711_s8 + $0x3c0] sm:$0xff] }
  0x51   : > { %3491 = vmatpush1.bf16.msra.mxu0 %v1858_v26  ;;  %v2046_v26 = vunpack.c.h.s8.bf16 %v1128_v15  ;;  %v2063_v31 = vunpack.c.l.s8.bf16 %v1145_v27 }
  0x52   : > { %6090 = vmatpush1.msk.msra.mxu1 %vm546_vm1, %v476_v29  ;;  %3492 = vmatprep.subr.bf16.mxu0 %v1876_v28  ;;  %v2030_v28 = vunpack.c.l.s8.bf16 %v1129_v25  ;;  %v2048_v29 = vunpack.c.h.s8.bf16 %v1130_v20 }
  0x53   : > { %3736 = vmatprep.subr.bf16.mxu1 %v1861_v30  ;;  %6091 = vmatmul.mubr.msk.f32.vlgmr.msra.gmra.mrb[4].mxu1 %vm542_vm2, %v6737_v58  ;;  %v1943_v58 = vunpack.c.h.s8.bf16 %v1076_v49  ;;  %v2045_v30 = vunpack.c.h.s8.bf16 %v1127_v21  ;;  %v2148_v21 = vunpack.c.h.s8.bf16 %v1179_v55 }
  0x54   : > { %3737 = vmatpush1.bf16.msra.mxu1 %v1860_v32  ;;  %v1147_v32 = vld [vmem:[%s6711_s8 + $0x348] sm:$0xff] }
  0x55   : > { %3738 = vmatprep.subr.bf16.mxu1 %v1878_v33  ;;  %3493 = vmatpush1.bf16.msra.mxu0 %v1875_v34  ;;  %v1144_v33 = vld [vmem:[%s6711_s8 + $0x330] sm:$0xff]  ;;  %v2047_v34 = vunpack.c.h.s8.bf16 %v1129_v25  ;;  %v1198_v25 = vld [vmem:[%s6711_s8 + $0x4e0] sm:$0xff] }
  0x56   : > { %3494 = vmatprep.subr.bf16.mxu0 %v1893_v35  ;;  %v2065_v35 = vunpack.c.l.s8.bf16 %v1147_v32  ;;  %v2062_v36 = vunpack.c.l.s8.bf16 %v1144_v33  ;;  %v2079_v41 = vunpack.c.h.s8.bf16 %v1144_v33 }
  0x58   : > { %3739 = vmatpush1.bf16.msra.mxu1 %v1877_v38  ;;  %v2080_v38 = vunpack.c.h.s8.bf16 %v1145_v27 }
  0x59   : > { %3740 = vmatprep.subr.bf16.mxu1 %v1895_v39  ;;  %3495 = vmatpush1.bf16.msra.mxu0 %v1892_v40  ;;  %v2064_v39 = vunpack.c.l.s8.bf16 %v1146_v37  ;;  %v2082_v40 = vunpack.c.h.s8.bf16 %v1147_v32  ;;  %v1197_v32 = vld [vmem:[%s6711_s8 + $0x4d8] sm:$0xff] }
  0x5a   : > { %3496 = vmatprep.subr.bf16.mxu0 %v1910_v42  ;;  %v2081_v42 = vunpack.c.h.s8.bf16 %v1146_v37  ;;  %v1213_v37 = vld [vmem:[%s6711_s8 + $0x558] sm:$0xff] }
  0x5c   : > { %3741 = vmatpush1.bf16.msra.mxu1 %v1894_v44  ;;  %v1164_v44 = vld [vmem:[%s6711_s8 + $0x3d0] sm:$0xff] }
  0x5d   : > { %3742 = vmatprep.subr.bf16.mxu1 %v1912_v45  ;;  %3497 = vmatpush1.bf16.msra.mxu0 %v1909_v46  ;;  %v2097_v45 = vunpack.c.l.s8.bf16 %v1162_v43  ;;  %v2099_v46 = vunpack.c.l.s8.bf16 %v1164_v44 }
  0x5e   : > { %3498 = vmatprep.subr.bf16.mxu0 %v1927_v47  ;;  %v1161_v47 = vld [vmem:[%s6711_s8 + $0x3b8] sm:$0xff] }
  0x5f   : > { %v2096_v49 = vunpack.c.l.s8.bf16 %v1161_v47  ;;  %v2113_v53 = vunpack.c.h.s8.bf16 %v1161_v47 }
  0x60   : > { %3743 = vmatpush1.bf16.msra.mxu1 %v1911_v50  ;;  %v2098_v50 = vunpack.c.l.s8.bf16 %v1163_v48 }
  0x61   : > { %3744 = vmatprep.subr.bf16.mxu1 %v1929_v51  ;;  %3499 = vmatpush1.bf16.msra.mxu0 %v1926_v52  ;;  %v2114_v51 = vunpack.c.h.s8.bf16 %v1162_v43  ;;  %v2116_v52 = vunpack.c.h.s8.bf16 %v1164_v44  ;;  %v1212_v43 = vld [vmem:[%s6711_s8 + $0x550] sm:$0xff]  ;;  %v1214_v44 = vld [vmem:[%s6711_s8 + $0x560] sm:$0xff] }
  0x62   : > { %3500 = vmatprep.subr.bf16.mxu0 %v1944_v54  ;;  %v2115_v54 = vunpack.c.h.s8.bf16 %v1163_v48  ;;  %v2216_v48 = vunpack.c.h.s8.bf16 %v1213_v37 }
  0x64   : > { %3745 = vmatpush1.bf16.msra.mxu1 %v1928_v56  ;;  %v1181_v56 = vld [vmem:[%s6711_s8 + $0x458] sm:$0xff] }
  0x65   : > { %3746 = vmatprep.subr.bf16.mxu1 %v1946_v57  ;;  %3501 = vmatpush1.bf16.msra.mxu0 %v1943_v58  ;;  %v2131_v57 = vunpack.c.l.s8.bf16 %v1179_v55  ;;  %v2133_v58 = vunpack.c.l.s8.bf16 %v1181_v56  ;;  %v2217_v55 = vunpack.c.h.s8.bf16 %v1214_v44 }
  0x66   : > { %3502 = vmatprep.subr.bf16.mxu0 %v1961_v59  ;;  %v482_v59 = vlaneseq }
  0x68   : > { %3747 = vmatpush1.bf16.msra.mxu1 %v1945_v62  ;;  %v6821_v60 = vshrl.u32 %v482_v59, 7  ;;  %v6827_v62 = vld [vmem:[%s6706_s20] sm:$0xff] }
  0x69   : > { %3748 = vmatprep.subr.bf16.mxu1 %v1963_v63  ;;  %3503 = vmatpush1.bf16.msra.mxu0 %v1960_v0 }
  0x6a   : > { %3504 = vmatprep.subr.bf16.mxu0 %v1978_v2  ;;  %v6824_v61 = vsub.s32 0, %v6821_v60  ;;  %v6830_v63 = vsub.s32 1, %v6821_v60  ;;  %v6833_v0 = vsub.s32 3, %v6821_v60 }
  0x6c   : > { %3749 = vmatpush1.bf16.msra.mxu1 %v1962_v4  ;;  %v485_v1 = vrot.slane %v6827_v62, %v6824_v61  ;;  %v489_v2 = vrot.slane %v6827_v62, %v6830_v63  ;;  %v497_v4 = vrot.slane %v6827_v62, %v6833_v0 }
  0x6d   : > { %3750 = vmatprep.subr.bf16.mxu1 %v1980_v5  ;;  %3505 = vmatpush1.bf16.msra.mxu0 %v1977_v6 }
  0x6e   : > { %3506 = vmatprep.subr.bf16.mxu0 %v1995_v7 }
  0x70   : > { %3751 = vmatpush1.bf16.msra.mxu1 %v1979_v10  ;;  %v1178_v10 = vld [vmem:[%s6711_s8 + $0x440] sm:$0xff] }
  0x71   : > { %3752 = vmatprep.subr.bf16.mxu1 %v1997_v11  ;;  %3507 = vmatpush1.bf16.msra.mxu0 %v1994_v12  ;;  %v1180_v11 = vld [vmem:[%s6711_s8 + $0x450] sm:$0xff]  ;;  %v2147_v27 = vunpack.c.h.s8.bf16 %v1178_v10 }
  0x72   : > { %3508 = vmatprep.subr.bf16.mxu0 %v2012_v14 }
  0x74   : > { %3753 = vmatpush1.bf16.msra.mxu1 %v1996_v16  ;;  %v2130_v16 = vunpack.c.l.s8.bf16 %v1178_v10 }
  0x75   : > { %3754 = vmatprep.subr.bf16.mxu1 %v2014_v17  ;;  %3509 = vmatpush1.bf16.msra.mxu0 %v2011_v18  ;;  %v2132_v17 = vunpack.c.l.s8.bf16 %v1180_v11 }
  0x76   : > { %3510 = vmatprep.subr.bf16.mxu0 %v2029_v19 }
  0x78   : > { %3755 = vmatpush1.bf16.msra.mxu1 %v2013_v22  ;;  %v2150_v22 = vunpack.c.h.s8.bf16 %v1181_v56  ;;  %v6879_v56 = vld [vmem:[%s6706_s20 + $0x8] sm:$0xf] }
  0x79   : > { %3756 = vmatprep.subr.bf16.mxu1 %v2031_v23  ;;  %3511 = vmatpush1.bf16.msra.mxu0 %v2028_v24  ;;  %v1196_v24 = vld [vmem:[%s6711_s8 + $0x4d0] sm:$0xff]  ;;  %v529_v10 = vrot.slane %v6879_v56, %v6833_v0 }
  0x7a   : > { %3512 = vmatprep.subr.bf16.mxu0 %v2046_v26 }
  0x7c   : > { %3757 = vmatpush1.bf16.msra.mxu1 %v2030_v28  ;;  %v2149_v28 = vunpack.c.h.s8.bf16 %v1180_v11 }
  0x7d   : > { %3758 = vmatprep.subr.bf16.mxu1 %v2048_v29  ;;  %3513 = vmatpush1.bf16.msra.mxu0 %v2045_v30  ;;  %v2165_v29 = vunpack.c.l.s8.bf16 %v1196_v24  ;;  %v2167_v30 = vunpack.c.l.s8.bf16 %v1198_v25 }
  0x7e   : > { %3514 = vmatprep.subr.bf16.mxu0 %v2063_v31  ;;  %v1195_v31 = vld [vmem:[%s6711_s8 + $0x4c8] sm:$0xff] }
  0x7f   : > { %v2164_v33 = vunpack.c.l.s8.bf16 %v1195_v31 }
  0x80   : > { %3759 = vmatpush1.bf16.msra.mxu1 %v2047_v34  ;;  %v2166_v34 = vunpack.c.l.s8.bf16 %v1197_v32 }
  0x81   : > { %3760 = vmatprep.subr.bf16.mxu1 %v2065_v35  ;;  %3515 = vmatpush1.bf16.msra.mxu0 %v2062_v36  ;;  %v2182_v35 = vunpack.c.h.s8.bf16 %v1196_v24  ;;  %v2184_v36 = vunpack.c.h.s8.bf16 %v1198_v25  ;;  %v1246_v25 = vld [vmem:[%s6711_s8 + $0x660] sm:$0xff] }
  0x82   : > { %3516 = vmatprep.subr.bf16.mxu0 %v2080_v38  ;;  %v1215_v38 = vld [vmem:[%s6711_s8 + $0x568] sm:$0xff] }
  0x84   : > { %3761 = vmatpush1.bf16.msra.mxu1 %v2064_v39  ;;  %v2181_v39 = vunpack.c.h.s8.bf16 %v1195_v31 }
  0x85   : > { %3762 = vmatprep.subr.bf16.mxu1 %v2082_v40  ;;  %3517 = vmatpush1.bf16.msra.mxu0 %v2079_v41  ;;  %v2183_v40 = vunpack.c.h.s8.bf16 %v1197_v32  ;;  %v2199_v41 = vunpack.c.l.s8.bf16 %v1213_v37  ;;  %v1264_v32 = vld [vmem:[%s6711_s8 + $0x6f0] sm:$0xff] }
  0x86   : > { %3518 = vmatprep.subr.bf16.mxu0 %v2097_v45  ;;  %v2198_v45 = vunpack.c.l.s8.bf16 %v1212_v43 }
  0x88   : > { %3763 = vmatpush1.bf16.msra.mxu1 %v2081_v42  ;;  %v2201_v42 = vunpack.c.l.s8.bf16 %v1215_v38 }
  0x89   : > { %3764 = vmatprep.subr.bf16.mxu1 %v2099_v46  ;;  %3519 = vmatpush1.bf16.msra.mxu0 %v2096_v49  ;;  %v2200_v46 = vunpack.c.l.s8.bf16 %v1214_v44  ;;  %v2218_v49 = vunpack.c.h.s8.bf16 %v1215_v38  ;;  %v1263_v38 = vld [vmem:[%s6711_s8 + $0x6e8] sm:$0xff]  ;;  %v1281_v44 = vld [vmem:[%s6711_s8 + $0x778] sm:$0xff] }
  0x8a   : > { %3520 = vmatprep.subr.bf16.mxu0 %v2114_v51  ;;  %v1230_v51 = vld [vmem:[%s6711_s8 + $0x5e0] sm:$0xff] }
  0x8c   : > { %3765 = vmatpush1.bf16.msra.mxu1 %v2098_v50 }
  0x8d   : > { %3766 = vmatprep.subr.bf16.mxu1 %v2116_v52  ;;  %3521 = vmatpush1.bf16.msra.mxu0 %v2113_v53  ;;  %v1232_v52 = vld [vmem:[%s6711_s8 + $0x5f0] sm:$0xff]  ;;  %v6876_v53 = vsub.s32 2, %v6821_v60 }
  0x8e   : > { %3531 = vmatprep.subr.bf16.mxu0 %v2131_v57  ;;  %v2235_v59 = vunpack.c.l.s8.bf16 %v1232_v52 }
  0x90   : > { %3767 = vmatpush1.bf16.msra.mxu1 %v2115_v54  ;;  %v2215_v54 = vunpack.c.h.s8.bf16 %v1212_v43 }
  0x91   : > { %3777 = vmatprep.subr.bf16.mxu1 %v2133_v58  ;;  %v2233_v58 = vunpack.c.l.s8.bf16 %v1230_v51 }
 0x117   : > { %v649_v3 = vpop.f32.mrb[0].mxu0 }
 0x118   : > { %v650_v5 = vadd.f32 %v649_v3, %v485_v1  ;;  %v651_v6 = vpop.f32.mrb[1].mxu0  ;;  %v1229_v1 = vld [vmem:[%s6711_s8 + $0x5d8] sm:$0xff] }
 0x119   : > { %v652_v7 = vadd.f32 %v651_v6, %v489_v2  ;;  %v6841_v8 = vpop.f32.mrb[0].mxu1  ;;  %v1231_v2 = vld [vmem:[%s6711_s8 + $0x5e8] sm:$0xff] }
 0x11a   : > { %v1009_v9 = vmax.f32 %v650_v5, 0.0  ;;  %v722_v12 = vpop.f32.mrb[1].mxu1 }
 0x11b   : > { %v1010_v13 = vmax.f32 %v652_v7, 0.0  ;;  %v723_v14 = vadd.f32 %v722_v12, %v497_v4  ;;  %v525_v4 = vrot.slane %v6879_v56, %v6876_v53  ;;  %v2232_v7 = vunpack.c.l.s8.bf16 %v1229_v1 }
 0x11c   : > { %v6849_v20 = vpack.c.bf16 %v1009_v9, %v1009_v9  ;;  %v2234_v9 = vunpack.c.l.s8.bf16 %v1231_v2  ;;  %v2250_v12 = vunpack.c.h.s8.bf16 %v1230_v51 }
 0x11d   : > { %v6845_v15 = vpack.c.bf16 %v1010_v13, %v1010_v13  ;;  %v1012_v18 = vmax.f32 %v723_v14, 0.0  ;;  %v6847_v19 = vpop.f32.mrb[2].mxu0  ;;  %v2252_v13 = vunpack.c.h.s8.bf16 %v1232_v52  ;;  %v1247_v14 = vld [vmem:[%s6711_s8 + $0x668] sm:$0xff]  ;;  %v1280_v52 = vld [vmem:[%s6711_s8 + $0x770] sm:$0xff] }
 0x11e   : > { %v6851_v23 = vpop.f32.mrb[3].mxu0 }
 0x11f   : > { %3522 = vmatprep.mubr.bf16.mxu0 %v6845_v15  ;;  %3768 = vmatprep.mubr.bf16.mxu1 %v6845_v15  ;;  %v6857_v26 = vpack.c.bf16 %v1012_v18, %v1012_v18  ;;  %v2249_v18 = vunpack.c.h.s8.bf16 %v1229_v1 }
 0x120   : > { %3523 = vmatmul.mubr.bf16.vlgmr.msra.gmra.mrb[8].mxu0 %v6849_v20  ;;  %3769 = vmatmul.mubr.bf16.vlgmr.msra.gmra.mrb[8].mxu1 %v6849_v20  ;;  %v6869_v47 = vpop.f32.mrb[2].mxu1 }
 0x121   : > { %3532 = vmatpush1.bf16.msra.mxu0 %v2130_v16  ;;  %3778 = vmatpush1.bf16.msra.mxu1 %v2132_v17  ;;  %v6871_v50 = vpop.f32.mrb[3].mxu1  ;;  %v1249_v16 = vld [vmem:[%s6711_s8 + $0x678] sm:$0xff] }
 0x122   : > { %3533 = vmatprep.subr.bf16.mxu0 %v2148_v21  ;;  %3779 = vmatprep.subr.bf16.mxu1 %v2150_v22  ;;  %v2251_v21 = vunpack.c.h.s8.bf16 %v1231_v2  ;;  %v2267_v22 = vunpack.c.l.s8.bf16 %v1247_v14  ;;  %v2269_v24 = vunpack.c.l.s8.bf16 %v1249_v16  ;;  %v2286_v31 = vunpack.c.h.s8.bf16 %v1249_v16  ;;  %v1298_v2 = vld [vmem:[%s6711_s8 + $0x800] sm:$0xff] }
 0x123   : > { %3563 = vmatprep.mubr.bf16.mxu0 %v6857_v26  ;;  %3809 = vmatprep.mubr.bf16.mxu1 %v6857_v26  ;;  %v6881_v57 = vpop.f32.mrb[4].mxu0 }
 0x124   : > { %v6885_v3 = vpop.f32.mrb[5].mxu0 }
 0x125   : > { %3534 = vmatpush1.bf16.msra.mxu0 %v2147_v27  ;;  %3780 = vmatpush1.bf16.msra.mxu1 %v2149_v28  ;;  %v1248_v27 = vld [vmem:[%s6711_s8 + $0x670] sm:$0xff]  ;;  %v2266_v28 = vunpack.c.l.s8.bf16 %v1246_v25 }
 0x126   : > { %3535 = vmatprep.subr.bf16.mxu0 %v2165_v29  ;;  %3781 = vmatprep.subr.bf16.mxu1 %v2167_v30  ;;  %v1004_v5 = vpop.f32.mrb[4].mxu1  ;;  %v2268_v29 = vunpack.c.l.s8.bf16 %v1248_v27  ;;  %v2284_v30 = vunpack.c.h.s8.bf16 %v1247_v14  ;;  %v1299_v14 = vld [vmem:[%s6711_s8 + $0x808] sm:$0xff] }
 0x127   : > { %v6889_v6 = vadd.f32 %v1004_v5, %v525_v4  ;;  %v1006_v11 = vpop.f32.mrb[5].mxu1  ;;  %v1300_v4 = vld [vmem:[%s6711_s8 + $0x810] sm:$0xff]  ;;  %v6910_v5 = vsub.s32 5, %v6821_v60 }
 0x128   : > { %v6895_v17 = vadd.f32 %v1006_v11, %v529_v10  ;;  %v2369_v11 = vunpack.c.l.s8.bf16 %v1298_v2 }
 0x129   : > { %3536 = vmatpush1.bf16.msra.mxu0 %v2164_v33  ;;  %3782 = vmatpush1.bf16.msra.mxu1 %v2166_v34  ;;  %v1266_v33 = vld [vmem:[%s6711_s8 + $0x700] sm:$0xff]  ;;  %v2283_v34 = vunpack.c.h.s8.bf16 %v1246_v25  ;;  %v505_v16 = vrot.slane %v6827_v62, %v6910_v5  ;;  %v2388_v25 = vunpack.c.h.s8.bf16 %v1300_v4 }
 0x12a   : > { %3537 = vmatprep.subr.bf16.mxu0 %v2182_v35  ;;  %3783 = vmatprep.subr.bf16.mxu1 %v2184_v36  ;;  %v2285_v35 = vunpack.c.h.s8.bf16 %v1248_v27  ;;  %v2301_v36 = vunpack.c.l.s8.bf16 %v1264_v32  ;;  %v2303_v37 = vunpack.c.l.s8.bf16 %v1266_v33  ;;  %v2320_v43 = vunpack.c.h.s8.bf16 %v1266_v33  ;;  %v1315_v27 = vld [vmem:[%s6711_s8 + $0x888] sm:$0xff] }
 0x12d   : > { %3538 = vmatpush1.bf16.msra.mxu0 %v2181_v39  ;;  %3784 = vmatpush1.bf16.msra.mxu1 %v2183_v40  ;;  %v1265_v39 = vld [vmem:[%s6711_s8 + $0x6f8] sm:$0xff]  ;;  %v2300_v40 = vunpack.c.l.s8.bf16 %v1263_v38 }
 0x12e   : > { %3539 = vmatprep.subr.bf16.mxu0 %v2199_v41  ;;  %3785 = vmatprep.subr.bf16.mxu1 %v2201_v42  ;;  %v2302_v41 = vunpack.c.l.s8.bf16 %v1265_v39  ;;  %v2318_v42 = vunpack.c.h.s8.bf16 %v1264_v32  ;;  %v2387_v32 = vunpack.c.h.s8.bf16 %v1299_v14 }
 0x131   : > { %3540 = vmatpush1.bf16.msra.mxu0 %v2198_v45  ;;  %3786 = vmatpush1.bf16.msra.mxu1 %v2200_v46  ;;  %v1283_v45 = vld [vmem:[%s6711_s8 + $0x788] sm:$0xff]  ;;  %v2317_v46 = vunpack.c.h.s8.bf16 %v1263_v38 }
 0x132   : > { %3541 = vmatprep.subr.bf16.mxu0 %v2216_v48  ;;  %3787 = vmatprep.subr.bf16.mxu1 %v2218_v49  ;;  %v2319_v48 = vunpack.c.h.s8.bf16 %v1265_v39  ;;  %v2335_v49 = vunpack.c.l.s8.bf16 %v1281_v44  ;;  %v2337_v51 = vunpack.c.l.s8.bf16 %v1283_v45  ;;  %v2354_v1 = vunpack.c.h.s8.bf16 %v1283_v45 }
 0x133   : > { %v2420_v39 = vunpack.c.h.s8.bf16 %v1315_v27 }
 0x135   : > { %3542 = vmatpush1.bf16.msra.mxu0 %v2215_v54  ;;  %3788 = vmatpush1.bf16.msra.mxu1 %v2217_v55  ;;  %v1282_v54 = vld [vmem:[%s6711_s8 + $0x780] sm:$0xff]  ;;  %v2334_v55 = vunpack.c.l.s8.bf16 %v1280_v52 }
 0x136   : > { %3543 = vmatprep.subr.bf16.mxu0 %v2233_v58  ;;  %3789 = vmatprep.subr.bf16.mxu1 %v2235_v59  ;;  %v2336_v58 = vunpack.c.l.s8.bf16 %v1282_v54  ;;  %v2352_v59 = vunpack.c.h.s8.bf16 %v1281_v44  ;;  %v2353_v10 = vunpack.c.h.s8.bf16 %v1282_v54 }
 0x139   : > { %3544 = vmatpush1.bf16.msra.mxu0 %v2232_v7  ;;  %3790 = vmatpush1.bf16.msra.mxu1 %v2234_v9  ;;  %v493_v7 = vrot.slane %v6827_v62, %v6876_v53  ;;  %v2351_v9 = vunpack.c.h.s8.bf16 %v1280_v52 }
 0x13a   : > { %3545 = vmatprep.subr.bf16.mxu0 %v2250_v12  ;;  %3791 = vmatprep.subr.bf16.mxu1 %v2252_v13  ;;  %v2371_v12 = vunpack.c.l.s8.bf16 %v1300_v4  ;;  %v1297_v13 = vld [vmem:[%s6711_s8 + $0x7f8] sm:$0xff] }
 0x13d   : > { %3546 = vmatpush1.bf16.msra.mxu0 %v2249_v18  ;;  %3792 = vmatpush1.bf16.msra.mxu1 %v2251_v21  ;;  %v721_v18 = vadd.f32 %v6841_v8, %v493_v7  ;;  %v2368_v21 = vunpack.c.l.s8.bf16 %v1297_v13  ;;  %v2403_v8 = vunpack.c.l.s8.bf16 %v1315_v27 }
 0x13e   : > { %3547 = vmatprep.subr.bf16.mxu0 %v2267_v22  ;;  %3793 = vmatprep.subr.bf16.mxu1 %v2269_v24  ;;  %v2370_v22 = vunpack.c.l.s8.bf16 %v1299_v14  ;;  %v2386_v24 = vunpack.c.h.s8.bf16 %v1298_v2 }
 0x141   : > { %3548 = vmatpush1.bf16.msra.mxu0 %v2266_v28  ;;  %3794 = vmatpush1.bf16.msra.mxu1 %v2268_v29  ;;  %v1317_v28 = vld [vmem:[%s6711_s8 + $0x898] sm:$0xff]  ;;  %v794_v29 = vadd.f32 %v6851_v23, %v505_v16 }
 0x142   : > { %3549 = vmatprep.subr.bf16.mxu0 %v2284_v30  ;;  %3795 = vmatprep.subr.bf16.mxu1 %v2286_v31  ;;  %v1011_v30 = vmax.f32 %v721_v18, 0.0  ;;  %v2385_v31 = vunpack.c.h.s8.bf16 %v1297_v13  ;;  %v2405_v33 = vunpack.c.l.s8.bf16 %v1317_v28  ;;  %v1366_v18 = vld [vmem:[%s6711_s8 + $0xa20] sm:$0xff] }
 0x145   : > { %3550 = vmatpush1.bf16.msra.mxu0 %v2283_v34  ;;  %3796 = vmatpush1.bf16.msra.mxu1 %v2285_v35  ;;  %v1314_v34 = vld [vmem:[%s6711_s8 + $0x880] sm:$0xff]  ;;  %v1316_v35 = vld [vmem:[%s6711_s8 + $0x890] sm:$0xff] }
 0x146   : > { %3551 = vmatprep.subr.bf16.mxu0 %v2301_v36  ;;  %3797 = vmatprep.subr.bf16.mxu1 %v2303_v37  ;;  %v1014_v36 = vmax.f32 %v794_v29, 0.0  ;;  %v6924_v37 = vpack.c.bf16 %v1011_v30, %v1011_v30  ;;  %v2402_v38 = vunpack.c.l.s8.bf16 %v1314_v34  ;;  %v2404_v23 = vunpack.c.l.s8.bf16 %v1316_v35  ;;  %v1367_v29 = vld [vmem:[%s6711_s8 + $0xa28] sm:$0xff] }
 0x147   : > { %v2419_v44 = vunpack.c.h.s8.bf16 %v1314_v34  ;;  %v2421_v45 = vunpack.c.h.s8.bf16 %v1316_v35  ;;  %v1385_v34 = vld [vmem:[%s6711_s8 + $0xab8] sm:$0xff] }
 0x149   : > { %3552 = vmatpush1.bf16.msra.mxu0 %v2300_v40  ;;  %3798 = vmatpush1.bf16.msra.mxu1 %v2302_v41  ;;  %v2422_v40 = vunpack.c.h.s8.bf16 %v1317_v28  ;;  %v1332_v41 = vld [vmem:[%s6711_s8 + $0x910] sm:$0xff]  ;;  %v1365_v28 = vld [vmem:[%s6711_s8 + $0xa18] sm:$0xff] }
 0x14a   : > { %3553 = vmatprep.subr.bf16.mxu0 %v2318_v42  ;;  %3799 = vmatprep.subr.bf16.mxu1 %v2320_v43  ;;  %v1334_v42 = vld [vmem:[%s6711_s8 + $0x920] sm:$0xff]  ;;  %v6928_v43 = vpack.c.bf16 %v1014_v36, %v1014_v36  ;;  %v2504_v30 = vunpack.c.l.s8.bf16 %v1365_v28  ;;  %v2521_v35 = vunpack.c.h.s8.bf16 %v1365_v28  ;;  %v2523_v36 = vunpack.c.h.s8.bf16 %v1367_v29  ;;  %v1436_v28 = vld [vmem:[%s6711_s8 + $0xc50] sm:$0xff] }
 0x14d   : > { %3554 = vmatpush1.bf16.msra.mxu0 %v2317_v46  ;;  %3800 = vmatpush1.bf16.msra.mxu1 %v2319_v48  ;;  %v2437_v46 = vunpack.c.l.s8.bf16 %v1332_v41  ;;  %v2439_v48 = vunpack.c.l.s8.bf16 %v1334_v42 }
 0x14e   : > { %3555 = vmatprep.subr.bf16.mxu0 %v2335_v49  ;;  %3801 = vmatprep.subr.bf16.mxu1 %v2337_v51  ;;  %v1331_v49 = vld [vmem:[%s6711_s8 + $0x908] sm:$0xff]  ;;  %v1333_v51 = vld [vmem:[%s6711_s8 + $0x918] sm:$0xff] }
 0x14f   : > { %v2436_v52 = vunpack.c.l.s8.bf16 %v1331_v49  ;;  %v2438_v54 = vunpack.c.l.s8.bf16 %v1333_v51  ;;  %v2453_v2 = vunpack.c.h.s8.bf16 %v1331_v49  ;;  %v2455_v4 = vunpack.c.h.s8.bf16 %v1333_v51 }
 0x151   : > { %3556 = vmatpush1.bf16.msra.mxu0 %v2334_v55  ;;  %3802 = vmatpush1.bf16.msra.mxu1 %v2336_v58  ;;  %v2454_v55 = vunpack.c.h.s8.bf16 %v1332_v41  ;;  %v2456_v58 = vunpack.c.h.s8.bf16 %v1334_v42 }
 0x152   : > { %3557 = vmatprep.subr.bf16.mxu0 %v2352_v59  ;;  %3803 = vmatprep.subr.bf16.mxu1 %v2354_v1  ;;  %v1349_v59 = vld [vmem:[%s6711_s8 + $0x998] sm:$0xff]  ;;  %v1351_v1 = vld [vmem:[%s6711_s8 + $0x9a8] sm:$0xff] }
 0x153   : > { %v2471_v7 = vunpack.c.l.s8.bf16 %v1349_v59  ;;  %v2488_v14 = vunpack.c.h.s8.bf16 %v1349_v59  ;;  %v2490_v16 = vunpack.c.h.s8.bf16 %v1351_v1 }
 0x155   : > { %3558 = vmatpush1.bf16.msra.mxu0 %v2351_v9  ;;  %3804 = vmatpush1.bf16.msra.mxu1 %v2353_v10  ;;  %v2473_v9 = vunpack.c.l.s8.bf16 %v1351_v1  ;;  %v1348_v10 = vld [vmem:[%s6711_s8 + $0x990] sm:$0xff] }
 0x156   : > { %3559 = vmatprep.subr.bf16.mxu0 %v2369_v11  ;;  %3805 = vmatprep.subr.bf16.mxu1 %v2371_v12  ;;  %v1350_v11 = vld [vmem:[%s6711_s8 + $0x9a0] sm:$0xff]  ;;  %v2470_v12 = vunpack.c.l.s8.bf16 %v1348_v10 }
 0x157   : > { %v2472_v13 = vunpack.c.l.s8.bf16 %v1350_v11 }
 0x159   : > { %3560 = vmatpush1.bf16.msra.mxu0 %v2368_v21  ;;  %3806 = vmatpush1.bf16.msra.mxu1 %v2370_v22  ;;  %v1368_v21 = vld [vmem:[%s6711_s8 + $0xa30] sm:$0xff]  ;;  %v2487_v22 = vunpack.c.h.s8.bf16 %v1348_v10 }
 0x15a   : > { %3561 = vmatprep.subr.bf16.mxu0 %v2386_v24  ;;  %3807 = vmatprep.subr.bf16.mxu1 %v2388_v25  ;;  %v2489_v24 = vunpack.c.h.s8.bf16 %v1350_v11  ;;  %v2505_v25 = vunpack.c.l.s8.bf16 %v1366_v18  ;;  %v2507_v27 = vunpack.c.l.s8.bf16 %v1368_v21 }
 0x15d   : > { %3562 = vmatpush1.bf16.msra.mxu0 %v2385_v31  ;;  %3808 = vmatpush1.bf16.msra.mxu1 %v2387_v32  ;;  %v2506_v31 = vunpack.c.l.s8.bf16 %v1367_v29  ;;  %v2522_v32 = vunpack.c.h.s8.bf16 %v1366_v18  ;;  %v6957_v18 = vsub.s32 4, %v6821_v60  ;;  %v6962_v29 = vsub.s32 7, %v6821_v60 }
 0x15e   : > { %3572 = vmatprep.subr.bf16.mxu0 %v2403_v8  ;;  %3818 = vmatprep.subr.bf16.mxu1 %v2405_v33  ;;  %v2524_v8 = vunpack.c.h.s8.bf16 %v1368_v21  ;;  %v1383_v33 = vld [vmem:[%s6711_s8 + $0xaa8] sm:$0xff] }
 0x160   : > { %3564 = vmatmul.mubr.bf16.vlgmr.msra.gmra.mrb[8].mxu0 %v6924_v37  ;;  %3810 = vmatmul.mubr.bf16.vlgmr.msra.gmra.mrb[8].mxu1 %v6924_v37 }
 0x161   : > { %3573 = vmatpush1.bf16.msra.mxu0 %v2402_v38  ;;  %3819 = vmatpush1.bf16.msra.mxu1 %v2404_v23  ;;  %v2539_v38 = vunpack.c.l.s8.bf16 %v1383_v33  ;;  %v2541_v23 = vunpack.c.l.s8.bf16 %v1385_v34 }
 0x162   : > { %3574 = vmatprep.subr.bf16.mxu0 %v2420_v39  ;;  %3820 = vmatprep.subr.bf16.mxu1 %v2422_v40  ;;  %v1382_v39 = vld [vmem:[%s6711_s8 + $0xaa0] sm:$0xff]  ;;  %v1384_v40 = vld [vmem:[%s6711_s8 + $0xab0] sm:$0xff] }
 0x163   : > { %3604 = vmatprep.mubr.bf16.mxu0 %v6928_v43  ;;  %3850 = vmatprep.mubr.bf16.mxu1 %v6928_v43  ;;  %v2538_v41 = vunpack.c.l.s8.bf16 %v1382_v39  ;;  %v2540_v42 = vunpack.c.l.s8.bf16 %v1384_v40  ;;  %v2555_v49 = vunpack.c.h.s8.bf16 %v1382_v39  ;;  %v2557_v51 = vunpack.c.h.s8.bf16 %v1384_v40 }
 0x165   : > { %3575 = vmatpush1.bf16.msra.mxu0 %v2419_v44  ;;  %3821 = vmatpush1.bf16.msra.mxu1 %v2421_v45  ;;  %v2556_v44 = vunpack.c.h.s8.bf16 %v1383_v33  ;;  %v2558_v45 = vunpack.c.h.s8.bf16 %v1385_v34  ;;  %v2643_v33 = vunpack.c.l.s8.bf16 %v1436_v28  ;;  %v1433_v34 = vld [vmem:[%s6711_s8 + $0xc38] sm:$0xff] }
 0x166   : > { %3576 = vmatprep.subr.bf16.mxu0 %v2437_v46  ;;  %3822 = vmatprep.subr.bf16.mxu1 %v2439_v48  ;;  %v1400_v46 = vld [vmem:[%s6711_s8 + $0xb30] sm:$0xff]  ;;  %v1402_v48 = vld [vmem:[%s6711_s8 + $0xb40] sm:$0xff] }
 0x169   : > { %3577 = vmatpush1.bf16.msra.mxu0 %v2436_v52  ;;  %3823 = vmatpush1.bf16.msra.mxu1 %v2438_v54  ;;  %v2573_v52 = vunpack.c.l.s8.bf16 %v1400_v46  ;;  %v2575_v54 = vunpack.c.l.s8.bf16 %v1402_v48 }
 0x16a   : > { %3578 = vmatprep.subr.bf16.mxu0 %v2454_v55  ;;  %3824 = vmatprep.subr.bf16.mxu1 %v2456_v58  ;;  %v1399_v55 = vld [vmem:[%s6711_s8 + $0xb28] sm:$0xff]  ;;  %v1401_v58 = vld [vmem:[%s6711_s8 + $0xb38] sm:$0xff] }
 0x16b   : > { %v2572_v59 = vunpack.c.l.s8.bf16 %v1399_v55  ;;  %v2574_v1 = vunpack.c.l.s8.bf16 %v1401_v58  ;;  %v2589_v10 = vunpack.c.h.s8.bf16 %v1399_v55  ;;  %v2591_v11 = vunpack.c.h.s8.bf16 %v1401_v58 }
 0x16d   : > { %3579 = vmatpush1.bf16.msra.mxu0 %v2453_v2  ;;  %3825 = vmatpush1.bf16.msra.mxu1 %v2455_v4  ;;  %v2590_v2 = vunpack.c.h.s8.bf16 %v1400_v46  ;;  %v2592_v4 = vunpack.c.h.s8.bf16 %v1402_v48 }
 0x16e   : > { %3580 = vmatprep.subr.bf16.mxu0 %v2471_v7  ;;  %3826 = vmatprep.subr.bf16.mxu1 %v2473_v9  ;;  %v1417_v7 = vld [vmem:[%s6711_s8 + $0xbb8] sm:$0xff]  ;;  %v1419_v9 = vld [vmem:[%s6711_s8 + $0xbc8] sm:$0xff] }
 0x171   : > { %3581 = vmatpush1.bf16.msra.mxu0 %v2470_v12  ;;  %3827 = vmatpush1.bf16.msra.mxu1 %v2472_v13  ;;  %v2607_v12 = vunpack.c.l.s8.bf16 %v1417_v7  ;;  %v2609_v13 = vunpack.c.l.s8.bf16 %v1419_v9 }
 0x172   : > { %3582 = vmatprep.subr.bf16.mxu0 %v2488_v14  ;;  %3828 = vmatprep.subr.bf16.mxu1 %v2490_v16  ;;  %v1416_v14 = vld [vmem:[%s6711_s8 + $0xbb0] sm:$0xff]  ;;  %v1418_v16 = vld [vmem:[%s6711_s8 + $0xbc0] sm:$0xff] }
 0x173   : > { %v2606_v21 = vunpack.c.l.s8.bf16 %v1416_v14 }
 0x175   : > { %3583 = vmatpush1.bf16.msra.mxu0 %v2487_v22  ;;  %3829 = vmatpush1.bf16.msra.mxu1 %v2489_v24  ;;  %v2608_v22 = vunpack.c.l.s8.bf16 %v1418_v16  ;;  %v2624_v24 = vunpack.c.h.s8.bf16 %v1417_v7 }
 0x176   : > { %3584 = vmatprep.subr.bf16.mxu0 %v2505_v25  ;;  %3830 = vmatprep.subr.bf16.mxu1 %v2507_v27  ;;  %v2626_v25 = vunpack.c.h.s8.bf16 %v1419_v9  ;;  %v1434_v27 = vld [vmem:[%s6711_s8 + $0xc40] sm:$0xff] }
 0x177   : > { %v2658_v40 = vunpack.c.h.s8.bf16 %v1434_v27 }
 0x179   : > { %3585 = vmatpush1.bf16.msra.mxu0 %v2504_v30  ;;  %3831 = vmatpush1.bf16.msra.mxu1 %v2506_v31  ;;  %v501_v30 = vrot.slane %v6827_v62, %v6957_v18  ;;  %v2623_v31 = vunpack.c.h.s8.bf16 %v1416_v14  ;;  %v1469_v14 = vld [vmem:[%s6711_s8 + $0xd58] sm:$0xff] }
 0x17a   : > { %3586 = vmatprep.subr.bf16.mxu0 %v2522_v32  ;;  %3832 = vmatprep.subr.bf16.mxu1 %v2524_v8  ;;  %v2625_v32 = vunpack.c.h.s8.bf16 %v1418_v16  ;;  %v2641_v8 = vunpack.c.l.s8.bf16 %v1434_v27  ;;  %v1487_v27 = vld [vmem:[%s6711_s8 + $0xde8] sm:$0xff] }
 0x17d   : > { %3587 = vmatpush1.bf16.msra.mxu0 %v2521_v35  ;;  %3833 = vmatpush1.bf16.msra.mxu1 %v2523_v36  ;;  %v1435_v35 = vld [vmem:[%s6711_s8 + $0xc48] sm:$0xff]  ;;  %v513_v36 = vrot.slane %v6827_v62, %v6962_v29  ;;  %v2657_v62 = vunpack.c.h.s8.bf16 %v1433_v34 }
 0x17e   : > { %3588 = vmatprep.subr.bf16.mxu0 %v2539_v38  ;;  %3834 = vmatprep.subr.bf16.mxu1 %v2541_v23  ;;  %v792_v38 = vadd.f32 %v6847_v19, %v501_v30  ;;  %v2640_v23 = vunpack.c.l.s8.bf16 %v1433_v34  ;;  %v2642_v39 = vunpack.c.l.s8.bf16 %v1435_v35  ;;  %v2659_v48 = vunpack.c.h.s8.bf16 %v1435_v35 }
 0x17f   : > { %v2727_v30 = vunpack.c.h.s8.bf16 %v1469_v14 }
 0x180   : > { %v1013_v46 = vmax.f32 %v792_v38, 0.0  ;;  %v2762_v38 = vunpack.c.h.s8.bf16 %v1487_v27 }
 0x181   : > { %3589 = vmatpush1.bf16.msra.mxu0 %v2538_v41  ;;  %3835 = vmatpush1.bf16.msra.mxu1 %v2540_v42  ;;  %v2660_v41 = vunpack.c.h.s8.bf16 %v1436_v28  ;;  %v1451_v42 = vld [vmem:[%s6711_s8 + $0xcc8] sm:$0xff] }
 0x182   : > { %3590 = vmatprep.subr.bf16.mxu0 %v2556_v44  ;;  %3836 = vmatprep.subr.bf16.mxu1 %v2558_v45  ;;  %v1453_v44 = vld [vmem:[%s6711_s8 + $0xcd8] sm:$0xff]  ;;  %v865_v45 = vadd.f32 %v6871_v50, %v513_v36  ;;  %v2675_v19 = vunpack.c.l.s8.bf16 %v1451_v42  ;;  %v6976_v55 = vpack.c.bf16 %v1013_v46, %v1013_v46  ;;  %v1503_v46 = vld [vmem:[%s6711_s8 + $0xe68] sm:$0xff] }
 0x185   : > { %3591 = vmatpush1.bf16.msra.mxu0 %v2555_v49  ;;  %3837 = vmatpush1.bf16.msra.mxu1 %v2557_v51  ;;  %v2677_v49 = vunpack.c.l.s8.bf16 %v1453_v44  ;;  %v1450_v51 = vld [vmem:[%s6711_s8 + $0xcc0] sm:$0xff] }
 0x186   : > { %3592 = vmatprep.subr.bf16.mxu0 %v2573_v52  ;;  %3838 = vmatprep.subr.bf16.mxu1 %v2575_v54  ;;  %v1452_v52 = vld [vmem:[%s6711_s8 + $0xcd0] sm:$0xff]  ;;  %v1016_v54 = vmax.f32 %v865_v45, 0.0  ;;  %v2674_v58 = vunpack.c.l.s8.bf16 %v1450_v51  ;;  %v2691_v9 = vunpack.c.h.s8.bf16 %v1450_v51  ;;  %v1501_v45 = vld [vmem:[%s6711_s8 + $0xe58] sm:$0xff]  ;;  %v1519_v51 = vld [vmem:[%s6711_s8 + $0xee8] sm:$0xff] }
 0x187   : > { %v2676_v50 = vunpack.c.l.s8.bf16 %v1452_v52 }
 0x188   : > { %v6980_v7 = vpack.c.bf16 %v1016_v54, %v1016_v54  ;;  %v2793_v54 = vunpack.c.h.s8.bf16 %v1501_v45 }
 0x189   : > { %3593 = vmatpush1.bf16.msra.mxu0 %v2572_v59  ;;  %3839 = vmatpush1.bf16.msra.mxu1 %v2574_v1  ;;  %v2692_v59 = vunpack.c.h.s8.bf16 %v1451_v42  ;;  %v2694_v1 = vunpack.c.h.s8.bf16 %v1453_v44 }
 0x18a   : > { %3594 = vmatprep.subr.bf16.mxu0 %v2590_v2  ;;  %3840 = vmatprep.subr.bf16.mxu1 %v2592_v4  ;;  %v1468_v2 = vld [vmem:[%s6711_s8 + $0xd50] sm:$0xff]  ;;  %v1470_v4 = vld [vmem:[%s6711_s8 + $0xd60] sm:$0xff] }
 0x18d   : > { %3595 = vmatpush1.bf16.msra.mxu0 %v2589_v10  ;;  %3841 = vmatpush1.bf16.msra.mxu1 %v2591_v11  ;;  %v2693_v10 = vunpack.c.h.s8.bf16 %v1452_v52  ;;  %v2709_v11 = vunpack.c.l.s8.bf16 %v1468_v2  ;;  %v1521_v52 = vld [vmem:[%s6711_s8 + $0xef8] sm:$0xff] }
 0x18e   : > { %3596 = vmatprep.subr.bf16.mxu0 %v2607_v12  ;;  %3842 = vmatprep.subr.bf16.mxu1 %v2609_v13  ;;  %v2711_v12 = vunpack.c.l.s8.bf16 %v1470_v4  ;;  %v1467_v13 = vld [vmem:[%s6711_s8 + $0xd48] sm:$0xff] }
 0x18f   : > { %v2708_v16 = vunpack.c.l.s8.bf16 %v1467_v13  ;;  %v2725_v28 = vunpack.c.h.s8.bf16 %v1467_v13  ;;  %v1538_v13 = vld [vmem:[%s6711_s8 + $0xf80] sm:$0xff] }
 0x191   : > { %3597 = vmatpush1.bf16.msra.mxu0 %v2606_v21  ;;  %3843 = vmatpush1.bf16.msra.mxu1 %v2608_v22  ;;  %v2710_v21 = vunpack.c.l.s8.bf16 %v1469_v14  ;;  %v2726_v22 = vunpack.c.h.s8.bf16 %v1468_v2  ;;  %v1520_v2 = vld [vmem:[%s6711_s8 + $0xef0] sm:$0xff] }
 0x192   : > { %3598 = vmatprep.subr.bf16.mxu0 %v2624_v24  ;;  %3844 = vmatprep.subr.bf16.mxu1 %v2626_v25  ;;  %v2728_v24 = vunpack.c.h.s8.bf16 %v1470_v4  ;;  %v1485_v25 = vld [vmem:[%s6711_s8 + $0xdd8] sm:$0xff] }
 0x193   : > { %v2760_v36 = vunpack.c.h.s8.bf16 %v1485_v25 }
 0x195   : > { %3599 = vmatpush1.bf16.msra.mxu0 %v2623_v31  ;;  %3845 = vmatpush1.bf16.msra.mxu1 %v2625_v32  ;;  %v2743_v31 = vunpack.c.l.s8.bf16 %v1485_v25  ;;  %v2745_v32 = vunpack.c.l.s8.bf16 %v1487_v27  ;;  %v1537_v25 = vld [vmem:[%s6711_s8 + $0xf78] sm:$0xff] }
 0x196   : > { %3600 = vmatprep.subr.bf16.mxu0 %v2641_v8  ;;  %3846 = vmatprep.subr.bf16.mxu1 %v2643_v33  ;;  %v1484_v8 = vld [vmem:[%s6711_s8 + $0xdd0] sm:$0xff]  ;;  %v1486_v33 = vld [vmem:[%s6711_s8 + $0xde0] sm:$0xff] }
 0x197   : > { %v2742_v34 = vunpack.c.l.s8.bf16 %v1484_v8  ;;  %v2744_v35 = vunpack.c.l.s8.bf16 %v1486_v33 }
 0x199   : > { %3601 = vmatpush1.bf16.msra.mxu0 %v2640_v23  ;;  %3847 = vmatpush1.bf16.msra.mxu1 %v2642_v39  ;;  %v1502_v23 = vld [vmem:[%s6711_s8 + $0xe60] sm:$0xff]  ;;  %v1504_v39 = vld [vmem:[%s6711_s8 + $0xe70] sm:$0xff] }
 0x19a   : > { %3602 = vmatprep.subr.bf16.mxu0 %v2658_v40  ;;  %3848 = vmatprep.subr.bf16.mxu1 %v2660_v41  ;;  %v2759_v40 = vunpack.c.h.s8.bf16 %v1484_v8  ;;  %v2761_v41 = vunpack.c.h.s8.bf16 %v1486_v33  ;;  %v2777_v42 = vunpack.c.l.s8.bf16 %v1502_v23  ;;  %v2779_v44 = vunpack.c.l.s8.bf16 %v1504_v39  ;;  %v1555_v8 = vld [vmem:[%s6711_s8 + $0x1008] sm:$0xff] }
 0x19d   : > { %3603 = vmatpush1.bf16.msra.mxu0 %v2657_v62  ;;  %3849 = vmatpush1.bf16.msra.mxu1 %v2659_v48  ;;  %v2776_v62 = vunpack.c.l.s8.bf16 %v1501_v45  ;;  %v2778_v48 = vunpack.c.l.s8.bf16 %v1503_v46  ;;  %v1570_v45 = vld [vmem:[%s6711_s8 + $0x1080] sm:$0xff] }
 0x19e   : > { %3613 = vmatprep.subr.bf16.mxu0 %v2675_v19  ;;  %3859 = vmatprep.subr.bf16.mxu1 %v2677_v49  ;;  %v2794_v19 = vunpack.c.h.s8.bf16 %v1502_v23  ;;  %v2796_v49 = vunpack.c.h.s8.bf16 %v1504_v39  ;;  %v1554_v23 = vld [vmem:[%s6711_s8 + $0x1000] sm:$0xff] }
 0x1a0   : > { %3605 = vmatmul.mubr.bf16.vlgmr.msra.gmra.mrb[8].mxu0 %v6976_v55  ;;  %3851 = vmatmul.mubr.bf16.vlgmr.msra.gmra.mrb[8].mxu1 %v6976_v55 }
 0x1a1   : > { %3614 = vmatpush1.bf16.msra.mxu0 %v2674_v58  ;;  %3860 = vmatpush1.bf16.msra.mxu1 %v2676_v50  ;;  %v2795_v58 = vunpack.c.h.s8.bf16 %v1503_v46  ;;  %v2811_v50 = vunpack.c.l.s8.bf16 %v1519_v51  ;;  %v1572_v46 = vld [vmem:[%s6711_s8 + $0x1090] sm:$0xff] }
 0x1a2   : > { %3615 = vmatprep.subr.bf16.mxu0 %v2692_v59  ;;  %3861 = vmatprep.subr.bf16.mxu1 %v2694_v1  ;;  %v2813_v59 = vunpack.c.l.s8.bf16 %v1521_v52  ;;  %v1518_v1 = vld [vmem:[%s6711_s8 + $0xee0] sm:$0xff] }
 0x1a3   : > { %3645 = vmatprep.mubr.bf16.mxu0 %v6980_v7  ;;  %3891 = vmatprep.mubr.bf16.mxu1 %v6980_v7  ;;  %v2810_v4 = vunpack.c.l.s8.bf16 %v1518_v1  ;;  %v2827_v14 = vunpack.c.h.s8.bf16 %v1518_v1 }
 0x1a5   : > { %3616 = vmatpush1.bf16.msra.mxu0 %v2691_v9  ;;  %3862 = vmatpush1.bf16.msra.mxu1 %v2693_v10  ;;  %v2812_v9 = vunpack.c.l.s8.bf16 %v1520_v2  ;;  %v2828_v10 = vunpack.c.h.s8.bf16 %v1519_v51  ;;  %v2915_v51 = vunpack.c.l.s8.bf16 %v1572_v46 }
 0x1a6   : > { %3617 = vmatprep.subr.bf16.mxu0 %v2709_v11  ;;  %3863 = vmatprep.subr.bf16.mxu1 %v2711_v12  ;;  %v2830_v11 = vunpack.c.h.s8.bf16 %v1521_v52  ;;  %v1536_v12 = vld [vmem:[%s6711_s8 + $0xf70] sm:$0xff]  ;;  %v1569_v52 = vld [vmem:[%s6711_s8 + $0x1078] sm:$0xff] }
 0x1a9   : > { %3618 = vmatpush1.bf16.msra.mxu0 %v2708_v16  ;;  %3864 = vmatpush1.bf16.msra.mxu1 %v2710_v21  ;;  %v2829_v16 = vunpack.c.h.s8.bf16 %v1520_v2  ;;  %v2845_v21 = vunpack.c.l.s8.bf16 %v1536_v12  ;;  %v2930_v2 = vunpack.c.h.s8.bf16 %v1570_v45 }
 0x1aa   : > { %3619 = vmatprep.subr.bf16.mxu0 %v2726_v22  ;;  %3865 = vmatprep.subr.bf16.mxu1 %v2728_v24  ;;  %v2847_v22 = vunpack.c.l.s8.bf16 %v1538_v13  ;;  %v1535_v24 = vld [vmem:[%s6711_s8 + $0xf68] sm:$0xff] }
 0x1ab   : > { %v2844_v27 = vunpack.c.l.s8.bf16 %v1535_v24  ;;  %v2861_v33 = vunpack.c.h.s8.bf16 %v1535_v24 }
 0x1ad   : > { %3620 = vmatpush1.bf16.msra.mxu0 %v2725_v28  ;;  %3866 = vmatpush1.bf16.msra.mxu1 %v2727_v30  ;;  %v2846_v28 = vunpack.c.l.s8.bf16 %v1537_v25  ;;  %v2862_v30 = vunpack.c.h.s8.bf16 %v1536_v12  ;;  %v2929_v12 = vunpack.c.h.s8.bf16 %v1569_v52 }
 0x1ae   : > { %3621 = vmatprep.subr.bf16.mxu0 %v2743_v31  ;;  %3867 = vmatprep.subr.bf16.mxu1 %v2745_v32  ;;  %v2864_v31 = vunpack.c.h.s8.bf16 %v1538_v13  ;;  %v1553_v32 = vld [vmem:[%s6711_s8 + $0xff8] sm:$0xff] }
 0x1b1   : > { %3622 = vmatpush1.bf16.msra.mxu0 %v2742_v34  ;;  %3868 = vmatpush1.bf16.msra.mxu1 %v2744_v35  ;;  %v2863_v34 = vunpack.c.h.s8.bf16 %v1537_v25  ;;  %v2879_v35 = vunpack.c.l.s8.bf16 %v1553_v32 }
 0x1b2   : > { %3623 = vmatprep.subr.bf16.mxu0 %v2760_v36  ;;  %3869 = vmatprep.subr.bf16.mxu1 %v2762_v38  ;;  %v2881_v36 = vunpack.c.l.s8.bf16 %v1555_v8  ;;  %v1552_v38 = vld [vmem:[%s6711_s8 + $0xff0] sm:$0xff] }
 0x1b3   : > { %v2878_v39 = vunpack.c.l.s8.bf16 %v1552_v38 }
 0x1b5   : > { %3624 = vmatpush1.bf16.msra.mxu0 %v2759_v40  ;;  %3870 = vmatpush1.bf16.msra.mxu1 %v2761_v41  ;;  %v2880_v40 = vunpack.c.l.s8.bf16 %v1554_v23  ;;  %v7009_v41 = vsub.s32 6, %v6821_v60  ;;  %v2913_v60 = vunpack.c.l.s8.bf16 %v1570_v45  ;;  %v1623_v45 = vld [vmem:[%s6711_s8 + $0x1228] sm:$0xff] }
 0x1b6   : > { %3625 = vmatprep.subr.bf16.mxu0 %v2777_v42  ;;  %3871 = vmatprep.subr.bf16.mxu1 %v2779_v44  ;;  %v2896_v42 = vunpack.c.h.s8.bf16 %v1553_v32  ;;  %v2898_v44 = vunpack.c.h.s8.bf16 %v1555_v8  ;;  %v1606_v32 = vld [vmem:[%s6711_s8 + $0x11a0] sm:$0xff] }
 0x1b9   : > { %3626 = vmatpush1.bf16.msra.mxu0 %v2776_v62  ;;  %3872 = vmatpush1.bf16.msra.mxu1 %v2778_v48  ;;  %v2895_v62 = vunpack.c.h.s8.bf16 %v1552_v38  ;;  %v2897_v48 = vunpack.c.h.s8.bf16 %v1554_v23  ;;  %v1605_v38 = vld [vmem:[%s6711_s8 + $0x1198] sm:$0xff] }
 0x1ba   : > { %3627 = vmatprep.subr.bf16.mxu0 %v2794_v19  ;;  %3873 = vmatprep.subr.bf16.mxu1 %v2796_v49  ;;  %v6468_v19 = vld [vmem:[%s6706_s20] sm:$0xff] }
 0x1bb   : > { %v509_v49 = vrot.slane %v6468_v19, %v7009_v41  ;;  %v1620_v19 = vld [vmem:[%s6711_s8 + $0x1210] sm:$0xff] }
 0x1bd   : > { %3628 = vmatpush1.bf16.msra.mxu0 %v2793_v54  ;;  %3874 = vmatpush1.bf16.msra.mxu1 %v2795_v58  ;;  %v1571_v54 = vld [vmem:[%s6711_s8 + $0x1088] sm:$0xff]  ;;  %v521_v58 = vrot.slane %v6879_v56, %v6830_v63  ;;  %v863_v1 = vadd.f32 %v6869_v47, %v509_v49  ;;  %v3017_v49 = vunpack.c.l.s8.bf16 %v1623_v45 }
 0x1be   : > { %3629 = vmatprep.subr.bf16.mxu0 %v2811_v50  ;;  %3875 = vmatprep.subr.bf16.mxu1 %v2813_v59  ;;  %v2912_v50 = vunpack.c.l.s8.bf16 %v1569_v52  ;;  %v2914_v59 = vunpack.c.l.s8.bf16 %v1571_v54  ;;  %v2931_v56 = vunpack.c.h.s8.bf16 %v1571_v54 }
 0x1bf   : > { %v1015_v13 = vmax.f32 %v863_v1, 0.0  ;;  %v3031_v1 = vunpack.c.h.s8.bf16 %v1620_v19 }
 0x1c1   : > { %3630 = vmatpush1.bf16.msra.mxu0 %v2810_v4  ;;  %3876 = vmatpush1.bf16.msra.mxu1 %v2812_v9  ;;  %v2932_v4 = vunpack.c.h.s8.bf16 %v1572_v46  ;;  %v936_v9 = vadd.f32 %v6885_v3, %v521_v58  ;;  %v7025_v3 = vpack.c.bf16 %v1015_v13, %v1015_v13  ;;  %v3034_v58 = vunpack.c.h.s8.bf16 %v1623_v45 }
 0x1c2   : > { %3631 = vmatprep.subr.bf16.mxu0 %v2828_v10  ;;  %3877 = vmatprep.subr.bf16.mxu1 %v2830_v11  ;;  %v1587_v10 = vld [vmem:[%s6711_s8 + $0x1108] sm:$0xff]  ;;  %v1589_v11 = vld [vmem:[%s6711_s8 + $0x1118] sm:$0xff] }
 0x1c3   : > { %v2949_v47 = vunpack.c.l.s8.bf16 %v1589_v11 }
 0x1c5   : > { %3632 = vmatpush1.bf16.msra.mxu0 %v2827_v14  ;;  %3878 = vmatpush1.bf16.msra.mxu1 %v2829_v16  ;;  %v2947_v14 = vunpack.c.l.s8.bf16 %v1587_v10  ;;  %v1586_v16 = vld [vmem:[%s6711_s8 + $0x1100] sm:$0xff] }
 0x1c6   : > { %3633 = vmatprep.subr.bf16.mxu0 %v2845_v21  ;;  %3879 = vmatprep.subr.bf16.mxu1 %v2847_v22  ;;  %v1018_v21 = vmax.f32 %v936_v9, 0.0  ;;  %v1588_v22 = vld [vmem:[%s6711_s8 + $0x1110] sm:$0xff]  ;;  %v2946_v24 = vunpack.c.l.s8.bf16 %v1586_v16  ;;  %v2963_v8 = vunpack.c.h.s8.bf16 %v1586_v16  ;;  %v1637_v9 = vld [vmem:[%s6711_s8 + $0x1298] sm:$0xff] }
 0x1c7   : > { %v2948_v25 = vunpack.c.l.s8.bf16 %v1588_v22  ;;  %v1657_v16 = vld [vmem:[%s6711_s8 + $0x1338] sm:$0xff] }
 0x1c9   : > { %3634 = vmatpush1.bf16.msra.mxu0 %v2844_v27  ;;  %3880 = vmatpush1.bf16.msra.mxu1 %v2846_v28  ;;  %v7027_v27 = vpack.c.bf16 %v1018_v21, %v1018_v21  ;;  %v2964_v28 = vunpack.c.h.s8.bf16 %v1587_v10  ;;  %v3065_v21 = vunpack.c.h.s8.bf16 %v1637_v9 }
 0x1ca   : > { %3635 = vmatprep.subr.bf16.mxu0 %v2862_v30  ;;  %3881 = vmatprep.subr.bf16.mxu1 %v2864_v31  ;;  %v2966_v30 = vunpack.c.h.s8.bf16 %v1589_v11  ;;  %v1604_v31 = vld [vmem:[%s6711_s8 + $0x1190] sm:$0xff]  ;;  %v1639_v11 = vld [vmem:[%s6711_s8 + $0x12a8] sm:$0xff] }
 0x1cd   : > { %3636 = vmatpush1.bf16.msra.mxu0 %v2861_v33  ;;  %3882 = vmatpush1.bf16.msra.mxu1 %v2863_v34  ;;  %v2965_v33 = vunpack.c.h.s8.bf16 %v1588_v22  ;;  %v2981_v34 = vunpack.c.l.s8.bf16 %v1604_v31  ;;  %v3067_v22 = vunpack.c.h.s8.bf16 %v1639_v11 }
 0x1ce   : > { %3637 = vmatprep.subr.bf16.mxu0 %v2879_v35  ;;  %3883 = vmatprep.subr.bf16.mxu1 %v2881_v36  ;;  %v1603_v35 = vld [vmem:[%s6711_s8 + $0x1188] sm:$0xff]  ;;  %v2983_v36 = vunpack.c.l.s8.bf16 %v1606_v32 }
 0x1cf   : > { %v2980_v23 = vunpack.c.l.s8.bf16 %v1603_v35  ;;  %v2997_v46 = vunpack.c.h.s8.bf16 %v1603_v35  ;;  %v1674_v35 = vld [vmem:[%s6711_s8 + $0x13c0] sm:$0xff] }
 0x1d1   : > { %3638 = vmatpush1.bf16.msra.mxu0 %v2878_v39  ;;  %3884 = vmatpush1.bf16.msra.mxu1 %v2880_v40  ;;  %v2982_v39 = vunpack.c.l.s8.bf16 %v1605_v38  ;;  %v2998_v40 = vunpack.c.h.s8.bf16 %v1604_v31 }
 0x1d2   : > { %3639 = vmatprep.subr.bf16.mxu0 %v2896_v42  ;;  %3885 = vmatprep.subr.bf16.mxu1 %v2898_v44  ;;  %v3000_v42 = vunpack.c.h.s8.bf16 %v1606_v32  ;;  %v1621_v44 = vld [vmem:[%s6711_s8 + $0x1218] sm:$0xff] }
 0x1d3   : > { %v3032_v54 = vunpack.c.h.s8.bf16 %v1621_v44 }
 0x1d5   : > { %3640 = vmatpush1.bf16.msra.mxu0 %v2895_v62  ;;  %3886 = vmatpush1.bf16.msra.mxu1 %v2897_v48  ;;  %v2999_v62 = vunpack.c.h.s8.bf16 %v1605_v38  ;;  %v3015_v48 = vunpack.c.l.s8.bf16 %v1621_v44 }
 0x1d6   : > { %3641 = vmatprep.subr.bf16.mxu0 %v2913_v60  ;;  %3887 = vmatprep.subr.bf16.mxu1 %v2915_v51  ;;  %v1622_v60 = vld [vmem:[%s6711_s8 + $0x1220] sm:$0xff]  ;;  %v3014_v51 = vunpack.c.l.s8.bf16 %v1620_v19  ;;  %v1691_v19 = vld [vmem:[%s6711_s8 + $0x1448] sm:$0xff] }
 0x1d7   : > { %v3016_v52 = vunpack.c.l.s8.bf16 %v1622_v60 }
 0x1d9   : > { %3642 = vmatpush1.bf16.msra.mxu0 %v2912_v50  ;;  %3888 = vmatpush1.bf16.msra.mxu1 %v2914_v59  ;;  %v1638_v50 = vld [vmem:[%s6711_s8 + $0x12a0] sm:$0xff]  ;;  %v1640_v59 = vld [vmem:[%s6711_s8 + $0x12b0] sm:$0xff] }
 0x1da   : > { %3643 = vmatprep.subr.bf16.mxu0 %v2930_v2  ;;  %3889 = vmatprep.subr.bf16.mxu1 %v2932_v4  ;;  %v3033_v2 = vunpack.c.h.s8.bf16 %v1622_v60  ;;  %v3049_v4 = vunpack.c.l.s8.bf16 %v1638_v50  ;;  %v3051_v10 = vunpack.c.l.s8.bf16 %v1640_v59  ;;  %v3066_v13 = vunpack.c.h.s8.bf16 %v1638_v50 }
 0x1dd   : > { %3644 = vmatpush1.bf16.msra.mxu0 %v2929_v12  ;;  %3890 = vmatpush1.bf16.msra.mxu1 %v2931_v56  ;;  %v3048_v12 = vunpack.c.l.s8.bf16 %v1637_v9  ;;  %v3050_v56 = vunpack.c.l.s8.bf16 %v1639_v11  ;;  %v1708_v9 = vld [vmem:[%s6711_s8 + $0x14d0] sm:$0xff]  ;;  %v6469_v11 = vld [vmem:[%s6706_s20 + $0x8] sm:$0xf] }
 0x1de   : > { %3654 = vmatprep.subr.bf16.mxu0 %v2947_v14  ;;  %3900 = vmatprep.subr.bf16.mxu1 %v2949_v47  ;;  %v3068_v14 = vunpack.c.h.s8.bf16 %v1640_v59  ;;  %v1655_v47 = vld [vmem:[%s6711_s8 + $0x1328] sm:$0xff] }
 0x1e0   : > { %3646 = vmatmul.mubr.bf16.vlgmr.msra.gmra.mrb[8].mxu0 %v7025_v3  ;;  %3892 = vmatmul.mubr.bf16.vlgmr.msra.gmra.mrb[8].mxu1 %v7025_v3 }
 0x1e1   : > { %3655 = vmatpush1.bf16.msra.mxu0 %v2946_v24  ;;  %3686 = vmatprep.mubr.bf16.mxu0 %v7027_v27  ;;  %v3083_v24 = vunpack.c.l.s8.bf16 %v1655_v47 }
 0x1e2   : > { %3901 = vmatpush1.bf16.msra.mxu1 %v2948_v25  ;;  %3932 = vmatprep.mubr.bf16.mxu1 %v7027_v27  ;;  %v1654_v25 = vld [vmem:[%s6711_s8 + $0x1320] sm:$0xff] }
 0x1e3   : > { %3656 = vmatprep.subr.bf16.mxu0 %v2964_v28  ;;  %3902 = vmatprep.subr.bf16.mxu1 %v2966_v30  ;;  %v3085_v28 = vunpack.c.l.s8.bf16 %v1657_v16  ;;  %v1656_v30 = vld [vmem:[%s6711_s8 + $0x1330] sm:$0xff]  ;;  %v3082_v31 = vunpack.c.l.s8.bf16 %v1654_v25 }
 0x1e4   : > { %v3084_v32 = vunpack.c.l.s8.bf16 %v1656_v30  ;;  %v3101_v38 = vunpack.c.h.s8.bf16 %v1656_v30  ;;  %v1723_v30 = vld [vmem:[%s6711_s8 + $0x1548] sm:$0xff] }
 0x1e5   : > { %3657 = vmatpush1.bf16.msra.mxu0 %v2963_v8  ;;  %v3100_v8 = vunpack.c.h.s8.bf16 %v1655_v47  ;;  %v3187_v47 = vunpack.c.l.s8.bf16 %v1708_v9 }
 0x1e6   : > { %3903 = vmatpush1.bf16.msra.mxu1 %v2965_v33  ;;  %3658 = vmatprep.subr.bf16.mxu0 %v2981_v34  ;;  %v3102_v33 = vunpack.c.h.s8.bf16 %v1657_v16  ;;  %v1672_v34 = vld [vmem:[%s6711_s8 + $0x13b0] sm:$0xff]  ;;  %v1707_v16 = vld [vmem:[%s6711_s8 + $0x14c8] sm:$0xff] }
 0x1e7   : > { %3904 = vmatprep.subr.bf16.mxu1 %v2983_v36  ;;  %v3099_v36 = vunpack.c.h.s8.bf16 %v1654_v25 }
 0x1e9   : > { %3659 = vmatpush1.bf16.msra.mxu0 %v2980_v23  ;;  %v3117_v23 = vunpack.c.l.s8.bf16 %v1672_v34 }
 0x1ea   : > { %3905 = vmatpush1.bf16.msra.mxu1 %v2982_v39  ;;  %3660 = vmatprep.subr.bf16.mxu0 %v2998_v40  ;;  %v1671_v39 = vld [vmem:[%s6711_s8 + $0x13a8] sm:$0xff]  ;;  %v3119_v40 = vunpack.c.l.s8.bf16 %v1674_v35 }
 0x1eb   : > { %3906 = vmatprep.subr.bf16.mxu1 %v3000_v42  ;;  %v1673_v42 = vld [vmem:[%s6711_s8 + $0x13b8] sm:$0xff]  ;;  %v3116_v44 = vunpack.c.l.s8.bf16 %v1671_v39 }
 0x1ec   : > { %v3118_v45 = vunpack.c.l.s8.bf16 %v1673_v42  ;;  %v3135_v60 = vunpack.c.h.s8.bf16 %v1673_v42  ;;  %v3236_v42 = vunpack.c.h.s8.bf16 %v1723_v30 }
 0x1ed   : > { %3661 = vmatpush1.bf16.msra.mxu0 %v2997_v46  ;;  %v3134_v46 = vunpack.c.h.s8.bf16 %v1672_v34  ;;  %v3219_v34 = vunpack.c.l.s8.bf16 %v1723_v30 }
 0x1ee   : > { %3907 = vmatpush1.bf16.msra.mxu1 %v2999_v62  ;;  %3662 = vmatprep.subr.bf16.mxu0 %v3015_v48  ;;  %v3136_v62 = vunpack.c.h.s8.bf16 %v1674_v35  ;;  %v1689_v48 = vld [vmem:[%s6711_s8 + $0x1438] sm:$0xff]  ;;  %v1722_v35 = vld [vmem:[%s6711_s8 + $0x1540] sm:$0xff] }
 0x1ef   : > { %3908 = vmatprep.subr.bf16.mxu1 %v3017_v49  ;;  %v3133_v49 = vunpack.c.h.s8.bf16 %v1671_v39 }
 0x1f1   : > { %3663 = vmatpush1.bf16.msra.mxu0 %v3014_v51  ;;  %v3151_v51 = vunpack.c.l.s8.bf16 %v1689_v48 }
 0x1f2   : > { %3909 = vmatpush1.bf16.msra.mxu1 %v3016_v52  ;;  %3664 = vmatprep.subr.bf16.mxu0 %v3032_v54  ;;  %v1688_v52 = vld [vmem:[%s6711_s8 + $0x1430] sm:$0xff]  ;;  %v3153_v54 = vunpack.c.l.s8.bf16 %v1691_v19 }
 0x1f3   : > { %3910 = vmatprep.subr.bf16.mxu1 %v3034_v58  ;;  %v1690_v58 = vld [vmem:[%s6711_s8 + $0x1440] sm:$0xff]  ;;  %v3150_v50 = vunpack.c.l.s8.bf16 %v1688_v52 }
 0x1f4   : > { %v3152_v59 = vunpack.c.l.s8.bf16 %v1690_v58 }
 0x1f5   : > { %3665 = vmatpush1.bf16.msra.mxu0 %v3031_v1  ;;  %v3168_v1 = vunpack.c.h.s8.bf16 %v1689_v48 }
 0x1f6   : > { %3911 = vmatpush1.bf16.msra.mxu1 %v3033_v2  ;;  %3666 = vmatprep.subr.bf16.mxu0 %v3049_v4  ;;  %v3170_v2 = vunpack.c.h.s8.bf16 %v1691_v19  ;;  %v1706_v4 = vld [vmem:[%s6711_s8 + $0x14c0] sm:$0xff] }
 0x1f7   : > { %3912 = vmatprep.subr.bf16.mxu1 %v3051_v10  ;;  %v3167_v10 = vunpack.c.h.s8.bf16 %v1688_v52  ;;  %v3202_v25 = vunpack.c.h.s8.bf16 %v1706_v4 }
 0x1f9   : > { %3667 = vmatpush1.bf16.msra.mxu0 %v3048_v12  ;;  %v517_v12 = vrot.slane %v6469_v11, %v6824_v61 }
 0x1fa   : > { %3913 = vmatpush1.bf16.msra.mxu1 %v3050_v56  ;;  %3668 = vmatprep.subr.bf16.mxu0 %v3066_v13  ;;  %v3169_v56 = vunpack.c.h.s8.bf16 %v1690_v58  ;;  %v3185_v13 = vunpack.c.l.s8.bf16 %v1706_v4 }
 0x1fb   : > { %3914 = vmatprep.subr.bf16.mxu1 %v3068_v14  ;;  %v1705_v14 = vld [vmem:[%s6711_s8 + $0x14b8] sm:$0xff] }
 0x1fd   : > { %3669 = vmatpush1.bf16.msra.mxu0 %v3065_v21  ;;  %v3184_v21 = vunpack.c.l.s8.bf16 %v1705_v14 }
 0x1fe   : > { %3915 = vmatpush1.bf16.msra.mxu1 %v3067_v22  ;;  %3670 = vmatprep.subr.bf16.mxu0 %v3083_v24  ;;  %v934_v22 = vadd.f32 %v6881_v57, %v517_v12  ;;  %v3186_v24 = vunpack.c.l.s8.bf16 %v1707_v16  ;;  %v1758_v12 = vld [vmem:[%s6711_s8 + $0x1660] sm:$0xff] }
 0x1ff   : > { %3916 = vmatprep.subr.bf16.mxu1 %v3085_v28  ;;  %v3204_v28 = vunpack.c.h.s8.bf16 %v1708_v9 }
 0x201   : > { %3671 = vmatpush1.bf16.msra.mxu0 %v3082_v31  ;;  %v1725_v31 = vld [vmem:[%s6711_s8 + $0x1558] sm:$0xff] }
 0x202   : > { %3917 = vmatpush1.bf16.msra.mxu1 %v3084_v32  ;;  %3672 = vmatprep.subr.bf16.mxu0 %v3100_v8  ;;  %v3201_v32 = vunpack.c.h.s8.bf16 %v1705_v14  ;;  %v1017_v8 = vmax.f32 %v934_v22, 0.0  ;;  %v3221_v57 = vunpack.c.l.s8.bf16 %v1725_v31 }
 0x203   : > { %3918 = vmatprep.subr.bf16.mxu1 %v3102_v33  ;;  %v3203_v33 = vunpack.c.h.s8.bf16 %v1707_v16  ;;  %v1774_v16 = vld [vmem:[%s6711_s8 + $0x16e0] sm:$0xff] }
 0x204   : > { %v7069_v39 = vpack.c.bf16 %v1017_v8, %v1017_v8 }
 0x205   : > { %3673 = vmatpush1.bf16.msra.mxu0 %v3099_v36  ;;  %v1724_v36 = vld [vmem:[%s6711_s8 + $0x1550] sm:$0xff] }
 0x206   : > { %3919 = vmatpush1.bf16.msra.mxu1 %v3101_v38  ;;  %3674 = vmatprep.subr.bf16.mxu0 %v3117_v23  ;;  %v1020_v38 = vmax.f32 %v6895_v17, 0.0  ;;  %v3218_v23 = vunpack.c.l.s8.bf16 %v1722_v35  ;;  %v3235_v17 = vunpack.c.h.s8.bf16 %v1722_v35  ;;  %v3237_v48 = vunpack.c.h.s8.bf16 %v1724_v36  ;;  %v1791_v35 = vld [vmem:[%s6711_s8 + $0x1768] sm:$0xff] }
 0x207   : > { %3920 = vmatprep.subr.bf16.mxu1 %v3119_v40  ;;  %v3220_v40 = vunpack.c.l.s8.bf16 %v1724_v36 }
 0x209   : > { %3675 = vmatpush1.bf16.msra.mxu0 %v3116_v44  ;;  %v1740_v44 = vld [vmem:[%s6711_s8 + $0x15d0] sm:$0xff] }
 0x20a   : > { %3921 = vmatpush1.bf16.msra.mxu1 %v3118_v45  ;;  %3676 = vmatprep.subr.bf16.mxu0 %v3134_v46  ;;  %v7072_v45 = vpack.c.bf16 %v1020_v38, %v1020_v38  ;;  %v3238_v46 = vunpack.c.h.s8.bf16 %v1725_v31  ;;  %v3253_v19 = vunpack.c.l.s8.bf16 %v1740_v44  ;;  %v3270_v58 = vunpack.c.h.s8.bf16 %v1740_v44  ;;  %v1775_v31 = vld [vmem:[%s6711_s8 + $0x16e8] sm:$0xff]  ;;  %v1792_v44 = vld [vmem:[%s6711_s8 + $0x1770] sm:$0xff] }
 0x20b   : > { %3922 = vmatprep.subr.bf16.mxu1 %v3136_v62  ;;  %v1742_v62 = vld [vmem:[%s6711_s8 + $0x15e0] sm:$0xff]  ;;  %v3322_v8 = vunpack.c.l.s8.bf16 %v1775_v31  ;;  %v3339_v38 = vunpack.c.h.s8.bf16 %v1775_v31 }
 0x20d   : > { %3677 = vmatpush1.bf16.msra.mxu0 %v3133_v49  ;;  %v1739_v49 = vld [vmem:[%s6711_s8 + $0x15c8] sm:$0xff] }
 0x20e   : > { %3923 = vmatpush1.bf16.msra.mxu1 %v3135_v60  ;;  %3678 = vmatprep.subr.bf16.mxu0 %v3151_v51  ;;  %v3255_v60 = vunpack.c.l.s8.bf16 %v1742_v62  ;;  %v1741_v51 = vld [vmem:[%s6711_s8 + $0x15d8] sm:$0xff]  ;;  %v3252_v52 = vunpack.c.l.s8.bf16 %v1739_v49 }
 0x20f   : > { %3924 = vmatprep.subr.bf16.mxu1 %v3153_v54  ;;  %v3254_v54 = vunpack.c.l.s8.bf16 %v1741_v51  ;;  %v3271_v4 = vunpack.c.h.s8.bf16 %v1741_v51  ;;  %v3373_v51 = vunpack.c.h.s8.bf16 %v1792_v44 }
 0x211   : > { %3679 = vmatpush1.bf16.msra.mxu0 %v3150_v50  ;;  %v3272_v50 = vunpack.c.h.s8.bf16 %v1742_v62  ;;  %v3356_v62 = vunpack.c.l.s8.bf16 %v1792_v44  ;;  %v1019_v44 = vmax.f32 %v6889_v6, 0.0 }
 0x212   : > { %3925 = vmatpush1.bf16.msra.mxu1 %v3152_v59  ;;  %3680 = vmatprep.subr.bf16.mxu0 %v3168_v1  ;;  %v1757_v59 = vld [vmem:[%s6711_s8 + $0x1658] sm:$0xff]  ;;  %v1759_v1 = vld [vmem:[%s6711_s8 + $0x1668] sm:$0xff] }
 0x213   : > { %3926 = vmatprep.subr.bf16.mxu1 %v3170_v2  ;;  %v3269_v2 = vunpack.c.h.s8.bf16 %v1739_v49  ;;  %v3287_v9 = vunpack.c.l.s8.bf16 %v1757_v59  ;;  %v3289_v11 = vunpack.c.l.s8.bf16 %v1759_v1  ;;  %v3304_v14 = vunpack.c.h.s8.bf16 %v1757_v59  ;;  %v1810_v49 = vld [vmem:[%s6711_s8 + $0x1800] sm:$0xff] }
 0x215   : > { %3681 = vmatpush1.bf16.msra.mxu0 %v3167_v10  ;;  %v1756_v10 = vld [vmem:[%s6711_s8 + $0x1650] sm:$0xff] }
 0x216   : > { %3927 = vmatpush1.bf16.msra.mxu1 %v3169_v56  ;;  %3682 = vmatprep.subr.bf16.mxu0 %v3185_v13  ;;  %v3286_v56 = vunpack.c.l.s8.bf16 %v1756_v10  ;;  %v3288_v13 = vunpack.c.l.s8.bf16 %v1758_v12  ;;  %v3303_v22 = vunpack.c.h.s8.bf16 %v1756_v10  ;;  %v1827_v10 = vld [vmem:[%s6711_s8 + $0x1888] sm:$0xff] }
 0x217   : > { %3928 = vmatprep.subr.bf16.mxu1 %v3187_v47  ;;  %v3306_v47 = vunpack.c.h.s8.bf16 %v1759_v1 }
 0x219   : > { %3683 = vmatpush1.bf16.msra.mxu0 %v3184_v21  ;;  %v1776_v21 = vld [vmem:[%s6711_s8 + $0x16f0] sm:$0xff] }
 0x21a   : > { %3929 = vmatpush1.bf16.msra.mxu1 %v3186_v24  ;;  %3684 = vmatprep.subr.bf16.mxu0 %v3202_v25  ;;  %v3305_v24 = vunpack.c.h.s8.bf16 %v1758_v12  ;;  %v3321_v25 = vunpack.c.l.s8.bf16 %v1774_v16  ;;  %v3323_v30 = vunpack.c.l.s8.bf16 %v1776_v21 }
 0x21b   : > { %3930 = vmatprep.subr.bf16.mxu1 %v3204_v28  ;;  %v1773_v28 = vld [vmem:[%s6711_s8 + $0x16d8] sm:$0xff] }
 0x21c   : > { %v3337_v36 = vunpack.c.h.s8.bf16 %v1773_v28 }
 0x21d   : > { %3685 = vmatpush1.bf16.msra.mxu0 %v3201_v32  ;;  %v3320_v32 = vunpack.c.l.s8.bf16 %v1773_v28  ;;  %v1844_v28 = vld [vmem:[%s6711_s8 + $0x1910] sm:$0xff] }
 0x21e   : > { %3931 = vmatpush1.bf16.msra.mxu1 %v3203_v33  ;;  %3695 = vmatprep.subr.bf16.mxu0 %v3219_v34  ;;  %v3338_v33 = vunpack.c.h.s8.bf16 %v1774_v16  ;;  %v3340_v34 = vunpack.c.h.s8.bf16 %v1776_v21 }
 0x21f   : > { %3941 = vmatprep.subr.bf16.mxu1 %v3221_v57  ;;  %v1793_v57 = vld [vmem:[%s6711_s8 + $0x1778] sm:$0xff] }
 0x220   : > { %3687 = vmatmul.mubr.bf16.vlgmr.msra.gmra.mrb[8].mxu0 %v7069_v39 }
 0x221   : > { %3933 = vmatmul.mubr.bf16.vlgmr.msra.gmra.mrb[8].mxu1 %v7069_v39  ;;  %3696 = vmatpush1.bf16.msra.mxu0 %v3218_v23  ;;  %v3355_v23 = vunpack.c.l.s8.bf16 %v1791_v35 }
 0x222   : > { %3727 = vmatprep.mubr.bf16.mxu0 %v7072_v45  ;;  %3942 = vmatpush1.bf16.msra.mxu1 %v3220_v40  ;;  %v1790_v40 = vld [vmem:[%s6711_s8 + $0x1760] sm:$0xff] }
 0x223   : > { %3973 = vmatprep.mubr.bf16.mxu1 %v7072_v45  ;;  %3697 = vmatprep.subr.bf16.mxu0 %v3236_v42  ;;  %v3357_v42 = vunpack.c.l.s8.bf16 %v1793_v57 }
 0x224   : > { %3943 = vmatprep.subr.bf16.mxu1 %v3238_v46  ;;  %v3354_v46 = vunpack.c.l.s8.bf16 %v1790_v40 }
 0x225   : > { %3698 = vmatpush1.bf16.msra.mxu0 %v3235_v17  ;;  %v3372_v17 = vunpack.c.h.s8.bf16 %v1791_v35 }
 0x226   : > { %3944 = vmatpush1.bf16.msra.mxu1 %v3237_v48  ;;  %3699 = vmatprep.subr.bf16.mxu0 %v3253_v19  ;;  %v3374_v48 = vunpack.c.h.s8.bf16 %v1793_v57  ;;  %v1808_v19 = vld [vmem:[%s6711_s8 + $0x17f0] sm:$0xff] }
 0x227   : > { %3945 = vmatprep.subr.bf16.mxu1 %v3255_v60  ;;  %v3371_v60 = vunpack.c.h.s8.bf16 %v1790_v40  ;;  %v1049_v40 = vld [vmem:[%s6711_s8 + $0x38] sm:$0xff] }
 0x229   : > { %3700 = vmatpush1.bf16.msra.mxu0 %v3252_v52  ;;  %v3389_v52 = vunpack.c.l.s8.bf16 %v1808_v19 }
 0x22a   : > { %3946 = vmatpush1.bf16.msra.mxu1 %v3254_v54  ;;  %3701 = vmatprep.subr.bf16.mxu0 %v3270_v58  ;;  %v1807_v54 = vld [vmem:[%s6711_s8 + $0x17e8] sm:$0xff]  ;;  %v3391_v58 = vunpack.c.l.s8.bf16 %v1810_v49 }
 0x22b   : > { %3947 = vmatprep.subr.bf16.mxu1 %v3272_v50  ;;  %v1809_v50 = vld [vmem:[%s6711_s8 + $0x17f8] sm:$0xff]  ;;  %v3388_v59 = vunpack.c.l.s8.bf16 %v1807_v54 }
 0x22c   : > { %v3390_v1 = vunpack.c.l.s8.bf16 %v1809_v50  ;;  %v3407_v12 = vunpack.c.h.s8.bf16 %v1809_v50 }
 0x22d   : > { %3702 = vmatpush1.bf16.msra.mxu0 %v3269_v2  ;;  %v3406_v2 = vunpack.c.h.s8.bf16 %v1808_v19  ;;  %v1048_v19 = vld [vmem:[%s6711_s8 + $0x30] sm:$0xff] }
 0x22e   : > { %3948 = vmatpush1.bf16.msra.mxu1 %v3271_v4  ;;  %3703 = vmatprep.subr.bf16.mxu0 %v3287_v9  ;;  %v3408_v4 = vunpack.c.h.s8.bf16 %v1810_v49  ;;  %v1825_v9 = vld [vmem:[%s6711_s8 + $0x1878] sm:$0xff] }
 0x22f   : > { %3949 = vmatprep.subr.bf16.mxu1 %v3289_v11  ;;  %v3405_v11 = vunpack.c.h.s8.bf16 %v1807_v54  ;;  %v1882_v54 = vunpack.c.h.s8.bf16 %v1049_v40 }
 0x231   : > { %3704 = vmatpush1.bf16.msra.mxu0 %v3286_v56  ;;  %v3423_v56 = vunpack.c.l.s8.bf16 %v1825_v9 }
 0x232   : > { %3950 = vmatpush1.bf16.msra.mxu1 %v3288_v13  ;;  %3705 = vmatprep.subr.bf16.mxu0 %v3304_v14  ;;  %v1824_v13 = vld [vmem:[%s6711_s8 + $0x1870] sm:$0xff]  ;;  %v3425_v14 = vunpack.c.l.s8.bf16 %v1827_v10 }
 0x233   : > { %3951 = vmatprep.subr.bf16.mxu1 %v3306_v47  ;;  %v1826_v47 = vld [vmem:[%s6711_s8 + $0x1880] sm:$0xff]  ;;  %v3422_v16 = vunpack.c.l.s8.bf16 %v1824_v13 }
 0x234   : > { %v3424_v21 = vunpack.c.l.s8.bf16 %v1826_v47  ;;  %v3441_v31 = vunpack.c.h.s8.bf16 %v1826_v47 }
 0x235   : > { %3706 = vmatpush1.bf16.msra.mxu0 %v3303_v22  ;;  %v3440_v22 = vunpack.c.h.s8.bf16 %v1825_v9  ;;  %v1065_v9 = vld [vmem:[%s6711_s8 + $0xb8] sm:$0xff] }
 0x236   : > { %3952 = vmatpush1.bf16.msra.mxu1 %v3305_v24  ;;  %3707 = vmatprep.subr.bf16.mxu0 %v3321_v25  ;;  %v3442_v24 = vunpack.c.h.s8.bf16 %v1827_v10  ;;  %v1842_v25 = vld [vmem:[%s6711_s8 + $0x1900] sm:$0xff] }
 0x237   : > { %3953 = vmatprep.subr.bf16.mxu1 %v3323_v30  ;;  %v3439_v30 = vunpack.c.h.s8.bf16 %v1824_v13  ;;  %v1081_v13 = vld [vmem:[%s6711_s8 + $0x138] sm:$0xff] }
 0x239   : > { %3708 = vmatpush1.bf16.msra.mxu0 %v3320_v32  ;;  %v3457_v32 = vunpack.c.l.s8.bf16 %v1842_v25 }
 0x23a   : > { %3954 = vmatpush1.bf16.msra.mxu1 %v3322_v8  ;;  %3709 = vmatprep.subr.bf16.mxu0 %v3338_v33  ;;  %v1841_v8 = vld [vmem:[%s6711_s8 + $0x18f8] sm:$0xff]  ;;  %v3459_v33 = vunpack.c.l.s8.bf16 %v1844_v28 }
 0x23b   : > { %3955 = vmatprep.subr.bf16.mxu1 %v3340_v34  ;;  %v1843_v34 = vld [vmem:[%s6711_s8 + $0x1908] sm:$0xff]  ;;  %v3456_v35 = vunpack.c.l.s8.bf16 %v1841_v8 }
 0x23c   : > { %v3458_v57 = vunpack.c.l.s8.bf16 %v1843_v34 }
 0x23d   : > { %3710 = vmatpush1.bf16.msra.mxu0 %v3337_v36  ;;  %v3474_v36 = vunpack.c.h.s8.bf16 %v1842_v25  ;;  %v1082_v25 = vld [vmem:[%s6711_s8 + $0x140] sm:$0xff] }
 0x23e   : > { %3956 = vmatpush1.bf16.msra.mxu1 %v3339_v38  ;;  %3711 = vmatprep.subr.bf16.mxu0 %v3355_v23  ;;  %v3476_v38 = vunpack.c.h.s8.bf16 %v1844_v28  ;;  %v1047_v23 = vld [vmem:[%s6711_s8 + $0x28] sm:$0xff] }
 0x23f   : > { %3957 = vmatprep.subr.bf16.mxu1 %v3357_v42  ;;  %v3473_v42 = vunpack.c.h.s8.bf16 %v1841_v8  ;;  %v1880_v6 = vunpack.c.h.s8.bf16 %v1047_v23  ;;  %v1098_v8 = vld [vmem:[%s6711_s8 + $0x1c0] sm:$0xff] }
 0x241   : > { %3712 = vmatpush1.bf16.msra.mxu0 %v3354_v46  ;;  %v3475_v46 = vunpack.c.h.s8.bf16 %v1843_v34 }
 0x242   : > { %3958 = vmatpush1.bf16.msra.mxu1 %v3356_v62  ;;  %3713 = vmatprep.subr.bf16.mxu0 %v3372_v17  ;;  %v1863_v62 = vunpack.c.l.s8.bf16 %v1047_v23  ;;  %v1046_v17 = vld [vmem:[%s6711_s8 + $0x20] sm:$0xff]  ;;  %v1099_v23 = vld [vmem:[%s6711_s8 + $0x1c8] sm:$0xff] }
 0x243   : > { %3959 = vmatprep.subr.bf16.mxu1 %v3374_v48  ;;  %v1865_v48 = vunpack.c.l.s8.bf16 %v1049_v40  ;;  %v1862_v49 = vunpack.c.l.s8.bf16 %v1046_v17  ;;  %v1879_v50 = vunpack.c.h.s8.bf16 %v1046_v17  ;;  %v1117_v17 = vld [vmem:[%s6711_s8 + $0x258] sm:$0xff] }
 0x245   : > { %3714 = vmatpush1.bf16.msra.mxu0 %v3371_v60  ;;  %v7110_v60 = vpack.c.bf16 %v1019_v44, %v1019_v44  ;;  %v1982_v44 = vunpack.c.h.s8.bf16 %v1098_v8 }
 0x246   : > { %3960 = vmatpush1.bf16.msra.mxu1 %v3373_v51  ;;  %3715 = vmatprep.subr.bf16.mxu0 %v3389_v52  ;;  %v1864_v51 = vunpack.c.l.s8.bf16 %v1048_v19  ;;  %v1064_v52 = vld [vmem:[%s6711_s8 + $0xb0] sm:$0xff] }
 0x247   : > { %3961 = vmatprep.subr.bf16.mxu1 %v3391_v58  ;;  %v1066_v58 = vld [vmem:[%s6711_s8 + $0xc0] sm:$0xff] }
 0x249   : > { %3716 = vmatpush1.bf16.msra.mxu0 %v3388_v59  ;;  %v1881_v59 = vunpack.c.h.s8.bf16 %v1048_v19  ;;  %v1983_v19 = vunpack.c.h.s8.bf16 %v1099_v23 }
 0x24a   : > { %3962 = vmatpush1.bf16.msra.mxu1 %v3390_v1  ;;  %3717 = vmatprep.subr.bf16.mxu0 %v3406_v2  ;;  %v1897_v1 = vunpack.c.l.s8.bf16 %v1064_v52  ;;  %v1063_v2 = vld [vmem:[%s6711_s8 + $0xa8] sm:$0xff] }
 0x24b   : > { %3963 = vmatprep.subr.bf16.mxu1 %v3408_v4  ;;  %v1899_v4 = vunpack.c.l.s8.bf16 %v1066_v58  ;;  %v1896_v10 = vunpack.c.l.s8.bf16 %v1063_v2  ;;  %v1913_v47 = vunpack.c.h.s8.bf16 %v1063_v2  ;;  %v1134_v2 = vld [vmem:[%s6711_s8 + $0x2e0] sm:$0xff] }
 0x24d   : > { %3718 = vmatpush1.bf16.msra.mxu0 %v3405_v11  ;;  %v1898_v11 = vunpack.c.l.s8.bf16 %v1065_v9 }
 0x24e   : > { %3964 = vmatpush1.bf16.msra.mxu1 %v3407_v12  ;;  %3719 = vmatprep.subr.bf16.mxu0 %v3423_v56  ;;  %v1914_v12 = vunpack.c.h.s8.bf16 %v1064_v52  ;;  %v1916_v56 = vunpack.c.h.s8.bf16 %v1066_v58  ;;  %v1116_v52 = vld [vmem:[%s6711_s8 + $0x250] sm:$0xff] }
 0x24f   : > { %3965 = vmatprep.subr.bf16.mxu1 %v3425_v14  ;;  %v1083_v14 = vld [vmem:[%s6711_s8 + $0x148] sm:$0xff]  ;;  %v2000_v58 = vunpack.c.l.s8.bf16 %v1116_v52 }
 0x251   : > { %3720 = vmatpush1.bf16.msra.mxu0 %v3422_v16  ;;  %v1915_v16 = vunpack.c.h.s8.bf16 %v1065_v9  ;;  %v2017_v9 = vunpack.c.h.s8.bf16 %v1116_v52 }
 0x252   : > { %3966 = vmatpush1.bf16.msra.mxu1 %v3424_v21  ;;  %3721 = vmatprep.subr.bf16.mxu0 %v3440_v22  ;;  %v1931_v21 = vunpack.c.l.s8.bf16 %v1081_v13  ;;  %v1080_v22 = vld [vmem:[%s6711_s8 + $0x130] sm:$0xff] }
 0x253   : > { %3967 = vmatprep.subr.bf16.mxu1 %v3442_v24  ;;  %v1933_v24 = vunpack.c.l.s8.bf16 %v1083_v14  ;;  %v1930_v28 = vunpack.c.l.s8.bf16 %v1080_v22  ;;  %v1947_v34 = vunpack.c.h.s8.bf16 %v1080_v22  ;;  %v1151_v22 = vld [vmem:[%s6711_s8 + $0x368] sm:$0xff] }
 0x255   : > { %3722 = vmatpush1.bf16.msra.mxu0 %v3439_v30  ;;  %v1932_v30 = vunpack.c.l.s8.bf16 %v1082_v25 }
 0x256   : > { %3968 = vmatpush1.bf16.msra.mxu1 %v3441_v31  ;;  %3723 = vmatprep.subr.bf16.mxu0 %v3457_v32  ;;  %v1948_v31 = vunpack.c.h.s8.bf16 %v1081_v13  ;;  %v1950_v32 = vunpack.c.h.s8.bf16 %v1083_v14 }
 0x257   : > { %3969 = vmatprep.subr.bf16.mxu1 %v3459_v33  ;;  %v1100_v33 = vld [vmem:[%s6711_s8 + $0x1d0] sm:$0xff] }
 0x259   : > { %3724 = vmatpush1.bf16.msra.mxu0 %v3456_v35  ;;  %v1949_v35 = vunpack.c.h.s8.bf16 %v1082_v25 }
 0x25a   : > { %3970 = vmatpush1.bf16.msra.mxu1 %v3458_v57  ;;  %3725 = vmatprep.subr.bf16.mxu0 %v3474_v36  ;;  %v1965_v57 = vunpack.c.l.s8.bf16 %v1098_v8  ;;  %v1097_v36 = vld [vmem:[%s6711_s8 + $0x1b8] sm:$0xff] }
 0x25b   : > { %3971 = vmatprep.subr.bf16.mxu1 %v3476_v38  ;;  %v1967_v38 = vunpack.c.l.s8.bf16 %v1100_v33  ;;  %v1964_v40 = vunpack.c.l.s8.bf16 %v1097_v36 }
 0x25d   : > { %3726 = vmatpush1.bf16.msra.mxu0 %v3473_v42  ;;  %v1966_v42 = vunpack.c.l.s8.bf16 %v1099_v23 }
 0x25e   : > { %3972 = vmatpush1.bf16.msra.mxu1 %v3475_v46  ;;  %3982 = vmatprep.subr.bf16.mxu0 %v1863_v62  ;;  %v1984_v46 = vunpack.c.h.s8.bf16 %v1100_v33  ;;  %v1115_v62 = vld [vmem:[%s6711_s8 + $0x248] sm:$0xff] }
 0x25f   : > { %4228 = vmatprep.subr.bf16.mxu1 %v1865_v48  ;;  %v1981_v48 = vunpack.c.h.s8.bf16 %v1097_v36  ;;  %v1168_v36 = vld [vmem:[%s6711_s8 + $0x3f0] sm:$0xff] }
 0x260   : > { %3728 = vmatmul.mubr.bf16.vlgmr.msra.gmra.mrb[8].mxu0 %v7110_v60 }
 0x261   : > { %3974 = vmatmul.mubr.bf16.vlgmr.msra.gmra.mrb[8].mxu1 %v7110_v60  ;;  %3983 = vmatpush1.bf16.msra.mxu0 %v1862_v49  ;;  %v1999_v49 = vunpack.c.l.s8.bf16 %v1115_v62 }
 0x262   : > { %4014 = vmatprep.mubr.bf16.mxu0 %v6845_v15  ;;  %4229 = vmatpush1.bf16.msra.mxu1 %v1864_v51  ;;  %v1114_v51 = vld [vmem:[%s6711_s8 + $0x240] sm:$0xff] }
 0x263   : > { %4260 = vmatprep.mubr.bf16.mxu1 %v6845_v15  ;;  %3984 = vmatprep.subr.bf16.mxu0 %v1880_v6  ;;  %v2001_v6 = vunpack.c.l.s8.bf16 %v1117_v17 }
 0x264   : > { %4230 = vmatprep.subr.bf16.mxu1 %v1882_v54  ;;  %v1998_v54 = vunpack.c.l.s8.bf16 %v1114_v51 }
 0x265   : > { %3985 = vmatpush1.bf16.msra.mxu0 %v1879_v50  ;;  %v2016_v50 = vunpack.c.h.s8.bf16 %v1115_v62 }
 0x266   : > { %4231 = vmatpush1.bf16.msra.mxu1 %v1881_v59  ;;  %3986 = vmatprep.subr.bf16.mxu0 %v1897_v1  ;;  %v2018_v59 = vunpack.c.h.s8.bf16 %v1117_v17  ;;  %v1132_v1 = vld [vmem:[%s6711_s8 + $0x2d0] sm:$0xff] }
 0x267   : > { %4232 = vmatprep.subr.bf16.mxu1 %v1899_v4  ;;  %v2015_v4 = vunpack.c.h.s8.bf16 %v1114_v51  ;;  %v1185_v51 = vld [vmem:[%s6711_s8 + $0x478] sm:$0xff] }
 0x269   : > { %3987 = vmatpush1.bf16.msra.mxu0 %v1896_v10  ;;  %v2033_v10 = vunpack.c.l.s8.bf16 %v1132_v1 }
 0x26a   : > { %4233 = vmatpush1.bf16.msra.mxu1 %v1898_v11  ;;  %3988 = vmatprep.subr.bf16.mxu0 %v1914_v12  ;;  %v1131_v11 = vld [vmem:[%s6711_s8 + $0x2c8] sm:$0xff]  ;;  %v2035_v12 = vunpack.c.l.s8.bf16 %v1134_v2 }
 0x26b   : > { %4234 = vmatprep.subr.bf16.mxu1 %v1916_v56  ;;  %v1133_v56 = vld [vmem:[%s6711_s8 + $0x2d8] sm:$0xff]  ;;  %v2032_v13 = vunpack.c.l.s8.bf16 %v1131_v11 }
 0x26c   : > { %v2034_v14 = vunpack.c.l.s8.bf16 %v1133_v56  ;;  %v2051_v25 = vunpack.c.h.s8.bf16 %v1133_v56 }
 0x26d   : > { %3989 = vmatpush1.bf16.msra.mxu0 %v1913_v47  ;;  %v2050_v47 = vunpack.c.h.s8.bf16 %v1132_v1 }
 0x26e   : > { %4235 = vmatpush1.bf16.msra.mxu1 %v1915_v16  ;;  %3990 = vmatprep.subr.bf16.mxu0 %v1931_v21  ;;  %v2052_v16 = vunpack.c.h.s8.bf16 %v1134_v2  ;;  %v1149_v21 = vld [vmem:[%s6711_s8 + $0x358] sm:$0xff] }
 0x26f   : > { %4236 = vmatprep.subr.bf16.mxu1 %v1933_v24  ;;  %v2049_v24 = vunpack.c.h.s8.bf16 %v1131_v11  ;;  %v1202_v11 = vld [vmem:[%s6711_s8 + $0x500] sm:$0xff] }
 0x271   : > { %3991 = vmatpush1.bf16.msra.mxu0 %v1930_v28  ;;  %v2067_v28 = vunpack.c.l.s8.bf16 %v1149_v21 }
 0x272   : > { %4237 = vmatpush1.bf16.msra.mxu1 %v1932_v30  ;;  %3992 = vmatprep.subr.bf16.mxu0 %v1948_v31  ;;  %v1148_v30 = vld [vmem:[%s6711_s8 + $0x350] sm:$0xff]  ;;  %v2069_v31 = vunpack.c.l.s8.bf16 %v1151_v22 }
 0x273   : > { %4238 = vmatprep.subr.bf16.mxu1 %v1950_v32  ;;  %v1150_v32 = vld [vmem:[%s6711_s8 + $0x360] sm:$0xff]  ;;  %v2066_v8 = vunpack.c.l.s8.bf16 %v1148_v30 }
 0x274   : > { %v2068_v33 = vunpack.c.l.s8.bf16 %v1150_v32  ;;  %v2085_v23 = vunpack.c.h.s8.bf16 %v1150_v32 }
 0x275   : > { %3993 = vmatpush1.bf16.msra.mxu0 %v1947_v34  ;;  %v2084_v34 = vunpack.c.h.s8.bf16 %v1149_v21 }
 0x276   : > { %4239 = vmatpush1.bf16.msra.mxu1 %v1949_v35  ;;  %3994 = vmatprep.subr.bf16.mxu0 %v1965_v57  ;;  %v2086_v35 = vunpack.c.h.s8.bf16 %v1151_v22  ;;  %v1166_v57 = vld [vmem:[%s6711_s8 + $0x3e0] sm:$0xff] }
 0x277   : > { %4240 = vmatprep.subr.bf16.mxu1 %v1967_v38  ;;  %v2083_v38 = vunpack.c.h.s8.bf16 %v1148_v30  ;;  %v1219_v30 = vld [vmem:[%s6711_s8 + $0x588] sm:$0xff] }
 0x279   : > { %3995 = vmatpush1.bf16.msra.mxu0 %v1964_v40  ;;  %v2101_v40 = vunpack.c.l.s8.bf16 %v1166_v57 }
 0x27a   : > { %4241 = vmatpush1.bf16.msra.mxu1 %v1966_v42  ;;  %3996 = vmatprep.subr.bf16.mxu0 %v1982_v44  ;;  %v1165_v42 = vld [vmem:[%s6711_s8 + $0x3d8] sm:$0xff]  ;;  %v2103_v44 = vunpack.c.l.s8.bf16 %v1168_v36 }
 0x27b   : > { %4242 = vmatprep.subr.bf16.mxu1 %v1984_v46  ;;  %v1167_v46 = vld [vmem:[%s6711_s8 + $0x3e8] sm:$0xff]  ;;  %v2100_v62 = vunpack.c.l.s8.bf16 %v1165_v42 }
 0x27c   : > { %v2102_v17 = vunpack.c.l.s8.bf16 %v1167_v46  ;;  %v2119_v52 = vunpack.c.h.s8.bf16 %v1167_v46 }
 0x27d   : > { %3997 = vmatpush1.bf16.msra.mxu0 %v1981_v48  ;;  %v2118_v48 = vunpack.c.h.s8.bf16 %v1166_v57 }
 0x27e   : > { %4243 = vmatpush1.bf16.msra.mxu1 %v1983_v19  ;;  %3998 = vmatprep.subr.bf16.mxu0 %v1999_v49  ;;  %v2120_v19 = vunpack.c.h.s8.bf16 %v1168_v36  ;;  %v1183_v49 = vld [vmem:[%s6711_s8 + $0x468] sm:$0xff] }
 0x27f   : > { %4244 = vmatprep.subr.bf16.mxu1 %v2001_v6  ;;  %v2117_v6 = vunpack.c.h.s8.bf16 %v1165_v42  ;;  %v1236_v42 = vld [vmem:[%s6711_s8 + $0x610] sm:$0xff] }
 0x281   : > { %3999 = vmatpush1.bf16.msra.mxu0 %v1998_v54  ;;  %v2135_v54 = vunpack.c.l.s8.bf16 %v1183_v49 }
 0x282   : > { %4245 = vmatpush1.bf16.msra.mxu1 %v2000_v58  ;;  %4000 = vmatprep.subr.bf16.mxu0 %v2016_v50  ;;  %v1182_v58 = vld [vmem:[%s6711_s8 + $0x460] sm:$0xff]  ;;  %v2137_v50 = vunpack.c.l.s8.bf16 %v1185_v51 }
 0x283   : > { %4246 = vmatprep.subr.bf16.mxu1 %v2018_v59  ;;  %v1184_v59 = vld [vmem:[%s6711_s8 + $0x470] sm:$0xff]  ;;  %v2134_v1 = vunpack.c.l.s8.bf16 %v1182_v58 }
 0x284   : > { %v2136_v2 = vunpack.c.l.s8.bf16 %v1184_v59  ;;  %v2153_v56 = vunpack.c.h.s8.bf16 %v1184_v59 }
 0x285   : > { %4001 = vmatpush1.bf16.msra.mxu0 %v2015_v4  ;;  %v2152_v4 = vunpack.c.h.s8.bf16 %v1183_v49 }
 0x286   : > { %4247 = vmatpush1.bf16.msra.mxu1 %v2017_v9  ;;  %4002 = vmatprep.subr.bf16.mxu0 %v2033_v10  ;;  %v1200_v9 = vld [vmem:[%s6711_s8 + $0x4f0] sm:$0xff]  ;;  %v2154_v10 = vunpack.c.h.s8.bf16 %v1185_v51 }
 0x287   : > { %4248 = vmatprep.subr.bf16.mxu1 %v2035_v12  ;;  %v2151_v12 = vunpack.c.h.s8.bf16 %v1182_v58  ;;  %v1253_v58 = vld [vmem:[%s6711_s8 + $0x698] sm:$0xff] }
 0x289   : > { %4003 = vmatpush1.bf16.msra.mxu0 %v2032_v13  ;;  %v2169_v13 = vunpack.c.l.s8.bf16 %v1200_v9 }
 0x28a   : > { %4249 = vmatpush1.bf16.msra.mxu1 %v2034_v14  ;;  %4004 = vmatprep.subr.bf16.mxu0 %v2050_v47  ;;  %v1199_v14 = vld [vmem:[%s6711_s8 + $0x4e8] sm:$0xff]  ;;  %v2171_v47 = vunpack.c.l.s8.bf16 %v1202_v11 }
 0x28b   : > { %4250 = vmatprep.subr.bf16.mxu1 %v2052_v16  ;;  %v1201_v16 = vld [vmem:[%s6711_s8 + $0x4f8] sm:$0xff]  ;;  %v2168_v21 = vunpack.c.l.s8.bf16 %v1199_v14 }
 0x28c   : > { %v2170_v22 = vunpack.c.l.s8.bf16 %v1201_v16  ;;  %v2187_v32 = vunpack.c.h.s8.bf16 %v1201_v16 }
 0x28d   : > { %4005 = vmatpush1.bf16.msra.mxu0 %v2049_v24  ;;  %v2186_v24 = vunpack.c.h.s8.bf16 %v1200_v9  ;;  %v1252_v9 = vld [vmem:[%s6711_s8 + $0x690] sm:$0xff] }
 0x28e   : > { %4251 = vmatpush1.bf16.msra.mxu1 %v2051_v25  ;;  %4006 = vmatprep.subr.bf16.mxu0 %v2067_v28  ;;  %v2188_v25 = vunpack.c.h.s8.bf16 %v1202_v11  ;;  %v1217_v28 = vld [vmem:[%s6711_s8 + $0x578] sm:$0xff]  ;;  %v2272_v11 = vunpack.c.l.s8.bf16 %v1252_v9  ;;  %v2289_v16 = vunpack.c.h.s8.bf16 %v1252_v9 }
 0x28f   : > { %4252 = vmatprep.subr.bf16.mxu1 %v2069_v31  ;;  %v2185_v31 = vunpack.c.h.s8.bf16 %v1199_v14  ;;  %v1270_v14 = vld [vmem:[%s6711_s8 + $0x720] sm:$0xff] }
 0x291   : > { %4007 = vmatpush1.bf16.msra.mxu0 %v2066_v8  ;;  %v2203_v8 = vunpack.c.l.s8.bf16 %v1217_v28 }
 0x292   : > { %4253 = vmatpush1.bf16.msra.mxu1 %v2068_v33  ;;  %4008 = vmatprep.subr.bf16.mxu0 %v2084_v34  ;;  %v1216_v33 = vld [vmem:[%s6711_s8 + $0x570] sm:$0xff]  ;;  %v2205_v34 = vunpack.c.l.s8.bf16 %v1219_v30 }
 0x293   : > { %4254 = vmatprep.subr.bf16.mxu1 %v2086_v35  ;;  %v1218_v35 = vld [vmem:[%s6711_s8 + $0x580] sm:$0xff]  ;;  %v2202_v57 = vunpack.c.l.s8.bf16 %v1216_v33 }
 0x294   : > { %v2204_v36 = vunpack.c.l.s8.bf16 %v1218_v35  ;;  %v2221_v46 = vunpack.c.h.s8.bf16 %v1218_v35 }
 0x295   : > { %4009 = vmatpush1.bf16.msra.mxu0 %v2083_v38  ;;  %v2220_v38 = vunpack.c.h.s8.bf16 %v1217_v28 }
 0x296   : > { %4255 = vmatpush1.bf16.msra.mxu1 %v2085_v23  ;;  %4010 = vmatprep.subr.bf16.mxu0 %v2101_v40  ;;  %v2222_v23 = vunpack.c.h.s8.bf16 %v1219_v30  ;;  %v1234_v40 = vld [vmem:[%s6711_s8 + $0x600] sm:$0xff] }
 0x297   : > { %4256 = vmatprep.subr.bf16.mxu1 %v2103_v44  ;;  %v2219_v44 = vunpack.c.h.s8.bf16 %v1216_v33  ;;  %v1287_v33 = vld [vmem:[%s6711_s8 + $0x7a8] sm:$0xff] }
 0x299   : > { %4011 = vmatpush1.bf16.msra.mxu0 %v2100_v62  ;;  %v2237_v62 = vunpack.c.l.s8.bf16 %v1234_v40 }
 0x29a   : > { %4257 = vmatpush1.bf16.msra.mxu1 %v2102_v17  ;;  %4012 = vmatprep.subr.bf16.mxu0 %v2118_v48  ;;  %v1233_v17 = vld [vmem:[%s6711_s8 + $0x5f8] sm:$0xff]  ;;  %v2239_v48 = vunpack.c.l.s8.bf16 %v1236_v42 }
 0x29b   : > { %4258 = vmatprep.subr.bf16.mxu1 %v2120_v19  ;;  %v1235_v19 = vld [vmem:[%s6711_s8 + $0x608] sm:$0xff]  ;;  %v2236_v49 = vunpack.c.l.s8.bf16 %v1233_v17 }
 0x29c   : > { %v2238_v51 = vunpack.c.l.s8.bf16 %v1235_v19  ;;  %v2255_v59 = vunpack.c.h.s8.bf16 %v1235_v19 }
 0x29d   : > { %4013 = vmatpush1.bf16.msra.mxu0 %v2117_v6  ;;  %v2254_v6 = vunpack.c.h.s8.bf16 %v1234_v40 }
 0x29e   : > { %4259 = vmatpush1.bf16.msra.mxu1 %v2119_v52  ;;  %4023 = vmatprep.subr.bf16.mxu0 %v2135_v54  ;;  %v2256_v52 = vunpack.c.h.s8.bf16 %v1236_v42  ;;  %v1251_v54 = vld [vmem:[%s6711_s8 + $0x688] sm:$0xff] }
 0x29f   : > { %4269 = vmatprep.subr.bf16.mxu1 %v2137_v50  ;;  %v2253_v50 = vunpack.c.h.s8.bf16 %v1233_v17  ;;  %v1304_v17 = vld [vmem:[%s6711_s8 + $0x830] sm:$0xff] }
 0x2a0   : > { %4015 = vmatmul.mubr.bf16.vlgmr.msra.gmra.mrb[12].mxu0 %v6849_v20 }
 0x2a1   : > { %4261 = vmatmul.mubr.bf16.vlgmr.msra.gmra.mrb[12].mxu1 %v6849_v20  ;;  %4024 = vmatpush1.bf16.msra.mxu0 %v2134_v1  ;;  %v2271_v1 = vunpack.c.l.s8.bf16 %v1251_v54 }
 0x2a2   : > { %4055 = vmatprep.mubr.bf16.mxu0 %v6857_v26  ;;  %4270 = vmatpush1.bf16.msra.mxu1 %v2136_v2  ;;  %v1250_v2 = vld [vmem:[%s6711_s8 + $0x680] sm:$0xff] }
 0x2a3   : > { %4301 = vmatprep.mubr.bf16.mxu1 %v6857_v26  ;;  %4025 = vmatprep.subr.bf16.mxu0 %v2152_v4  ;;  %v2273_v4 = vunpack.c.l.s8.bf16 %v1253_v58 }
 0x2a4   : > { %4271 = vmatprep.subr.bf16.mxu1 %v2154_v10  ;;  %v2270_v10 = vunpack.c.l.s8.bf16 %v1250_v2 }
 0x2a5   : > { %4026 = vmatpush1.bf16.msra.mxu0 %v2151_v12  ;;  %v2288_v12 = vunpack.c.h.s8.bf16 %v1251_v54 }
 0x2a6   : > { %4272 = vmatpush1.bf16.msra.mxu1 %v2153_v56  ;;  %4027 = vmatprep.subr.bf16.mxu0 %v2169_v13  ;;  %v2290_v56 = vunpack.c.h.s8.bf16 %v1253_v58  ;;  %v1268_v13 = vld [vmem:[%s6711_s8 + $0x710] sm:$0xff] }
 0x2a7   : > { %4273 = vmatprep.subr.bf16.mxu1 %v2171_v47  ;;  %v2287_v47 = vunpack.c.h.s8.bf16 %v1250_v2  ;;  %v1321_v2 = vld [vmem:[%s6711_s8 + $0x8b8] sm:$0xff] }
 0x2a9   : > { %4028 = vmatpush1.bf16.msra.mxu0 %v2168_v21  ;;  %v2305_v21 = vunpack.c.l.s8.bf16 %v1268_v13 }
 0x2aa   : > { %4274 = vmatpush1.bf16.msra.mxu1 %v2170_v22  ;;  %4029 = vmatprep.subr.bf16.mxu0 %v2186_v24  ;;  %v1267_v22 = vld [vmem:[%s6711_s8 + $0x708] sm:$0xff]  ;;  %v2307_v24 = vunpack.c.l.s8.bf16 %v1270_v14 }
 0x2ab   : > { %4275 = vmatprep.subr.bf16.mxu1 %v2188_v25  ;;  %v1269_v25 = vld [vmem:[%s6711_s8 + $0x718] sm:$0xff]  ;;  %v2304_v28 = vunpack.c.l.s8.bf16 %v1267_v22 }
 0x2ac   : > { %v2306_v30 = vunpack.c.l.s8.bf16 %v1269_v25  ;;  %v2323_v35 = vunpack.c.h.s8.bf16 %v1269_v25 }
 0x2ad   : > { %4030 = vmatpush1.bf16.msra.mxu0 %v2185_v31  ;;  %v2322_v31 = vunpack.c.h.s8.bf16 %v1268_v13 }
 0x2ae   : > { %4276 = vmatpush1.bf16.msra.mxu1 %v2187_v32  ;;  %4031 = vmatprep.subr.bf16.mxu0 %v2203_v8  ;;  %v2324_v32 = vunpack.c.h.s8.bf16 %v1270_v14  ;;  %v1285_v8 = vld [vmem:[%s6711_s8 + $0x798] sm:$0xff] }
 0x2af   : > { %4277 = vmatprep.subr.bf16.mxu1 %v2205_v34  ;;  %v2321_v34 = vunpack.c.h.s8.bf16 %v1267_v22  ;;  %v1338_v22 = vld [vmem:[%s6711_s8 + $0x940] sm:$0xff] }
 0x2b1   : > { %4032 = vmatpush1.bf16.msra.mxu0 %v2202_v57  ;;  %v2339_v57 = vunpack.c.l.s8.bf16 %v1285_v8 }
 0x2b2   : > { %4278 = vmatpush1.bf16.msra.mxu1 %v2204_v36  ;;  %4033 = vmatprep.subr.bf16.mxu0 %v2220_v38  ;;  %v1284_v36 = vld [vmem:[%s6711_s8 + $0x790] sm:$0xff]  ;;  %v2341_v38 = vunpack.c.l.s8.bf16 %v1287_v33 }
 0x2b3   : > { %4279 = vmatprep.subr.bf16.mxu1 %v2222_v23  ;;  %v1286_v23 = vld [vmem:[%s6711_s8 + $0x7a0] sm:$0xff]  ;;  %v2338_v40 = vunpack.c.l.s8.bf16 %v1284_v36 }
 0x2b4   : > { %v2340_v42 = vunpack.c.l.s8.bf16 %v1286_v23  ;;  %v2357_v19 = vunpack.c.h.s8.bf16 %v1286_v23 }
 0x2b5   : > { %4034 = vmatpush1.bf16.msra.mxu0 %v2219_v44  ;;  %v2356_v44 = vunpack.c.h.s8.bf16 %v1285_v8 }
 0x2b6   : > { %4280 = vmatpush1.bf16.msra.mxu1 %v2221_v46  ;;  %4035 = vmatprep.subr.bf16.mxu0 %v2237_v62  ;;  %v2358_v46 = vunpack.c.h.s8.bf16 %v1287_v33  ;;  %v1302_v62 = vld [vmem:[%s6711_s8 + $0x820] sm:$0xff] }
 0x2b7   : > { %4281 = vmatprep.subr.bf16.mxu1 %v2239_v48  ;;  %v2355_v48 = vunpack.c.h.s8.bf16 %v1284_v36  ;;  %v1355_v36 = vld [vmem:[%s6711_s8 + $0x9c8] sm:$0xff] }
 0x2b9   : > { %4036 = vmatpush1.bf16.msra.mxu0 %v2236_v49  ;;  %v2373_v49 = vunpack.c.l.s8.bf16 %v1302_v62 }
 0x2ba   : > { %4282 = vmatpush1.bf16.msra.mxu1 %v2238_v51  ;;  %4037 = vmatprep.subr.bf16.mxu0 %v2254_v6  ;;  %v1301_v51 = vld [vmem:[%s6711_s8 + $0x818] sm:$0xff]  ;;  %v2375_v6 = vunpack.c.l.s8.bf16 %v1304_v17 }
 0x2bb   : > { %4283 = vmatprep.subr.bf16.mxu1 %v2256_v52  ;;  %v1303_v52 = vld [vmem:[%s6711_s8 + $0x828] sm:$0xff]  ;;  %v2372_v54 = vunpack.c.l.s8.bf16 %v1301_v51 }
 0x2bc   : > { %v2374_v58 = vunpack.c.l.s8.bf16 %v1303_v52  ;;  %v2391_v9 = vunpack.c.h.s8.bf16 %v1303_v52 }
 0x2bd   : > { %4038 = vmatpush1.bf16.msra.mxu0 %v2253_v50  ;;  %v2390_v50 = vunpack.c.h.s8.bf16 %v1302_v62 }
 0x2be   : > { %4284 = vmatpush1.bf16.msra.mxu1 %v2255_v59  ;;  %4039 = vmatprep.subr.bf16.mxu0 %v2271_v1  ;;  %v2392_v59 = vunpack.c.h.s8.bf16 %v1304_v17  ;;  %v1319_v1 = vld [vmem:[%s6711_s8 + $0x8a8] sm:$0xff] }
 0x2bf   : > { %4285 = vmatprep.subr.bf16.mxu1 %v2273_v4  ;;  %v2389_v4 = vunpack.c.h.s8.bf16 %v1301_v51  ;;  %v1372_v51 = vld [vmem:[%s6711_s8 + $0xa50] sm:$0xff] }
 0x2c1   : > { %4040 = vmatpush1.bf16.msra.mxu0 %v2270_v10  ;;  %v2407_v10 = vunpack.c.l.s8.bf16 %v1319_v1 }
 0x2c2   : > { %4286 = vmatpush1.bf16.msra.mxu1 %v2272_v11  ;;  %4041 = vmatprep.subr.bf16.mxu0 %v2288_v12  ;;  %v1318_v11 = vld [vmem:[%s6711_s8 + $0x8a0] sm:$0xff]  ;;  %v2409_v12 = vunpack.c.l.s8.bf16 %v1321_v2 }
 0x2c3   : > { %4287 = vmatprep.subr.bf16.mxu1 %v2290_v56  ;;  %v1320_v56 = vld [vmem:[%s6711_s8 + $0x8b0] sm:$0xff]  ;;  %v2406_v13 = vunpack.c.l.s8.bf16 %v1318_v11 }
 0x2c4   : > { %v2408_v14 = vunpack.c.l.s8.bf16 %v1320_v56  ;;  %v2425_v25 = vunpack.c.h.s8.bf16 %v1320_v56 }
 0x2c5   : > { %4042 = vmatpush1.bf16.msra.mxu0 %v2287_v47  ;;  %v2424_v47 = vunpack.c.h.s8.bf16 %v1319_v1 }
 0x2c6   : > { %4288 = vmatpush1.bf16.msra.mxu1 %v2289_v16  ;;  %4043 = vmatprep.subr.bf16.mxu0 %v2305_v21  ;;  %v1336_v16 = vld [vmem:[%s6711_s8 + $0x930] sm:$0xff]  ;;  %v2426_v21 = vunpack.c.h.s8.bf16 %v1321_v2 }
 0x2c7   : > { %4289 = vmatprep.subr.bf16.mxu1 %v2307_v24  ;;  %v2423_v24 = vunpack.c.h.s8.bf16 %v1318_v11  ;;  %v1389_v11 = vld [vmem:[%s6711_s8 + $0xad8] sm:$0xff] }
 0x2c9   : > { %4044 = vmatpush1.bf16.msra.mxu0 %v2304_v28  ;;  %v2441_v28 = vunpack.c.l.s8.bf16 %v1336_v16 }
 0x2ca   : > { %4290 = vmatpush1.bf16.msra.mxu1 %v2306_v30  ;;  %4045 = vmatprep.subr.bf16.mxu0 %v2322_v31  ;;  %v1335_v30 = vld [vmem:[%s6711_s8 + $0x928] sm:$0xff]  ;;  %v2443_v31 = vunpack.c.l.s8.bf16 %v1338_v22 }
 0x2cb   : > { %4291 = vmatprep.subr.bf16.mxu1 %v2324_v32  ;;  %v1337_v32 = vld [vmem:[%s6711_s8 + $0x938] sm:$0xff]  ;;  %v2440_v8 = vunpack.c.l.s8.bf16 %v1335_v30 }
 0x2cc   : > { %v2442_v33 = vunpack.c.l.s8.bf16 %v1337_v32  ;;  %v2459_v23 = vunpack.c.h.s8.bf16 %v1337_v32 }
 0x2cd   : > { %4046 = vmatpush1.bf16.msra.mxu0 %v2321_v34  ;;  %v2458_v34 = vunpack.c.h.s8.bf16 %v1336_v16  ;;  %v1388_v16 = vld [vmem:[%s6711_s8 + $0xad0] sm:$0xff] }
 0x2ce   : > { %4292 = vmatpush1.bf16.msra.mxu1 %v2323_v35  ;;  %4047 = vmatprep.subr.bf16.mxu0 %v2339_v57  ;;  %v2460_v35 = vunpack.c.h.s8.bf16 %v1338_v22  ;;  %v1353_v57 = vld [vmem:[%s6711_s8 + $0x9b8] sm:$0xff]  ;;  %v2544_v22 = vunpack.c.l.s8.bf16 %v1388_v16  ;;  %v2561_v32 = vunpack.c.h.s8.bf16 %v1388_v16 }
 0x2cf   : > { %4293 = vmatprep.subr.bf16.mxu1 %v2341_v38  ;;  %v2457_v38 = vunpack.c.h.s8.bf16 %v1335_v30  ;;  %v1406_v30 = vld [vmem:[%s6711_s8 + $0xb60] sm:$0xff] }
 0x2d1   : > { %4048 = vmatpush1.bf16.msra.mxu0 %v2338_v40  ;;  %v2475_v40 = vunpack.c.l.s8.bf16 %v1353_v57 }
 0x2d2   : > { %4294 = vmatpush1.bf16.msra.mxu1 %v2340_v42  ;;  %4049 = vmatprep.subr.bf16.mxu0 %v2356_v44  ;;  %v1352_v42 = vld [vmem:[%s6711_s8 + $0x9b0] sm:$0xff]  ;;  %v2477_v44 = vunpack.c.l.s8.bf16 %v1355_v36 }
 0x2d3   : > { %4295 = vmatprep.subr.bf16.mxu1 %v2358_v46  ;;  %v1354_v46 = vld [vmem:[%s6711_s8 + $0x9c0] sm:$0xff]  ;;  %v2474_v62 = vunpack.c.l.s8.bf16 %v1352_v42 }
 0x2d4   : > { %v2476_v17 = vunpack.c.l.s8.bf16 %v1354_v46  ;;  %v2493_v52 = vunpack.c.h.s8.bf16 %v1354_v46 }
 0x2d5   : > { %4050 = vmatpush1.bf16.msra.mxu0 %v2355_v48  ;;  %v2492_v48 = vunpack.c.h.s8.bf16 %v1353_v57 }
 0x2d6   : > { %4296 = vmatpush1.bf16.msra.mxu1 %v2357_v19  ;;  %4051 = vmatprep.subr.bf16.mxu0 %v2373_v49  ;;  %v2494_v19 = vunpack.c.h.s8.bf16 %v1355_v36  ;;  %v1370_v49 = vld [vmem:[%s6711_s8 + $0xa40] sm:$0xff] }
 0x2d7   : > { %4297 = vmatprep.subr.bf16.mxu1 %v2375_v6  ;;  %v2491_v6 = vunpack.c.h.s8.bf16 %v1352_v42  ;;  %v1423_v42 = vld [vmem:[%s6711_s8 + $0xbe8] sm:$0xff] }
 0x2d9   : > { %4052 = vmatpush1.bf16.msra.mxu0 %v2372_v54  ;;  %v2509_v54 = vunpack.c.l.s8.bf16 %v1370_v49 }
 0x2da   : > { %4298 = vmatpush1.bf16.msra.mxu1 %v2374_v58  ;;  %4053 = vmatprep.subr.bf16.mxu0 %v2390_v50  ;;  %v1369_v58 = vld [vmem:[%s6711_s8 + $0xa38] sm:$0xff]  ;;  %v2511_v50 = vunpack.c.l.s8.bf16 %v1372_v51 }
 0x2db   : > { %4299 = vmatprep.subr.bf16.mxu1 %v2392_v59  ;;  %v1371_v59 = vld [vmem:[%s6711_s8 + $0xa48] sm:$0xff]  ;;  %v2508_v1 = vunpack.c.l.s8.bf16 %v1369_v58 }
 0x2dc   : > { %v2510_v2 = vunpack.c.l.s8.bf16 %v1371_v59  ;;  %v2527_v56 = vunpack.c.h.s8.bf16 %v1371_v59 }
 0x2dd   : > { %4054 = vmatpush1.bf16.msra.mxu0 %v2389_v4  ;;  %v2526_v4 = vunpack.c.h.s8.bf16 %v1370_v49 }
 0x2de   : > { %4300 = vmatpush1.bf16.msra.mxu1 %v2391_v9  ;;  %4064 = vmatprep.subr.bf16.mxu0 %v2407_v10  ;;  %v2528_v9 = vunpack.c.h.s8.bf16 %v1372_v51  ;;  %v1387_v10 = vld [vmem:[%s6711_s8 + $0xac8] sm:$0xff] }
 0x2df   : > { %4310 = vmatprep.subr.bf16.mxu1 %v2409_v12  ;;  %v2525_v12 = vunpack.c.h.s8.bf16 %v1369_v58  ;;  %v1440_v58 = vld [vmem:[%s6711_s8 + $0xc70] sm:$0xff] }
 0x2e0   : > { %4056 = vmatmul.mubr.bf16.vlgmr.msra.gmra.mrb[12].mxu0 %v6924_v37 }
 0x2e1   : > { %4302 = vmatmul.mubr.bf16.vlgmr.msra.gmra.mrb[12].mxu1 %v6924_v37  ;;  %4065 = vmatpush1.bf16.msra.mxu0 %v2406_v13  ;;  %v2543_v13 = vunpack.c.l.s8.bf16 %v1387_v10 }
 0x2e2   : > { %4096 = vmatprep.mubr.bf16.mxu0 %v6928_v43  ;;  %4311 = vmatpush1.bf16.msra.mxu1 %v2408_v14  ;;  %v1386_v14 = vld [vmem:[%s6711_s8 + $0xac0] sm:$0xff] }
 0x2e3   : > { %4342 = vmatprep.mubr.bf16.mxu1 %v6928_v43  ;;  %4066 = vmatprep.subr.bf16.mxu0 %v2424_v47  ;;  %v2545_v47 = vunpack.c.l.s8.bf16 %v1389_v11 }
 0x2e4   : > { %4312 = vmatprep.subr.bf16.mxu1 %v2426_v21  ;;  %v2542_v21 = vunpack.c.l.s8.bf16 %v1386_v14 }
 0x2e5   : > { %4067 = vmatpush1.bf16.msra.mxu0 %v2423_v24  ;;  %v2560_v24 = vunpack.c.h.s8.bf16 %v1387_v10 }
 0x2e6   : > { %4313 = vmatpush1.bf16.msra.mxu1 %v2425_v25  ;;  %4068 = vmatprep.subr.bf16.mxu0 %v2441_v28  ;;  %v2562_v25 = vunpack.c.h.s8.bf16 %v1389_v11  ;;  %v1404_v28 = vld [vmem:[%s6711_s8 + $0xb50] sm:$0xff] }
 0x2e7   : > { %4314 = vmatprep.subr.bf16.mxu1 %v2443_v31  ;;  %v2559_v31 = vunpack.c.h.s8.bf16 %v1386_v14  ;;  %v1457_v14 = vld [vmem:[%s6711_s8 + $0xcf8] sm:$0xff] }
 0x2e9   : > { %4069 = vmatpush1.bf16.msra.mxu0 %v2440_v8  ;;  %v2577_v8 = vunpack.c.l.s8.bf16 %v1404_v28 }
 0x2ea   : > { %4315 = vmatpush1.bf16.msra.mxu1 %v2442_v33  ;;  %4070 = vmatprep.subr.bf16.mxu0 %v2458_v34  ;;  %v1403_v33 = vld [vmem:[%s6711_s8 + $0xb48] sm:$0xff]  ;;  %v2579_v34 = vunpack.c.l.s8.bf16 %v1406_v30 }
 0x2eb   : > { %4316 = vmatprep.subr.bf16.mxu1 %v2460_v35  ;;  %v1405_v35 = vld [vmem:[%s6711_s8 + $0xb58] sm:$0xff]  ;;  %v2576_v57 = vunpack.c.l.s8.bf16 %v1403_v33 }
 0x2ec   : > { %v2578_v36 = vunpack.c.l.s8.bf16 %v1405_v35  ;;  %v2595_v46 = vunpack.c.h.s8.bf16 %v1405_v35 }
 0x2ed   : > { %4071 = vmatpush1.bf16.msra.mxu0 %v2457_v38  ;;  %v2594_v38 = vunpack.c.h.s8.bf16 %v1404_v28 }
 0x2ee   : > { %4317 = vmatpush1.bf16.msra.mxu1 %v2459_v23  ;;  %4072 = vmatprep.subr.bf16.mxu0 %v2475_v40  ;;  %v2596_v23 = vunpack.c.h.s8.bf16 %v1406_v30  ;;  %v1421_v40 = vld [vmem:[%s6711_s8 + $0xbd8] sm:$0xff] }
 0x2ef   : > { %4318 = vmatprep.subr.bf16.mxu1 %v2477_v44  ;;  %v2593_v44 = vunpack.c.h.s8.bf16 %v1403_v33  ;;  %v1474_v33 = vld [vmem:[%s6711_s8 + $0xd80] sm:$0xff] }
 0x2f1   : > { %4073 = vmatpush1.bf16.msra.mxu0 %v2474_v62  ;;  %v2611_v62 = vunpack.c.l.s8.bf16 %v1421_v40 }
 0x2f2   : > { %4319 = vmatpush1.bf16.msra.mxu1 %v2476_v17  ;;  %4074 = vmatprep.subr.bf16.mxu0 %v2492_v48  ;;  %v1420_v17 = vld [vmem:[%s6711_s8 + $0xbd0] sm:$0xff]  ;;  %v2613_v48 = vunpack.c.l.s8.bf16 %v1423_v42 }
 0x2f3   : > { %4320 = vmatprep.subr.bf16.mxu1 %v2494_v19  ;;  %v1422_v19 = vld [vmem:[%s6711_s8 + $0xbe0] sm:$0xff]  ;;  %v2610_v49 = vunpack.c.l.s8.bf16 %v1420_v17 }
 0x2f4   : > { %v2612_v51 = vunpack.c.l.s8.bf16 %v1422_v19  ;;  %v2629_v59 = vunpack.c.h.s8.bf16 %v1422_v19 }
 0x2f5   : > { %4075 = vmatpush1.bf16.msra.mxu0 %v2491_v6  ;;  %v2628_v6 = vunpack.c.h.s8.bf16 %v1421_v40 }
 0x2f6   : > { %4321 = vmatpush1.bf16.msra.mxu1 %v2493_v52  ;;  %4076 = vmatprep.subr.bf16.mxu0 %v2509_v54  ;;  %v2630_v52 = vunpack.c.h.s8.bf16 %v1423_v42  ;;  %v1438_v54 = vld [vmem:[%s6711_s8 + $0xc60] sm:$0xff] }
 0x2f7   : > { %4322 = vmatprep.subr.bf16.mxu1 %v2511_v50  ;;  %v2627_v50 = vunpack.c.h.s8.bf16 %v1420_v17  ;;  %v1491_v17 = vld [vmem:[%s6711_s8 + $0xe08] sm:$0xff] }
 0x2f9   : > { %4077 = vmatpush1.bf16.msra.mxu0 %v2508_v1  ;;  %v2645_v1 = vunpack.c.l.s8.bf16 %v1438_v54 }
 0x2fa   : > { %4323 = vmatpush1.bf16.msra.mxu1 %v2510_v2  ;;  %4078 = vmatprep.subr.bf16.mxu0 %v2526_v4  ;;  %v1437_v2 = vld [vmem:[%s6711_s8 + $0xc58] sm:$0xff]  ;;  %v2647_v4 = vunpack.c.l.s8.bf16 %v1440_v58 }
 0x2fb   : > { %4324 = vmatprep.subr.bf16.mxu1 %v2528_v9  ;;  %v1439_v9 = vld [vmem:[%s6711_s8 + $0xc68] sm:$0xff]  ;;  %v2644_v10 = vunpack.c.l.s8.bf16 %v1437_v2 }
 0x2fc   : > { %v2646_v11 = vunpack.c.l.s8.bf16 %v1439_v9  ;;  %v2663_v16 = vunpack.c.h.s8.bf16 %v1439_v9 }
 0x2fd   : > { %4079 = vmatpush1.bf16.msra.mxu0 %v2525_v12  ;;  %v2662_v12 = vunpack.c.h.s8.bf16 %v1438_v54 }
 0x2fe   : > { %4325 = vmatpush1.bf16.msra.mxu1 %v2527_v56  ;;  %4080 = vmatprep.subr.bf16.mxu0 %v2543_v13  ;;  %v2664_v56 = vunpack.c.h.s8.bf16 %v1440_v58  ;;  %v1455_v13 = vld [vmem:[%s6711_s8 + $0xce8] sm:$0xff] }
 0x2ff   : > { %4326 = vmatprep.subr.bf16.mxu1 %v2545_v47  ;;  %v2661_v47 = vunpack.c.h.s8.bf16 %v1437_v2  ;;  %v1508_v2 = vld [vmem:[%s6711_s8 + $0xe90] sm:$0xff] }
 0x301   : > { %4081 = vmatpush1.bf16.msra.mxu0 %v2542_v21  ;;  %v2679_v21 = vunpack.c.l.s8.bf16 %v1455_v13 }
 0x302   : > { %4327 = vmatpush1.bf16.msra.mxu1 %v2544_v22  ;;  %4082 = vmatprep.subr.bf16.mxu0 %v2560_v24  ;;  %v1454_v22 = vld [vmem:[%s6711_s8 + $0xce0] sm:$0xff]  ;;  %v2681_v24 = vunpack.c.l.s8.bf16 %v1457_v14 }
 0x303   : > { %4328 = vmatprep.subr.bf16.mxu1 %v2562_v25  ;;  %v1456_v25 = vld [vmem:[%s6711_s8 + $0xcf0] sm:$0xff]  ;;  %v2678_v28 = vunpack.c.l.s8.bf16 %v1454_v22 }
 0x304   : > { %v2680_v30 = vunpack.c.l.s8.bf16 %v1456_v25  ;;  %v2697_v35 = vunpack.c.h.s8.bf16 %v1456_v25 }
 0x305   : > { %4083 = vmatpush1.bf16.msra.mxu0 %v2559_v31  ;;  %v2696_v31 = vunpack.c.h.s8.bf16 %v1455_v13  ;;  %v1507_v13 = vld [vmem:[%s6711_s8 + $0xe88] sm:$0xff] }
 0x306   : > { %4329 = vmatpush1.bf16.msra.mxu1 %v2561_v32  ;;  %4084 = vmatprep.subr.bf16.mxu0 %v2577_v8  ;;  %v1472_v32 = vld [vmem:[%s6711_s8 + $0xd70] sm:$0xff]  ;;  %v2698_v8 = vunpack.c.h.s8.bf16 %v1457_v14 }
 0x307   : > { %4330 = vmatprep.subr.bf16.mxu1 %v2579_v34  ;;  %v2695_v34 = vunpack.c.h.s8.bf16 %v1454_v22  ;;  %v1022_v22 = vld [vmem:[#allocation3 + $0x8] sm:$0xff] }
 0x309   : > { %4085 = vmatpush1.bf16.msra.mxu0 %v2576_v57  ;;  %v2713_v57 = vunpack.c.l.s8.bf16 %v1472_v32 }
 0x30a   : > { %4331 = vmatpush1.bf16.msra.mxu1 %v2578_v36  ;;  %4086 = vmatprep.subr.bf16.mxu0 %v2594_v38  ;;  %v1471_v36 = vld [vmem:[%s6711_s8 + $0xd68] sm:$0xff]  ;;  %v2715_v38 = vunpack.c.l.s8.bf16 %v1474_v33 }
 0x30b   : > { %4332 = vmatprep.subr.bf16.mxu1 %v2596_v23  ;;  %v1473_v23 = vld [vmem:[%s6711_s8 + $0xd78] sm:$0xff]  ;;  %v2712_v40 = vunpack.c.l.s8.bf16 %v1471_v36 }
 0x30c   : > { %v2714_v42 = vunpack.c.l.s8.bf16 %v1473_v23  ;;  %v2731_v19 = vunpack.c.h.s8.bf16 %v1473_v23  ;;  %v1525_v23 = vld [vmem:[%s6711_s8 + $0xf18] sm:$0xff] }
 0x30d   : > { %4087 = vmatpush1.bf16.msra.mxu0 %v2593_v44  ;;  %v2730_v44 = vunpack.c.h.s8.bf16 %v1472_v32 }
 0x30e   : > { %4333 = vmatpush1.bf16.msra.mxu1 %v2595_v46  ;;  %4088 = vmatprep.subr.bf16.mxu0 %v2611_v62  ;;  %v2732_v46 = vunpack.c.h.s8.bf16 %v1474_v33  ;;  %v1489_v62 = vld [vmem:[%s6711_s8 + $0xdf8] sm:$0xff] }
 0x30f   : > { %4334 = vmatprep.subr.bf16.mxu1 %v2613_v48  ;;  %v2729_v48 = vunpack.c.h.s8.bf16 %v1471_v36  ;;  %v1523_v36 = vld [vmem:[%s6711_s8 + $0xf08] sm:$0xff] }
 0x311   : > { %4089 = vmatpush1.bf16.msra.mxu0 %v2610_v49  ;;  %v2747_v49 = vunpack.c.l.s8.bf16 %v1489_v62 }
 0x312   : > { %4335 = vmatpush1.bf16.msra.mxu1 %v2612_v51  ;;  %4090 = vmatprep.subr.bf16.mxu0 %v2628_v6  ;;  %v1488_v51 = vld [vmem:[%s6711_s8 + $0xdf0] sm:$0xff]  ;;  %v2749_v6 = vunpack.c.l.s8.bf16 %v1491_v17 }
 0x313   : > { %4336 = vmatprep.subr.bf16.mxu1 %v2630_v52  ;;  %v1490_v52 = vld [vmem:[%s6711_s8 + $0xe00] sm:$0xff]  ;;  %v2746_v54 = vunpack.c.l.s8.bf16 %v1488_v51 }
 0x314   : > { %v2748_v58 = vunpack.c.l.s8.bf16 %v1490_v52  ;;  %v2765_v9 = vunpack.c.h.s8.bf16 %v1490_v52  ;;  %v1542_v52 = vld [vmem:[%s6711_s8 + $0xfa0] sm:$0xff] }
 0x315   : > { %4091 = vmatpush1.bf16.msra.mxu0 %v2627_v50  ;;  %v2764_v50 = vunpack.c.h.s8.bf16 %v1489_v62  ;;  %v2817_v62 = vunpack.c.l.s8.bf16 %v1525_v23 }
 0x316   : > { %4337 = vmatpush1.bf16.msra.mxu1 %v2629_v59  ;;  %4092 = vmatprep.subr.bf16.mxu0 %v2645_v1  ;;  %v2766_v59 = vunpack.c.h.s8.bf16 %v1491_v17  ;;  %v1506_v1 = vld [vmem:[%s6711_s8 + $0xe80] sm:$0xff]  ;;  %v1524_v17 = vld [vmem:[%s6711_s8 + $0xf10] sm:$0xff] }
 0x317   : > { %4338 = vmatprep.subr.bf16.mxu1 %v2647_v4  ;;  %v2763_v4 = vunpack.c.h.s8.bf16 %v1488_v51  ;;  %v2798_v33 = vunpack.c.h.s8.bf16 %v1506_v1  ;;  %v2834_v51 = vunpack.c.h.s8.bf16 %v1525_v23 }
 0x319   : > { %4093 = vmatpush1.bf16.msra.mxu0 %v2644_v10  ;;  %v2781_v10 = vunpack.c.l.s8.bf16 %v1506_v1  ;;  %v2851_v1 = vunpack.c.l.s8.bf16 %v1542_v52 }
 0x31a   : > { %4339 = vmatpush1.bf16.msra.mxu1 %v2646_v11  ;;  %4094 = vmatprep.subr.bf16.mxu0 %v2662_v12  ;;  %v1505_v11 = vld [vmem:[%s6711_s8 + $0xe78] sm:$0xff] }
 0x31b   : > { %4340 = vmatprep.subr.bf16.mxu1 %v2664_v56  ;;  %v2783_v56 = vunpack.c.l.s8.bf16 %v1508_v2 }
 0x31d   : > { %4095 = vmatpush1.bf16.msra.mxu0 %v2661_v47  ;;  %v1021_v47 = vld [vmem:[#allocation3] sm:$0xff] }
 0x31e   : > { %4341 = vmatpush1.bf16.msra.mxu1 %v2663_v16  ;;  %4105 = vmatprep.subr.bf16.mxu0 %v2679_v21 }
 0x31f   : > { %4351 = vmatprep.subr.bf16.mxu1 %v2681_v24 }
 0x320   : > { %4097 = vmatmul.mubr.bf16.vlgmr.msra.gmra.mrb[12].mxu0 %v6976_v55 }
 0x321   : > { %4343 = vmatmul.mubr.bf16.vlgmr.msra.gmra.mrb[12].mxu1 %v6976_v55  ;;  %4106 = vmatpush1.bf16.msra.mxu0 %v2678_v28  ;;  %v2780_v28 = vunpack.c.l.s8.bf16 %v1505_v11 }
 0x322   : > { %4137 = vmatprep.mubr.bf16.mxu0 %v6980_v7  ;;  %4352 = vmatpush1.bf16.msra.mxu1 %v2680_v30 }
 0x323   : > { %4383 = vmatprep.mubr.bf16.mxu1 %v6980_v7  ;;  %4107 = vmatprep.subr.bf16.mxu0 %v2696_v31 }
 0x324   : > { %4353 = vmatprep.subr.bf16.mxu1 %v2698_v8  ;;  %v2782_v8 = vunpack.c.l.s8.bf16 %v1507_v13 }
 0x325   : > { %4108 = vmatpush1.bf16.msra.mxu0 %v2695_v34 }
 0x326   : > { %4354 = vmatpush1.bf16.msra.mxu1 %v2697_v35  ;;  %4109 = vmatprep.subr.bf16.mxu0 %v2713_v57  ;;  %v2800_v57 = vunpack.c.h.s8.bf16 %v1508_v2  ;;  %v1541_v2 = vld [vmem:[%s6711_s8 + $0xf98] sm:$0xff] }
 0x327   : > { %4355 = vmatprep.subr.bf16.mxu1 %v2715_v38 }
 0x329   : > { %4110 = vmatpush1.bf16.msra.mxu0 %v2712_v40  ;;  %v2797_v40 = vunpack.c.h.s8.bf16 %v1505_v11  ;;  %v2868_v11 = vunpack.c.h.s8.bf16 %v1542_v52 }
 0x32a   : > { %4356 = vmatpush1.bf16.msra.mxu1 %v2714_v42  ;;  %4111 = vmatprep.subr.bf16.mxu0 %v2730_v44  ;;  %v2799_v42 = vunpack.c.h.s8.bf16 %v1507_v13  ;;  %v2815_v44 = vunpack.c.l.s8.bf16 %v1523_v36 }
 0x32b   : > { %4357 = vmatprep.subr.bf16.mxu1 %v2732_v46  ;;  %v1522_v46 = vld [vmem:[%s6711_s8 + $0xf00] sm:$0xff] }
 0x32d   : > { %4112 = vmatpush1.bf16.msra.mxu0 %v2729_v48  ;;  %v2814_v48 = vunpack.c.l.s8.bf16 %v1522_v46 }
 0x32e   : > { %4358 = vmatpush1.bf16.msra.mxu1 %v2731_v19  ;;  %4113 = vmatprep.subr.bf16.mxu0 %v2747_v49  ;;  %v2816_v19 = vunpack.c.l.s8.bf16 %v1524_v17  ;;  %v2832_v49 = vunpack.c.h.s8.bf16 %v1523_v36  ;;  %v1575_v36 = vld [vmem:[%s6711_s8 + $0x10a8] sm:$0xff] }
 0x32f   : > { %4359 = vmatprep.subr.bf16.mxu1 %v2749_v6  ;;  %v1540_v6 = vld [vmem:[%s6711_s8 + $0xf90] sm:$0xff]  ;;  %v2918_v23 = vunpack.c.l.s8.bf16 %v1575_v36 }
 0x331   : > { %4114 = vmatpush1.bf16.msra.mxu0 %v2746_v54  ;;  %v2831_v54 = vunpack.c.h.s8.bf16 %v1522_v46  ;;  %v1593_v46 = vld [vmem:[%s6711_s8 + $0x1138] sm:$0xff] }
 0x332   : > { %4360 = vmatpush1.bf16.msra.mxu1 %v2748_v58  ;;  %4115 = vmatprep.subr.bf16.mxu0 %v2764_v50  ;;  %v2833_v58 = vunpack.c.h.s8.bf16 %v1524_v17  ;;  %v2849_v50 = vunpack.c.l.s8.bf16 %v1540_v6  ;;  %v2935_v17 = vunpack.c.h.s8.bf16 %v1575_v36 }
 0x333   : > { %v3729_v12 = vpop.f32.mrb[8].mxu0  ;;  %4361 = vmatprep.subr.bf16.mxu1 %v2766_v59  ;;  %v1539_v59 = vld [vmem:[%s6711_s8 + $0xf88] sm:$0xff] }
 0x334   : > { %v3975_v14 = vpop.f32.mrb[8].mxu1  ;;  %v3731_v16 = vpop.f32.mrb[9].mxu0  ;;  %v2865_v13 = vunpack.c.h.s8.bf16 %v1539_v59 }
 0x335   : > { %v5714_v21 = vcombine.low %v3729_v12, %v3731_v16  ;;  %v3977_v24 = vpop.f32.mrb[9].mxu1  ;;  %v3733_v25 = vpop.f32.mrb[10].mxu0  ;;  %4116 = vmatpush1.bf16.msra.mxu0 %v2763_v4  ;;  %v2848_v4 = vunpack.c.l.s8.bf16 %v1539_v59  ;;  %v1557_v12 = vld [vmem:[%s6711_s8 + $0x1018] sm:$0xff]  ;;  %v1556_v16 = vld [vmem:[%s6711_s8 + $0x1010] sm:$0xff]  ;;  %v1610_v59 = vld [vmem:[%s6711_s8 + $0x11c0] sm:$0xff] }
 0x336   : > { %v5715_v30 = vcombine.low %v3975_v14, %v3977_v24  ;;  %v3979_v31 = vpop.f32.mrb[10].mxu1  ;;  %4362 = vmatpush1.bf16.msra.mxu1 %v2765_v9  ;;  %v3734_v32 = vpop.f32.mrb[11].mxu0  ;;  %4117 = vmatprep.subr.bf16.mxu0 %v2781_v10  ;;  %v2850_v9 = vunpack.c.l.s8.bf16 %v1541_v2  ;;  %v2866_v10 = vunpack.c.h.s8.bf16 %v1540_v6  ;;  %v2867_v14 = vunpack.c.h.s8.bf16 %v1541_v2 }
 0x337   : > { %v5730_v34 = vadd.f32 %v5714_v21, %v1021_v47  ;;  %v3980_v35 = vpop.f32.mrb[11].mxu1  ;;  %4363 = vmatprep.subr.bf16.mxu1 %v2783_v56  ;;  %v1559_v56 = vld [vmem:[%s6711_s8 + $0x1028] sm:$0xff]  ;;  %v2883_v47 = vunpack.c.l.s8.bf16 %v1557_v12  ;;  %v2882_v24 = vunpack.c.l.s8.bf16 %v1556_v16  ;;  %v1574_v31 = vld [vmem:[%s6711_s8 + $0x10a0] sm:$0xff]  ;;  %v1576_v32 = vld [vmem:[%s6711_s8 + $0x10b0] sm:$0xff] }
 0x338   : > { %v5731_v38 = vadd.f32 %v5715_v30, %v1022_v22  ;;  %v2885_v21 = vunpack.c.l.s8.bf16 %v1559_v56  ;;  %v1558_v22 = vld [vmem:[%s6711_s8 + $0x1020] sm:$0xff]  ;;  %v2902_v30 = vunpack.c.h.s8.bf16 %v1559_v56  ;;  %v1573_v35 = vld [vmem:[%s6711_s8 + $0x1098] sm:$0xff] }
 0x339   : > { %5739 = vst [vmem:[#allocation3] sm:$0xff] %v5730_v34  ;;  %4118 = vmatpush1.bf16.msra.mxu0 %v2780_v28  ;;  %v2884_v25 = vunpack.c.l.s8.bf16 %v1558_v22  ;;  %v2900_v28 = vunpack.c.h.s8.bf16 %v1557_v12  ;;  %v2917_v34 = vunpack.c.l.s8.bf16 %v1574_v31 }
 0x33a   : > { %5740 = vst [vmem:[#allocation3 + $0x8] sm:$0xff] %v5731_v38  ;;  %4364 = vmatpush1.bf16.msra.mxu1 %v2782_v8  ;;  %4119 = vmatprep.subr.bf16.mxu0 %v2798_v33  ;;  %v2899_v8 = vunpack.c.h.s8.bf16 %v1556_v16  ;;  %v2901_v33 = vunpack.c.h.s8.bf16 %v1558_v22  ;;  %v2916_v38 = vunpack.c.l.s8.bf16 %v1573_v35  ;;  %v1627_v16 = vld [vmem:[%s6711_s8 + $0x1248] sm:$0xff] }
 0x33b   : > { %4365 = vmatprep.subr.bf16.mxu1 %v2800_v57  ;;  %v2919_v57 = vunpack.c.l.s8.bf16 %v1576_v32 }
 0x33d   : > { %4120 = vmatpush1.bf16.msra.mxu0 %v2797_v40  ;;  %v2934_v40 = vunpack.c.h.s8.bf16 %v1574_v31 }
 0x33e   : > { %4366 = vmatpush1.bf16.msra.mxu1 %v2799_v42  ;;  %4121 = vmatprep.subr.bf16.mxu0 %v2815_v44  ;;  %v2936_v42 = vunpack.c.h.s8.bf16 %v1576_v32  ;;  %v1591_v44 = vld [vmem:[%s6711_s8 + $0x1128] sm:$0xff] }
 0x33f   : > { %4367 = vmatprep.subr.bf16.mxu1 %v2817_v62  ;;  %v2933_v62 = vunpack.c.h.s8.bf16 %v1573_v35  ;;  %v1644_v35 = vld [vmem:[%s6711_s8 + $0x12d0] sm:$0xff] }
 0x341   : > { %4122 = vmatpush1.bf16.msra.mxu0 %v2814_v48  ;;  %v2951_v48 = vunpack.c.l.s8.bf16 %v1591_v44 }
 0x342   : > { %4368 = vmatpush1.bf16.msra.mxu1 %v2816_v19  ;;  %4123 = vmatprep.subr.bf16.mxu0 %v2832_v49  ;;  %v1590_v19 = vld [vmem:[%s6711_s8 + $0x1120] sm:$0xff]  ;;  %v2953_v49 = vunpack.c.l.s8.bf16 %v1593_v46 }
 0x343   : > { %4369 = vmatprep.subr.bf16.mxu1 %v2834_v51  ;;  %v1592_v51 = vld [vmem:[%s6711_s8 + $0x1130] sm:$0xff]  ;;  %v2950_v6 = vunpack.c.l.s8.bf16 %v1590_v19 }
 0x344   : > { %v2952_v52 = vunpack.c.l.s8.bf16 %v1592_v51  ;;  %v2969_v2 = vunpack.c.h.s8.bf16 %v1592_v51 }
 0x345   : > { %4124 = vmatpush1.bf16.msra.mxu0 %v2831_v54  ;;  %v2968_v54 = vunpack.c.h.s8.bf16 %v1591_v44 }
 0x346   : > { %4370 = vmatpush1.bf16.msra.mxu1 %v2833_v58  ;;  %4125 = vmatprep.subr.bf16.mxu0 %v2849_v50  ;;  %v1608_v58 = vld [vmem:[%s6711_s8 + $0x11b0] sm:$0xff]  ;;  %v2970_v50 = vunpack.c.h.s8.bf16 %v1593_v46 }
 0x347   : > { %4371 = vmatprep.subr.bf16.mxu1 %v2851_v1  ;;  %v2967_v1 = vunpack.c.h.s8.bf16 %v1590_v19  ;;  %v1661_v19 = vld [vmem:[%s6711_s8 + $0x1358] sm:$0xff] }
 0x349   : > { %4126 = vmatpush1.bf16.msra.mxu0 %v2848_v4  ;;  %v2985_v4 = vunpack.c.l.s8.bf16 %v1608_v58 }
 0x34a   : > { %4372 = vmatpush1.bf16.msra.mxu1 %v2850_v9  ;;  %4127 = vmatprep.subr.bf16.mxu0 %v2866_v10  ;;  %v1607_v9 = vld [vmem:[%s6711_s8 + $0x11a8] sm:$0xff]  ;;  %v2987_v10 = vunpack.c.l.s8.bf16 %v1610_v59 }
 0x34b   : > { %4373 = vmatprep.subr.bf16.mxu1 %v2868_v11  ;;  %v1609_v11 = vld [vmem:[%s6711_s8 + $0x11b8] sm:$0xff]  ;;  %v2984_v12 = vunpack.c.l.s8.bf16 %v1607_v9 }
 0x34c   : > { %v2986_v56 = vunpack.c.l.s8.bf16 %v1609_v11  ;;  %v3003_v22 = vunpack.c.h.s8.bf16 %v1609_v11 }
 0x34d   : > { %4128 = vmatpush1.bf16.msra.mxu0 %v2865_v13  ;;  %v3002_v13 = vunpack.c.h.s8.bf16 %v1608_v58  ;;  %v1660_v58 = vld [vmem:[%s6711_s8 + $0x1350] sm:$0xff] }
 0x34e   : > { %4374 = vmatpush1.bf16.msra.mxu1 %v2867_v14  ;;  %4129 = vmatprep.subr.bf16.mxu0 %v2883_v47  ;;  %v3004_v14 = vunpack.c.h.s8.bf16 %v1610_v59  ;;  %v1625_v47 = vld [vmem:[%s6711_s8 + $0x1238] sm:$0xff]  ;;  %v3088_v59 = vunpack.c.l.s8.bf16 %v1660_v58  ;;  %v3105_v11 = vunpack.c.h.s8.bf16 %v1660_v58 }
 0x34f   : > { %4375 = vmatprep.subr.bf16.mxu1 %v2885_v21  ;;  %v3001_v21 = vunpack.c.h.s8.bf16 %v1607_v9  ;;  %v1678_v9 = vld [vmem:[%s6711_s8 + $0x13e0] sm:$0xff] }
 0x351   : > { %4130 = vmatpush1.bf16.msra.mxu0 %v2882_v24  ;;  %v3019_v24 = vunpack.c.l.s8.bf16 %v1625_v47 }
 0x352   : > { %4376 = vmatpush1.bf16.msra.mxu1 %v2884_v25  ;;  %4131 = vmatprep.subr.bf16.mxu0 %v2900_v28  ;;  %v1624_v25 = vld [vmem:[%s6711_s8 + $0x1230] sm:$0xff]  ;;  %v3021_v28 = vunpack.c.l.s8.bf16 %v1627_v16 }
 0x353   : > { %4377 = vmatprep.subr.bf16.mxu1 %v2902_v30  ;;  %v1626_v30 = vld [vmem:[%s6711_s8 + $0x1240] sm:$0xff]  ;;  %v3018_v31 = vunpack.c.l.s8.bf16 %v1624_v25 }
 0x354   : > { %v3020_v32 = vunpack.c.l.s8.bf16 %v1626_v30  ;;  %v3037_v36 = vunpack.c.h.s8.bf16 %v1626_v30 }
 0x355   : > { %4132 = vmatpush1.bf16.msra.mxu0 %v2899_v8  ;;  %v3036_v8 = vunpack.c.h.s8.bf16 %v1625_v47 }
 0x356   : > { %4378 = vmatpush1.bf16.msra.mxu1 %v2901_v33  ;;  %4133 = vmatprep.subr.bf16.mxu0 %v2917_v34  ;;  %v3038_v33 = vunpack.c.h.s8.bf16 %v1627_v16  ;;  %v1642_v34 = vld [vmem:[%s6711_s8 + $0x12c0] sm:$0xff] }
 0x357   : > { %4379 = vmatprep.subr.bf16.mxu1 %v2919_v57  ;;  %v3035_v57 = vunpack.c.h.s8.bf16 %v1624_v25  ;;  %v1695_v25 = vld [vmem:[%s6711_s8 + $0x1468] sm:$0xff] }
 0x359   : > { %4134 = vmatpush1.bf16.msra.mxu0 %v2916_v38  ;;  %v3053_v38 = vunpack.c.l.s8.bf16 %v1642_v34 }
 0x35a   : > { %4380 = vmatpush1.bf16.msra.mxu1 %v2918_v23  ;;  %4135 = vmatprep.subr.bf16.mxu0 %v2934_v40  ;;  %v1641_v23 = vld [vmem:[%s6711_s8 + $0x12b8] sm:$0xff]  ;;  %v3055_v40 = vunpack.c.l.s8.bf16 %v1644_v35 }
 0x35b   : > { %4381 = vmatprep.subr.bf16.mxu1 %v2936_v42  ;;  %v1643_v42 = vld [vmem:[%s6711_s8 + $0x12c8] sm:$0xff]  ;;  %v3052_v44 = vunpack.c.l.s8.bf16 %v1641_v23 }
 0x35c   : > { %v3054_v46 = vunpack.c.l.s8.bf16 %v1643_v42  ;;  %v3071_v51 = vunpack.c.h.s8.bf16 %v1643_v42 }
 0x35d   : > { %4136 = vmatpush1.bf16.msra.mxu0 %v2933_v62  ;;  %v3070_v62 = vunpack.c.h.s8.bf16 %v1642_v34 }
 0x35e   : > { %4382 = vmatpush1.bf16.msra.mxu1 %v2935_v17  ;;  %4146 = vmatprep.subr.bf16.mxu0 %v2951_v48  ;;  %v3072_v17 = vunpack.c.h.s8.bf16 %v1644_v35  ;;  %v1659_v48 = vld [vmem:[%s6711_s8 + $0x1348] sm:$0xff] }
 0x35f   : > { %4392 = vmatprep.subr.bf16.mxu1 %v2953_v49  ;;  %v3069_v49 = vunpack.c.h.s8.bf16 %v1641_v23  ;;  %v1712_v23 = vld [vmem:[%s6711_s8 + $0x14f0] sm:$0xff] }
 0x360   : > { %4138 = vmatmul.mubr.bf16.vlgmr.msra.gmra.mrb[12].mxu0 %v7025_v3 }
 0x361   : > { %4384 = vmatmul.mubr.bf16.vlgmr.msra.gmra.mrb[12].mxu1 %v7025_v3  ;;  %4147 = vmatpush1.bf16.msra.mxu0 %v2950_v6  ;;  %v3087_v6 = vunpack.c.l.s8.bf16 %v1659_v48 }
 0x362   : > { %4178 = vmatprep.mubr.bf16.mxu0 %v7027_v27  ;;  %4393 = vmatpush1.bf16.msra.mxu1 %v2952_v52  ;;  %v1658_v52 = vld [vmem:[%s6711_s8 + $0x1340] sm:$0xff] }
 0x363   : > { %4424 = vmatprep.mubr.bf16.mxu1 %v7027_v27  ;;  %4148 = vmatprep.subr.bf16.mxu0 %v2968_v54  ;;  %v3089_v54 = vunpack.c.l.s8.bf16 %v1661_v19 }
 0x364   : > { %4394 = vmatprep.subr.bf16.mxu1 %v2970_v50  ;;  %v3086_v50 = vunpack.c.l.s8.bf16 %v1658_v52 }
 0x365   : > { %4149 = vmatpush1.bf16.msra.mxu0 %v2967_v1  ;;  %v3104_v1 = vunpack.c.h.s8.bf16 %v1659_v48 }
 0x366   : > { %4395 = vmatpush1.bf16.msra.mxu1 %v2969_v2  ;;  %4150 = vmatprep.subr.bf16.mxu0 %v2985_v4  ;;  %v3106_v2 = vunpack.c.h.s8.bf16 %v1661_v19  ;;  %v1676_v4 = vld [vmem:[%s6711_s8 + $0x13d0] sm:$0xff] }
 0x367   : > { %4396 = vmatprep.subr.bf16.mxu1 %v2987_v10  ;;  %v3103_v10 = vunpack.c.h.s8.bf16 %v1658_v52  ;;  %v1729_v52 = vld [vmem:[%s6711_s8 + $0x1578] sm:$0xff] }
 0x369   : > { %4151 = vmatpush1.bf16.msra.mxu0 %v2984_v12  ;;  %v3121_v12 = vunpack.c.l.s8.bf16 %v1676_v4 }
 0x36a   : > { %4397 = vmatpush1.bf16.msra.mxu1 %v2986_v56  ;;  %4152 = vmatprep.subr.bf16.mxu0 %v3002_v13  ;;  %v1675_v56 = vld [vmem:[%s6711_s8 + $0x13c8] sm:$0xff]  ;;  %v3123_v13 = vunpack.c.l.s8.bf16 %v1678_v9 }
 0x36b   : > { %4398 = vmatprep.subr.bf16.mxu1 %v3004_v14  ;;  %v1677_v14 = vld [vmem:[%s6711_s8 + $0x13d8] sm:$0xff]  ;;  %v3120_v47 = vunpack.c.l.s8.bf16 %v1675_v56 }
 0x36c   : > { %v3122_v16 = vunpack.c.l.s8.bf16 %v1677_v14  ;;  %v3139_v30 = vunpack.c.h.s8.bf16 %v1677_v14 }
 0x36d   : > { %4153 = vmatpush1.bf16.msra.mxu0 %v3001_v21  ;;  %v3138_v21 = vunpack.c.h.s8.bf16 %v1676_v4 }
 0x36e   : > { %4399 = vmatpush1.bf16.msra.mxu1 %v3003_v22  ;;  %4154 = vmatprep.subr.bf16.mxu0 %v3019_v24  ;;  %v3140_v22 = vunpack.c.h.s8.bf16 %v1678_v9  ;;  %v1693_v24 = vld [vmem:[%s6711_s8 + $0x1458] sm:$0xff] }
 0x36f   : > { %4400 = vmatprep.subr.bf16.mxu1 %v3021_v28  ;;  %v3137_v28 = vunpack.c.h.s8.bf16 %v1675_v56  ;;  %v1746_v56 = vld [vmem:[%s6711_s8 + $0x1600] sm:$0xff] }
 0x371   : > { %4155 = vmatpush1.bf16.msra.mxu0 %v3018_v31  ;;  %v3155_v31 = vunpack.c.l.s8.bf16 %v1693_v24 }
 0x372   : > { %4401 = vmatpush1.bf16.msra.mxu1 %v3020_v32  ;;  %4156 = vmatprep.subr.bf16.mxu0 %v3036_v8  ;;  %v1692_v32 = vld [vmem:[%s6711_s8 + $0x1450] sm:$0xff]  ;;  %v3157_v8 = vunpack.c.l.s8.bf16 %v1695_v25 }
 0x373   : > { %4402 = vmatprep.subr.bf16.mxu1 %v3038_v33  ;;  %v1694_v33 = vld [vmem:[%s6711_s8 + $0x1460] sm:$0xff]  ;;  %v3154_v34 = vunpack.c.l.s8.bf16 %v1692_v32 }
 0x374   : > { %v3156_v35 = vunpack.c.l.s8.bf16 %v1694_v33  ;;  %v3173_v42 = vunpack.c.h.s8.bf16 %v1694_v33 }
 0x375   : > { %4157 = vmatpush1.bf16.msra.mxu0 %v3035_v57  ;;  %v3172_v57 = vunpack.c.h.s8.bf16 %v1693_v24 }
 0x376   : > { %4403 = vmatpush1.bf16.msra.mxu1 %v3037_v36  ;;  %4158 = vmatprep.subr.bf16.mxu0 %v3053_v38  ;;  %v3174_v36 = vunpack.c.h.s8.bf16 %v1695_v25  ;;  %v1710_v38 = vld [vmem:[%s6711_s8 + $0x14e0] sm:$0xff] }
 0x377   : > { %4404 = vmatprep.subr.bf16.mxu1 %v3055_v40  ;;  %v3171_v40 = vunpack.c.h.s8.bf16 %v1692_v32  ;;  %v1763_v32 = vld [vmem:[%s6711_s8 + $0x1688] sm:$0xff] }
 0x379   : > { %4159 = vmatpush1.bf16.msra.mxu0 %v3052_v44  ;;  %v3189_v44 = vunpack.c.l.s8.bf16 %v1710_v38 }
 0x37a   : > { %4405 = vmatpush1.bf16.msra.mxu1 %v3054_v46  ;;  %4160 = vmatprep.subr.bf16.mxu0 %v3070_v62  ;;  %v1709_v46 = vld [vmem:[%s6711_s8 + $0x14d8] sm:$0xff]  ;;  %v3191_v62 = vunpack.c.l.s8.bf16 %v1712_v23 }
 0x37b   : > { %4406 = vmatprep.subr.bf16.mxu1 %v3072_v17  ;;  %v1711_v17 = vld [vmem:[%s6711_s8 + $0x14e8] sm:$0xff]  ;;  %v3188_v48 = vunpack.c.l.s8.bf16 %v1709_v46 }
 0x37c   : > { %v3190_v19 = vunpack.c.l.s8.bf16 %v1711_v17  ;;  %v3207_v58 = vunpack.c.h.s8.bf16 %v1711_v17 }
 0x37d   : > { %4161 = vmatpush1.bf16.msra.mxu0 %v3069_v49  ;;  %v3206_v49 = vunpack.c.h.s8.bf16 %v1710_v38 }
 0x37e   : > { %4407 = vmatpush1.bf16.msra.mxu1 %v3071_v51  ;;  %4162 = vmatprep.subr.bf16.mxu0 %v3087_v6  ;;  %v3208_v51 = vunpack.c.h.s8.bf16 %v1712_v23  ;;  %v1727_v6 = vld [vmem:[%s6711_s8 + $0x1568] sm:$0xff] }
 0x37f   : > { %4408 = vmatprep.subr.bf16.mxu1 %v3089_v54  ;;  %v3205_v54 = vunpack.c.h.s8.bf16 %v1709_v46  ;;  %v1780_v46 = vld [vmem:[%s6711_s8 + $0x1710] sm:$0xff] }
 0x381   : > { %4163 = vmatpush1.bf16.msra.mxu0 %v3086_v50  ;;  %v3223_v50 = vunpack.c.l.s8.bf16 %v1727_v6 }
 0x382   : > { %4409 = vmatpush1.bf16.msra.mxu1 %v3088_v59  ;;  %4164 = vmatprep.subr.bf16.mxu0 %v3104_v1  ;;  %v1726_v59 = vld [vmem:[%s6711_s8 + $0x1560] sm:$0xff]  ;;  %v3225_v1 = vunpack.c.l.s8.bf16 %v1729_v52 }
 0x383   : > { %4410 = vmatprep.subr.bf16.mxu1 %v3106_v2  ;;  %v1728_v2 = vld [vmem:[%s6711_s8 + $0x1570] sm:$0xff]  ;;  %v3222_v4 = vunpack.c.l.s8.bf16 %v1726_v59 }
 0x384   : > { %v3224_v9 = vunpack.c.l.s8.bf16 %v1728_v2  ;;  %v3241_v14 = vunpack.c.h.s8.bf16 %v1728_v2 }
 0x385   : > { %4165 = vmatpush1.bf16.msra.mxu0 %v3103_v10  ;;  %v3240_v10 = vunpack.c.h.s8.bf16 %v1727_v6 }
 0x386   : > { %4411 = vmatpush1.bf16.msra.mxu1 %v3105_v11  ;;  %4166 = vmatprep.subr.bf16.mxu0 %v3121_v12  ;;  %v1744_v11 = vld [vmem:[%s6711_s8 + $0x15f0] sm:$0xff]  ;;  %v3242_v12 = vunpack.c.h.s8.bf16 %v1729_v52 }
 0x387   : > { %4412 = vmatprep.subr.bf16.mxu1 %v3123_v13  ;;  %v3239_v13 = vunpack.c.h.s8.bf16 %v1726_v59  ;;  %v1797_v59 = vld [vmem:[%s6711_s8 + $0x1798] sm:$0xff] }
 0x389   : > { %4167 = vmatpush1.bf16.msra.mxu0 %v3120_v47  ;;  %v3257_v47 = vunpack.c.l.s8.bf16 %v1744_v11 }
 0x38a   : > { %4413 = vmatpush1.bf16.msra.mxu1 %v3122_v16  ;;  %4168 = vmatprep.subr.bf16.mxu0 %v3138_v21  ;;  %v1743_v16 = vld [vmem:[%s6711_s8 + $0x15e8] sm:$0xff]  ;;  %v3259_v21 = vunpack.c.l.s8.bf16 %v1746_v56 }
 0x38b   : > { %4414 = vmatprep.subr.bf16.mxu1 %v3140_v22  ;;  %v1745_v22 = vld [vmem:[%s6711_s8 + $0x15f8] sm:$0xff]  ;;  %v3256_v24 = vunpack.c.l.s8.bf16 %v1743_v16 }
 0x38c   : > { %v3258_v25 = vunpack.c.l.s8.bf16 %v1745_v22  ;;  %v3275_v33 = vunpack.c.h.s8.bf16 %v1745_v22 }
 0x38d   : > { %4169 = vmatpush1.bf16.msra.mxu0 %v3137_v28  ;;  %v3274_v28 = vunpack.c.h.s8.bf16 %v1744_v11  ;;  %v1796_v11 = vld [vmem:[%s6711_s8 + $0x1790] sm:$0xff] }
 0x38e   : > { %4415 = vmatpush1.bf16.msra.mxu1 %v3139_v30  ;;  %4170 = vmatprep.subr.bf16.mxu0 %v3155_v31  ;;  %v3276_v30 = vunpack.c.h.s8.bf16 %v1746_v56  ;;  %v1761_v31 = vld [vmem:[%s6711_s8 + $0x1678] sm:$0xff]  ;;  %v3360_v56 = vunpack.c.l.s8.bf16 %v1796_v11  ;;  %v3377_v22 = vunpack.c.h.s8.bf16 %v1796_v11 }
 0x38f   : > { %4416 = vmatprep.subr.bf16.mxu1 %v3157_v8  ;;  %v3273_v8 = vunpack.c.h.s8.bf16 %v1743_v16  ;;  %v1814_v16 = vld [vmem:[%s6711_s8 + $0x1820] sm:$0xff] }
 0x391   : > { %4171 = vmatpush1.bf16.msra.mxu0 %v3154_v34  ;;  %v3291_v34 = vunpack.c.l.s8.bf16 %v1761_v31 }
 0x392   : > { %4417 = vmatpush1.bf16.msra.mxu1 %v3156_v35  ;;  %4172 = vmatprep.subr.bf16.mxu0 %v3172_v57  ;;  %v1760_v35 = vld [vmem:[%s6711_s8 + $0x1670] sm:$0xff]  ;;  %v3293_v57 = vunpack.c.l.s8.bf16 %v1763_v32 }
 0x393   : > { %4418 = vmatprep.subr.bf16.mxu1 %v3174_v36  ;;  %v1762_v36 = vld [vmem:[%s6711_s8 + $0x1680] sm:$0xff]  ;;  %v3290_v38 = vunpack.c.l.s8.bf16 %v1760_v35 }
 0x394   : > { %v3292_v23 = vunpack.c.l.s8.bf16 %v1762_v36  ;;  %v3309_v17 = vunpack.c.h.s8.bf16 %v1762_v36 }
 0x395   : > { %4173 = vmatpush1.bf16.msra.mxu0 %v3171_v40  ;;  %v3308_v40 = vunpack.c.h.s8.bf16 %v1761_v31 }
 0x396   : > { %4419 = vmatpush1.bf16.msra.mxu1 %v3173_v42  ;;  %4174 = vmatprep.subr.bf16.mxu0 %v3189_v44  ;;  %v3310_v42 = vunpack.c.h.s8.bf16 %v1763_v32  ;;  %v1778_v44 = vld [vmem:[%s6711_s8 + $0x1700] sm:$0xff] }
 0x397   : > { %4420 = vmatprep.subr.bf16.mxu1 %v3191_v62  ;;  %v3307_v62 = vunpack.c.h.s8.bf16 %v1760_v35  ;;  %v1831_v35 = vld [vmem:[%s6711_s8 + $0x18a8] sm:$0xff] }
 0x399   : > { %4175 = vmatpush1.bf16.msra.mxu0 %v3188_v48  ;;  %v3325_v48 = vunpack.c.l.s8.bf16 %v1778_v44 }
 0x39a   : > { %4421 = vmatpush1.bf16.msra.mxu1 %v3190_v19  ;;  %4176 = vmatprep.subr.bf16.mxu0 %v3206_v49  ;;  %v1777_v19 = vld [vmem:[%s6711_s8 + $0x16f8] sm:$0xff]  ;;  %v3327_v49 = vunpack.c.l.s8.bf16 %v1780_v46 }
 0x39b   : > { %4422 = vmatprep.subr.bf16.mxu1 %v3208_v51  ;;  %v1779_v51 = vld [vmem:[%s6711_s8 + $0x1708] sm:$0xff]  ;;  %v3324_v6 = vunpack.c.l.s8.bf16 %v1777_v19 }
 0x39c   : > { %v3326_v52 = vunpack.c.l.s8.bf16 %v1779_v51  ;;  %v3343_v2 = vunpack.c.h.s8.bf16 %v1779_v51 }
 0x39d   : > { %4177 = vmatpush1.bf16.msra.mxu0 %v3205_v54  ;;  %v3342_v54 = vunpack.c.h.s8.bf16 %v1778_v44 }
 0x39e   : > { %4423 = vmatpush1.bf16.msra.mxu1 %v3207_v58  ;;  %4187 = vmatprep.subr.bf16.mxu0 %v3223_v50  ;;  %v3344_v58 = vunpack.c.h.s8.bf16 %v1780_v46  ;;  %v1795_v50 = vld [vmem:[%s6711_s8 + $0x1788] sm:$0xff] }
 0x39f   : > { %4433 = vmatprep.subr.bf16.mxu1 %v3225_v1  ;;  %v3341_v1 = vunpack.c.h.s8.bf16 %v1777_v19  ;;  %v1848_v19 = vld [vmem:[%s6711_s8 + $0x1930] sm:$0xff] }
 0x3a0   : > { %4179 = vmatmul.mubr.bf16.vlgmr.msra.gmra.mrb[12].mxu0 %v7069_v39 }
 0x3a1   : > { %4425 = vmatmul.mubr.bf16.vlgmr.msra.gmra.mrb[12].mxu1 %v7069_v39  ;;  %4188 = vmatpush1.bf16.msra.mxu0 %v3222_v4  ;;  %v3359_v4 = vunpack.c.l.s8.bf16 %v1795_v50 }
 0x3a2   : > { %4219 = vmatprep.mubr.bf16.mxu0 %v7072_v45  ;;  %4434 = vmatpush1.bf16.msra.mxu1 %v3224_v9  ;;  %v1794_v9 = vld [vmem:[%s6711_s8 + $0x1780] sm:$0xff] }
 0x3a3   : > { %4465 = vmatprep.mubr.bf16.mxu1 %v7072_v45  ;;  %4189 = vmatprep.subr.bf16.mxu0 %v3240_v10  ;;  %v3361_v10 = vunpack.c.l.s8.bf16 %v1797_v59 }
 0x3a4   : > { %4435 = vmatprep.subr.bf16.mxu1 %v3242_v12  ;;  %v3358_v12 = vunpack.c.l.s8.bf16 %v1794_v9 }
 0x3a5   : > { %4190 = vmatpush1.bf16.msra.mxu0 %v3239_v13  ;;  %v3376_v13 = vunpack.c.h.s8.bf16 %v1795_v50 }
 0x3a6   : > { %4436 = vmatpush1.bf16.msra.mxu1 %v3241_v14  ;;  %4191 = vmatprep.subr.bf16.mxu0 %v3257_v47  ;;  %v3378_v14 = vunpack.c.h.s8.bf16 %v1797_v59  ;;  %v1812_v47 = vld [vmem:[%s6711_s8 + $0x1810] sm:$0xff] }
 0x3a7   : > { %4437 = vmatprep.subr.bf16.mxu1 %v3259_v21  ;;  %v3375_v21 = vunpack.c.h.s8.bf16 %v1794_v9  ;;  %v1053_v9 = vld [vmem:[%s6711_s8 + $0x58] sm:$0xff] }
 0x3a9   : > { %4192 = vmatpush1.bf16.msra.mxu0 %v3256_v24  ;;  %v3393_v24 = vunpack.c.l.s8.bf16 %v1812_v47 }
 0x3aa   : > { %4438 = vmatpush1.bf16.msra.mxu1 %v3258_v25  ;;  %4193 = vmatprep.subr.bf16.mxu0 %v3274_v28  ;;  %v1811_v25 = vld [vmem:[%s6711_s8 + $0x1808] sm:$0xff]  ;;  %v3395_v28 = vunpack.c.l.s8.bf16 %v1814_v16 }
 0x3ab   : > { %4439 = vmatprep.subr.bf16.mxu1 %v3276_v30  ;;  %v1813_v30 = vld [vmem:[%s6711_s8 + $0x1818] sm:$0xff]  ;;  %v3392_v31 = vunpack.c.l.s8.bf16 %v1811_v25 }
 0x3ac   : > { %v3394_v32 = vunpack.c.l.s8.bf16 %v1813_v30  ;;  %v3411_v36 = vunpack.c.h.s8.bf16 %v1813_v30 }
 0x3ad   : > { %4194 = vmatpush1.bf16.msra.mxu0 %v3273_v8  ;;  %v3410_v8 = vunpack.c.h.s8.bf16 %v1812_v47 }
 0x3ae   : > { %4440 = vmatpush1.bf16.msra.mxu1 %v3275_v33  ;;  %4195 = vmatprep.subr.bf16.mxu0 %v3291_v34  ;;  %v3412_v33 = vunpack.c.h.s8.bf16 %v1814_v16  ;;  %v1829_v34 = vld [vmem:[%s6711_s8 + $0x1898] sm:$0xff] }
 0x3af   : > { %4441 = vmatprep.subr.bf16.mxu1 %v3293_v57  ;;  %v3409_v57 = vunpack.c.h.s8.bf16 %v1811_v25  ;;  %v1070_v25 = vld [vmem:[%s6711_s8 + $0xe0] sm:$0xff] }
 0x3b1   : > { %4196 = vmatpush1.bf16.msra.mxu0 %v3290_v38  ;;  %v3427_v38 = vunpack.c.l.s8.bf16 %v1829_v34 }
 0x3b2   : > { %4442 = vmatpush1.bf16.msra.mxu1 %v3292_v23  ;;  %4197 = vmatprep.subr.bf16.mxu0 %v3308_v40  ;;  %v1828_v23 = vld [vmem:[%s6711_s8 + $0x1890] sm:$0xff]  ;;  %v3429_v40 = vunpack.c.l.s8.bf16 %v1831_v35 }
 0x3b3   : > { %4443 = vmatprep.subr.bf16.mxu1 %v3310_v42  ;;  %v1830_v42 = vld [vmem:[%s6711_s8 + $0x18a0] sm:$0xff]  ;;  %v3426_v44 = vunpack.c.l.s8.bf16 %v1828_v23 }
 0x3b4   : > { %v3428_v46 = vunpack.c.l.s8.bf16 %v1830_v42  ;;  %v3445_v51 = vunpack.c.h.s8.bf16 %v1830_v42 }
 0x3b5   : > { %4198 = vmatpush1.bf16.msra.mxu0 %v3307_v62  ;;  %v3444_v62 = vunpack.c.h.s8.bf16 %v1829_v34 }
 0x3b6   : > { %4444 = vmatpush1.bf16.msra.mxu1 %v3309_v17  ;;  %4199 = vmatprep.subr.bf16.mxu0 %v3325_v48  ;;  %v3446_v17 = vunpack.c.h.s8.bf16 %v1831_v35  ;;  %v1846_v48 = vld [vmem:[%s6711_s8 + $0x1920] sm:$0xff] }
 0x3b7   : > { %4445 = vmatprep.subr.bf16.mxu1 %v3327_v49  ;;  %v3443_v49 = vunpack.c.h.s8.bf16 %v1828_v23  ;;  %v1087_v23 = vld [vmem:[%s6711_s8 + $0x168] sm:$0xff] }
 0x3b9   : > { %4200 = vmatpush1.bf16.msra.mxu0 %v3324_v6  ;;  %v3461_v6 = vunpack.c.l.s8.bf16 %v1846_v48 }
 0x3ba   : > { %4446 = vmatpush1.bf16.msra.mxu1 %v3326_v52  ;;  %4201 = vmatprep.subr.bf16.mxu0 %v3342_v54  ;;  %v1845_v52 = vld [vmem:[%s6711_s8 + $0x1918] sm:$0xff]  ;;  %v3463_v54 = vunpack.c.l.s8.bf16 %v1848_v19 }
 0x3bb   : > { %4447 = vmatprep.subr.bf16.mxu1 %v3344_v58  ;;  %v1847_v58 = vld [vmem:[%s6711_s8 + $0x1928] sm:$0xff]  ;;  %v3460_v50 = vunpack.c.l.s8.bf16 %v1845_v52 }
 0x3bc   : > { %v3462_v59 = vunpack.c.l.s8.bf16 %v1847_v58  ;;  %v3479_v11 = vunpack.c.h.s8.bf16 %v1847_v58 }
 0x3bd   : > { %4202 = vmatpush1.bf16.msra.mxu0 %v3341_v1  ;;  %v3478_v1 = vunpack.c.h.s8.bf16 %v1846_v48 }
 0x3be   : > { %4448 = vmatpush1.bf16.msra.mxu1 %v3343_v2  ;;  %4203 = vmatprep.subr.bf16.mxu0 %v3359_v4  ;;  %v3480_v2 = vunpack.c.h.s8.bf16 %v1848_v19  ;;  %v1051_v4 = vld [vmem:[%s6711_s8 + $0x48] sm:$0xff] }
 0x3bf   : > { %4449 = vmatprep.subr.bf16.mxu1 %v3361_v10  ;;  %v3477_v10 = vunpack.c.h.s8.bf16 %v1845_v52  ;;  %v1104_v52 = vld [vmem:[%s6711_s8 + $0x1f0] sm:$0xff] }
 0x3c1   : > { %4204 = vmatpush1.bf16.msra.mxu0 %v3358_v12  ;;  %v1867_v12 = vunpack.c.l.s8.bf16 %v1051_v4 }
 0x3c2   : > { %4450 = vmatpush1.bf16.msra.mxu1 %v3360_v56  ;;  %4205 = vmatprep.subr.bf16.mxu0 %v3376_v13  ;;  %v1050_v56 = vld [vmem:[%s6711_s8 + $0x40] sm:$0xff]  ;;  %v1869_v13 = vunpack.c.l.s8.bf16 %v1053_v9 }
 0x3c3   : > { %4451 = vmatprep.subr.bf16.mxu1 %v3378_v14  ;;  %v1052_v14 = vld [vmem:[%s6711_s8 + $0x50] sm:$0xff]  ;;  %v1866_v47 = vunpack.c.l.s8.bf16 %v1050_v56 }
 0x3c4   : > { %v1868_v16 = vunpack.c.l.s8.bf16 %v1052_v14  ;;  %v1885_v30 = vunpack.c.h.s8.bf16 %v1052_v14 }
 0x3c5   : > { %4206 = vmatpush1.bf16.msra.mxu0 %v3375_v21  ;;  %v1884_v21 = vunpack.c.h.s8.bf16 %v1051_v4 }
 0x3c6   : > { %4452 = vmatpush1.bf16.msra.mxu1 %v3377_v22  ;;  %4207 = vmatprep.subr.bf16.mxu0 %v3393_v24  ;;  %v1068_v22 = vld [vmem:[%s6711_s8 + $0xd0] sm:$0xff]  ;;  %v1886_v24 = vunpack.c.h.s8.bf16 %v1053_v9 }
 0x3c7   : > { %4453 = vmatprep.subr.bf16.mxu1 %v3395_v28  ;;  %v1883_v28 = vunpack.c.h.s8.bf16 %v1050_v56  ;;  %v1121_v56 = vld [vmem:[%s6711_s8 + $0x278] sm:$0xff] }
 0x3c9   : > { %4208 = vmatpush1.bf16.msra.mxu0 %v3392_v31  ;;  %v1901_v31 = vunpack.c.l.s8.bf16 %v1068_v22 }
 0x3ca   : > { %4454 = vmatpush1.bf16.msra.mxu1 %v3394_v32  ;;  %4209 = vmatprep.subr.bf16.mxu0 %v3410_v8  ;;  %v1067_v32 = vld [vmem:[%s6711_s8 + $0xc8] sm:$0xff]  ;;  %v1903_v8 = vunpack.c.l.s8.bf16 %v1070_v25 }
 0x3cb   : > { %4455 = vmatprep.subr.bf16.mxu1 %v3412_v33  ;;  %v1069_v33 = vld [vmem:[%s6711_s8 + $0xd8] sm:$0xff]  ;;  %v1900_v34 = vunpack.c.l.s8.bf16 %v1067_v32 }
 0x3cc   : > { %v1902_v35 = vunpack.c.l.s8.bf16 %v1069_v33  ;;  %v1919_v42 = vunpack.c.h.s8.bf16 %v1069_v33 }
 0x3cd   : > { %4210 = vmatpush1.bf16.msra.mxu0 %v3409_v57  ;;  %v1918_v57 = vunpack.c.h.s8.bf16 %v1068_v22  ;;  %v1120_v22 = vld [vmem:[%s6711_s8 + $0x270] sm:$0xff] }
 0x3ce   : > { %4456 = vmatpush1.bf16.msra.mxu1 %v3411_v36  ;;  %4211 = vmatprep.subr.bf16.mxu0 %v3427_v38  ;;  %v1920_v36 = vunpack.c.h.s8.bf16 %v1070_v25  ;;  %v1085_v38 = vld [vmem:[%s6711_s8 + $0x158] sm:$0xff]  ;;  %v2004_v25 = vunpack.c.l.s8.bf16 %v1120_v22  ;;  %v2021_v33 = vunpack.c.h.s8.bf16 %v1120_v22 }
 0x3cf   : > { %4457 = vmatprep.subr.bf16.mxu1 %v3429_v40  ;;  %v1917_v40 = vunpack.c.h.s8.bf16 %v1067_v32  ;;  %v1138_v32 = vld [vmem:[%s6711_s8 + $0x300] sm:$0xff] }
 0x3d1   : > { %4212 = vmatpush1.bf16.msra.mxu0 %v3426_v44  ;;  %v1935_v44 = vunpack.c.l.s8.bf16 %v1085_v38 }
 0x3d2   : > { %4458 = vmatpush1.bf16.msra.mxu1 %v3428_v46  ;;  %4213 = vmatprep.subr.bf16.mxu0 %v3444_v62  ;;  %v1084_v46 = vld [vmem:[%s6711_s8 + $0x150] sm:$0xff]  ;;  %v1937_v62 = vunpack.c.l.s8.bf16 %v1087_v23 }
 0x3d3   : > { %4459 = vmatprep.subr.bf16.mxu1 %v3446_v17  ;;  %v1086_v17 = vld [vmem:[%s6711_s8 + $0x160] sm:$0xff]  ;;  %v1934_v48 = vunpack.c.l.s8.bf16 %v1084_v46 }
 0x3d4   : > { %v1936_v19 = vunpack.c.l.s8.bf16 %v1086_v17  ;;  %v1953_v58 = vunpack.c.h.s8.bf16 %v1086_v17 }
 0x3d5   : > { %4214 = vmatpush1.bf16.msra.mxu0 %v3443_v49  ;;  %v1952_v49 = vunpack.c.h.s8.bf16 %v1085_v38 }
 0x3d6   : > { %4460 = vmatpush1.bf16.msra.mxu1 %v3445_v51  ;;  %4215 = vmatprep.subr.bf16.mxu0 %v3461_v6  ;;  %v1954_v51 = vunpack.c.h.s8.bf16 %v1087_v23  ;;  %v1102_v6 = vld [vmem:[%s6711_s8 + $0x1e0] sm:$0xff] }
 0x3d7   : > { %4461 = vmatprep.subr.bf16.mxu1 %v3463_v54  ;;  %v1951_v54 = vunpack.c.h.s8.bf16 %v1084_v46  ;;  %v1155_v46 = vld [vmem:[%s6711_s8 + $0x388] sm:$0xff] }
 0x3d9   : > { %4216 = vmatpush1.bf16.msra.mxu0 %v3460_v50  ;;  %v1969_v50 = vunpack.c.l.s8.bf16 %v1102_v6 }
 0x3da   : > { %4462 = vmatpush1.bf16.msra.mxu1 %v3462_v59  ;;  %4217 = vmatprep.subr.bf16.mxu0 %v3478_v1  ;;  %v1101_v59 = vld [vmem:[%s6711_s8 + $0x1d8] sm:$0xff]  ;;  %v1971_v1 = vunpack.c.l.s8.bf16 %v1104_v52 }
 0x3db   : > { %4463 = vmatprep.subr.bf16.mxu1 %v3480_v2  ;;  %v1103_v2 = vld [vmem:[%s6711_s8 + $0x1e8] sm:$0xff]  ;;  %v1968_v4 = vunpack.c.l.s8.bf16 %v1101_v59 }
 0x3dc   : > { %v1970_v9 = vunpack.c.l.s8.bf16 %v1103_v2  ;;  %v1987_v14 = vunpack.c.h.s8.bf16 %v1103_v2 }
 0x3dd   : > { %4218 = vmatpush1.bf16.msra.mxu0 %v3477_v10  ;;  %v1986_v10 = vunpack.c.h.s8.bf16 %v1102_v6 }
 0x3de   : > { %4464 = vmatpush1.bf16.msra.mxu1 %v3479_v11  ;;  %4474 = vmatprep.subr.bf16.mxu0 %v1867_v12  ;;  %v1988_v11 = vunpack.c.h.s8.bf16 %v1104_v52  ;;  %v1119_v12 = vld [vmem:[%s6711_s8 + $0x268] sm:$0xff] }
 0x3df   : > { %4720 = vmatprep.subr.bf16.mxu1 %v1869_v13  ;;  %v1985_v13 = vunpack.c.h.s8.bf16 %v1101_v59  ;;  %v1172_v59 = vld [vmem:[%s6711_s8 + $0x410] sm:$0xff] }
 0x3e0   : > { %4220 = vmatmul.mubr.bf16.vlgmr.msra.gmra.mrb[12].mxu0 %v7110_v60 }
 0x3e1   : > { %4466 = vmatmul.mubr.bf16.vlgmr.msra.gmra.mrb[12].mxu1 %v7110_v60  ;;  %4475 = vmatpush1.bf16.msra.mxu0 %v1866_v47  ;;  %v2003_v47 = vunpack.c.l.s8.bf16 %v1119_v12 }
 0x3e2   : > { %4506 = vmatprep.mubr.bf16.mxu0 %v6845_v15  ;;  %4721 = vmatpush1.bf16.msra.mxu1 %v1868_v16  ;;  %v1118_v16 = vld [vmem:[%s6711_s8 + $0x260] sm:$0xff] }
 0x3e3   : > { %4752 = vmatprep.mubr.bf16.mxu1 %v6845_v15  ;;  %4476 = vmatprep.subr.bf16.mxu0 %v1884_v21  ;;  %v2005_v21 = vunpack.c.l.s8.bf16 %v1121_v56 }
 0x3e4   : > { %4722 = vmatprep.subr.bf16.mxu1 %v1886_v24  ;;  %v2002_v24 = vunpack.c.l.s8.bf16 %v1118_v16 }
 0x3e5   : > { %4477 = vmatpush1.bf16.msra.mxu0 %v1883_v28  ;;  %v2020_v28 = vunpack.c.h.s8.bf16 %v1119_v12 }
 0x3e6   : > { %4723 = vmatpush1.bf16.msra.mxu1 %v1885_v30  ;;  %4478 = vmatprep.subr.bf16.mxu0 %v1901_v31  ;;  %v2022_v30 = vunpack.c.h.s8.bf16 %v1121_v56  ;;  %v1136_v31 = vld [vmem:[%s6711_s8 + $0x2f0] sm:$0xff] }
 0x3e7   : > { %4724 = vmatprep.subr.bf16.mxu1 %v1903_v8  ;;  %v2019_v8 = vunpack.c.h.s8.bf16 %v1118_v16  ;;  %v1189_v16 = vld [vmem:[%s6711_s8 + $0x498] sm:$0xff] }
 0x3e9   : > { %4479 = vmatpush1.bf16.msra.mxu0 %v1900_v34  ;;  %v2037_v34 = vunpack.c.l.s8.bf16 %v1136_v31 }
 0x3ea   : > { %4725 = vmatpush1.bf16.msra.mxu1 %v1902_v35  ;;  %4480 = vmatprep.subr.bf16.mxu0 %v1918_v57  ;;  %v1135_v35 = vld [vmem:[%s6711_s8 + $0x2e8] sm:$0xff]  ;;  %v2039_v57 = vunpack.c.l.s8.bf16 %v1138_v32 }
 0x3eb   : > { %4726 = vmatprep.subr.bf16.mxu1 %v1920_v36  ;;  %v1137_v36 = vld [vmem:[%s6711_s8 + $0x2f8] sm:$0xff]  ;;  %v2036_v38 = vunpack.c.l.s8.bf16 %v1135_v35 }
 0x3ec   : > { %v2038_v23 = vunpack.c.l.s8.bf16 %v1137_v36  ;;  %v2055_v17 = vunpack.c.h.s8.bf16 %v1137_v36 }
 0x3ed   : > { %4481 = vmatpush1.bf16.msra.mxu0 %v1917_v40  ;;  %v2054_v40 = vunpack.c.h.s8.bf16 %v1136_v31 }
 0x3ee   : > { %4727 = vmatpush1.bf16.msra.mxu1 %v1919_v42  ;;  %4482 = vmatprep.subr.bf16.mxu0 %v1935_v44  ;;  %v2056_v42 = vunpack.c.h.s8.bf16 %v1138_v32  ;;  %v1153_v44 = vld [vmem:[%s6711_s8 + $0x378] sm:$0xff] }
 0x3ef   : > { %4728 = vmatprep.subr.bf16.mxu1 %v1937_v62  ;;  %v2053_v62 = vunpack.c.h.s8.bf16 %v1135_v35  ;;  %v1206_v35 = vld [vmem:[%s6711_s8 + $0x520] sm:$0xff] }
 0x3f1   : > { %4483 = vmatpush1.bf16.msra.mxu0 %v1934_v48  ;;  %v2071_v48 = vunpack.c.l.s8.bf16 %v1153_v44 }
 0x3f2   : > { %4729 = vmatpush1.bf16.msra.mxu1 %v1936_v19  ;;  %4484 = vmatprep.subr.bf16.mxu0 %v1952_v49  ;;  %v1152_v19 = vld [vmem:[%s6711_s8 + $0x370] sm:$0xff]  ;;  %v2073_v49 = vunpack.c.l.s8.bf16 %v1155_v46 }
 0x3f3   : > { %4730 = vmatprep.subr.bf16.mxu1 %v1954_v51  ;;  %v1154_v51 = vld [vmem:[%s6711_s8 + $0x380] sm:$0xff]  ;;  %v2070_v6 = vunpack.c.l.s8.bf16 %v1152_v19 }
 0x3f4   : > { %v2072_v52 = vunpack.c.l.s8.bf16 %v1154_v51  ;;  %v2089_v2 = vunpack.c.h.s8.bf16 %v1154_v51 }
 0x3f5   : > { %4485 = vmatpush1.bf16.msra.mxu0 %v1951_v54  ;;  %v2088_v54 = vunpack.c.h.s8.bf16 %v1153_v44 }
 0x3f6   : > { %4731 = vmatpush1.bf16.msra.mxu1 %v1953_v58  ;;  %4486 = vmatprep.subr.bf16.mxu0 %v1969_v50  ;;  %v2090_v58 = vunpack.c.h.s8.bf16 %v1155_v46  ;;  %v1170_v50 = vld [vmem:[%s6711_s8 + $0x400] sm:$0xff] }
 0x3f7   : > { %4732 = vmatprep.subr.bf16.mxu1 %v1971_v1  ;;  %v2087_v1 = vunpack.c.h.s8.bf16 %v1152_v19  ;;  %v1223_v19 = vld [vmem:[%s6711_s8 + $0x5a8] sm:$0xff] }
 0x3f9   : > { %4487 = vmatpush1.bf16.msra.mxu0 %v1968_v4  ;;  %v2105_v4 = vunpack.c.l.s8.bf16 %v1170_v50 }
 0x3fa   : > { %4733 = vmatpush1.bf16.msra.mxu1 %v1970_v9  ;;  %4488 = vmatprep.subr.bf16.mxu0 %v1986_v10  ;;  %v1169_v9 = vld [vmem:[%s6711_s8 + $0x3f8] sm:$0xff]  ;;  %v2107_v10 = vunpack.c.l.s8.bf16 %v1172_v59 }
 0x3fb   : > { %4734 = vmatprep.subr.bf16.mxu1 %v1988_v11  ;;  %v1171_v11 = vld [vmem:[%s6711_s8 + $0x408] sm:$0xff]  ;;  %v2104_v12 = vunpack.c.l.s8.bf16 %v1169_v9 }
 0x3fc   : > { %v2106_v56 = vunpack.c.l.s8.bf16 %v1171_v11  ;;  %v2123_v22 = vunpack.c.h.s8.bf16 %v1171_v11 }
 0x3fd   : > { %4489 = vmatpush1.bf16.msra.mxu0 %v1985_v13  ;;  %v2122_v13 = vunpack.c.h.s8.bf16 %v1170_v50 }
 0x3fe   : > { %4735 = vmatpush1.bf16.msra.mxu1 %v1987_v14  ;;  %4490 = vmatprep.subr.bf16.mxu0 %v2003_v47  ;;  %v2124_v14 = vunpack.c.h.s8.bf16 %v1172_v59  ;;  %v1187_v47 = vld [vmem:[%s6711_s8 + $0x488] sm:$0xff] }
 0x3ff   : > { %4736 = vmatprep.subr.bf16.mxu1 %v2005_v21  ;;  %v2121_v21 = vunpack.c.h.s8.bf16 %v1169_v9  ;;  %v1240_v9 = vld [vmem:[%s6711_s8 + $0x630] sm:$0xff] }
 0x401   : > { %4491 = vmatpush1.bf16.msra.mxu0 %v2002_v24  ;;  %v2139_v24 = vunpack.c.l.s8.bf16 %v1187_v47 }
 0x402   : > { %4737 = vmatpush1.bf16.msra.mxu1 %v2004_v25  ;;  %4492 = vmatprep.subr.bf16.mxu0 %v2020_v28  ;;  %v1186_v25 = vld [vmem:[%s6711_s8 + $0x480] sm:$0xff]  ;;  %v2141_v28 = vunpack.c.l.s8.bf16 %v1189_v16 }
 0x403   : > { %4738 = vmatprep.subr.bf16.mxu1 %v2022_v30  ;;  %v1188_v30 = vld [vmem:[%s6711_s8 + $0x490] sm:$0xff]  ;;  %v2138_v31 = vunpack.c.l.s8.bf16 %v1186_v25 }
 0x404   : > { %v2140_v32 = vunpack.c.l.s8.bf16 %v1188_v30  ;;  %v2157_v36 = vunpack.c.h.s8.bf16 %v1188_v30 }
 0x405   : > { %4493 = vmatpush1.bf16.msra.mxu0 %v2019_v8  ;;  %v2156_v8 = vunpack.c.h.s8.bf16 %v1187_v47 }
 0x406   : > { %4739 = vmatpush1.bf16.msra.mxu1 %v2021_v33  ;;  %4494 = vmatprep.subr.bf16.mxu0 %v2037_v34  ;;  %v1204_v33 = vld [vmem:[%s6711_s8 + $0x510] sm:$0xff]  ;;  %v2158_v34 = vunpack.c.h.s8.bf16 %v1189_v16 }
 0x407   : > { %4740 = vmatprep.subr.bf16.mxu1 %v2039_v57  ;;  %v2155_v57 = vunpack.c.h.s8.bf16 %v1186_v25  ;;  %v1257_v25 = vld [vmem:[%s6711_s8 + $0x6b8] sm:$0xff] }
 0x409   : > { %4495 = vmatpush1.bf16.msra.mxu0 %v2036_v38  ;;  %v2173_v38 = vunpack.c.l.s8.bf16 %v1204_v33 }
 0x40a   : > { %4741 = vmatpush1.bf16.msra.mxu1 %v2038_v23  ;;  %4496 = vmatprep.subr.bf16.mxu0 %v2054_v40  ;;  %v1203_v23 = vld [vmem:[%s6711_s8 + $0x508] sm:$0xff]  ;;  %v2175_v40 = vunpack.c.l.s8.bf16 %v1206_v35 }
 0x40b   : > { %4742 = vmatprep.subr.bf16.mxu1 %v2056_v42  ;;  %v1205_v42 = vld [vmem:[%s6711_s8 + $0x518] sm:$0xff]  ;;  %v2172_v44 = vunpack.c.l.s8.bf16 %v1203_v23 }
 0x40c   : > { %v2174_v46 = vunpack.c.l.s8.bf16 %v1205_v42  ;;  %v2191_v51 = vunpack.c.h.s8.bf16 %v1205_v42 }
 0x40d   : > { %4497 = vmatpush1.bf16.msra.mxu0 %v2053_v62  ;;  %v2190_v62 = vunpack.c.h.s8.bf16 %v1204_v33  ;;  %v1256_v33 = vld [vmem:[%s6711_s8 + $0x6b0] sm:$0xff] }
 0x40e   : > { %4743 = vmatpush1.bf16.msra.mxu1 %v2055_v17  ;;  %4498 = vmatprep.subr.bf16.mxu0 %v2071_v48  ;;  %v2192_v17 = vunpack.c.h.s8.bf16 %v1206_v35  ;;  %v1221_v48 = vld [vmem:[%s6711_s8 + $0x598] sm:$0xff]  ;;  %v2276_v35 = vunpack.c.l.s8.bf16 %v1256_v33  ;;  %v2293_v42 = vunpack.c.h.s8.bf16 %v1256_v33 }
 0x40f   : > { %4744 = vmatprep.subr.bf16.mxu1 %v2073_v49  ;;  %v2189_v49 = vunpack.c.h.s8.bf16 %v1203_v23  ;;  %v1274_v23 = vld [vmem:[%s6711_s8 + $0x740] sm:$0xff] }
 0x411   : > { %4499 = vmatpush1.bf16.msra.mxu0 %v2070_v6  ;;  %v2207_v6 = vunpack.c.l.s8.bf16 %v1221_v48 }
 0x412   : > { %4745 = vmatpush1.bf16.msra.mxu1 %v2072_v52  ;;  %4500 = vmatprep.subr.bf16.mxu0 %v2088_v54  ;;  %v1220_v52 = vld [vmem:[%s6711_s8 + $0x590] sm:$0xff]  ;;  %v2209_v54 = vunpack.c.l.s8.bf16 %v1223_v19 }
 0x413   : > { %4746 = vmatprep.subr.bf16.mxu1 %v2090_v58  ;;  %v1222_v58 = vld [vmem:[%s6711_s8 + $0x5a0] sm:$0xff]  ;;  %v2206_v50 = vunpack.c.l.s8.bf16 %v1220_v52 }
 0x414   : > { %v2208_v59 = vunpack.c.l.s8.bf16 %v1222_v58  ;;  %v2225_v11 = vunpack.c.h.s8.bf16 %v1222_v58 }
 0x415   : > { %4501 = vmatpush1.bf16.msra.mxu0 %v2087_v1  ;;  %v2224_v1 = vunpack.c.h.s8.bf16 %v1221_v48 }
 0x416   : > { %4747 = vmatpush1.bf16.msra.mxu1 %v2089_v2  ;;  %4502 = vmatprep.subr.bf16.mxu0 %v2105_v4  ;;  %v2226_v2 = vunpack.c.h.s8.bf16 %v1223_v19  ;;  %v1238_v4 = vld [vmem:[%s6711_s8 + $0x620] sm:$0xff] }
 0x417   : > { %4748 = vmatprep.subr.bf16.mxu1 %v2107_v10  ;;  %v2223_v10 = vunpack.c.h.s8.bf16 %v1220_v52  ;;  %v1291_v52 = vld [vmem:[%s6711_s8 + $0x7c8] sm:$0xff] }
 0x419   : > { %4503 = vmatpush1.bf16.msra.mxu0 %v2104_v12  ;;  %v2241_v12 = vunpack.c.l.s8.bf16 %v1238_v4 }
 0x41a   : > { %4749 = vmatpush1.bf16.msra.mxu1 %v2106_v56  ;;  %4504 = vmatprep.subr.bf16.mxu0 %v2122_v13  ;;  %v1237_v56 = vld [vmem:[%s6711_s8 + $0x618] sm:$0xff]  ;;  %v2243_v13 = vunpack.c.l.s8.bf16 %v1240_v9 }
 0x41b   : > { %4750 = vmatprep.subr.bf16.mxu1 %v2124_v14  ;;  %v1239_v14 = vld [vmem:[%s6711_s8 + $0x628] sm:$0xff]  ;;  %v2240_v47 = vunpack.c.l.s8.bf16 %v1237_v56 }
 0x41c   : > { %v2242_v16 = vunpack.c.l.s8.bf16 %v1239_v14  ;;  %v2259_v30 = vunpack.c.h.s8.bf16 %v1239_v14 }
 0x41d   : > { %4505 = vmatpush1.bf16.msra.mxu0 %v2121_v21  ;;  %v2258_v21 = vunpack.c.h.s8.bf16 %v1238_v4 }
 0x41e   : > { %4751 = vmatpush1.bf16.msra.mxu1 %v2123_v22  ;;  %4515 = vmatprep.subr.bf16.mxu0 %v2139_v24  ;;  %v2260_v22 = vunpack.c.h.s8.bf16 %v1240_v9  ;;  %v1255_v24 = vld [vmem:[%s6711_s8 + $0x6a8] sm:$0xff] }
 0x41f   : > { %4761 = vmatprep.subr.bf16.mxu1 %v2141_v28  ;;  %v2257_v28 = vunpack.c.h.s8.bf16 %v1237_v56  ;;  %v1308_v56 = vld [vmem:[%s6711_s8 + $0x850] sm:$0xff] }
 0x420   : > { %4507 = vmatmul.mubr.bf16.vlgmr.msra.gmra.mrb[16].mxu0 %v6849_v20 }
 0x421   : > { %4753 = vmatmul.mubr.bf16.vlgmr.msra.gmra.mrb[16].mxu1 %v6849_v20  ;;  %4516 = vmatpush1.bf16.msra.mxu0 %v2138_v31  ;;  %v2275_v31 = vunpack.c.l.s8.bf16 %v1255_v24 }
 0x422   : > { %4547 = vmatprep.mubr.bf16.mxu0 %v6857_v26  ;;  %4762 = vmatpush1.bf16.msra.mxu1 %v2140_v32  ;;  %v1254_v32 = vld [vmem:[%s6711_s8 + $0x6a0] sm:$0xff] }
 0x423   : > { %4793 = vmatprep.mubr.bf16.mxu1 %v6857_v26  ;;  %4517 = vmatprep.subr.bf16.mxu0 %v2156_v8  ;;  %v2277_v8 = vunpack.c.l.s8.bf16 %v1257_v25 }
 0x424   : > { %4763 = vmatprep.subr.bf16.mxu1 %v2158_v34  ;;  %v2274_v34 = vunpack.c.l.s8.bf16 %v1254_v32 }
 0x425   : > { %4518 = vmatpush1.bf16.msra.mxu0 %v2155_v57  ;;  %v2292_v57 = vunpack.c.h.s8.bf16 %v1255_v24 }
 0x426   : > { %4764 = vmatpush1.bf16.msra.mxu1 %v2157_v36  ;;  %4519 = vmatprep.subr.bf16.mxu0 %v2173_v38  ;;  %v2294_v36 = vunpack.c.h.s8.bf16 %v1257_v25  ;;  %v1272_v38 = vld [vmem:[%s6711_s8 + $0x730] sm:$0xff] }
 0x427   : > { %4765 = vmatprep.subr.bf16.mxu1 %v2175_v40  ;;  %v2291_v40 = vunpack.c.h.s8.bf16 %v1254_v32  ;;  %v1325_v32 = vld [vmem:[%s6711_s8 + $0x8d8] sm:$0xff] }
 0x429   : > { %4520 = vmatpush1.bf16.msra.mxu0 %v2172_v44  ;;  %v2309_v44 = vunpack.c.l.s8.bf16 %v1272_v38 }
 0x42a   : > { %4766 = vmatpush1.bf16.msra.mxu1 %v2174_v46  ;;  %4521 = vmatprep.subr.bf16.mxu0 %v2190_v62  ;;  %v1271_v46 = vld [vmem:[%s6711_s8 + $0x728] sm:$0xff]  ;;  %v2311_v62 = vunpack.c.l.s8.bf16 %v1274_v23 }
 0x42b   : > { %4767 = vmatprep.subr.bf16.mxu1 %v2192_v17  ;;  %v1273_v17 = vld [vmem:[%s6711_s8 + $0x738] sm:$0xff]  ;;  %v2308_v48 = vunpack.c.l.s8.bf16 %v1271_v46 }
 0x42c   : > { %v2310_v19 = vunpack.c.l.s8.bf16 %v1273_v17  ;;  %v2327_v58 = vunpack.c.h.s8.bf16 %v1273_v17 }
 0x42d   : > { %4522 = vmatpush1.bf16.msra.mxu0 %v2189_v49  ;;  %v2326_v49 = vunpack.c.h.s8.bf16 %v1272_v38 }
 0x42e   : > { %4768 = vmatpush1.bf16.msra.mxu1 %v2191_v51  ;;  %4523 = vmatprep.subr.bf16.mxu0 %v2207_v6  ;;  %v2328_v51 = vunpack.c.h.s8.bf16 %v1274_v23  ;;  %v1289_v6 = vld [vmem:[%s6711_s8 + $0x7b8] sm:$0xff] }
 0x42f   : > { %4769 = vmatprep.subr.bf16.mxu1 %v2209_v54  ;;  %v2325_v54 = vunpack.c.h.s8.bf16 %v1271_v46  ;;  %v1342_v46 = vld [vmem:[%s6711_s8 + $0x960] sm:$0xff] }
 0x431   : > { %4524 = vmatpush1.bf16.msra.mxu0 %v2206_v50  ;;  %v2343_v50 = vunpack.c.l.s8.bf16 %v1289_v6 }
 0x432   : > { %4770 = vmatpush1.bf16.msra.mxu1 %v2208_v59  ;;  %4525 = vmatprep.subr.bf16.mxu0 %v2224_v1  ;;  %v1288_v59 = vld [vmem:[%s6711_s8 + $0x7b0] sm:$0xff]  ;;  %v2345_v1 = vunpack.c.l.s8.bf16 %v1291_v52 }
 0x433   : > { %4771 = vmatprep.subr.bf16.mxu1 %v2226_v2  ;;  %v1290_v2 = vld [vmem:[%s6711_s8 + $0x7c0] sm:$0xff]  ;;  %v2342_v4 = vunpack.c.l.s8.bf16 %v1288_v59 }
 0x434   : > { %v2344_v9 = vunpack.c.l.s8.bf16 %v1290_v2  ;;  %v2361_v14 = vunpack.c.h.s8.bf16 %v1290_v2 }
 0x435   : > { %4526 = vmatpush1.bf16.msra.mxu0 %v2223_v10  ;;  %v2360_v10 = vunpack.c.h.s8.bf16 %v1289_v6 }
 0x436   : > { %4772 = vmatpush1.bf16.msra.mxu1 %v2225_v11  ;;  %4527 = vmatprep.subr.bf16.mxu0 %v2241_v12  ;;  %v2362_v11 = vunpack.c.h.s8.bf16 %v1291_v52  ;;  %v1306_v12 = vld [vmem:[%s6711_s8 + $0x840] sm:$0xff] }
 0x437   : > { %4773 = vmatprep.subr.bf16.mxu1 %v2243_v13  ;;  %v2359_v13 = vunpack.c.h.s8.bf16 %v1288_v59  ;;  %v1359_v59 = vld [vmem:[%s6711_s8 + $0x9e8] sm:$0xff] }
 0x439   : > { %4528 = vmatpush1.bf16.msra.mxu0 %v2240_v47  ;;  %v2377_v47 = vunpack.c.l.s8.bf16 %v1306_v12 }
 0x43a   : > { %4774 = vmatpush1.bf16.msra.mxu1 %v2242_v16  ;;  %4529 = vmatprep.subr.bf16.mxu0 %v2258_v21  ;;  %v1305_v16 = vld [vmem:[%s6711_s8 + $0x838] sm:$0xff]  ;;  %v2379_v21 = vunpack.c.l.s8.bf16 %v1308_v56 }
 0x43b   : > { %4775 = vmatprep.subr.bf16.mxu1 %v2260_v22  ;;  %v1307_v22 = vld [vmem:[%s6711_s8 + $0x848] sm:$0xff]  ;;  %v2376_v24 = vunpack.c.l.s8.bf16 %v1305_v16 }
 0x43c   : > { %v2378_v25 = vunpack.c.l.s8.bf16 %v1307_v22  ;;  %v2395_v33 = vunpack.c.h.s8.bf16 %v1307_v22 }
 0x43d   : > { %4530 = vmatpush1.bf16.msra.mxu0 %v2257_v28  ;;  %v2394_v28 = vunpack.c.h.s8.bf16 %v1306_v12 }
 0x43e   : > { %4776 = vmatpush1.bf16.msra.mxu1 %v2259_v30  ;;  %4531 = vmatprep.subr.bf16.mxu0 %v2275_v31  ;;  %v2396_v30 = vunpack.c.h.s8.bf16 %v1308_v56  ;;  %v1323_v31 = vld [vmem:[%s6711_s8 + $0x8c8] sm:$0xff] }
 0x43f   : > { %4777 = vmatprep.subr.bf16.mxu1 %v2277_v8  ;;  %v2393_v8 = vunpack.c.h.s8.bf16 %v1305_v16  ;;  %v1376_v16 = vld [vmem:[%s6711_s8 + $0xa70] sm:$0xff] }
 0x441   : > { %4532 = vmatpush1.bf16.msra.mxu0 %v2274_v34  ;;  %v2411_v34 = vunpack.c.l.s8.bf16 %v1323_v31 }
 0x442   : > { %4778 = vmatpush1.bf16.msra.mxu1 %v2276_v35  ;;  %4533 = vmatprep.subr.bf16.mxu0 %v2292_v57  ;;  %v1322_v35 = vld [vmem:[%s6711_s8 + $0x8c0] sm:$0xff]  ;;  %v2413_v57 = vunpack.c.l.s8.bf16 %v1325_v32 }
 0x443   : > { %4779 = vmatprep.subr.bf16.mxu1 %v2294_v36  ;;  %v1324_v36 = vld [vmem:[%s6711_s8 + $0x8d0] sm:$0xff]  ;;  %v2410_v38 = vunpack.c.l.s8.bf16 %v1322_v35 }
 0x444   : > { %v2412_v23 = vunpack.c.l.s8.bf16 %v1324_v36  ;;  %v2429_v17 = vunpack.c.h.s8.bf16 %v1324_v36 }
 0x445   : > { %4534 = vmatpush1.bf16.msra.mxu0 %v2291_v40  ;;  %v2428_v40 = vunpack.c.h.s8.bf16 %v1323_v31 }
 0x446   : > { %4780 = vmatpush1.bf16.msra.mxu1 %v2293_v42  ;;  %4535 = vmatprep.subr.bf16.mxu0 %v2309_v44  ;;  %v1340_v42 = vld [vmem:[%s6711_s8 + $0x950] sm:$0xff]  ;;  %v2430_v44 = vunpack.c.h.s8.bf16 %v1325_v32 }
 0x447   : > { %4781 = vmatprep.subr.bf16.mxu1 %v2311_v62  ;;  %v2427_v62 = vunpack.c.h.s8.bf16 %v1322_v35  ;;  %v1393_v35 = vld [vmem:[%s6711_s8 + $0xaf8] sm:$0xff] }
 0x449   : > { %4536 = vmatpush1.bf16.msra.mxu0 %v2308_v48  ;;  %v2445_v48 = vunpack.c.l.s8.bf16 %v1340_v42 }
 0x44a   : > { %4782 = vmatpush1.bf16.msra.mxu1 %v2310_v19  ;;  %4537 = vmatprep.subr.bf16.mxu0 %v2326_v49  ;;  %v1339_v19 = vld [vmem:[%s6711_s8 + $0x948] sm:$0xff]  ;;  %v2447_v49 = vunpack.c.l.s8.bf16 %v1342_v46 }
 0x44b   : > { %4783 = vmatprep.subr.bf16.mxu1 %v2328_v51  ;;  %v1341_v51 = vld [vmem:[%s6711_s8 + $0x958] sm:$0xff]  ;;  %v2444_v6 = vunpack.c.l.s8.bf16 %v1339_v19 }
 0x44c   : > { %v2446_v52 = vunpack.c.l.s8.bf16 %v1341_v51  ;;  %v2463_v2 = vunpack.c.h.s8.bf16 %v1341_v51 }
 0x44d   : > { %4538 = vmatpush1.bf16.msra.mxu0 %v2325_v54  ;;  %v2462_v54 = vunpack.c.h.s8.bf16 %v1340_v42  ;;  %v1392_v42 = vld [vmem:[%s6711_s8 + $0xaf0] sm:$0xff] }
 0x44e   : > { %4784 = vmatpush1.bf16.msra.mxu1 %v2327_v58  ;;  %4539 = vmatprep.subr.bf16.mxu0 %v2343_v50  ;;  %v2464_v58 = vunpack.c.h.s8.bf16 %v1342_v46  ;;  %v1357_v50 = vld [vmem:[%s6711_s8 + $0x9d8] sm:$0xff]  ;;  %v2548_v46 = vunpack.c.l.s8.bf16 %v1392_v42  ;;  %v2565_v51 = vunpack.c.h.s8.bf16 %v1392_v42 }
 0x44f   : > { %4785 = vmatprep.subr.bf16.mxu1 %v2345_v1  ;;  %v2461_v1 = vunpack.c.h.s8.bf16 %v1339_v19  ;;  %v1410_v19 = vld [vmem:[%s6711_s8 + $0xb80] sm:$0xff] }
 0x451   : > { %4540 = vmatpush1.bf16.msra.mxu0 %v2342_v4  ;;  %v2479_v4 = vunpack.c.l.s8.bf16 %v1357_v50 }
 0x452   : > { %4786 = vmatpush1.bf16.msra.mxu1 %v2344_v9  ;;  %4541 = vmatprep.subr.bf16.mxu0 %v2360_v10  ;;  %v1356_v9 = vld [vmem:[%s6711_s8 + $0x9d0] sm:$0xff]  ;;  %v2481_v10 = vunpack.c.l.s8.bf16 %v1359_v59 }
 0x453   : > { %4787 = vmatprep.subr.bf16.mxu1 %v2362_v11  ;;  %v1358_v11 = vld [vmem:[%s6711_s8 + $0x9e0] sm:$0xff]  ;;  %v2478_v12 = vunpack.c.l.s8.bf16 %v1356_v9 }
 0x454   : > { %v2480_v56 = vunpack.c.l.s8.bf16 %v1358_v11  ;;  %v2497_v22 = vunpack.c.h.s8.bf16 %v1358_v11 }
 0x455   : > { %4542 = vmatpush1.bf16.msra.mxu0 %v2359_v13  ;;  %v2496_v13 = vunpack.c.h.s8.bf16 %v1357_v50 }
 0x456   : > { %4788 = vmatpush1.bf16.msra.mxu1 %v2361_v14  ;;  %4543 = vmatprep.subr.bf16.mxu0 %v2377_v47  ;;  %v2498_v14 = vunpack.c.h.s8.bf16 %v1359_v59  ;;  %v1374_v47 = vld [vmem:[%s6711_s8 + $0xa60] sm:$0xff] }
 0x457   : > { %4789 = vmatprep.subr.bf16.mxu1 %v2379_v21  ;;  %v2495_v21 = vunpack.c.h.s8.bf16 %v1356_v9  ;;  %v1427_v9 = vld [vmem:[%s6711_s8 + $0xc08] sm:$0xff] }
 0x459   : > { %4544 = vmatpush1.bf16.msra.mxu0 %v2376_v24  ;;  %v2513_v24 = vunpack.c.l.s8.bf16 %v1374_v47 }
 0x45a   : > { %4790 = vmatpush1.bf16.msra.mxu1 %v2378_v25  ;;  %4545 = vmatprep.subr.bf16.mxu0 %v2394_v28  ;;  %v1373_v25 = vld [vmem:[%s6711_s8 + $0xa58] sm:$0xff]  ;;  %v2515_v28 = vunpack.c.l.s8.bf16 %v1376_v16 }
 0x45b   : > { %4791 = vmatprep.subr.bf16.mxu1 %v2396_v30  ;;  %v1375_v30 = vld [vmem:[%s6711_s8 + $0xa68] sm:$0xff]  ;;  %v2512_v31 = vunpack.c.l.s8.bf16 %v1373_v25 }
 0x45c   : > { %v2514_v32 = vunpack.c.l.s8.bf16 %v1375_v30  ;;  %v2531_v36 = vunpack.c.h.s8.bf16 %v1375_v30 }
 0x45d   : > { %4546 = vmatpush1.bf16.msra.mxu0 %v2393_v8  ;;  %v2530_v8 = vunpack.c.h.s8.bf16 %v1374_v47 }
 0x45e   : > { %4792 = vmatpush1.bf16.msra.mxu1 %v2395_v33  ;;  %4556 = vmatprep.subr.bf16.mxu0 %v2411_v34  ;;  %v2532_v33 = vunpack.c.h.s8.bf16 %v1376_v16  ;;  %v1391_v34 = vld [vmem:[%s6711_s8 + $0xae8] sm:$0xff] }
 0x45f   : > { %4802 = vmatprep.subr.bf16.mxu1 %v2413_v57  ;;  %v2529_v57 = vunpack.c.h.s8.bf16 %v1373_v25  ;;  %v1444_v25 = vld [vmem:[%s6711_s8 + $0xc90] sm:$0xff] }
 0x460   : > { %4548 = vmatmul.mubr.bf16.vlgmr.msra.gmra.mrb[16].mxu0 %v6924_v37 }
 0x461   : > { %4794 = vmatmul.mubr.bf16.vlgmr.msra.gmra.mrb[16].mxu1 %v6924_v37  ;;  %4557 = vmatpush1.bf16.msra.mxu0 %v2410_v38  ;;  %v2547_v38 = vunpack.c.l.s8.bf16 %v1391_v34 }
 0x462   : > { %4588 = vmatprep.mubr.bf16.mxu0 %v6928_v43  ;;  %4803 = vmatpush1.bf16.msra.mxu1 %v2412_v23  ;;  %v1390_v23 = vld [vmem:[%s6711_s8 + $0xae0] sm:$0xff] }
 0x463   : > { %4834 = vmatprep.mubr.bf16.mxu1 %v6928_v43  ;;  %4558 = vmatprep.subr.bf16.mxu0 %v2428_v40  ;;  %v2549_v40 = vunpack.c.l.s8.bf16 %v1393_v35 }
 0x464   : > { %4804 = vmatprep.subr.bf16.mxu1 %v2430_v44  ;;  %v2546_v44 = vunpack.c.l.s8.bf16 %v1390_v23 }
 0x465   : > { %4559 = vmatpush1.bf16.msra.mxu0 %v2427_v62  ;;  %v2564_v62 = vunpack.c.h.s8.bf16 %v1391_v34 }
 0x466   : > { %4805 = vmatpush1.bf16.msra.mxu1 %v2429_v17  ;;  %4560 = vmatprep.subr.bf16.mxu0 %v2445_v48  ;;  %v2566_v17 = vunpack.c.h.s8.bf16 %v1393_v35  ;;  %v1408_v48 = vld [vmem:[%s6711_s8 + $0xb70] sm:$0xff] }
 0x467   : > { %4806 = vmatprep.subr.bf16.mxu1 %v2447_v49  ;;  %v2563_v49 = vunpack.c.h.s8.bf16 %v1390_v23  ;;  %v1461_v23 = vld [vmem:[%s6711_s8 + $0xd18] sm:$0xff] }
 0x469   : > { %4561 = vmatpush1.bf16.msra.mxu0 %v2444_v6  ;;  %v2581_v6 = vunpack.c.l.s8.bf16 %v1408_v48 }
 0x46a   : > { %4807 = vmatpush1.bf16.msra.mxu1 %v2446_v52  ;;  %4562 = vmatprep.subr.bf16.mxu0 %v2462_v54  ;;  %v1407_v52 = vld [vmem:[%s6711_s8 + $0xb68] sm:$0xff]  ;;  %v2583_v54 = vunpack.c.l.s8.bf16 %v1410_v19 }
 0x46b   : > { %4808 = vmatprep.subr.bf16.mxu1 %v2464_v58  ;;  %v1409_v58 = vld [vmem:[%s6711_s8 + $0xb78] sm:$0xff]  ;;  %v2580_v50 = vunpack.c.l.s8.bf16 %v1407_v52 }
 0x46c   : > { %v2582_v59 = vunpack.c.l.s8.bf16 %v1409_v58  ;;  %v2599_v11 = vunpack.c.h.s8.bf16 %v1409_v58 }
 0x46d   : > { %4563 = vmatpush1.bf16.msra.mxu0 %v2461_v1  ;;  %v2598_v1 = vunpack.c.h.s8.bf16 %v1408_v48 }
 0x46e   : > { %4809 = vmatpush1.bf16.msra.mxu1 %v2463_v2  ;;  %4564 = vmatprep.subr.bf16.mxu0 %v2479_v4  ;;  %v2600_v2 = vunpack.c.h.s8.bf16 %v1410_v19  ;;  %v1425_v4 = vld [vmem:[%s6711_s8 + $0xbf8] sm:$0xff] }
 0x46f   : > { %4810 = vmatprep.subr.bf16.mxu1 %v2481_v10  ;;  %v2597_v10 = vunpack.c.h.s8.bf16 %v1407_v52  ;;  %v1478_v52 = vld [vmem:[%s6711_s8 + $0xda0] sm:$0xff] }
 0x471   : > { %4565 = vmatpush1.bf16.msra.mxu0 %v2478_v12  ;;  %v2615_v12 = vunpack.c.l.s8.bf16 %v1425_v4 }
 0x472   : > { %4811 = vmatpush1.bf16.msra.mxu1 %v2480_v56  ;;  %4566 = vmatprep.subr.bf16.mxu0 %v2496_v13  ;;  %v1424_v56 = vld [vmem:[%s6711_s8 + $0xbf0] sm:$0xff]  ;;  %v2617_v13 = vunpack.c.l.s8.bf16 %v1427_v9 }
 0x473   : > { %4812 = vmatprep.subr.bf16.mxu1 %v2498_v14  ;;  %v1426_v14 = vld [vmem:[%s6711_s8 + $0xc00] sm:$0xff]  ;;  %v2614_v47 = vunpack.c.l.s8.bf16 %v1424_v56 }
 0x474   : > { %v2616_v16 = vunpack.c.l.s8.bf16 %v1426_v14  ;;  %v2633_v30 = vunpack.c.h.s8.bf16 %v1426_v14 }
 0x475   : > { %4567 = vmatpush1.bf16.msra.mxu0 %v2495_v21  ;;  %v2632_v21 = vunpack.c.h.s8.bf16 %v1425_v4 }
 0x476   : > { %4813 = vmatpush1.bf16.msra.mxu1 %v2497_v22  ;;  %4568 = vmatprep.subr.bf16.mxu0 %v2513_v24  ;;  %v2634_v22 = vunpack.c.h.s8.bf16 %v1427_v9  ;;  %v1442_v24 = vld [vmem:[%s6711_s8 + $0xc80] sm:$0xff] }
 0x477   : > { %4814 = vmatprep.subr.bf16.mxu1 %v2515_v28  ;;  %v2631_v28 = vunpack.c.h.s8.bf16 %v1424_v56  ;;  %v1495_v56 = vld [vmem:[%s6711_s8 + $0xe28] sm:$0xff] }
 0x479   : > { %4569 = vmatpush1.bf16.msra.mxu0 %v2512_v31  ;;  %v2649_v31 = vunpack.c.l.s8.bf16 %v1442_v24 }
 0x47a   : > { %4815 = vmatpush1.bf16.msra.mxu1 %v2514_v32  ;;  %4570 = vmatprep.subr.bf16.mxu0 %v2530_v8  ;;  %v1441_v32 = vld [vmem:[%s6711_s8 + $0xc78] sm:$0xff]  ;;  %v2651_v8 = vunpack.c.l.s8.bf16 %v1444_v25 }
 0x47b   : > { %4816 = vmatprep.subr.bf16.mxu1 %v2532_v33  ;;  %v1443_v33 = vld [vmem:[%s6711_s8 + $0xc88] sm:$0xff]  ;;  %v2648_v34 = vunpack.c.l.s8.bf16 %v1441_v32 }
 0x47c   : > { %v2650_v35 = vunpack.c.l.s8.bf16 %v1443_v33  ;;  %v2667_v42 = vunpack.c.h.s8.bf16 %v1443_v33 }
 0x47d   : > { %4571 = vmatpush1.bf16.msra.mxu0 %v2529_v57  ;;  %v2666_v57 = vunpack.c.h.s8.bf16 %v1442_v24 }
 0x47e   : > { %4817 = vmatpush1.bf16.msra.mxu1 %v2531_v36  ;;  %4572 = vmatprep.subr.bf16.mxu0 %v2547_v38  ;;  %v2668_v36 = vunpack.c.h.s8.bf16 %v1444_v25  ;;  %v1459_v38 = vld [vmem:[%s6711_s8 + $0xd08] sm:$0xff] }
 0x47f   : > { %4818 = vmatprep.subr.bf16.mxu1 %v2549_v40  ;;  %v2665_v40 = vunpack.c.h.s8.bf16 %v1441_v32  ;;  %v1512_v32 = vld [vmem:[%s6711_s8 + $0xeb0] sm:$0xff] }
 0x481   : > { %4573 = vmatpush1.bf16.msra.mxu0 %v2546_v44  ;;  %v2683_v44 = vunpack.c.l.s8.bf16 %v1459_v38 }
 0x482   : > { %4819 = vmatpush1.bf16.msra.mxu1 %v2548_v46  ;;  %4574 = vmatprep.subr.bf16.mxu0 %v2564_v62  ;;  %v1458_v46 = vld [vmem:[%s6711_s8 + $0xd00] sm:$0xff]  ;;  %v2685_v62 = vunpack.c.l.s8.bf16 %v1461_v23 }
 0x483   : > { %4820 = vmatprep.subr.bf16.mxu1 %v2566_v17  ;;  %v1460_v17 = vld [vmem:[%s6711_s8 + $0xd10] sm:$0xff]  ;;  %v2682_v48 = vunpack.c.l.s8.bf16 %v1458_v46 }
 0x484   : > { %v2684_v19 = vunpack.c.l.s8.bf16 %v1460_v17  ;;  %v2701_v58 = vunpack.c.h.s8.bf16 %v1460_v17 }
 0x485   : > { %4575 = vmatpush1.bf16.msra.mxu0 %v2563_v49  ;;  %v2700_v49 = vunpack.c.h.s8.bf16 %v1459_v38  ;;  %v1511_v38 = vld [vmem:[%s6711_s8 + $0xea8] sm:$0xff] }
 0x486   : > { %4821 = vmatpush1.bf16.msra.mxu1 %v2565_v51  ;;  %4576 = vmatprep.subr.bf16.mxu0 %v2581_v6  ;;  %v1476_v51 = vld [vmem:[%s6711_s8 + $0xd90] sm:$0xff]  ;;  %v2702_v6 = vunpack.c.h.s8.bf16 %v1461_v23 }
 0x487   : > { %4822 = vmatprep.subr.bf16.mxu1 %v2583_v54  ;;  %v2699_v54 = vunpack.c.h.s8.bf16 %v1458_v46  ;;  %v1024_v46 = vld [vmem:[#allocation3 + $0x18] sm:$0xff] }
 0x489   : > { %4577 = vmatpush1.bf16.msra.mxu0 %v2580_v50  ;;  %v2717_v50 = vunpack.c.l.s8.bf16 %v1476_v51 }
 0x48a   : > { %4823 = vmatpush1.bf16.msra.mxu1 %v2582_v59  ;;  %4578 = vmatprep.subr.bf16.mxu0 %v2598_v1  ;;  %v1475_v59 = vld [vmem:[%s6711_s8 + $0xd88] sm:$0xff]  ;;  %v2719_v1 = vunpack.c.l.s8.bf16 %v1478_v52 }
 0x48b   : > { %4824 = vmatprep.subr.bf16.mxu1 %v2600_v2  ;;  %v1477_v2 = vld [vmem:[%s6711_s8 + $0xd98] sm:$0xff]  ;;  %v2716_v4 = vunpack.c.l.s8.bf16 %v1475_v59 }
 0x48c   : > { %v2718_v9 = vunpack.c.l.s8.bf16 %v1477_v2  ;;  %v2735_v14 = vunpack.c.h.s8.bf16 %v1477_v2  ;;  %v1529_v2 = vld [vmem:[%s6711_s8 + $0xf38] sm:$0xff] }
 0x48d   : > { %4579 = vmatpush1.bf16.msra.mxu0 %v2597_v10  ;;  %v2734_v10 = vunpack.c.h.s8.bf16 %v1476_v51 }
 0x48e   : > { %4825 = vmatpush1.bf16.msra.mxu1 %v2599_v11  ;;  %4580 = vmatprep.subr.bf16.mxu0 %v2615_v12  ;;  %v2736_v11 = vunpack.c.h.s8.bf16 %v1478_v52  ;;  %v1493_v12 = vld [vmem:[%s6711_s8 + $0xe18] sm:$0xff] }
 0x48f   : > { %4826 = vmatprep.subr.bf16.mxu1 %v2617_v13  ;;  %v2733_v13 = vunpack.c.h.s8.bf16 %v1475_v59  ;;  %v1527_v59 = vld [vmem:[%s6711_s8 + $0xf28] sm:$0xff] }
 0x491   : > { %4581 = vmatpush1.bf16.msra.mxu0 %v2614_v47  ;;  %v2751_v47 = vunpack.c.l.s8.bf16 %v1493_v12 }
 0x492   : > { %4827 = vmatpush1.bf16.msra.mxu1 %v2616_v16  ;;  %4582 = vmatprep.subr.bf16.mxu0 %v2632_v21  ;;  %v1492_v16 = vld [vmem:[%s6711_s8 + $0xe10] sm:$0xff]  ;;  %v2753_v21 = vunpack.c.l.s8.bf16 %v1495_v56 }
 0x493   : > { %4828 = vmatprep.subr.bf16.mxu1 %v2634_v22  ;;  %v1494_v22 = vld [vmem:[%s6711_s8 + $0xe20] sm:$0xff]  ;;  %v2750_v24 = vunpack.c.l.s8.bf16 %v1492_v16 }
 0x494   : > { %v2752_v25 = vunpack.c.l.s8.bf16 %v1494_v22  ;;  %v2769_v33 = vunpack.c.h.s8.bf16 %v1494_v22  ;;  %v1546_v22 = vld [vmem:[%s6711_s8 + $0xfc0] sm:$0xff] }
 0x495   : > { %4583 = vmatpush1.bf16.msra.mxu0 %v2631_v28  ;;  %v2768_v28 = vunpack.c.h.s8.bf16 %v1493_v12  ;;  %v2821_v12 = vunpack.c.l.s8.bf16 %v1529_v2 }
 0x496   : > { %4829 = vmatpush1.bf16.msra.mxu1 %v2633_v30  ;;  %4584 = vmatprep.subr.bf16.mxu0 %v2649_v31  ;;  %v2770_v30 = vunpack.c.h.s8.bf16 %v1495_v56  ;;  %v1510_v31 = vld [vmem:[%s6711_s8 + $0xea0] sm:$0xff]  ;;  %v1528_v56 = vld [vmem:[%s6711_s8 + $0xf30] sm:$0xff] }
 0x497   : > { %4830 = vmatprep.subr.bf16.mxu1 %v2651_v8  ;;  %v2767_v8 = vunpack.c.h.s8.bf16 %v1492_v16  ;;  %v2802_v52 = vunpack.c.h.s8.bf16 %v1510_v31  ;;  %v2838_v16 = vunpack.c.h.s8.bf16 %v1529_v2 }
 0x499   : > { %4585 = vmatpush1.bf16.msra.mxu0 %v2648_v34  ;;  %v2785_v34 = vunpack.c.l.s8.bf16 %v1510_v31  ;;  %v2855_v31 = vunpack.c.l.s8.bf16 %v1546_v22 }
 0x49a   : > { %4831 = vmatpush1.bf16.msra.mxu1 %v2650_v35  ;;  %4586 = vmatprep.subr.bf16.mxu0 %v2666_v57  ;;  %v1509_v35 = vld [vmem:[%s6711_s8 + $0xe98] sm:$0xff] }
 0x49b   : > { %4832 = vmatprep.subr.bf16.mxu1 %v2668_v36  ;;  %v2787_v36 = vunpack.c.l.s8.bf16 %v1512_v32 }
 0x49d   : > { %4587 = vmatpush1.bf16.msra.mxu0 %v2665_v40  ;;  %v1023_v40 = vld [vmem:[#allocation3 + $0x10] sm:$0xff] }
 0x49e   : > { %4833 = vmatpush1.bf16.msra.mxu1 %v2667_v42  ;;  %4597 = vmatprep.subr.bf16.mxu0 %v2683_v44 }
 0x49f   : > { %4843 = vmatprep.subr.bf16.mxu1 %v2685_v62 }
 0x4a0   : > { %4589 = vmatmul.mubr.bf16.vlgmr.msra.gmra.mrb[16].mxu0 %v6976_v55 }
 0x4a1   : > { %4835 = vmatmul.mubr.bf16.vlgmr.msra.gmra.mrb[16].mxu1 %v6976_v55  ;;  %4598 = vmatpush1.bf16.msra.mxu0 %v2682_v48  ;;  %v2784_v48 = vunpack.c.l.s8.bf16 %v1509_v35 }
 0x4a2   : > { %4629 = vmatprep.mubr.bf16.mxu0 %v6980_v7  ;;  %4844 = vmatpush1.bf16.msra.mxu1 %v2684_v19 }
 0x4a3   : > { %4875 = vmatprep.mubr.bf16.mxu1 %v6980_v7  ;;  %4599 = vmatprep.subr.bf16.mxu0 %v2700_v49 }
 0x4a4   : > { %4845 = vmatprep.subr.bf16.mxu1 %v2702_v6  ;;  %v2786_v6 = vunpack.c.l.s8.bf16 %v1511_v38 }
 0x4a5   : > { %4600 = vmatpush1.bf16.msra.mxu0 %v2699_v54 }
 0x4a6   : > { %4846 = vmatpush1.bf16.msra.mxu1 %v2701_v58  ;;  %4601 = vmatprep.subr.bf16.mxu0 %v2717_v50  ;;  %v2804_v50 = vunpack.c.h.s8.bf16 %v1512_v32  ;;  %v1545_v32 = vld [vmem:[%s6711_s8 + $0xfb8] sm:$0xff] }
 0x4a7   : > { %4847 = vmatprep.subr.bf16.mxu1 %v2719_v1 }
 0x4a9   : > { %4602 = vmatpush1.bf16.msra.mxu0 %v2716_v4  ;;  %v2801_v4 = vunpack.c.h.s8.bf16 %v1509_v35  ;;  %v2872_v35 = vunpack.c.h.s8.bf16 %v1546_v22 }
 0x4aa   : > { %4848 = vmatpush1.bf16.msra.mxu1 %v2718_v9  ;;  %4603 = vmatprep.subr.bf16.mxu0 %v2734_v10  ;;  %v2803_v9 = vunpack.c.h.s8.bf16 %v1511_v38  ;;  %v2819_v10 = vunpack.c.l.s8.bf16 %v1527_v59 }
 0x4ab   : > { %4849 = vmatprep.subr.bf16.mxu1 %v2736_v11  ;;  %v1526_v11 = vld [vmem:[%s6711_s8 + $0xf20] sm:$0xff] }
 0x4ad   : > { %4604 = vmatpush1.bf16.msra.mxu0 %v2733_v13  ;;  %v2818_v13 = vunpack.c.l.s8.bf16 %v1526_v11 }
 0x4ae   : > { %4850 = vmatpush1.bf16.msra.mxu1 %v2735_v14  ;;  %4605 = vmatprep.subr.bf16.mxu0 %v2751_v47  ;;  %v2820_v14 = vunpack.c.l.s8.bf16 %v1528_v56  ;;  %v2836_v47 = vunpack.c.h.s8.bf16 %v1527_v59  ;;  %v1579_v59 = vld [vmem:[%s6711_s8 + $0x10c8] sm:$0xff] }
 0x4af   : > { %4851 = vmatprep.subr.bf16.mxu1 %v2753_v21  ;;  %v1544_v21 = vld [vmem:[%s6711_s8 + $0xfb0] sm:$0xff]  ;;  %v2922_v2 = vunpack.c.l.s8.bf16 %v1579_v59 }
 0x4b1   : > { %4606 = vmatpush1.bf16.msra.mxu0 %v2750_v24  ;;  %v2835_v24 = vunpack.c.h.s8.bf16 %v1526_v11  ;;  %v1597_v11 = vld [vmem:[%s6711_s8 + $0x1158] sm:$0xff] }
 0x4b2   : > { %4852 = vmatpush1.bf16.msra.mxu1 %v2752_v25  ;;  %4607 = vmatprep.subr.bf16.mxu0 %v2768_v28  ;;  %v2837_v25 = vunpack.c.h.s8.bf16 %v1528_v56  ;;  %v2853_v28 = vunpack.c.l.s8.bf16 %v1544_v21  ;;  %v2939_v56 = vunpack.c.h.s8.bf16 %v1579_v59 }
 0x4b3   : > { %v4221_v57 = vpop.f32.mrb[12].mxu0  ;;  %4853 = vmatprep.subr.bf16.mxu1 %v2770_v30  ;;  %v1543_v30 = vld [vmem:[%s6711_s8 + $0xfa8] sm:$0xff] }
 0x4b4   : > { %v4467_v23 = vpop.f32.mrb[12].mxu1  ;;  %v4223_v42 = vpop.f32.mrb[13].mxu0  ;;  %v2869_v38 = vunpack.c.h.s8.bf16 %v1543_v30 }
 0x4b5   : > { %v5716_v44 = vcombine.low %v4221_v57, %v4223_v42  ;;  %v4469_v62 = vpop.f32.mrb[13].mxu1  ;;  %v4225_v17 = vpop.f32.mrb[14].mxu0  ;;  %4608 = vmatpush1.bf16.msra.mxu0 %v2767_v8  ;;  %v2852_v8 = vunpack.c.l.s8.bf16 %v1543_v30  ;;  %v1561_v57 = vld [vmem:[%s6711_s8 + $0x1038] sm:$0xff]  ;;  %v1560_v42 = vld [vmem:[%s6711_s8 + $0x1030] sm:$0xff]  ;;  %v1614_v30 = vld [vmem:[%s6711_s8 + $0x11e0] sm:$0xff] }
 0x4b6   : > { %v5717_v19 = vcombine.low %v4467_v23, %v4469_v62  ;;  %v4471_v49 = vpop.f32.mrb[14].mxu1  ;;  %4854 = vmatpush1.bf16.msra.mxu1 %v2769_v33  ;;  %v4226_v51 = vpop.f32.mrb[15].mxu0  ;;  %4609 = vmatprep.subr.bf16.mxu0 %v2785_v34  ;;  %v2854_v33 = vunpack.c.l.s8.bf16 %v1545_v32  ;;  %v2870_v34 = vunpack.c.h.s8.bf16 %v1544_v21  ;;  %v2871_v23 = vunpack.c.h.s8.bf16 %v1545_v32 }
 0x4b7   : > { %v5732_v54 = vadd.f32 %v5716_v44, %v1023_v40  ;;  %v4472_v58 = vpop.f32.mrb[15].mxu1  ;;  %4855 = vmatprep.subr.bf16.mxu1 %v2787_v36  ;;  %v1563_v36 = vld [vmem:[%s6711_s8 + $0x1048] sm:$0xff]  ;;  %v2887_v40 = vunpack.c.l.s8.bf16 %v1561_v57  ;;  %v2886_v62 = vunpack.c.l.s8.bf16 %v1560_v42  ;;  %v1578_v49 = vld [vmem:[%s6711_s8 + $0x10c0] sm:$0xff]  ;;  %v1580_v51 = vld [vmem:[%s6711_s8 + $0x10d0] sm:$0xff] }
 0x4b8   : > { %v5733_v1 = vadd.f32 %v5717_v19, %v1024_v46  ;;  %v2889_v44 = vunpack.c.l.s8.bf16 %v1563_v36  ;;  %v1562_v46 = vld [vmem:[%s6711_s8 + $0x1040] sm:$0xff]  ;;  %v2906_v19 = vunpack.c.h.s8.bf16 %v1563_v36  ;;  %v1577_v58 = vld [vmem:[%s6711_s8 + $0x10b8] sm:$0xff] }
 0x4b9   : > { %5741 = vst [vmem:[#allocation3 + $0x10] sm:$0xff] %v5732_v54  ;;  %4610 = vmatpush1.bf16.msra.mxu0 %v2784_v48  ;;  %v2888_v17 = vunpack.c.l.s8.bf16 %v1562_v46  ;;  %v2904_v48 = vunpack.c.h.s8.bf16 %v1561_v57  ;;  %v2921_v54 = vunpack.c.l.s8.bf16 %v1578_v49 }
 0x4ba   : > { %5742 = vst [vmem:[#allocation3 + $0x18] sm:$0xff] %v5733_v1  ;;  %4856 = vmatpush1.bf16.msra.mxu1 %v2786_v6  ;;  %4611 = vmatprep.subr.bf16.mxu0 %v2802_v52  ;;  %v2903_v6 = vunpack.c.h.s8.bf16 %v1560_v42  ;;  %v2905_v52 = vunpack.c.h.s8.bf16 %v1562_v46  ;;  %v2920_v1 = vunpack.c.l.s8.bf16 %v1577_v58  ;;  %v1631_v42 = vld [vmem:[%s6711_s8 + $0x1268] sm:$0xff] }
 0x4bb   : > { %4857 = vmatprep.subr.bf16.mxu1 %v2804_v50  ;;  %v2923_v50 = vunpack.c.l.s8.bf16 %v1580_v51 }
 0x4bd   : > { %4612 = vmatpush1.bf16.msra.mxu0 %v2801_v4  ;;  %v2938_v4 = vunpack.c.h.s8.bf16 %v1578_v49 }
 0x4be   : > { %4858 = vmatpush1.bf16.msra.mxu1 %v2803_v9  ;;  %4613 = vmatprep.subr.bf16.mxu0 %v2819_v10  ;;  %v2940_v9 = vunpack.c.h.s8.bf16 %v1580_v51  ;;  %v1595_v10 = vld [vmem:[%s6711_s8 + $0x1148] sm:$0xff] }
 0x4bf   : > { %4859 = vmatprep.subr.bf16.mxu1 %v2821_v12  ;;  %v2937_v12 = vunpack.c.h.s8.bf16 %v1577_v58  ;;  %v1648_v58 = vld [vmem:[%s6711_s8 + $0x12f0] sm:$0xff] }
 0x4c1   : > { %4614 = vmatpush1.bf16.msra.mxu0 %v2818_v13  ;;  %v2955_v13 = vunpack.c.l.s8.bf16 %v1595_v10 }
 0x4c2   : > { %4860 = vmatpush1.bf16.msra.mxu1 %v2820_v14  ;;  %4615 = vmatprep.subr.bf16.mxu0 %v2836_v47  ;;  %v1594_v14 = vld [vmem:[%s6711_s8 + $0x1140] sm:$0xff]  ;;  %v2957_v47 = vunpack.c.l.s8.bf16 %v1597_v11 }
 0x4c3   : > { %4861 = vmatprep.subr.bf16.mxu1 %v2838_v16  ;;  %v1596_v16 = vld [vmem:[%s6711_s8 + $0x1150] sm:$0xff]  ;;  %v2954_v21 = vunpack.c.l.s8.bf16 %v1594_v14 }
 0x4c4   : > { %v2956_v22 = vunpack.c.l.s8.bf16 %v1596_v16  ;;  %v2973_v32 = vunpack.c.h.s8.bf16 %v1596_v16 }
 0x4c5   : > { %4616 = vmatpush1.bf16.msra.mxu0 %v2835_v24  ;;  %v2972_v24 = vunpack.c.h.s8.bf16 %v1595_v10 }
 0x4c6   : > { %4862 = vmatpush1.bf16.msra.mxu1 %v2837_v25  ;;  %4617 = vmatprep.subr.bf16.mxu0 %v2853_v28  ;;  %v1612_v25 = vld [vmem:[%s6711_s8 + $0x11d0] sm:$0xff]  ;;  %v2974_v28 = vunpack.c.h.s8.bf16 %v1597_v11 }
 0x4c7   : > { %4863 = vmatprep.subr.bf16.mxu1 %v2855_v31  ;;  %v2971_v31 = vunpack.c.h.s8.bf16 %v1594_v14  ;;  %v1665_v14 = vld [vmem:[%s6711_s8 + $0x1378] sm:$0xff] }
 0x4c9   : > { %4618 = vmatpush1.bf16.msra.mxu0 %v2852_v8  ;;  %v2989_v8 = vunpack.c.l.s8.bf16 %v1612_v25 }
 0x4ca   : > { %4864 = vmatpush1.bf16.msra.mxu1 %v2854_v33  ;;  %4619 = vmatprep.subr.bf16.mxu0 %v2870_v34  ;;  %v1611_v33 = vld [vmem:[%s6711_s8 + $0x11c8] sm:$0xff]  ;;  %v2991_v34 = vunpack.c.l.s8.bf16 %v1614_v30 }
 0x4cb   : > { %4865 = vmatprep.subr.bf16.mxu1 %v2872_v35  ;;  %v1613_v35 = vld [vmem:[%s6711_s8 + $0x11d8] sm:$0xff]  ;;  %v2988_v57 = vunpack.c.l.s8.bf16 %v1611_v33 }
 0x4cc   : > { %v2990_v36 = vunpack.c.l.s8.bf16 %v1613_v35  ;;  %v3007_v46 = vunpack.c.h.s8.bf16 %v1613_v35 }
 0x4cd   : > { %4620 = vmatpush1.bf16.msra.mxu0 %v2869_v38  ;;  %v3006_v38 = vunpack.c.h.s8.bf16 %v1612_v25  ;;  %v1664_v25 = vld [vmem:[%s6711_s8 + $0x1370] sm:$0xff] }
 0x4ce   : > { %4866 = vmatpush1.bf16.msra.mxu1 %v2871_v23  ;;  %4621 = vmatprep.subr.bf16.mxu0 %v2887_v40  ;;  %v3008_v23 = vunpack.c.h.s8.bf16 %v1614_v30  ;;  %v1629_v40 = vld [vmem:[%s6711_s8 + $0x1258] sm:$0xff]  ;;  %v3092_v30 = vunpack.c.l.s8.bf16 %v1664_v25  ;;  %v3109_v35 = vunpack.c.h.s8.bf16 %v1664_v25 }
 0x4cf   : > { %4867 = vmatprep.subr.bf16.mxu1 %v2889_v44  ;;  %v3005_v44 = vunpack.c.h.s8.bf16 %v1611_v33  ;;  %v1682_v33 = vld [vmem:[%s6711_s8 + $0x1400] sm:$0xff] }
 0x4d1   : > { %4622 = vmatpush1.bf16.msra.mxu0 %v2886_v62  ;;  %v3023_v62 = vunpack.c.l.s8.bf16 %v1629_v40 }
 0x4d2   : > { %4868 = vmatpush1.bf16.msra.mxu1 %v2888_v17  ;;  %4623 = vmatprep.subr.bf16.mxu0 %v2904_v48  ;;  %v1628_v17 = vld [vmem:[%s6711_s8 + $0x1250] sm:$0xff]  ;;  %v3025_v48 = vunpack.c.l.s8.bf16 %v1631_v42 }
 0x4d3   : > { %4869 = vmatprep.subr.bf16.mxu1 %v2906_v19  ;;  %v1630_v19 = vld [vmem:[%s6711_s8 + $0x1260] sm:$0xff]  ;;  %v3022_v49 = vunpack.c.l.s8.bf16 %v1628_v17 }
 0x4d4   : > { %v3024_v51 = vunpack.c.l.s8.bf16 %v1630_v19  ;;  %v3041_v59 = vunpack.c.h.s8.bf16 %v1630_v19 }
 0x4d5   : > { %4624 = vmatpush1.bf16.msra.mxu0 %v2903_v6  ;;  %v3040_v6 = vunpack.c.h.s8.bf16 %v1629_v40 }
 0x4d6   : > { %4870 = vmatpush1.bf16.msra.mxu1 %v2905_v52  ;;  %4625 = vmatprep.subr.bf16.mxu0 %v2921_v54  ;;  %v3042_v52 = vunpack.c.h.s8.bf16 %v1631_v42  ;;  %v1646_v54 = vld [vmem:[%s6711_s8 + $0x12e0] sm:$0xff] }
 0x4d7   : > { %4871 = vmatprep.subr.bf16.mxu1 %v2923_v50  ;;  %v3039_v50 = vunpack.c.h.s8.bf16 %v1628_v17  ;;  %v1699_v17 = vld [vmem:[%s6711_s8 + $0x1488] sm:$0xff] }
 0x4d9   : > { %4626 = vmatpush1.bf16.msra.mxu0 %v2920_v1  ;;  %v3057_v1 = vunpack.c.l.s8.bf16 %v1646_v54 }
 0x4da   : > { %4872 = vmatpush1.bf16.msra.mxu1 %v2922_v2  ;;  %4627 = vmatprep.subr.bf16.mxu0 %v2938_v4  ;;  %v1645_v2 = vld [vmem:[%s6711_s8 + $0x12d8] sm:$0xff]  ;;  %v3059_v4 = vunpack.c.l.s8.bf16 %v1648_v58 }
 0x4db   : > { %4873 = vmatprep.subr.bf16.mxu1 %v2940_v9  ;;  %v1647_v9 = vld [vmem:[%s6711_s8 + $0x12e8] sm:$0xff]  ;;  %v3056_v10 = vunpack.c.l.s8.bf16 %v1645_v2 }
 0x4dc   : > { %v3058_v11 = vunpack.c.l.s8.bf16 %v1647_v9  ;;  %v3075_v16 = vunpack.c.h.s8.bf16 %v1647_v9 }
 0x4dd   : > { %4628 = vmatpush1.bf16.msra.mxu0 %v2937_v12  ;;  %v3074_v12 = vunpack.c.h.s8.bf16 %v1646_v54 }
 0x4de   : > { %4874 = vmatpush1.bf16.msra.mxu1 %v2939_v56  ;;  %4638 = vmatprep.subr.bf16.mxu0 %v2955_v13  ;;  %v3076_v56 = vunpack.c.h.s8.bf16 %v1648_v58  ;;  %v1663_v13 = vld [vmem:[%s6711_s8 + $0x1368] sm:$0xff] }
 0x4df   : > { %4884 = vmatprep.subr.bf16.mxu1 %v2957_v47  ;;  %v3073_v47 = vunpack.c.h.s8.bf16 %v1645_v2  ;;  %v1716_v2 = vld [vmem:[%s6711_s8 + $0x1510] sm:$0xff] }
 0x4e0   : > { %4630 = vmatmul.mubr.bf16.vlgmr.msra.gmra.mrb[16].mxu0 %v7025_v3 }
 0x4e1   : > { %4876 = vmatmul.mubr.bf16.vlgmr.msra.gmra.mrb[16].mxu1 %v7025_v3  ;;  %4639 = vmatpush1.bf16.msra.mxu0 %v2954_v21  ;;  %v3091_v21 = vunpack.c.l.s8.bf16 %v1663_v13 }
 0x4e2   : > { %4670 = vmatprep.mubr.bf16.mxu0 %v7027_v27  ;;  %4885 = vmatpush1.bf16.msra.mxu1 %v2956_v22  ;;  %v1662_v22 = vld [vmem:[%s6711_s8 + $0x1360] sm:$0xff] }
 0x4e3   : > { %4916 = vmatprep.mubr.bf16.mxu1 %v7027_v27  ;;  %4640 = vmatprep.subr.bf16.mxu0 %v2972_v24  ;;  %v3093_v24 = vunpack.c.l.s8.bf16 %v1665_v14 }
 0x4e4   : > { %4886 = vmatprep.subr.bf16.mxu1 %v2974_v28  ;;  %v3090_v28 = vunpack.c.l.s8.bf16 %v1662_v22 }
 0x4e5   : > { %4641 = vmatpush1.bf16.msra.mxu0 %v2971_v31  ;;  %v3108_v31 = vunpack.c.h.s8.bf16 %v1663_v13 }
 0x4e6   : > { %4887 = vmatpush1.bf16.msra.mxu1 %v2973_v32  ;;  %4642 = vmatprep.subr.bf16.mxu0 %v2989_v8  ;;  %v3110_v32 = vunpack.c.h.s8.bf16 %v1665_v14  ;;  %v1680_v8 = vld [vmem:[%s6711_s8 + $0x13f0] sm:$0xff] }
 0x4e7   : > { %4888 = vmatprep.subr.bf16.mxu1 %v2991_v34  ;;  %v3107_v34 = vunpack.c.h.s8.bf16 %v1662_v22  ;;  %v1733_v22 = vld [vmem:[%s6711_s8 + $0x1598] sm:$0xff] }
 0x4e9   : > { %4643 = vmatpush1.bf16.msra.mxu0 %v2988_v57  ;;  %v3125_v57 = vunpack.c.l.s8.bf16 %v1680_v8 }
 0x4ea   : > { %4889 = vmatpush1.bf16.msra.mxu1 %v2990_v36  ;;  %4644 = vmatprep.subr.bf16.mxu0 %v3006_v38  ;;  %v1679_v36 = vld [vmem:[%s6711_s8 + $0x13e8] sm:$0xff]  ;;  %v3127_v38 = vunpack.c.l.s8.bf16 %v1682_v33 }
 0x4eb   : > { %4890 = vmatprep.subr.bf16.mxu1 %v3008_v23  ;;  %v1681_v23 = vld [vmem:[%s6711_s8 + $0x13f8] sm:$0xff]  ;;  %v3124_v40 = vunpack.c.l.s8.bf16 %v1679_v36 }
 0x4ec   : > { %v3126_v42 = vunpack.c.l.s8.bf16 %v1681_v23  ;;  %v3143_v19 = vunpack.c.h.s8.bf16 %v1681_v23 }
 0x4ed   : > { %4645 = vmatpush1.bf16.msra.mxu0 %v3005_v44  ;;  %v3142_v44 = vunpack.c.h.s8.bf16 %v1680_v8 }
 0x4ee   : > { %4891 = vmatpush1.bf16.msra.mxu1 %v3007_v46  ;;  %4646 = vmatprep.subr.bf16.mxu0 %v3023_v62  ;;  %v3144_v46 = vunpack.c.h.s8.bf16 %v1682_v33  ;;  %v1697_v62 = vld [vmem:[%s6711_s8 + $0x1478] sm:$0xff] }
 0x4ef   : > { %4892 = vmatprep.subr.bf16.mxu1 %v3025_v48  ;;  %v3141_v48 = vunpack.c.h.s8.bf16 %v1679_v36  ;;  %v1750_v36 = vld [vmem:[%s6711_s8 + $0x1620] sm:$0xff] }
 0x4f1   : > { %4647 = vmatpush1.bf16.msra.mxu0 %v3022_v49  ;;  %v3159_v49 = vunpack.c.l.s8.bf16 %v1697_v62 }
 0x4f2   : > { %4893 = vmatpush1.bf16.msra.mxu1 %v3024_v51  ;;  %4648 = vmatprep.subr.bf16.mxu0 %v3040_v6  ;;  %v1696_v51 = vld [vmem:[%s6711_s8 + $0x1470] sm:$0xff]  ;;  %v3161_v6 = vunpack.c.l.s8.bf16 %v1699_v17 }
 0x4f3   : > { %4894 = vmatprep.subr.bf16.mxu1 %v3042_v52  ;;  %v1698_v52 = vld [vmem:[%s6711_s8 + $0x1480] sm:$0xff]  ;;  %v3158_v54 = vunpack.c.l.s8.bf16 %v1696_v51 }
 0x4f4   : > { %v3160_v58 = vunpack.c.l.s8.bf16 %v1698_v52  ;;  %v3177_v9 = vunpack.c.h.s8.bf16 %v1698_v52 }
 0x4f5   : > { %4649 = vmatpush1.bf16.msra.mxu0 %v3039_v50  ;;  %v3176_v50 = vunpack.c.h.s8.bf16 %v1697_v62 }
 0x4f6   : > { %4895 = vmatpush1.bf16.msra.mxu1 %v3041_v59  ;;  %4650 = vmatprep.subr.bf16.mxu0 %v3057_v1  ;;  %v3178_v59 = vunpack.c.h.s8.bf16 %v1699_v17  ;;  %v1714_v1 = vld [vmem:[%s6711_s8 + $0x1500] sm:$0xff] }
 0x4f7   : > { %4896 = vmatprep.subr.bf16.mxu1 %v3059_v4  ;;  %v3175_v4 = vunpack.c.h.s8.bf16 %v1696_v51  ;;  %v1767_v51 = vld [vmem:[%s6711_s8 + $0x16a8] sm:$0xff] }
 0x4f9   : > { %4651 = vmatpush1.bf16.msra.mxu0 %v3056_v10  ;;  %v3193_v10 = vunpack.c.l.s8.bf16 %v1714_v1 }
 0x4fa   : > { %4897 = vmatpush1.bf16.msra.mxu1 %v3058_v11  ;;  %4652 = vmatprep.subr.bf16.mxu0 %v3074_v12  ;;  %v1713_v11 = vld [vmem:[%s6711_s8 + $0x14f8] sm:$0xff]  ;;  %v3195_v12 = vunpack.c.l.s8.bf16 %v1716_v2 }
 0x4fb   : > { %4898 = vmatprep.subr.bf16.mxu1 %v3076_v56  ;;  %v1715_v56 = vld [vmem:[%s6711_s8 + $0x1508] sm:$0xff]  ;;  %v3192_v13 = vunpack.c.l.s8.bf16 %v1713_v11 }
 0x4fc   : > { %v3194_v14 = vunpack.c.l.s8.bf16 %v1715_v56  ;;  %v3211_v25 = vunpack.c.h.s8.bf16 %v1715_v56 }
 0x4fd   : > { %4653 = vmatpush1.bf16.msra.mxu0 %v3073_v47  ;;  %v3210_v47 = vunpack.c.h.s8.bf16 %v1714_v1 }
 0x4fe   : > { %4899 = vmatpush1.bf16.msra.mxu1 %v3075_v16  ;;  %4654 = vmatprep.subr.bf16.mxu0 %v3091_v21  ;;  %v3212_v16 = vunpack.c.h.s8.bf16 %v1716_v2  ;;  %v1731_v21 = vld [vmem:[%s6711_s8 + $0x1588] sm:$0xff] }
 0x4ff   : > { %4900 = vmatprep.subr.bf16.mxu1 %v3093_v24  ;;  %v3209_v24 = vunpack.c.h.s8.bf16 %v1713_v11  ;;  %v1784_v11 = vld [vmem:[%s6711_s8 + $0x1730] sm:$0xff] }
 0x501   : > { %4655 = vmatpush1.bf16.msra.mxu0 %v3090_v28  ;;  %v3227_v28 = vunpack.c.l.s8.bf16 %v1731_v21 }
 0x502   : > { %4901 = vmatpush1.bf16.msra.mxu1 %v3092_v30  ;;  %4656 = vmatprep.subr.bf16.mxu0 %v3108_v31  ;;  %v1730_v30 = vld [vmem:[%s6711_s8 + $0x1580] sm:$0xff]  ;;  %v3229_v31 = vunpack.c.l.s8.bf16 %v1733_v22 }
 0x503   : > { %4902 = vmatprep.subr.bf16.mxu1 %v3110_v32  ;;  %v1732_v32 = vld [vmem:[%s6711_s8 + $0x1590] sm:$0xff]  ;;  %v3226_v8 = vunpack.c.l.s8.bf16 %v1730_v30 }
 0x504   : > { %v3228_v33 = vunpack.c.l.s8.bf16 %v1732_v32  ;;  %v3245_v23 = vunpack.c.h.s8.bf16 %v1732_v32 }
 0x505   : > { %4657 = vmatpush1.bf16.msra.mxu0 %v3107_v34  ;;  %v3244_v34 = vunpack.c.h.s8.bf16 %v1731_v21 }
 0x506   : > { %4903 = vmatpush1.bf16.msra.mxu1 %v3109_v35  ;;  %4658 = vmatprep.subr.bf16.mxu0 %v3125_v57  ;;  %v1748_v35 = vld [vmem:[%s6711_s8 + $0x1610] sm:$0xff]  ;;  %v3246_v57 = vunpack.c.h.s8.bf16 %v1733_v22 }
 0x507   : > { %4904 = vmatprep.subr.bf16.mxu1 %v3127_v38  ;;  %v3243_v38 = vunpack.c.h.s8.bf16 %v1730_v30  ;;  %v1801_v30 = vld [vmem:[%s6711_s8 + $0x17b8] sm:$0xff] }
 0x509   : > { %4659 = vmatpush1.bf16.msra.mxu0 %v3124_v40  ;;  %v3261_v40 = vunpack.c.l.s8.bf16 %v1748_v35 }
 0x50a   : > { %4905 = vmatpush1.bf16.msra.mxu1 %v3126_v42  ;;  %4660 = vmatprep.subr.bf16.mxu0 %v3142_v44  ;;  %v1747_v42 = vld [vmem:[%s6711_s8 + $0x1608] sm:$0xff]  ;;  %v3263_v44 = vunpack.c.l.s8.bf16 %v1750_v36 }
 0x50b   : > { %4906 = vmatprep.subr.bf16.mxu1 %v3144_v46  ;;  %v1749_v46 = vld [vmem:[%s6711_s8 + $0x1618] sm:$0xff]  ;;  %v3260_v62 = vunpack.c.l.s8.bf16 %v1747_v42 }
 0x50c   : > { %v3262_v17 = vunpack.c.l.s8.bf16 %v1749_v46  ;;  %v3279_v52 = vunpack.c.h.s8.bf16 %v1749_v46 }
 0x50d   : > { %4661 = vmatpush1.bf16.msra.mxu0 %v3141_v48  ;;  %v3278_v48 = vunpack.c.h.s8.bf16 %v1748_v35  ;;  %v1800_v35 = vld [vmem:[%s6711_s8 + $0x17b0] sm:$0xff] }
 0x50e   : > { %4907 = vmatpush1.bf16.msra.mxu1 %v3143_v19  ;;  %4662 = vmatprep.subr.bf16.mxu0 %v3159_v49  ;;  %v3280_v19 = vunpack.c.h.s8.bf16 %v1750_v36  ;;  %v1765_v49 = vld [vmem:[%s6711_s8 + $0x1698] sm:$0xff]  ;;  %v3364_v36 = vunpack.c.l.s8.bf16 %v1800_v35  ;;  %v3381_v46 = vunpack.c.h.s8.bf16 %v1800_v35 }
 0x50f   : > { %4908 = vmatprep.subr.bf16.mxu1 %v3161_v6  ;;  %v3277_v6 = vunpack.c.h.s8.bf16 %v1747_v42  ;;  %v1818_v42 = vld [vmem:[%s6711_s8 + $0x1840] sm:$0xff] }
 0x511   : > { %4663 = vmatpush1.bf16.msra.mxu0 %v3158_v54  ;;  %v3295_v54 = vunpack.c.l.s8.bf16 %v1765_v49 }
 0x512   : > { %4909 = vmatpush1.bf16.msra.mxu1 %v3160_v58  ;;  %4664 = vmatprep.subr.bf16.mxu0 %v3176_v50  ;;  %v1764_v58 = vld [vmem:[%s6711_s8 + $0x1690] sm:$0xff]  ;;  %v3297_v50 = vunpack.c.l.s8.bf16 %v1767_v51 }
 0x513   : > { %4910 = vmatprep.subr.bf16.mxu1 %v3178_v59  ;;  %v1766_v59 = vld [vmem:[%s6711_s8 + $0x16a0] sm:$0xff]  ;;  %v3294_v1 = vunpack.c.l.s8.bf16 %v1764_v58 }
 0x514   : > { %v3296_v2 = vunpack.c.l.s8.bf16 %v1766_v59  ;;  %v3313_v56 = vunpack.c.h.s8.bf16 %v1766_v59 }
 0x515   : > { %4665 = vmatpush1.bf16.msra.mxu0 %v3175_v4  ;;  %v3312_v4 = vunpack.c.h.s8.bf16 %v1765_v49 }
 0x516   : > { %4911 = vmatpush1.bf16.msra.mxu1 %v3177_v9  ;;  %4666 = vmatprep.subr.bf16.mxu0 %v3193_v10  ;;  %v3314_v9 = vunpack.c.h.s8.bf16 %v1767_v51  ;;  %v1782_v10 = vld [vmem:[%s6711_s8 + $0x1720] sm:$0xff] }
 0x517   : > { %4912 = vmatprep.subr.bf16.mxu1 %v3195_v12  ;;  %v3311_v12 = vunpack.c.h.s8.bf16 %v1764_v58  ;;  %v1835_v58 = vld [vmem:[%s6711_s8 + $0x18c8] sm:$0xff] }
 0x519   : > { %4667 = vmatpush1.bf16.msra.mxu0 %v3192_v13  ;;  %v3329_v13 = vunpack.c.l.s8.bf16 %v1782_v10 }
 0x51a   : > { %4913 = vmatpush1.bf16.msra.mxu1 %v3194_v14  ;;  %4668 = vmatprep.subr.bf16.mxu0 %v3210_v47  ;;  %v1781_v14 = vld [vmem:[%s6711_s8 + $0x1718] sm:$0xff]  ;;  %v3331_v47 = vunpack.c.l.s8.bf16 %v1784_v11 }
 0x51b   : > { %4914 = vmatprep.subr.bf16.mxu1 %v3212_v16  ;;  %v1783_v16 = vld [vmem:[%s6711_s8 + $0x1728] sm:$0xff]  ;;  %v3328_v21 = vunpack.c.l.s8.bf16 %v1781_v14 }
 0x51c   : > { %v3330_v22 = vunpack.c.l.s8.bf16 %v1783_v16  ;;  %v3347_v32 = vunpack.c.h.s8.bf16 %v1783_v16 }
 0x51d   : > { %4669 = vmatpush1.bf16.msra.mxu0 %v3209_v24  ;;  %v3346_v24 = vunpack.c.h.s8.bf16 %v1782_v10 }
 0x51e   : > { %4915 = vmatpush1.bf16.msra.mxu1 %v3211_v25  ;;  %4679 = vmatprep.subr.bf16.mxu0 %v3227_v28  ;;  %v3348_v25 = vunpack.c.h.s8.bf16 %v1784_v11  ;;  %v1799_v28 = vld [vmem:[%s6711_s8 + $0x17a8] sm:$0xff] }
 0x51f   : > { %4925 = vmatprep.subr.bf16.mxu1 %v3229_v31  ;;  %v3345_v31 = vunpack.c.h.s8.bf16 %v1781_v14  ;;  %v1852_v14 = vld [vmem:[%s6711_s8 + $0x1950] sm:$0xff] }
 0x520   : > { %4671 = vmatmul.mubr.bf16.vlgmr.msra.gmra.mrb[16].mxu0 %v7069_v39 }
 0x521   : > { %4917 = vmatmul.mubr.bf16.vlgmr.msra.gmra.mrb[16].mxu1 %v7069_v39  ;;  %4680 = vmatpush1.bf16.msra.mxu0 %v3226_v8  ;;  %v3363_v8 = vunpack.c.l.s8.bf16 %v1799_v28 }
 0x522   : > { %4711 = vmatprep.mubr.bf16.mxu0 %v7072_v45  ;;  %4926 = vmatpush1.bf16.msra.mxu1 %v3228_v33  ;;  %v1798_v33 = vld [vmem:[%s6711_s8 + $0x17a0] sm:$0xff] }
 0x523   : > { %4957 = vmatprep.mubr.bf16.mxu1 %v7072_v45  ;;  %4681 = vmatprep.subr.bf16.mxu0 %v3244_v34  ;;  %v3365_v34 = vunpack.c.l.s8.bf16 %v1801_v30 }
 0x524   : > { %4927 = vmatprep.subr.bf16.mxu1 %v3246_v57  ;;  %v3362_v57 = vunpack.c.l.s8.bf16 %v1798_v33 }
 0x525   : > { %4682 = vmatpush1.bf16.msra.mxu0 %v3243_v38  ;;  %v3380_v38 = vunpack.c.h.s8.bf16 %v1799_v28 }
 0x526   : > { %4928 = vmatpush1.bf16.msra.mxu1 %v3245_v23  ;;  %4683 = vmatprep.subr.bf16.mxu0 %v3261_v40  ;;  %v3382_v23 = vunpack.c.h.s8.bf16 %v1801_v30  ;;  %v1816_v40 = vld [vmem:[%s6711_s8 + $0x1830] sm:$0xff] }
 0x527   : > { %4929 = vmatprep.subr.bf16.mxu1 %v3263_v44  ;;  %v3379_v44 = vunpack.c.h.s8.bf16 %v1798_v33  ;;  %v1057_v33 = vld [vmem:[%s6711_s8 + $0x78] sm:$0xff] }
 0x529   : > { %4684 = vmatpush1.bf16.msra.mxu0 %v3260_v62  ;;  %v3397_v62 = vunpack.c.l.s8.bf16 %v1816_v40 }
 0x52a   : > { %4930 = vmatpush1.bf16.msra.mxu1 %v3262_v17  ;;  %4685 = vmatprep.subr.bf16.mxu0 %v3278_v48  ;;  %v1815_v17 = vld [vmem:[%s6711_s8 + $0x1828] sm:$0xff]  ;;  %v3399_v48 = vunpack.c.l.s8.bf16 %v1818_v42 }
 0x52b   : > { %4931 = vmatprep.subr.bf16.mxu1 %v3280_v19  ;;  %v1817_v19 = vld [vmem:[%s6711_s8 + $0x1838] sm:$0xff]  ;;  %v3396_v49 = vunpack.c.l.s8.bf16 %v1815_v17 }
 0x52c   : > { %v3398_v51 = vunpack.c.l.s8.bf16 %v1817_v19  ;;  %v3415_v59 = vunpack.c.h.s8.bf16 %v1817_v19 }
 0x52d   : > { %4686 = vmatpush1.bf16.msra.mxu0 %v3277_v6  ;;  %v3414_v6 = vunpack.c.h.s8.bf16 %v1816_v40 }
 0x52e   : > { %4932 = vmatpush1.bf16.msra.mxu1 %v3279_v52  ;;  %4687 = vmatprep.subr.bf16.mxu0 %v3295_v54  ;;  %v3416_v52 = vunpack.c.h.s8.bf16 %v1818_v42  ;;  %v1833_v54 = vld [vmem:[%s6711_s8 + $0x18b8] sm:$0xff] }
 0x52f   : > { %4933 = vmatprep.subr.bf16.mxu1 %v3297_v50  ;;  %v3413_v50 = vunpack.c.h.s8.bf16 %v1815_v17  ;;  %v1074_v17 = vld [vmem:[%s6711_s8 + $0x100] sm:$0xff] }
 0x531   : > { %4688 = vmatpush1.bf16.msra.mxu0 %v3294_v1  ;;  %v3431_v1 = vunpack.c.l.s8.bf16 %v1833_v54 }
 0x532   : > { %4934 = vmatpush1.bf16.msra.mxu1 %v3296_v2  ;;  %4689 = vmatprep.subr.bf16.mxu0 %v3312_v4  ;;  %v1832_v2 = vld [vmem:[%s6711_s8 + $0x18b0] sm:$0xff]  ;;  %v3433_v4 = vunpack.c.l.s8.bf16 %v1835_v58 }
 0x533   : > { %4935 = vmatprep.subr.bf16.mxu1 %v3314_v9  ;;  %v1834_v9 = vld [vmem:[%s6711_s8 + $0x18c0] sm:$0xff]  ;;  %v3430_v10 = vunpack.c.l.s8.bf16 %v1832_v2 }
 0x534   : > { %v3432_v11 = vunpack.c.l.s8.bf16 %v1834_v9  ;;  %v3449_v16 = vunpack.c.h.s8.bf16 %v1834_v9 }
 0x535   : > { %4690 = vmatpush1.bf16.msra.mxu0 %v3311_v12  ;;  %v3448_v12 = vunpack.c.h.s8.bf16 %v1833_v54 }
 0x536   : > { %4936 = vmatpush1.bf16.msra.mxu1 %v3313_v56  ;;  %4691 = vmatprep.subr.bf16.mxu0 %v3329_v13  ;;  %v3450_v56 = vunpack.c.h.s8.bf16 %v1835_v58  ;;  %v1850_v13 = vld [vmem:[%s6711_s8 + $0x1940] sm:$0xff] }
 0x537   : > { %4937 = vmatprep.subr.bf16.mxu1 %v3331_v47  ;;  %v3447_v47 = vunpack.c.h.s8.bf16 %v1832_v2  ;;  %v1091_v2 = vld [vmem:[%s6711_s8 + $0x188] sm:$0xff] }
 0x539   : > { %4692 = vmatpush1.bf16.msra.mxu0 %v3328_v21  ;;  %v3465_v21 = vunpack.c.l.s8.bf16 %v1850_v13 }
 0x53a   : > { %4938 = vmatpush1.bf16.msra.mxu1 %v3330_v22  ;;  %4693 = vmatprep.subr.bf16.mxu0 %v3346_v24  ;;  %v1849_v22 = vld [vmem:[%s6711_s8 + $0x1938] sm:$0xff]  ;;  %v3467_v24 = vunpack.c.l.s8.bf16 %v1852_v14 }
 0x53b   : > { %4939 = vmatprep.subr.bf16.mxu1 %v3348_v25  ;;  %v1851_v25 = vld [vmem:[%s6711_s8 + $0x1948] sm:$0xff]  ;;  %v3464_v28 = vunpack.c.l.s8.bf16 %v1849_v22 }
 0x53c   : > { %v3466_v30 = vunpack.c.l.s8.bf16 %v1851_v25  ;;  %v3483_v35 = vunpack.c.h.s8.bf16 %v1851_v25 }
 0x53d   : > { %4694 = vmatpush1.bf16.msra.mxu0 %v3345_v31  ;;  %v3482_v31 = vunpack.c.h.s8.bf16 %v1850_v13 }
 0x53e   : > { %4940 = vmatpush1.bf16.msra.mxu1 %v3347_v32  ;;  %4695 = vmatprep.subr.bf16.mxu0 %v3363_v8  ;;  %v3484_v32 = vunpack.c.h.s8.bf16 %v1852_v14  ;;  %v1055_v8 = vld [vmem:[%s6711_s8 + $0x68] sm:$0xff] }
 0x53f   : > { %4941 = vmatprep.subr.bf16.mxu1 %v3365_v34  ;;  %v3481_v34 = vunpack.c.h.s8.bf16 %v1849_v22  ;;  %v1108_v22 = vld [vmem:[%s6711_s8 + $0x210] sm:$0xff] }
 0x541   : > { %4696 = vmatpush1.bf16.msra.mxu0 %v3362_v57  ;;  %v1871_v57 = vunpack.c.l.s8.bf16 %v1055_v8 }
 0x542   : > { %4942 = vmatpush1.bf16.msra.mxu1 %v3364_v36  ;;  %4697 = vmatprep.subr.bf16.mxu0 %v3380_v38  ;;  %v1054_v36 = vld [vmem:[%s6711_s8 + $0x60] sm:$0xff]  ;;  %v1873_v38 = vunpack.c.l.s8.bf16 %v1057_v33 }
 0x543   : > { %4943 = vmatprep.subr.bf16.mxu1 %v3382_v23  ;;  %v1056_v23 = vld [vmem:[%s6711_s8 + $0x70] sm:$0xff]  ;;  %v1870_v40 = vunpack.c.l.s8.bf16 %v1054_v36 }
 0x544   : > { %v1872_v42 = vunpack.c.l.s8.bf16 %v1056_v23  ;;  %v1889_v19 = vunpack.c.h.s8.bf16 %v1056_v23 }
 0x545   : > { %4698 = vmatpush1.bf16.msra.mxu0 %v3379_v44  ;;  %v1888_v44 = vunpack.c.h.s8.bf16 %v1055_v8 }
 0x546   : > { %4944 = vmatpush1.bf16.msra.mxu1 %v3381_v46  ;;  %4699 = vmatprep.subr.bf16.mxu0 %v3397_v62  ;;  %v1072_v46 = vld [vmem:[%s6711_s8 + $0xf0] sm:$0xff]  ;;  %v1890_v62 = vunpack.c.h.s8.bf16 %v1057_v33 }
 0x547   : > { %4945 = vmatprep.subr.bf16.mxu1 %v3399_v48  ;;  %v1887_v48 = vunpack.c.h.s8.bf16 %v1054_v36  ;;  %v1125_v36 = vld [vmem:[%s6711_s8 + $0x298] sm:$0xff] }
 0x549   : > { %4700 = vmatpush1.bf16.msra.mxu0 %v3396_v49  ;;  %v1905_v49 = vunpack.c.l.s8.bf16 %v1072_v46 }
 0x54a   : > { %4946 = vmatpush1.bf16.msra.mxu1 %v3398_v51  ;;  %4701 = vmatprep.subr.bf16.mxu0 %v3414_v6  ;;  %v1071_v51 = vld [vmem:[%s6711_s8 + $0xe8] sm:$0xff]  ;;  %v1907_v6 = vunpack.c.l.s8.bf16 %v1074_v17 }
 0x54b   : > { %4947 = vmatprep.subr.bf16.mxu1 %v3416_v52  ;;  %v1073_v52 = vld [vmem:[%s6711_s8 + $0xf8] sm:$0xff]  ;;  %v1904_v54 = vunpack.c.l.s8.bf16 %v1071_v51 }
 0x54c   : > { %v1906_v58 = vunpack.c.l.s8.bf16 %v1073_v52  ;;  %v1923_v9 = vunpack.c.h.s8.bf16 %v1073_v52 }
 0x54d   : > { %4702 = vmatpush1.bf16.msra.mxu0 %v3413_v50  ;;  %v1922_v50 = vunpack.c.h.s8.bf16 %v1072_v46  ;;  %v1124_v46 = vld [vmem:[%s6711_s8 + $0x290] sm:$0xff] }
 0x54e   : > { %4948 = vmatpush1.bf16.msra.mxu1 %v3415_v59  ;;  %4703 = vmatprep.subr.bf16.mxu0 %v3431_v1  ;;  %v1924_v59 = vunpack.c.h.s8.bf16 %v1074_v17  ;;  %v1089_v1 = vld [vmem:[%s6711_s8 + $0x178] sm:$0xff]  ;;  %v2008_v17 = vunpack.c.l.s8.bf16 %v1124_v46  ;;  %v2025_v52 = vunpack.c.h.s8.bf16 %v1124_v46 }
 0x54f   : > { %4949 = vmatprep.subr.bf16.mxu1 %v3433_v4  ;;  %v1921_v4 = vunpack.c.h.s8.bf16 %v1071_v51  ;;  %v1142_v51 = vld [vmem:[%s6711_s8 + $0x320] sm:$0xff] }
 0x551   : > { %4704 = vmatpush1.bf16.msra.mxu0 %v3430_v10  ;;  %v1939_v10 = vunpack.c.l.s8.bf16 %v1089_v1 }
 0x552   : > { %4950 = vmatpush1.bf16.msra.mxu1 %v3432_v11  ;;  %4705 = vmatprep.subr.bf16.mxu0 %v3448_v12  ;;  %v1088_v11 = vld [vmem:[%s6711_s8 + $0x170] sm:$0xff]  ;;  %v1941_v12 = vunpack.c.l.s8.bf16 %v1091_v2 }
 0x553   : > { %4951 = vmatprep.subr.bf16.mxu1 %v3450_v56  ;;  %v1090_v56 = vld [vmem:[%s6711_s8 + $0x180] sm:$0xff]  ;;  %v1938_v13 = vunpack.c.l.s8.bf16 %v1088_v11 }
 0x554   : > { %v1940_v14 = vunpack.c.l.s8.bf16 %v1090_v56  ;;  %v1957_v25 = vunpack.c.h.s8.bf16 %v1090_v56 }
 0x555   : > { %4706 = vmatpush1.bf16.msra.mxu0 %v3447_v47  ;;  %v1956_v47 = vunpack.c.h.s8.bf16 %v1089_v1 }
 0x556   : > { %4952 = vmatpush1.bf16.msra.mxu1 %v3449_v16  ;;  %4707 = vmatprep.subr.bf16.mxu0 %v3465_v21  ;;  %v1958_v16 = vunpack.c.h.s8.bf16 %v1091_v2  ;;  %v1106_v21 = vld [vmem:[%s6711_s8 + $0x200] sm:$0xff] }
 0x557   : > { %4953 = vmatprep.subr.bf16.mxu1 %v3467_v24  ;;  %v1955_v24 = vunpack.c.h.s8.bf16 %v1088_v11  ;;  %v1159_v11 = vld [vmem:[%s6711_s8 + $0x3a8] sm:$0xff] }
 0x559   : > { %4708 = vmatpush1.bf16.msra.mxu0 %v3464_v28  ;;  %v1973_v28 = vunpack.c.l.s8.bf16 %v1106_v21 }
 0x55a   : > { %4954 = vmatpush1.bf16.msra.mxu1 %v3466_v30  ;;  %4709 = vmatprep.subr.bf16.mxu0 %v3482_v31  ;;  %v1105_v30 = vld [vmem:[%s6711_s8 + $0x1f8] sm:$0xff]  ;;  %v1975_v31 = vunpack.c.l.s8.bf16 %v1108_v22 }
 0x55b   : > { %4955 = vmatprep.subr.bf16.mxu1 %v3484_v32  ;;  %v1107_v32 = vld [vmem:[%s6711_s8 + $0x208] sm:$0xff]  ;;  %v1972_v8 = vunpack.c.l.s8.bf16 %v1105_v30 }
 0x55c   : > { %v1974_v33 = vunpack.c.l.s8.bf16 %v1107_v32  ;;  %v1991_v23 = vunpack.c.h.s8.bf16 %v1107_v32 }
 0x55d   : > { %4710 = vmatpush1.bf16.msra.mxu0 %v3481_v34  ;;  %v1990_v34 = vunpack.c.h.s8.bf16 %v1106_v21 }
 0x55e   : > { %4956 = vmatpush1.bf16.msra.mxu1 %v3483_v35  ;;  %4966 = vmatprep.subr.bf16.mxu0 %v1871_v57  ;;  %v1992_v35 = vunpack.c.h.s8.bf16 %v1108_v22  ;;  %v1123_v57 = vld [vmem:[%s6711_s8 + $0x288] sm:$0xff] }
 0x55f   : > { %5212 = vmatprep.subr.bf16.mxu1 %v1873_v38  ;;  %v1989_v38 = vunpack.c.h.s8.bf16 %v1105_v30  ;;  %v1176_v30 = vld [vmem:[%s6711_s8 + $0x430] sm:$0xff] }
 0x560   : > { %4712 = vmatmul.mubr.bf16.vlgmr.msra.gmra.mrb[16].mxu0 %v7110_v60 }
 0x561   : > { %4958 = vmatmul.mubr.bf16.vlgmr.msra.gmra.mrb[16].mxu1 %v7110_v60  ;;  %4967 = vmatpush1.bf16.msra.mxu0 %v1870_v40  ;;  %v2007_v40 = vunpack.c.l.s8.bf16 %v1123_v57 }
 0x562   : > { %4998 = vmatprep.mubr.bf16.mxu0 %v6845_v15  ;;  %5213 = vmatpush1.bf16.msra.mxu1 %v1872_v42  ;;  %v1122_v42 = vld [vmem:[%s6711_s8 + $0x280] sm:$0xff] }
 0x563   : > { %5244 = vmatprep.mubr.bf16.mxu1 %v6845_v15  ;;  %4968 = vmatprep.subr.bf16.mxu0 %v1888_v44  ;;  %v2009_v44 = vunpack.c.l.s8.bf16 %v1125_v36 }
 0x564   : > { %5214 = vmatprep.subr.bf16.mxu1 %v1890_v62  ;;  %v2006_v62 = vunpack.c.l.s8.bf16 %v1122_v42 }
 0x565   : > { %4969 = vmatpush1.bf16.msra.mxu0 %v1887_v48  ;;  %v2024_v48 = vunpack.c.h.s8.bf16 %v1123_v57 }
 0x566   : > { %5215 = vmatpush1.bf16.msra.mxu1 %v1889_v19  ;;  %4970 = vmatprep.subr.bf16.mxu0 %v1905_v49  ;;  %v2026_v19 = vunpack.c.h.s8.bf16 %v1125_v36  ;;  %v1140_v49 = vld [vmem:[%s6711_s8 + $0x310] sm:$0xff] }
 0x567   : > { %5216 = vmatprep.subr.bf16.mxu1 %v1907_v6  ;;  %v2023_v6 = vunpack.c.h.s8.bf16 %v1122_v42  ;;  %v1193_v42 = vld [vmem:[%s6711_s8 + $0x4b8] sm:$0xff] }
 0x569   : > { %4971 = vmatpush1.bf16.msra.mxu0 %v1904_v54  ;;  %v2041_v54 = vunpack.c.l.s8.bf16 %v1140_v49 }
 0x56a   : > { %5217 = vmatpush1.bf16.msra.mxu1 %v1906_v58  ;;  %4972 = vmatprep.subr.bf16.mxu0 %v1922_v50  ;;  %v1139_v58 = vld [vmem:[%s6711_s8 + $0x308] sm:$0xff]  ;;  %v2043_v50 = vunpack.c.l.s8.bf16 %v1142_v51 }
 0x56b   : > { %5218 = vmatprep.subr.bf16.mxu1 %v1924_v59  ;;  %v1141_v59 = vld [vmem:[%s6711_s8 + $0x318] sm:$0xff]  ;;  %v2040_v1 = vunpack.c.l.s8.bf16 %v1139_v58 }
 0x56c   : > { %v2042_v2 = vunpack.c.l.s8.bf16 %v1141_v59  ;;  %v2059_v56 = vunpack.c.h.s8.bf16 %v1141_v59 }
 0x56d   : > { %4973 = vmatpush1.bf16.msra.mxu0 %v1921_v4  ;;  %v2058_v4 = vunpack.c.h.s8.bf16 %v1140_v49 }
 0x56e   : > { %5219 = vmatpush1.bf16.msra.mxu1 %v1923_v9  ;;  %4974 = vmatprep.subr.bf16.mxu0 %v1939_v10  ;;  %v2060_v9 = vunpack.c.h.s8.bf16 %v1142_v51  ;;  %v1157_v10 = vld [vmem:[%s6711_s8 + $0x398] sm:$0xff] }
 0x56f   : > { %5220 = vmatprep.subr.bf16.mxu1 %v1941_v12  ;;  %v2057_v12 = vunpack.c.h.s8.bf16 %v1139_v58  ;;  %v1210_v58 = vld [vmem:[%s6711_s8 + $0x540] sm:$0xff] }
 0x571   : > { %4975 = vmatpush1.bf16.msra.mxu0 %v1938_v13  ;;  %v2075_v13 = vunpack.c.l.s8.bf16 %v1157_v10 }
 0x572   : > { %5221 = vmatpush1.bf16.msra.mxu1 %v1940_v14  ;;  %4976 = vmatprep.subr.bf16.mxu0 %v1956_v47  ;;  %v1156_v14 = vld [vmem:[%s6711_s8 + $0x390] sm:$0xff]  ;;  %v2077_v47 = vunpack.c.l.s8.bf16 %v1159_v11 }
 0x573   : > { %5222 = vmatprep.subr.bf16.mxu1 %v1958_v16  ;;  %v1158_v16 = vld [vmem:[%s6711_s8 + $0x3a0] sm:$0xff]  ;;  %v2074_v21 = vunpack.c.l.s8.bf16 %v1156_v14 }
 0x574   : > { %v2076_v22 = vunpack.c.l.s8.bf16 %v1158_v16  ;;  %v2093_v32 = vunpack.c.h.s8.bf16 %v1158_v16 }
 0x575   : > { %4977 = vmatpush1.bf16.msra.mxu0 %v1955_v24  ;;  %v2092_v24 = vunpack.c.h.s8.bf16 %v1157_v10 }
 0x576   : > { %5223 = vmatpush1.bf16.msra.mxu1 %v1957_v25  ;;  %4978 = vmatprep.subr.bf16.mxu0 %v1973_v28  ;;  %v2094_v25 = vunpack.c.h.s8.bf16 %v1159_v11  ;;  %v1174_v28 = vld [vmem:[%s6711_s8 + $0x420] sm:$0xff] }
 0x577   : > { %5224 = vmatprep.subr.bf16.mxu1 %v1975_v31  ;;  %v2091_v31 = vunpack.c.h.s8.bf16 %v1156_v14  ;;  %v1227_v14 = vld [vmem:[%s6711_s8 + $0x5c8] sm:$0xff] }
 0x579   : > { %4979 = vmatpush1.bf16.msra.mxu0 %v1972_v8  ;;  %v2109_v8 = vunpack.c.l.s8.bf16 %v1174_v28 }
 0x57a   : > { %5225 = vmatpush1.bf16.msra.mxu1 %v1974_v33  ;;  %4980 = vmatprep.subr.bf16.mxu0 %v1990_v34  ;;  %v1173_v33 = vld [vmem:[%s6711_s8 + $0x418] sm:$0xff]  ;;  %v2111_v34 = vunpack.c.l.s8.bf16 %v1176_v30 }
 0x57b   : > { %5226 = vmatprep.subr.bf16.mxu1 %v1992_v35  ;;  %v1175_v35 = vld [vmem:[%s6711_s8 + $0x428] sm:$0xff]  ;;  %v2108_v57 = vunpack.c.l.s8.bf16 %v1173_v33 }
 0x57c   : > { %v2110_v36 = vunpack.c.l.s8.bf16 %v1175_v35  ;;  %v2127_v46 = vunpack.c.h.s8.bf16 %v1175_v35 }
 0x57d   : > { %4981 = vmatpush1.bf16.msra.mxu0 %v1989_v38  ;;  %v2126_v38 = vunpack.c.h.s8.bf16 %v1174_v28 }
 0x57e   : > { %5227 = vmatpush1.bf16.msra.mxu1 %v1991_v23  ;;  %4982 = vmatprep.subr.bf16.mxu0 %v2007_v40  ;;  %v2128_v23 = vunpack.c.h.s8.bf16 %v1176_v30  ;;  %v1191_v40 = vld [vmem:[%s6711_s8 + $0x4a8] sm:$0xff] }
 0x57f   : > { %5228 = vmatprep.subr.bf16.mxu1 %v2009_v44  ;;  %v2125_v44 = vunpack.c.h.s8.bf16 %v1173_v33  ;;  %v1244_v33 = vld [vmem:[%s6711_s8 + $0x650] sm:$0xff] }
 0x581   : > { %4983 = vmatpush1.bf16.msra.mxu0 %v2006_v62  ;;  %v2143_v62 = vunpack.c.l.s8.bf16 %v1191_v40 }
 0x582   : > { %5229 = vmatpush1.bf16.msra.mxu1 %v2008_v17  ;;  %4984 = vmatprep.subr.bf16.mxu0 %v2024_v48  ;;  %v1190_v17 = vld [vmem:[%s6711_s8 + $0x4a0] sm:$0xff]  ;;  %v2145_v48 = vunpack.c.l.s8.bf16 %v1193_v42 }
 0x583   : > { %5230 = vmatprep.subr.bf16.mxu1 %v2026_v19  ;;  %v1192_v19 = vld [vmem:[%s6711_s8 + $0x4b0] sm:$0xff]  ;;  %v2142_v49 = vunpack.c.l.s8.bf16 %v1190_v17 }
 0x584   : > { %v2144_v51 = vunpack.c.l.s8.bf16 %v1192_v19  ;;  %v2161_v59 = vunpack.c.h.s8.bf16 %v1192_v19 }
 0x585   : > { %4985 = vmatpush1.bf16.msra.mxu0 %v2023_v6  ;;  %v2160_v6 = vunpack.c.h.s8.bf16 %v1191_v40 }
 0x586   : > { %5231 = vmatpush1.bf16.msra.mxu1 %v2025_v52  ;;  %4986 = vmatprep.subr.bf16.mxu0 %v2041_v54  ;;  %v1208_v52 = vld [vmem:[%s6711_s8 + $0x530] sm:$0xff]  ;;  %v2162_v54 = vunpack.c.h.s8.bf16 %v1193_v42 }
 0x587   : > { %5232 = vmatprep.subr.bf16.mxu1 %v2043_v50  ;;  %v2159_v50 = vunpack.c.h.s8.bf16 %v1190_v17  ;;  %v1261_v17 = vld [vmem:[%s6711_s8 + $0x6d8] sm:$0xff] }
 0x589   : > { %4987 = vmatpush1.bf16.msra.mxu0 %v2040_v1  ;;  %v2177_v1 = vunpack.c.l.s8.bf16 %v1208_v52 }
 0x58a   : > { %5233 = vmatpush1.bf16.msra.mxu1 %v2042_v2  ;;  %4988 = vmatprep.subr.bf16.mxu0 %v2058_v4  ;;  %v1207_v2 = vld [vmem:[%s6711_s8 + $0x528] sm:$0xff]  ;;  %v2179_v4 = vunpack.c.l.s8.bf16 %v1210_v58 }
 0x58b   : > { %5234 = vmatprep.subr.bf16.mxu1 %v2060_v9  ;;  %v1209_v9 = vld [vmem:[%s6711_s8 + $0x538] sm:$0xff]  ;;  %v2176_v10 = vunpack.c.l.s8.bf16 %v1207_v2 }
 0x58c   : > { %v2178_v11 = vunpack.c.l.s8.bf16 %v1209_v9  ;;  %v2195_v16 = vunpack.c.h.s8.bf16 %v1209_v9 }
 0x58d   : > { %4989 = vmatpush1.bf16.msra.mxu0 %v2057_v12  ;;  %v2194_v12 = vunpack.c.h.s8.bf16 %v1208_v52  ;;  %v1260_v52 = vld [vmem:[%s6711_s8 + $0x6d0] sm:$0xff] }
 0x58e   : > { %5235 = vmatpush1.bf16.msra.mxu1 %v2059_v56  ;;  %4990 = vmatprep.subr.bf16.mxu0 %v2075_v13  ;;  %v2196_v56 = vunpack.c.h.s8.bf16 %v1210_v58  ;;  %v1225_v13 = vld [vmem:[%s6711_s8 + $0x5b8] sm:$0xff]  ;;  %v2280_v58 = vunpack.c.l.s8.bf16 %v1260_v52  ;;  %v2297_v9 = vunpack.c.h.s8.bf16 %v1260_v52 }
 0x58f   : > { %5236 = vmatprep.subr.bf16.mxu1 %v2077_v47  ;;  %v2193_v47 = vunpack.c.h.s8.bf16 %v1207_v2  ;;  %v1278_v2 = vld [vmem:[%s6711_s8 + $0x760] sm:$0xff] }
 0x591   : > { %4991 = vmatpush1.bf16.msra.mxu0 %v2074_v21  ;;  %v2211_v21 = vunpack.c.l.s8.bf16 %v1225_v13 }
 0x592   : > { %5237 = vmatpush1.bf16.msra.mxu1 %v2076_v22  ;;  %4992 = vmatprep.subr.bf16.mxu0 %v2092_v24  ;;  %v1224_v22 = vld [vmem:[%s6711_s8 + $0x5b0] sm:$0xff]  ;;  %v2213_v24 = vunpack.c.l.s8.bf16 %v1227_v14 }
 0x593   : > { %5238 = vmatprep.subr.bf16.mxu1 %v2094_v25  ;;  %v1226_v25 = vld [vmem:[%s6711_s8 + $0x5c0] sm:$0xff]  ;;  %v2210_v28 = vunpack.c.l.s8.bf16 %v1224_v22 }
 0x594   : > { %v2212_v30 = vunpack.c.l.s8.bf16 %v1226_v25  ;;  %v2229_v35 = vunpack.c.h.s8.bf16 %v1226_v25 }
 0x595   : > { %4993 = vmatpush1.bf16.msra.mxu0 %v2091_v31  ;;  %v2228_v31 = vunpack.c.h.s8.bf16 %v1225_v13 }
 0x596   : > { %5239 = vmatpush1.bf16.msra.mxu1 %v2093_v32  ;;  %4994 = vmatprep.subr.bf16.mxu0 %v2109_v8  ;;  %v2230_v32 = vunpack.c.h.s8.bf16 %v1227_v14  ;;  %v1242_v8 = vld [vmem:[%s6711_s8 + $0x640] sm:$0xff] }
 0x597   : > { %5240 = vmatprep.subr.bf16.mxu1 %v2111_v34  ;;  %v2227_v34 = vunpack.c.h.s8.bf16 %v1224_v22  ;;  %v1295_v22 = vld [vmem:[%s6711_s8 + $0x7e8] sm:$0xff] }
 0x599   : > { %4995 = vmatpush1.bf16.msra.mxu0 %v2108_v57  ;;  %v2245_v57 = vunpack.c.l.s8.bf16 %v1242_v8 }
 0x59a   : > { %5241 = vmatpush1.bf16.msra.mxu1 %v2110_v36  ;;  %4996 = vmatprep.subr.bf16.mxu0 %v2126_v38  ;;  %v1241_v36 = vld [vmem:[%s6711_s8 + $0x638] sm:$0xff]  ;;  %v2247_v38 = vunpack.c.l.s8.bf16 %v1244_v33 }
 0x59b   : > { %5242 = vmatprep.subr.bf16.mxu1 %v2128_v23  ;;  %v1243_v23 = vld [vmem:[%s6711_s8 + $0x648] sm:$0xff]  ;;  %v2244_v40 = vunpack.c.l.s8.bf16 %v1241_v36 }
 0x59c   : > { %v2246_v42 = vunpack.c.l.s8.bf16 %v1243_v23  ;;  %v2263_v19 = vunpack.c.h.s8.bf16 %v1243_v23 }
 0x59d   : > { %4997 = vmatpush1.bf16.msra.mxu0 %v2125_v44  ;;  %v2262_v44 = vunpack.c.h.s8.bf16 %v1242_v8 }
 0x59e   : > { %5243 = vmatpush1.bf16.msra.mxu1 %v2127_v46  ;;  %5007 = vmatprep.subr.bf16.mxu0 %v2143_v62  ;;  %v2264_v46 = vunpack.c.h.s8.bf16 %v1244_v33  ;;  %v1259_v62 = vld [vmem:[%s6711_s8 + $0x6c8] sm:$0xff] }
 0x59f   : > { %5253 = vmatprep.subr.bf16.mxu1 %v2145_v48  ;;  %v2261_v48 = vunpack.c.h.s8.bf16 %v1241_v36  ;;  %v1312_v36 = vld [vmem:[%s6711_s8 + $0x870] sm:$0xff] }
 0x5a0   : > { %4999 = vmatmul.mubr.bf16.vlgmr.msra.gmra.mrb[20].mxu0 %v6849_v20 }
 0x5a1   : > { %5245 = vmatmul.mubr.bf16.vlgmr.msra.gmra.mrb[20].mxu1 %v6849_v20  ;;  %5008 = vmatpush1.bf16.msra.mxu0 %v2142_v49  ;;  %v2279_v49 = vunpack.c.l.s8.bf16 %v1259_v62 }
 0x5a2   : > { %5039 = vmatprep.mubr.bf16.mxu0 %v6857_v26  ;;  %5254 = vmatpush1.bf16.msra.mxu1 %v2144_v51  ;;  %v1258_v51 = vld [vmem:[%s6711_s8 + $0x6c0] sm:$0xff] }
 0x5a3   : > { %5285 = vmatprep.mubr.bf16.mxu1 %v6857_v26  ;;  %5009 = vmatprep.subr.bf16.mxu0 %v2160_v6  ;;  %v2281_v6 = vunpack.c.l.s8.bf16 %v1261_v17 }
 0x5a4   : > { %5255 = vmatprep.subr.bf16.mxu1 %v2162_v54  ;;  %v2278_v54 = vunpack.c.l.s8.bf16 %v1258_v51 }
 0x5a5   : > { %5010 = vmatpush1.bf16.msra.mxu0 %v2159_v50  ;;  %v2296_v50 = vunpack.c.h.s8.bf16 %v1259_v62 }
 0x5a6   : > { %5256 = vmatpush1.bf16.msra.mxu1 %v2161_v59  ;;  %5011 = vmatprep.subr.bf16.mxu0 %v2177_v1  ;;  %v2298_v59 = vunpack.c.h.s8.bf16 %v1261_v17  ;;  %v1276_v1 = vld [vmem:[%s6711_s8 + $0x750] sm:$0xff] }
 0x5a7   : > { %5257 = vmatprep.subr.bf16.mxu1 %v2179_v4  ;;  %v2295_v4 = vunpack.c.h.s8.bf16 %v1258_v51  ;;  %v1329_v51 = vld [vmem:[%s6711_s8 + $0x8f8] sm:$0xff] }
 0x5a9   : > { %5012 = vmatpush1.bf16.msra.mxu0 %v2176_v10  ;;  %v2313_v10 = vunpack.c.l.s8.bf16 %v1276_v1 }
 0x5aa   : > { %5258 = vmatpush1.bf16.msra.mxu1 %v2178_v11  ;;  %5013 = vmatprep.subr.bf16.mxu0 %v2194_v12  ;;  %v1275_v11 = vld [vmem:[%s6711_s8 + $0x748] sm:$0xff]  ;;  %v2315_v12 = vunpack.c.l.s8.bf16 %v1278_v2 }
 0x5ab   : > { %5259 = vmatprep.subr.bf16.mxu1 %v2196_v56  ;;  %v1277_v56 = vld [vmem:[%s6711_s8 + $0x758] sm:$0xff]  ;;  %v2312_v13 = vunpack.c.l.s8.bf16 %v1275_v11 }
 0x5ac   : > { %v2314_v14 = vunpack.c.l.s8.bf16 %v1277_v56  ;;  %v2331_v25 = vunpack.c.h.s8.bf16 %v1277_v56 }
 0x5ad   : > { %5014 = vmatpush1.bf16.msra.mxu0 %v2193_v47  ;;  %v2330_v47 = vunpack.c.h.s8.bf16 %v1276_v1 }
 0x5ae   : > { %5260 = vmatpush1.bf16.msra.mxu1 %v2195_v16  ;;  %5015 = vmatprep.subr.bf16.mxu0 %v2211_v21  ;;  %v2332_v16 = vunpack.c.h.s8.bf16 %v1278_v2  ;;  %v1293_v21 = vld [vmem:[%s6711_s8 + $0x7d8] sm:$0xff] }
 0x5af   : > { %5261 = vmatprep.subr.bf16.mxu1 %v2213_v24  ;;  %v2329_v24 = vunpack.c.h.s8.bf16 %v1275_v11  ;;  %v1346_v11 = vld [vmem:[%s6711_s8 + $0x980] sm:$0xff] }
 0x5b1   : > { %5016 = vmatpush1.bf16.msra.mxu0 %v2210_v28  ;;  %v2347_v28 = vunpack.c.l.s8.bf16 %v1293_v21 }
 0x5b2   : > { %5262 = vmatpush1.bf16.msra.mxu1 %v2212_v30  ;;  %5017 = vmatprep.subr.bf16.mxu0 %v2228_v31  ;;  %v1292_v30 = vld [vmem:[%s6711_s8 + $0x7d0] sm:$0xff]  ;;  %v2349_v31 = vunpack.c.l.s8.bf16 %v1295_v22 }
 0x5b3   : > { %5263 = vmatprep.subr.bf16.mxu1 %v2230_v32  ;;  %v1294_v32 = vld [vmem:[%s6711_s8 + $0x7e0] sm:$0xff]  ;;  %v2346_v8 = vunpack.c.l.s8.bf16 %v1292_v30 }
 0x5b4   : > { %v2348_v33 = vunpack.c.l.s8.bf16 %v1294_v32  ;;  %v2365_v23 = vunpack.c.h.s8.bf16 %v1294_v32 }
 0x5b5   : > { %5018 = vmatpush1.bf16.msra.mxu0 %v2227_v34  ;;  %v2364_v34 = vunpack.c.h.s8.bf16 %v1293_v21 }
 0x5b6   : > { %5264 = vmatpush1.bf16.msra.mxu1 %v2229_v35  ;;  %5019 = vmatprep.subr.bf16.mxu0 %v2245_v57  ;;  %v2366_v35 = vunpack.c.h.s8.bf16 %v1295_v22  ;;  %v1310_v57 = vld [vmem:[%s6711_s8 + $0x860] sm:$0xff] }
 0x5b7   : > { %5265 = vmatprep.subr.bf16.mxu1 %v2247_v38  ;;  %v2363_v38 = vunpack.c.h.s8.bf16 %v1292_v30  ;;  %v1363_v30 = vld [vmem:[%s6711_s8 + $0xa08] sm:$0xff] }
 0x5b9   : > { %5020 = vmatpush1.bf16.msra.mxu0 %v2244_v40  ;;  %v2381_v40 = vunpack.c.l.s8.bf16 %v1310_v57 }
 0x5ba   : > { %5266 = vmatpush1.bf16.msra.mxu1 %v2246_v42  ;;  %5021 = vmatprep.subr.bf16.mxu0 %v2262_v44  ;;  %v1309_v42 = vld [vmem:[%s6711_s8 + $0x858] sm:$0xff]  ;;  %v2383_v44 = vunpack.c.l.s8.bf16 %v1312_v36 }
 0x5bb   : > { %5267 = vmatprep.subr.bf16.mxu1 %v2264_v46  ;;  %v1311_v46 = vld [vmem:[%s6711_s8 + $0x868] sm:$0xff]  ;;  %v2380_v62 = vunpack.c.l.s8.bf16 %v1309_v42 }
 0x5bc   : > { %v2382_v17 = vunpack.c.l.s8.bf16 %v1311_v46  ;;  %v2399_v52 = vunpack.c.h.s8.bf16 %v1311_v46 }
 0x5bd   : > { %5022 = vmatpush1.bf16.msra.mxu0 %v2261_v48  ;;  %v2398_v48 = vunpack.c.h.s8.bf16 %v1310_v57 }
 0x5be   : > { %5268 = vmatpush1.bf16.msra.mxu1 %v2263_v19  ;;  %5023 = vmatprep.subr.bf16.mxu0 %v2279_v49  ;;  %v2400_v19 = vunpack.c.h.s8.bf16 %v1312_v36  ;;  %v1327_v49 = vld [vmem:[%s6711_s8 + $0x8e8] sm:$0xff] }
 0x5bf   : > { %5269 = vmatprep.subr.bf16.mxu1 %v2281_v6  ;;  %v2397_v6 = vunpack.c.h.s8.bf16 %v1309_v42  ;;  %v1380_v42 = vld [vmem:[%s6711_s8 + $0xa90] sm:$0xff] }
 0x5c1   : > { %5024 = vmatpush1.bf16.msra.mxu0 %v2278_v54  ;;  %v2415_v54 = vunpack.c.l.s8.bf16 %v1327_v49 }
 0x5c2   : > { %5270 = vmatpush1.bf16.msra.mxu1 %v2280_v58  ;;  %5025 = vmatprep.subr.bf16.mxu0 %v2296_v50  ;;  %v1326_v58 = vld [vmem:[%s6711_s8 + $0x8e0] sm:$0xff]  ;;  %v2417_v50 = vunpack.c.l.s8.bf16 %v1329_v51 }
 0x5c3   : > { %5271 = vmatprep.subr.bf16.mxu1 %v2298_v59  ;;  %v1328_v59 = vld [vmem:[%s6711_s8 + $0x8f0] sm:$0xff]  ;;  %v2414_v1 = vunpack.c.l.s8.bf16 %v1326_v58 }
 0x5c4   : > { %v2416_v2 = vunpack.c.l.s8.bf16 %v1328_v59  ;;  %v2433_v56 = vunpack.c.h.s8.bf16 %v1328_v59 }
 0x5c5   : > { %5026 = vmatpush1.bf16.msra.mxu0 %v2295_v4  ;;  %v2432_v4 = vunpack.c.h.s8.bf16 %v1327_v49 }
 0x5c6   : > { %5272 = vmatpush1.bf16.msra.mxu1 %v2297_v9  ;;  %5027 = vmatprep.subr.bf16.mxu0 %v2313_v10  ;;  %v1344_v9 = vld [vmem:[%s6711_s8 + $0x970] sm:$0xff]  ;;  %v2434_v10 = vunpack.c.h.s8.bf16 %v1329_v51 }
 0x5c7   : > { %5273 = vmatprep.subr.bf16.mxu1 %v2315_v12  ;;  %v2431_v12 = vunpack.c.h.s8.bf16 %v1326_v58  ;;  %v1397_v58 = vld [vmem:[%s6711_s8 + $0xb18] sm:$0xff] }
 0x5c9   : > { %5028 = vmatpush1.bf16.msra.mxu0 %v2312_v13  ;;  %v2449_v13 = vunpack.c.l.s8.bf16 %v1344_v9 }
 0x5ca   : > { %5274 = vmatpush1.bf16.msra.mxu1 %v2314_v14  ;;  %5029 = vmatprep.subr.bf16.mxu0 %v2330_v47  ;;  %v1343_v14 = vld [vmem:[%s6711_s8 + $0x968] sm:$0xff]  ;;  %v2451_v47 = vunpack.c.l.s8.bf16 %v1346_v11 }
 0x5cb   : > { %5275 = vmatprep.subr.bf16.mxu1 %v2332_v16  ;;  %v1345_v16 = vld [vmem:[%s6711_s8 + $0x978] sm:$0xff]  ;;  %v2448_v21 = vunpack.c.l.s8.bf16 %v1343_v14 }
 0x5cc   : > { %v2450_v22 = vunpack.c.l.s8.bf16 %v1345_v16  ;;  %v2467_v32 = vunpack.c.h.s8.bf16 %v1345_v16 }
 0x5cd   : > { %5030 = vmatpush1.bf16.msra.mxu0 %v2329_v24  ;;  %v2466_v24 = vunpack.c.h.s8.bf16 %v1344_v9  ;;  %v1396_v9 = vld [vmem:[%s6711_s8 + $0xb10] sm:$0xff] }
 0x5ce   : > { %5276 = vmatpush1.bf16.msra.mxu1 %v2331_v25  ;;  %5031 = vmatprep.subr.bf16.mxu0 %v2347_v28  ;;  %v2468_v25 = vunpack.c.h.s8.bf16 %v1346_v11  ;;  %v1361_v28 = vld [vmem:[%s6711_s8 + $0x9f8] sm:$0xff]  ;;  %v2552_v11 = vunpack.c.l.s8.bf16 %v1396_v9  ;;  %v2569_v16 = vunpack.c.h.s8.bf16 %v1396_v9 }
 0x5cf   : > { %5277 = vmatprep.subr.bf16.mxu1 %v2349_v31  ;;  %v2465_v31 = vunpack.c.h.s8.bf16 %v1343_v14  ;;  %v1414_v14 = vld [vmem:[%s6711_s8 + $0xba0] sm:$0xff] }
 0x5d1   : > { %5032 = vmatpush1.bf16.msra.mxu0 %v2346_v8  ;;  %v2483_v8 = vunpack.c.l.s8.bf16 %v1361_v28 }
 0x5d2   : > { %5278 = vmatpush1.bf16.msra.mxu1 %v2348_v33  ;;  %5033 = vmatprep.subr.bf16.mxu0 %v2364_v34  ;;  %v1360_v33 = vld [vmem:[%s6711_s8 + $0x9f0] sm:$0xff]  ;;  %v2485_v34 = vunpack.c.l.s8.bf16 %v1363_v30 }
 0x5d3   : > { %5279 = vmatprep.subr.bf16.mxu1 %v2366_v35  ;;  %v1362_v35 = vld [vmem:[%s6711_s8 + $0xa00] sm:$0xff]  ;;  %v2482_v57 = vunpack.c.l.s8.bf16 %v1360_v33 }
 0x5d4   : > { %v2484_v36 = vunpack.c.l.s8.bf16 %v1362_v35  ;;  %v2501_v46 = vunpack.c.h.s8.bf16 %v1362_v35 }
 0x5d5   : > { %5034 = vmatpush1.bf16.msra.mxu0 %v2363_v38  ;;  %v2500_v38 = vunpack.c.h.s8.bf16 %v1361_v28 }
 0x5d6   : > { %5280 = vmatpush1.bf16.msra.mxu1 %v2365_v23  ;;  %5035 = vmatprep.subr.bf16.mxu0 %v2381_v40  ;;  %v2502_v23 = vunpack.c.h.s8.bf16 %v1363_v30  ;;  %v1378_v40 = vld [vmem:[%s6711_s8 + $0xa80] sm:$0xff] }
 0x5d7   : > { %5281 = vmatprep.subr.bf16.mxu1 %v2383_v44  ;;  %v2499_v44 = vunpack.c.h.s8.bf16 %v1360_v33  ;;  %v1431_v33 = vld [vmem:[%s6711_s8 + $0xc28] sm:$0xff] }
 0x5d9   : > { %5036 = vmatpush1.bf16.msra.mxu0 %v2380_v62  ;;  %v2517_v62 = vunpack.c.l.s8.bf16 %v1378_v40 }
 0x5da   : > { %5282 = vmatpush1.bf16.msra.mxu1 %v2382_v17  ;;  %5037 = vmatprep.subr.bf16.mxu0 %v2398_v48  ;;  %v1377_v17 = vld [vmem:[%s6711_s8 + $0xa78] sm:$0xff]  ;;  %v2519_v48 = vunpack.c.l.s8.bf16 %v1380_v42 }
 0x5db   : > { %5283 = vmatprep.subr.bf16.mxu1 %v2400_v19  ;;  %v1379_v19 = vld [vmem:[%s6711_s8 + $0xa88] sm:$0xff]  ;;  %v2516_v49 = vunpack.c.l.s8.bf16 %v1377_v17 }
 0x5dc   : > { %v2518_v51 = vunpack.c.l.s8.bf16 %v1379_v19  ;;  %v2535_v59 = vunpack.c.h.s8.bf16 %v1379_v19 }
 0x5dd   : > { %5038 = vmatpush1.bf16.msra.mxu0 %v2397_v6  ;;  %v2534_v6 = vunpack.c.h.s8.bf16 %v1378_v40 }
 0x5de   : > { %5284 = vmatpush1.bf16.msra.mxu1 %v2399_v52  ;;  %5048 = vmatprep.subr.bf16.mxu0 %v2415_v54  ;;  %v2536_v52 = vunpack.c.h.s8.bf16 %v1380_v42  ;;  %v1395_v54 = vld [vmem:[%s6711_s8 + $0xb08] sm:$0xff] }
 0x5df   : > { %5294 = vmatprep.subr.bf16.mxu1 %v2417_v50  ;;  %v2533_v50 = vunpack.c.h.s8.bf16 %v1377_v17  ;;  %v1448_v17 = vld [vmem:[%s6711_s8 + $0xcb0] sm:$0xff] }
 0x5e0   : > { %5040 = vmatmul.mubr.bf16.vlgmr.msra.gmra.mrb[20].mxu0 %v6924_v37 }
 0x5e1   : > { %5286 = vmatmul.mubr.bf16.vlgmr.msra.gmra.mrb[20].mxu1 %v6924_v37  ;;  %5049 = vmatpush1.bf16.msra.mxu0 %v2414_v1  ;;  %v2551_v1 = vunpack.c.l.s8.bf16 %v1395_v54 }
 0x5e2   : > { %5080 = vmatprep.mubr.bf16.mxu0 %v6928_v43  ;;  %5295 = vmatpush1.bf16.msra.mxu1 %v2416_v2  ;;  %v1394_v2 = vld [vmem:[%s6711_s8 + $0xb00] sm:$0xff] }
 0x5e3   : > { %5326 = vmatprep.mubr.bf16.mxu1 %v6928_v43  ;;  %5050 = vmatprep.subr.bf16.mxu0 %v2432_v4  ;;  %v2553_v4 = vunpack.c.l.s8.bf16 %v1397_v58 }
 0x5e4   : > { %5296 = vmatprep.subr.bf16.mxu1 %v2434_v10  ;;  %v2550_v10 = vunpack.c.l.s8.bf16 %v1394_v2 }
 0x5e5   : > { %5051 = vmatpush1.bf16.msra.mxu0 %v2431_v12  ;;  %v2568_v12 = vunpack.c.h.s8.bf16 %v1395_v54 }
 0x5e6   : > { %5297 = vmatpush1.bf16.msra.mxu1 %v2433_v56  ;;  %5052 = vmatprep.subr.bf16.mxu0 %v2449_v13  ;;  %v2570_v56 = vunpack.c.h.s8.bf16 %v1397_v58  ;;  %v1412_v13 = vld [vmem:[%s6711_s8 + $0xb90] sm:$0xff] }
 0x5e7   : > { %5298 = vmatprep.subr.bf16.mxu1 %v2451_v47  ;;  %v2567_v47 = vunpack.c.h.s8.bf16 %v1394_v2  ;;  %v1465_v2 = vld [vmem:[%s6711_s8 + $0xd38] sm:$0xff] }
 0x5e9   : > { %5053 = vmatpush1.bf16.msra.mxu0 %v2448_v21  ;;  %v2585_v21 = vunpack.c.l.s8.bf16 %v1412_v13 }
 0x5ea   : > { %5299 = vmatpush1.bf16.msra.mxu1 %v2450_v22  ;;  %5054 = vmatprep.subr.bf16.mxu0 %v2466_v24  ;;  %v1411_v22 = vld [vmem:[%s6711_s8 + $0xb88] sm:$0xff]  ;;  %v2587_v24 = vunpack.c.l.s8.bf16 %v1414_v14 }
 0x5eb   : > { %5300 = vmatprep.subr.bf16.mxu1 %v2468_v25  ;;  %v1413_v25 = vld [vmem:[%s6711_s8 + $0xb98] sm:$0xff]  ;;  %v2584_v28 = vunpack.c.l.s8.bf16 %v1411_v22 }
 0x5ec   : > { %v2586_v30 = vunpack.c.l.s8.bf16 %v1413_v25  ;;  %v2603_v35 = vunpack.c.h.s8.bf16 %v1413_v25 }
 0x5ed   : > { %5055 = vmatpush1.bf16.msra.mxu0 %v2465_v31  ;;  %v2602_v31 = vunpack.c.h.s8.bf16 %v1412_v13 }
 0x5ee   : > { %5301 = vmatpush1.bf16.msra.mxu1 %v2467_v32  ;;  %5056 = vmatprep.subr.bf16.mxu0 %v2483_v8  ;;  %v2604_v32 = vunpack.c.h.s8.bf16 %v1414_v14  ;;  %v1429_v8 = vld [vmem:[%s6711_s8 + $0xc18] sm:$0xff] }
 0x5ef   : > { %5302 = vmatprep.subr.bf16.mxu1 %v2485_v34  ;;  %v2601_v34 = vunpack.c.h.s8.bf16 %v1411_v22  ;;  %v1482_v22 = vld [vmem:[%s6711_s8 + $0xdc0] sm:$0xff] }
 0x5f1   : > { %5057 = vmatpush1.bf16.msra.mxu0 %v2482_v57  ;;  %v2619_v57 = vunpack.c.l.s8.bf16 %v1429_v8 }
 0x5f2   : > { %5303 = vmatpush1.bf16.msra.mxu1 %v2484_v36  ;;  %5058 = vmatprep.subr.bf16.mxu0 %v2500_v38  ;;  %v1428_v36 = vld [vmem:[%s6711_s8 + $0xc10] sm:$0xff]  ;;  %v2621_v38 = vunpack.c.l.s8.bf16 %v1431_v33 }
 0x5f3   : > { %5304 = vmatprep.subr.bf16.mxu1 %v2502_v23  ;;  %v1430_v23 = vld [vmem:[%s6711_s8 + $0xc20] sm:$0xff]  ;;  %v2618_v40 = vunpack.c.l.s8.bf16 %v1428_v36 }
 0x5f4   : > { %v2620_v42 = vunpack.c.l.s8.bf16 %v1430_v23  ;;  %v2637_v19 = vunpack.c.h.s8.bf16 %v1430_v23 }
 0x5f5   : > { %5059 = vmatpush1.bf16.msra.mxu0 %v2499_v44  ;;  %v2636_v44 = vunpack.c.h.s8.bf16 %v1429_v8 }
 0x5f6   : > { %5305 = vmatpush1.bf16.msra.mxu1 %v2501_v46  ;;  %5060 = vmatprep.subr.bf16.mxu0 %v2517_v62  ;;  %v2638_v46 = vunpack.c.h.s8.bf16 %v1431_v33  ;;  %v1446_v62 = vld [vmem:[%s6711_s8 + $0xca0] sm:$0xff] }
 0x5f7   : > { %5306 = vmatprep.subr.bf16.mxu1 %v2519_v48  ;;  %v2635_v48 = vunpack.c.h.s8.bf16 %v1428_v36  ;;  %v1499_v36 = vld [vmem:[%s6711_s8 + $0xe48] sm:$0xff] }
 0x5f9   : > { %5061 = vmatpush1.bf16.msra.mxu0 %v2516_v49  ;;  %v2653_v49 = vunpack.c.l.s8.bf16 %v1446_v62 }
 0x5fa   : > { %5307 = vmatpush1.bf16.msra.mxu1 %v2518_v51  ;;  %5062 = vmatprep.subr.bf16.mxu0 %v2534_v6  ;;  %v1445_v51 = vld [vmem:[%s6711_s8 + $0xc98] sm:$0xff]  ;;  %v2655_v6 = vunpack.c.l.s8.bf16 %v1448_v17 }
 0x5fb   : > { %5308 = vmatprep.subr.bf16.mxu1 %v2536_v52  ;;  %v1447_v52 = vld [vmem:[%s6711_s8 + $0xca8] sm:$0xff]  ;;  %v2652_v54 = vunpack.c.l.s8.bf16 %v1445_v51 }
 0x5fc   : > { %v2654_v58 = vunpack.c.l.s8.bf16 %v1447_v52  ;;  %v2671_v9 = vunpack.c.h.s8.bf16 %v1447_v52 }
 0x5fd   : > { %5063 = vmatpush1.bf16.msra.mxu0 %v2533_v50  ;;  %v2670_v50 = vunpack.c.h.s8.bf16 %v1446_v62 }
 0x5fe   : > { %5309 = vmatpush1.bf16.msra.mxu1 %v2535_v59  ;;  %5064 = vmatprep.subr.bf16.mxu0 %v2551_v1  ;;  %v2672_v59 = vunpack.c.h.s8.bf16 %v1448_v17  ;;  %v1463_v1 = vld [vmem:[%s6711_s8 + $0xd28] sm:$0xff] }
 0x5ff   : > { %5310 = vmatprep.subr.bf16.mxu1 %v2553_v4  ;;  %v2669_v4 = vunpack.c.h.s8.bf16 %v1445_v51  ;;  %v1516_v51 = vld [vmem:[%s6711_s8 + $0xed0] sm:$0xff] }
 0x601   : > { %5065 = vmatpush1.bf16.msra.mxu0 %v2550_v10  ;;  %v2687_v10 = vunpack.c.l.s8.bf16 %v1463_v1 }
 0x602   : > { %5311 = vmatpush1.bf16.msra.mxu1 %v2552_v11  ;;  %5066 = vmatprep.subr.bf16.mxu0 %v2568_v12  ;;  %v1462_v11 = vld [vmem:[%s6711_s8 + $0xd20] sm:$0xff]  ;;  %v2689_v12 = vunpack.c.l.s8.bf16 %v1465_v2 }
 0x603   : > { %5312 = vmatprep.subr.bf16.mxu1 %v2570_v56  ;;  %v1464_v56 = vld [vmem:[%s6711_s8 + $0xd30] sm:$0xff]  ;;  %v2686_v13 = vunpack.c.l.s8.bf16 %v1462_v11 }
 0x604   : > { %v2688_v14 = vunpack.c.l.s8.bf16 %v1464_v56  ;;  %v2705_v25 = vunpack.c.h.s8.bf16 %v1464_v56 }
 0x605   : > { %5067 = vmatpush1.bf16.msra.mxu0 %v2567_v47  ;;  %v2704_v47 = vunpack.c.h.s8.bf16 %v1463_v1  ;;  %v1515_v1 = vld [vmem:[%s6711_s8 + $0xec8] sm:$0xff] }
 0x606   : > { %5313 = vmatpush1.bf16.msra.mxu1 %v2569_v16  ;;  %5068 = vmatprep.subr.bf16.mxu0 %v2585_v21  ;;  %v1480_v16 = vld [vmem:[%s6711_s8 + $0xdb0] sm:$0xff]  ;;  %v2706_v21 = vunpack.c.h.s8.bf16 %v1465_v2 }
 0x607   : > { %5314 = vmatprep.subr.bf16.mxu1 %v2587_v24  ;;  %v2703_v24 = vunpack.c.h.s8.bf16 %v1462_v11  ;;  %v1026_v11 = vld [vmem:[#allocation3 + $0x28] sm:$0xff] }
 0x609   : > { %5069 = vmatpush1.bf16.msra.mxu0 %v2584_v28  ;;  %v2721_v28 = vunpack.c.l.s8.bf16 %v1480_v16 }
 0x60a   : > { %5315 = vmatpush1.bf16.msra.mxu1 %v2586_v30  ;;  %5070 = vmatprep.subr.bf16.mxu0 %v2602_v31  ;;  %v1479_v30 = vld [vmem:[%s6711_s8 + $0xda8] sm:$0xff]  ;;  %v2723_v31 = vunpack.c.l.s8.bf16 %v1482_v22 }
 0x60b   : > { %5316 = vmatprep.subr.bf16.mxu1 %v2604_v32  ;;  %v1481_v32 = vld [vmem:[%s6711_s8 + $0xdb8] sm:$0xff]  ;;  %v2720_v8 = vunpack.c.l.s8.bf16 %v1479_v30 }
 0x60c   : > { %v2722_v33 = vunpack.c.l.s8.bf16 %v1481_v32  ;;  %v2739_v23 = vunpack.c.h.s8.bf16 %v1481_v32  ;;  %v1533_v32 = vld [vmem:[%s6711_s8 + $0xf58] sm:$0xff] }
 0x60d   : > { %5071 = vmatpush1.bf16.msra.mxu0 %v2601_v34  ;;  %v2738_v34 = vunpack.c.h.s8.bf16 %v1480_v16 }
 0x60e   : > { %5317 = vmatpush1.bf16.msra.mxu1 %v2603_v35  ;;  %5072 = vmatprep.subr.bf16.mxu0 %v2619_v57  ;;  %v2740_v35 = vunpack.c.h.s8.bf16 %v1482_v22  ;;  %v1497_v57 = vld [vmem:[%s6711_s8 + $0xe38] sm:$0xff] }
 0x60f   : > { %5318 = vmatprep.subr.bf16.mxu1 %v2621_v38  ;;  %v2737_v38 = vunpack.c.h.s8.bf16 %v1479_v30  ;;  %v1531_v30 = vld [vmem:[%s6711_s8 + $0xf48] sm:$0xff] }
 0x611   : > { %5073 = vmatpush1.bf16.msra.mxu0 %v2618_v40  ;;  %v2755_v40 = vunpack.c.l.s8.bf16 %v1497_v57 }
 0x612   : > { %5319 = vmatpush1.bf16.msra.mxu1 %v2620_v42  ;;  %5074 = vmatprep.subr.bf16.mxu0 %v2636_v44  ;;  %v1496_v42 = vld [vmem:[%s6711_s8 + $0xe30] sm:$0xff]  ;;  %v2757_v44 = vunpack.c.l.s8.bf16 %v1499_v36 }
 0x613   : > { %5320 = vmatprep.subr.bf16.mxu1 %v2638_v46  ;;  %v1498_v46 = vld [vmem:[%s6711_s8 + $0xe40] sm:$0xff]  ;;  %v2754_v62 = vunpack.c.l.s8.bf16 %v1496_v42 }
 0x614   : > { %v2756_v17 = vunpack.c.l.s8.bf16 %v1498_v46  ;;  %v2773_v52 = vunpack.c.h.s8.bf16 %v1498_v46  ;;  %v1550_v46 = vld [vmem:[%s6711_s8 + $0xfe0] sm:$0xff] }
 0x615   : > { %5075 = vmatpush1.bf16.msra.mxu0 %v2635_v48  ;;  %v2772_v48 = vunpack.c.h.s8.bf16 %v1497_v57  ;;  %v2825_v57 = vunpack.c.l.s8.bf16 %v1533_v32 }
 0x616   : > { %5321 = vmatpush1.bf16.msra.mxu1 %v2637_v19  ;;  %5076 = vmatprep.subr.bf16.mxu0 %v2653_v49  ;;  %v2774_v19 = vunpack.c.h.s8.bf16 %v1499_v36  ;;  %v1514_v49 = vld [vmem:[%s6711_s8 + $0xec0] sm:$0xff]  ;;  %v1532_v36 = vld [vmem:[%s6711_s8 + $0xf50] sm:$0xff] }
 0x617   : > { %5322 = vmatprep.subr.bf16.mxu1 %v2655_v6  ;;  %v2771_v6 = vunpack.c.h.s8.bf16 %v1496_v42  ;;  %v2806_v22 = vunpack.c.h.s8.bf16 %v1514_v49  ;;  %v2842_v42 = vunpack.c.h.s8.bf16 %v1533_v32 }
 0x619   : > { %5077 = vmatpush1.bf16.msra.mxu0 %v2652_v54  ;;  %v2789_v54 = vunpack.c.l.s8.bf16 %v1514_v49  ;;  %v2859_v49 = vunpack.c.l.s8.bf16 %v1550_v46 }
 0x61a   : > { %5323 = vmatpush1.bf16.msra.mxu1 %v2654_v58  ;;  %5078 = vmatprep.subr.bf16.mxu0 %v2670_v50  ;;  %v1513_v58 = vld [vmem:[%s6711_s8 + $0xeb8] sm:$0xff] }
 0x61b   : > { %5324 = vmatprep.subr.bf16.mxu1 %v2672_v59  ;;  %v2791_v59 = vunpack.c.l.s8.bf16 %v1516_v51 }
 0x61d   : > { %5079 = vmatpush1.bf16.msra.mxu0 %v2669_v4  ;;  %v1025_v4 = vld [vmem:[#allocation3 + $0x20] sm:$0xff] }
 0x61e   : > { %5325 = vmatpush1.bf16.msra.mxu1 %v2671_v9  ;;  %5089 = vmatprep.subr.bf16.mxu0 %v2687_v10 }
 0x61f   : > { %5335 = vmatprep.subr.bf16.mxu1 %v2689_v12 }
 0x620   : > { %5081 = vmatmul.mubr.bf16.vlgmr.msra.gmra.mrb[20].mxu0 %v6976_v55 }
 0x621   : > { %5327 = vmatmul.mubr.bf16.vlgmr.msra.gmra.mrb[20].mxu1 %v6976_v55  ;;  %5090 = vmatpush1.bf16.msra.mxu0 %v2686_v13  ;;  %v2788_v13 = vunpack.c.l.s8.bf16 %v1513_v58 }
 0x622   : > { %5121 = vmatprep.mubr.bf16.mxu0 %v6980_v7  ;;  %5336 = vmatpush1.bf16.msra.mxu1 %v2688_v14 }
 0x623   : > { %5367 = vmatprep.mubr.bf16.mxu1 %v6980_v7  ;;  %5091 = vmatprep.subr.bf16.mxu0 %v2704_v47 }
 0x624   : > { %5337 = vmatprep.subr.bf16.mxu1 %v2706_v21  ;;  %v2790_v21 = vunpack.c.l.s8.bf16 %v1515_v1 }
 0x625   : > { %5092 = vmatpush1.bf16.msra.mxu0 %v2703_v24 }
 0x626   : > { %5338 = vmatpush1.bf16.msra.mxu1 %v2705_v25  ;;  %5093 = vmatprep.subr.bf16.mxu0 %v2721_v28  ;;  %v2808_v28 = vunpack.c.h.s8.bf16 %v1516_v51  ;;  %v1549_v51 = vld [vmem:[%s6711_s8 + $0xfd8] sm:$0xff] }
 0x627   : > { %5339 = vmatprep.subr.bf16.mxu1 %v2723_v31 }
 0x629   : > { %5094 = vmatpush1.bf16.msra.mxu0 %v2720_v8  ;;  %v2805_v8 = vunpack.c.h.s8.bf16 %v1513_v58  ;;  %v2876_v58 = vunpack.c.h.s8.bf16 %v1550_v46 }
 0x62a   : > { %5340 = vmatpush1.bf16.msra.mxu1 %v2722_v33  ;;  %5095 = vmatprep.subr.bf16.mxu0 %v2738_v34  ;;  %v2807_v33 = vunpack.c.h.s8.bf16 %v1515_v1  ;;  %v2823_v34 = vunpack.c.l.s8.bf16 %v1531_v30 }
 0x62b   : > { %5341 = vmatprep.subr.bf16.mxu1 %v2740_v35  ;;  %v1530_v35 = vld [vmem:[%s6711_s8 + $0xf40] sm:$0xff] }
 0x62d   : > { %5096 = vmatpush1.bf16.msra.mxu0 %v2737_v38  ;;  %v2822_v38 = vunpack.c.l.s8.bf16 %v1530_v35 }
 0x62e   : > { %5342 = vmatpush1.bf16.msra.mxu1 %v2739_v23  ;;  %5097 = vmatprep.subr.bf16.mxu0 %v2755_v40  ;;  %v2824_v23 = vunpack.c.l.s8.bf16 %v1532_v36  ;;  %v2840_v40 = vunpack.c.h.s8.bf16 %v1531_v30  ;;  %v1583_v30 = vld [vmem:[%s6711_s8 + $0x10e8] sm:$0xff] }
 0x62f   : > { %5343 = vmatprep.subr.bf16.mxu1 %v2757_v44  ;;  %v1548_v44 = vld [vmem:[%s6711_s8 + $0xfd0] sm:$0xff]  ;;  %v2926_v32 = vunpack.c.l.s8.bf16 %v1583_v30 }
 0x631   : > { %5098 = vmatpush1.bf16.msra.mxu0 %v2754_v62  ;;  %v2839_v62 = vunpack.c.h.s8.bf16 %v1530_v35  ;;  %v1601_v35 = vld [vmem:[%s6711_s8 + $0x1178] sm:$0xff] }
 0x632   : > { %5344 = vmatpush1.bf16.msra.mxu1 %v2756_v17  ;;  %5099 = vmatprep.subr.bf16.mxu0 %v2772_v48  ;;  %v2841_v17 = vunpack.c.h.s8.bf16 %v1532_v36  ;;  %v2857_v48 = vunpack.c.l.s8.bf16 %v1548_v44  ;;  %v2943_v36 = vunpack.c.h.s8.bf16 %v1583_v30 }
 0x633   : > { %v4713_v50 = vpop.f32.mrb[16].mxu0  ;;  %5345 = vmatprep.subr.bf16.mxu1 %v2774_v19  ;;  %v1547_v19 = vld [vmem:[%s6711_s8 + $0xfc8] sm:$0xff] }
 0x634   : > { %v4959_v2 = vpop.f32.mrb[16].mxu1  ;;  %v4715_v9 = vpop.f32.mrb[17].mxu0  ;;  %v2873_v1 = vunpack.c.h.s8.bf16 %v1547_v19 }
 0x635   : > { %v5718_v10 = vcombine.low %v4713_v50, %v4715_v9  ;;  %v4961_v12 = vpop.f32.mrb[17].mxu1  ;;  %v4717_v56 = vpop.f32.mrb[18].mxu0  ;;  %5100 = vmatpush1.bf16.msra.mxu0 %v2771_v6  ;;  %v2856_v6 = vunpack.c.l.s8.bf16 %v1547_v19  ;;  %v1565_v50 = vld [vmem:[%s6711_s8 + $0x1058] sm:$0xff]  ;;  %v1564_v9 = vld [vmem:[%s6711_s8 + $0x1050] sm:$0xff]  ;;  %v1618_v19 = vld [vmem:[%s6711_s8 + $0x1200] sm:$0xff] }
 0x636   : > { %v5719_v14 = vcombine.low %v4959_v2, %v4961_v12  ;;  %v4963_v47 = vpop.f32.mrb[18].mxu1  ;;  %5346 = vmatpush1.bf16.msra.mxu1 %v2773_v52  ;;  %v4718_v16 = vpop.f32.mrb[19].mxu0  ;;  %5101 = vmatprep.subr.bf16.mxu0 %v2789_v54  ;;  %v2858_v52 = vunpack.c.l.s8.bf16 %v1549_v51  ;;  %v2874_v54 = vunpack.c.h.s8.bf16 %v1548_v44  ;;  %v2875_v2 = vunpack.c.h.s8.bf16 %v1549_v51 }
 0x637   : > { %v5734_v24 = vadd.f32 %v5718_v10, %v1025_v4  ;;  %v4964_v25 = vpop.f32.mrb[19].mxu1  ;;  %5347 = vmatprep.subr.bf16.mxu1 %v2791_v59  ;;  %v1567_v59 = vld [vmem:[%s6711_s8 + $0x1068] sm:$0xff]  ;;  %v2891_v4 = vunpack.c.l.s8.bf16 %v1565_v50  ;;  %v2890_v12 = vunpack.c.l.s8.bf16 %v1564_v9  ;;  %v1582_v47 = vld [vmem:[%s6711_s8 + $0x10e0] sm:$0xff]  ;;  %v1584_v16 = vld [vmem:[%s6711_s8 + $0x10f0] sm:$0xff] }
 0x638   : > { %v5735_v31 = vadd.f32 %v5719_v14, %v1026_v11  ;;  %v2893_v10 = vunpack.c.l.s8.bf16 %v1567_v59  ;;  %v1566_v11 = vld [vmem:[%s6711_s8 + $0x1060] sm:$0xff]  ;;  %v2910_v14 = vunpack.c.h.s8.bf16 %v1567_v59  ;;  %v1581_v25 = vld [vmem:[%s6711_s8 + $0x10d8] sm:$0xff] }
 0x639   : > { %5743 = vst [vmem:[#allocation3 + $0x20] sm:$0xff] %v5734_v24  ;;  %5102 = vmatpush1.bf16.msra.mxu0 %v2788_v13  ;;  %v2892_v56 = vunpack.c.l.s8.bf16 %v1566_v11  ;;  %v2908_v13 = vunpack.c.h.s8.bf16 %v1565_v50  ;;  %v2925_v24 = vunpack.c.l.s8.bf16 %v1582_v47 }
 0x63a   : > { %5744 = vst [vmem:[#allocation3 + $0x28] sm:$0xff] %v5735_v31  ;;  %5348 = vmatpush1.bf16.msra.mxu1 %v2790_v21  ;;  %5103 = vmatprep.subr.bf16.mxu0 %v2806_v22  ;;  %v2907_v21 = vunpack.c.h.s8.bf16 %v1564_v9  ;;  %v2909_v22 = vunpack.c.h.s8.bf16 %v1566_v11  ;;  %v2924_v31 = vunpack.c.l.s8.bf16 %v1581_v25  ;;  %v1635_v9 = vld [vmem:[%s6711_s8 + $0x1288] sm:$0xff] }
 0x63b   : > { %5349 = vmatprep.subr.bf16.mxu1 %v2808_v28  ;;  %v2927_v28 = vunpack.c.l.s8.bf16 %v1584_v16 }
 0x63d   : > { %5104 = vmatpush1.bf16.msra.mxu0 %v2805_v8  ;;  %v2942_v8 = vunpack.c.h.s8.bf16 %v1582_v47 }
 0x63e   : > { %5350 = vmatpush1.bf16.msra.mxu1 %v2807_v33  ;;  %5105 = vmatprep.subr.bf16.mxu0 %v2823_v34  ;;  %v2944_v33 = vunpack.c.h.s8.bf16 %v1584_v16  ;;  %v1599_v34 = vld [vmem:[%s6711_s8 + $0x1168] sm:$0xff] }
 0x63f   : > { %5351 = vmatprep.subr.bf16.mxu1 %v2825_v57  ;;  %v2941_v57 = vunpack.c.h.s8.bf16 %v1581_v25  ;;  %v1652_v25 = vld [vmem:[%s6711_s8 + $0x1310] sm:$0xff] }
 0x641   : > { %5106 = vmatpush1.bf16.msra.mxu0 %v2822_v38  ;;  %v2959_v38 = vunpack.c.l.s8.bf16 %v1599_v34 }
 0x642   : > { %5352 = vmatpush1.bf16.msra.mxu1 %v2824_v23  ;;  %5107 = vmatprep.subr.bf16.mxu0 %v2840_v40  ;;  %v1598_v23 = vld [vmem:[%s6711_s8 + $0x1160] sm:$0xff]  ;;  %v2961_v40 = vunpack.c.l.s8.bf16 %v1601_v35 }
 0x643   : > { %5353 = vmatprep.subr.bf16.mxu1 %v2842_v42  ;;  %v1600_v42 = vld [vmem:[%s6711_s8 + $0x1170] sm:$0xff]  ;;  %v2958_v44 = vunpack.c.l.s8.bf16 %v1598_v23 }
 0x644   : > { %v2960_v46 = vunpack.c.l.s8.bf16 %v1600_v42  ;;  %v2977_v51 = vunpack.c.h.s8.bf16 %v1600_v42 }
 0x645   : > { %5108 = vmatpush1.bf16.msra.mxu0 %v2839_v62  ;;  %v2976_v62 = vunpack.c.h.s8.bf16 %v1599_v34 }
 0x646   : > { %5354 = vmatpush1.bf16.msra.mxu1 %v2841_v17  ;;  %5109 = vmatprep.subr.bf16.mxu0 %v2857_v48  ;;  %v1616_v17 = vld [vmem:[%s6711_s8 + $0x11f0] sm:$0xff]  ;;  %v2978_v48 = vunpack.c.h.s8.bf16 %v1601_v35 }
 0x647   : > { %5355 = vmatprep.subr.bf16.mxu1 %v2859_v49  ;;  %v2975_v49 = vunpack.c.h.s8.bf16 %v1598_v23  ;;  %v1669_v23 = vld [vmem:[%s6711_s8 + $0x1398] sm:$0xff] }
 0x649   : > { %5110 = vmatpush1.bf16.msra.mxu0 %v2856_v6  ;;  %v2993_v6 = vunpack.c.l.s8.bf16 %v1616_v17 }
 0x64a   : > { %5356 = vmatpush1.bf16.msra.mxu1 %v2858_v52  ;;  %5111 = vmatprep.subr.bf16.mxu0 %v2874_v54  ;;  %v1615_v52 = vld [vmem:[%s6711_s8 + $0x11e8] sm:$0xff]  ;;  %v2995_v54 = vunpack.c.l.s8.bf16 %v1618_v19 }
 0x64b   : > { %5357 = vmatprep.subr.bf16.mxu1 %v2876_v58  ;;  %v1617_v58 = vld [vmem:[%s6711_s8 + $0x11f8] sm:$0xff]  ;;  %v2992_v50 = vunpack.c.l.s8.bf16 %v1615_v52 }
 0x64c   : > { %v2994_v59 = vunpack.c.l.s8.bf16 %v1617_v58  ;;  %v3011_v11 = vunpack.c.h.s8.bf16 %v1617_v58 }
 0x64d   : > { %5112 = vmatpush1.bf16.msra.mxu0 %v2873_v1  ;;  %v3010_v1 = vunpack.c.h.s8.bf16 %v1616_v17  ;;  %v1668_v17 = vld [vmem:[%s6711_s8 + $0x1390] sm:$0xff] }
 0x64e   : > { %5358 = vmatpush1.bf16.msra.mxu1 %v2875_v2  ;;  %5113 = vmatprep.subr.bf16.mxu0 %v2891_v4  ;;  %v3012_v2 = vunpack.c.h.s8.bf16 %v1618_v19  ;;  %v1633_v4 = vld [vmem:[%s6711_s8 + $0x1278] sm:$0xff]  ;;  %v3096_v19 = vunpack.c.l.s8.bf16 %v1668_v17  ;;  %v3113_v58 = vunpack.c.h.s8.bf16 %v1668_v17 }
 0x64f   : > { %5359 = vmatprep.subr.bf16.mxu1 %v2893_v10  ;;  %v3009_v10 = vunpack.c.h.s8.bf16 %v1615_v52  ;;  %v1686_v52 = vld [vmem:[%s6711_s8 + $0x1420] sm:$0xff] }
 0x651   : > { %5114 = vmatpush1.bf16.msra.mxu0 %v2890_v12  ;;  %v3027_v12 = vunpack.c.l.s8.bf16 %v1633_v4 }
 0x652   : > { %5360 = vmatpush1.bf16.msra.mxu1 %v2892_v56  ;;  %5115 = vmatprep.subr.bf16.mxu0 %v2908_v13  ;;  %v1632_v56 = vld [vmem:[%s6711_s8 + $0x1270] sm:$0xff]  ;;  %v3029_v13 = vunpack.c.l.s8.bf16 %v1635_v9 }
 0x653   : > { %5361 = vmatprep.subr.bf16.mxu1 %v2910_v14  ;;  %v1634_v14 = vld [vmem:[%s6711_s8 + $0x1280] sm:$0xff]  ;;  %v3026_v47 = vunpack.c.l.s8.bf16 %v1632_v56 }
 0x654   : > { %v3028_v16 = vunpack.c.l.s8.bf16 %v1634_v14  ;;  %v3045_v30 = vunpack.c.h.s8.bf16 %v1634_v14 }
 0x655   : > { %5116 = vmatpush1.bf16.msra.mxu0 %v2907_v21  ;;  %v3044_v21 = vunpack.c.h.s8.bf16 %v1633_v4 }
 0x656   : > { %5362 = vmatpush1.bf16.msra.mxu1 %v2909_v22  ;;  %5117 = vmatprep.subr.bf16.mxu0 %v2925_v24  ;;  %v3046_v22 = vunpack.c.h.s8.bf16 %v1635_v9  ;;  %v1650_v24 = vld [vmem:[%s6711_s8 + $0x1300] sm:$0xff] }
 0x657   : > { %5363 = vmatprep.subr.bf16.mxu1 %v2927_v28  ;;  %v3043_v28 = vunpack.c.h.s8.bf16 %v1632_v56  ;;  %v1703_v56 = vld [vmem:[%s6711_s8 + $0x14a8] sm:$0xff] }
 0x659   : > { %5118 = vmatpush1.bf16.msra.mxu0 %v2924_v31  ;;  %v3061_v31 = vunpack.c.l.s8.bf16 %v1650_v24 }
 0x65a   : > { %5364 = vmatpush1.bf16.msra.mxu1 %v2926_v32  ;;  %5119 = vmatprep.subr.bf16.mxu0 %v2942_v8  ;;  %v1649_v32 = vld [vmem:[%s6711_s8 + $0x12f8] sm:$0xff]  ;;  %v3063_v8 = vunpack.c.l.s8.bf16 %v1652_v25 }
 0x65b   : > { %5365 = vmatprep.subr.bf16.mxu1 %v2944_v33  ;;  %v1651_v33 = vld [vmem:[%s6711_s8 + $0x1308] sm:$0xff]  ;;  %v3060_v34 = vunpack.c.l.s8.bf16 %v1649_v32 }
 0x65c   : > { %v3062_v35 = vunpack.c.l.s8.bf16 %v1651_v33  ;;  %v3079_v42 = vunpack.c.h.s8.bf16 %v1651_v33 }
 0x65d   : > { %5120 = vmatpush1.bf16.msra.mxu0 %v2941_v57  ;;  %v3078_v57 = vunpack.c.h.s8.bf16 %v1650_v24 }
 0x65e   : > { %5366 = vmatpush1.bf16.msra.mxu1 %v2943_v36  ;;  %5130 = vmatprep.subr.bf16.mxu0 %v2959_v38  ;;  %v3080_v36 = vunpack.c.h.s8.bf16 %v1652_v25  ;;  %v1667_v38 = vld [vmem:[%s6711_s8 + $0x1388] sm:$0xff] }
 0x65f   : > { %5376 = vmatprep.subr.bf16.mxu1 %v2961_v40  ;;  %v3077_v40 = vunpack.c.h.s8.bf16 %v1649_v32  ;;  %v1720_v32 = vld [vmem:[%s6711_s8 + $0x1530] sm:$0xff] }
 0x660   : > { %5122 = vmatmul.mubr.bf16.vlgmr.msra.gmra.mrb[20].mxu0 %v7025_v3 }
 0x661   : > { %5368 = vmatmul.mubr.bf16.vlgmr.msra.gmra.mrb[20].mxu1 %v7025_v3  ;;  %5131 = vmatpush1.bf16.msra.mxu0 %v2958_v44  ;;  %v3095_v44 = vunpack.c.l.s8.bf16 %v1667_v38 }
 0x662   : > { %5162 = vmatprep.mubr.bf16.mxu0 %v7027_v27  ;;  %5377 = vmatpush1.bf16.msra.mxu1 %v2960_v46  ;;  %v1666_v46 = vld [vmem:[%s6711_s8 + $0x1380] sm:$0xff] }
 0x663   : > { %5408 = vmatprep.mubr.bf16.mxu1 %v7027_v27  ;;  %5132 = vmatprep.subr.bf16.mxu0 %v2976_v62  ;;  %v3097_v62 = vunpack.c.l.s8.bf16 %v1669_v23 }
 0x664   : > { %5378 = vmatprep.subr.bf16.mxu1 %v2978_v48  ;;  %v3094_v48 = vunpack.c.l.s8.bf16 %v1666_v46 }
 0x665   : > { %5133 = vmatpush1.bf16.msra.mxu0 %v2975_v49  ;;  %v3112_v49 = vunpack.c.h.s8.bf16 %v1667_v38 }
 0x666   : > { %5379 = vmatpush1.bf16.msra.mxu1 %v2977_v51  ;;  %5134 = vmatprep.subr.bf16.mxu0 %v2993_v6  ;;  %v3114_v51 = vunpack.c.h.s8.bf16 %v1669_v23  ;;  %v1684_v6 = vld [vmem:[%s6711_s8 + $0x1410] sm:$0xff] }
 0x667   : > { %5380 = vmatprep.subr.bf16.mxu1 %v2995_v54  ;;  %v3111_v54 = vunpack.c.h.s8.bf16 %v1666_v46  ;;  %v1737_v46 = vld [vmem:[%s6711_s8 + $0x15b8] sm:$0xff] }
 0x669   : > { %5135 = vmatpush1.bf16.msra.mxu0 %v2992_v50  ;;  %v3129_v50 = vunpack.c.l.s8.bf16 %v1684_v6 }
 0x66a   : > { %5381 = vmatpush1.bf16.msra.mxu1 %v2994_v59  ;;  %5136 = vmatprep.subr.bf16.mxu0 %v3010_v1  ;;  %v1683_v59 = vld [vmem:[%s6711_s8 + $0x1408] sm:$0xff]  ;;  %v3131_v1 = vunpack.c.l.s8.bf16 %v1686_v52 }
 0x66b   : > { %5382 = vmatprep.subr.bf16.mxu1 %v3012_v2  ;;  %v1685_v2 = vld [vmem:[%s6711_s8 + $0x1418] sm:$0xff]  ;;  %v3128_v4 = vunpack.c.l.s8.bf16 %v1683_v59 }
 0x66c   : > { %v3130_v9 = vunpack.c.l.s8.bf16 %v1685_v2  ;;  %v3147_v14 = vunpack.c.h.s8.bf16 %v1685_v2 }
 0x66d   : > { %5137 = vmatpush1.bf16.msra.mxu0 %v3009_v10  ;;  %v3146_v10 = vunpack.c.h.s8.bf16 %v1684_v6 }
 0x66e   : > { %5383 = vmatpush1.bf16.msra.mxu1 %v3011_v11  ;;  %5138 = vmatprep.subr.bf16.mxu0 %v3027_v12  ;;  %v3148_v11 = vunpack.c.h.s8.bf16 %v1686_v52  ;;  %v1701_v12 = vld [vmem:[%s6711_s8 + $0x1498] sm:$0xff] }
 0x66f   : > { %5384 = vmatprep.subr.bf16.mxu1 %v3029_v13  ;;  %v3145_v13 = vunpack.c.h.s8.bf16 %v1683_v59  ;;  %v1754_v59 = vld [vmem:[%s6711_s8 + $0x1640] sm:$0xff] }
 0x671   : > { %5139 = vmatpush1.bf16.msra.mxu0 %v3026_v47  ;;  %v3163_v47 = vunpack.c.l.s8.bf16 %v1701_v12 }
 0x672   : > { %5385 = vmatpush1.bf16.msra.mxu1 %v3028_v16  ;;  %5140 = vmatprep.subr.bf16.mxu0 %v3044_v21  ;;  %v1700_v16 = vld [vmem:[%s6711_s8 + $0x1490] sm:$0xff]  ;;  %v3165_v21 = vunpack.c.l.s8.bf16 %v1703_v56 }
 0x673   : > { %5386 = vmatprep.subr.bf16.mxu1 %v3046_v22  ;;  %v1702_v22 = vld [vmem:[%s6711_s8 + $0x14a0] sm:$0xff]  ;;  %v3162_v24 = vunpack.c.l.s8.bf16 %v1700_v16 }
 0x674   : > { %v3164_v25 = vunpack.c.l.s8.bf16 %v1702_v22  ;;  %v3181_v33 = vunpack.c.h.s8.bf16 %v1702_v22 }
 0x675   : > { %5141 = vmatpush1.bf16.msra.mxu0 %v3043_v28  ;;  %v3180_v28 = vunpack.c.h.s8.bf16 %v1701_v12 }
 0x676   : > { %5387 = vmatpush1.bf16.msra.mxu1 %v3045_v30  ;;  %5142 = vmatprep.subr.bf16.mxu0 %v3061_v31  ;;  %v3182_v30 = vunpack.c.h.s8.bf16 %v1703_v56  ;;  %v1718_v31 = vld [vmem:[%s6711_s8 + $0x1520] sm:$0xff] }
 0x677   : > { %5388 = vmatprep.subr.bf16.mxu1 %v3063_v8  ;;  %v3179_v8 = vunpack.c.h.s8.bf16 %v1700_v16  ;;  %v1771_v16 = vld [vmem:[%s6711_s8 + $0x16c8] sm:$0xff] }
 0x679   : > { %5143 = vmatpush1.bf16.msra.mxu0 %v3060_v34  ;;  %v3197_v34 = vunpack.c.l.s8.bf16 %v1718_v31 }
 0x67a   : > { %5389 = vmatpush1.bf16.msra.mxu1 %v3062_v35  ;;  %5144 = vmatprep.subr.bf16.mxu0 %v3078_v57  ;;  %v1717_v35 = vld [vmem:[%s6711_s8 + $0x1518] sm:$0xff]  ;;  %v3199_v57 = vunpack.c.l.s8.bf16 %v1720_v32 }
 0x67b   : > { %5390 = vmatprep.subr.bf16.mxu1 %v3080_v36  ;;  %v1719_v36 = vld [vmem:[%s6711_s8 + $0x1528] sm:$0xff]  ;;  %v3196_v38 = vunpack.c.l.s8.bf16 %v1717_v35 }
 0x67c   : > { %v3198_v23 = vunpack.c.l.s8.bf16 %v1719_v36  ;;  %v3215_v17 = vunpack.c.h.s8.bf16 %v1719_v36 }
 0x67d   : > { %5145 = vmatpush1.bf16.msra.mxu0 %v3077_v40  ;;  %v3214_v40 = vunpack.c.h.s8.bf16 %v1718_v31 }
 0x67e   : > { %5391 = vmatpush1.bf16.msra.mxu1 %v3079_v42  ;;  %5146 = vmatprep.subr.bf16.mxu0 %v3095_v44  ;;  %v3216_v42 = vunpack.c.h.s8.bf16 %v1720_v32  ;;  %v1735_v44 = vld [vmem:[%s6711_s8 + $0x15a8] sm:$0xff] }
 0x67f   : > { %5392 = vmatprep.subr.bf16.mxu1 %v3097_v62  ;;  %v3213_v62 = vunpack.c.h.s8.bf16 %v1717_v35  ;;  %v1788_v35 = vld [vmem:[%s6711_s8 + $0x1750] sm:$0xff] }
 0x681   : > { %5147 = vmatpush1.bf16.msra.mxu0 %v3094_v48  ;;  %v3231_v48 = vunpack.c.l.s8.bf16 %v1735_v44 }
 0x682   : > { %5393 = vmatpush1.bf16.msra.mxu1 %v3096_v19  ;;  %5148 = vmatprep.subr.bf16.mxu0 %v3112_v49  ;;  %v1734_v19 = vld [vmem:[%s6711_s8 + $0x15a0] sm:$0xff]  ;;  %v3233_v49 = vunpack.c.l.s8.bf16 %v1737_v46 }
 0x683   : > { %5394 = vmatprep.subr.bf16.mxu1 %v3114_v51  ;;  %v1736_v51 = vld [vmem:[%s6711_s8 + $0x15b0] sm:$0xff]  ;;  %v3230_v6 = vunpack.c.l.s8.bf16 %v1734_v19 }
 0x684   : > { %v3232_v52 = vunpack.c.l.s8.bf16 %v1736_v51  ;;  %v3249_v2 = vunpack.c.h.s8.bf16 %v1736_v51 }
 0x685   : > { %5149 = vmatpush1.bf16.msra.mxu0 %v3111_v54  ;;  %v3248_v54 = vunpack.c.h.s8.bf16 %v1735_v44 }
 0x686   : > { %5395 = vmatpush1.bf16.msra.mxu1 %v3113_v58  ;;  %5150 = vmatprep.subr.bf16.mxu0 %v3129_v50  ;;  %v1752_v58 = vld [vmem:[%s6711_s8 + $0x1630] sm:$0xff]  ;;  %v3250_v50 = vunpack.c.h.s8.bf16 %v1737_v46 }
 0x687   : > { %5396 = vmatprep.subr.bf16.mxu1 %v3131_v1  ;;  %v3247_v1 = vunpack.c.h.s8.bf16 %v1734_v19  ;;  %v1805_v19 = vld [vmem:[%s6711_s8 + $0x17d8] sm:$0xff] }
 0x689   : > { %5151 = vmatpush1.bf16.msra.mxu0 %v3128_v4  ;;  %v3265_v4 = vunpack.c.l.s8.bf16 %v1752_v58 }
 0x68a   : > { %5397 = vmatpush1.bf16.msra.mxu1 %v3130_v9  ;;  %5152 = vmatprep.subr.bf16.mxu0 %v3146_v10  ;;  %v1751_v9 = vld [vmem:[%s6711_s8 + $0x1628] sm:$0xff]  ;;  %v3267_v10 = vunpack.c.l.s8.bf16 %v1754_v59 }
 0x68b   : > { %5398 = vmatprep.subr.bf16.mxu1 %v3148_v11  ;;  %v1753_v11 = vld [vmem:[%s6711_s8 + $0x1638] sm:$0xff]  ;;  %v3264_v12 = vunpack.c.l.s8.bf16 %v1751_v9 }
 0x68c   : > { %v3266_v56 = vunpack.c.l.s8.bf16 %v1753_v11  ;;  %v3283_v22 = vunpack.c.h.s8.bf16 %v1753_v11 }
 0x68d   : > { %5153 = vmatpush1.bf16.msra.mxu0 %v3145_v13  ;;  %v3282_v13 = vunpack.c.h.s8.bf16 %v1752_v58  ;;  %v1804_v58 = vld [vmem:[%s6711_s8 + $0x17d0] sm:$0xff] }
 0x68e   : > { %5399 = vmatpush1.bf16.msra.mxu1 %v3147_v14  ;;  %5154 = vmatprep.subr.bf16.mxu0 %v3163_v47  ;;  %v3284_v14 = vunpack.c.h.s8.bf16 %v1754_v59  ;;  %v1769_v47 = vld [vmem:[%s6711_s8 + $0x16b8] sm:$0xff]  ;;  %v3368_v59 = vunpack.c.l.s8.bf16 %v1804_v58  ;;  %v3385_v11 = vunpack.c.h.s8.bf16 %v1804_v58 }
 0x68f   : > { %5400 = vmatprep.subr.bf16.mxu1 %v3165_v21  ;;  %v3281_v21 = vunpack.c.h.s8.bf16 %v1751_v9  ;;  %v1822_v9 = vld [vmem:[%s6711_s8 + $0x1860] sm:$0xff] }
 0x691   : > { %5155 = vmatpush1.bf16.msra.mxu0 %v3162_v24  ;;  %v3299_v24 = vunpack.c.l.s8.bf16 %v1769_v47 }
 0x692   : > { %5401 = vmatpush1.bf16.msra.mxu1 %v3164_v25  ;;  %5156 = vmatprep.subr.bf16.mxu0 %v3180_v28  ;;  %v1768_v25 = vld [vmem:[%s6711_s8 + $0x16b0] sm:$0xff]  ;;  %v3301_v28 = vunpack.c.l.s8.bf16 %v1771_v16 }
 0x693   : > { %5402 = vmatprep.subr.bf16.mxu1 %v3182_v30  ;;  %v1770_v30 = vld [vmem:[%s6711_s8 + $0x16c0] sm:$0xff]  ;;  %v3298_v31 = vunpack.c.l.s8.bf16 %v1768_v25 }
 0x694   : > { %v3300_v32 = vunpack.c.l.s8.bf16 %v1770_v30  ;;  %v3317_v36 = vunpack.c.h.s8.bf16 %v1770_v30 }
 0x695   : > { %5157 = vmatpush1.bf16.msra.mxu0 %v3179_v8  ;;  %v3316_v8 = vunpack.c.h.s8.bf16 %v1769_v47 }
 0x696   : > { %5403 = vmatpush1.bf16.msra.mxu1 %v3181_v33  ;;  %5158 = vmatprep.subr.bf16.mxu0 %v3197_v34  ;;  %v3318_v33 = vunpack.c.h.s8.bf16 %v1771_v16  ;;  %v1786_v34 = vld [vmem:[%s6711_s8 + $0x1740] sm:$0xff] }
 0x697   : > { %5404 = vmatprep.subr.bf16.mxu1 %v3199_v57  ;;  %v3315_v57 = vunpack.c.h.s8.bf16 %v1768_v25  ;;  %v1839_v25 = vld [vmem:[%s6711_s8 + $0x18e8] sm:$0xff] }
 0x699   : > { %5159 = vmatpush1.bf16.msra.mxu0 %v3196_v38  ;;  %v3333_v38 = vunpack.c.l.s8.bf16 %v1786_v34 }
 0x69a   : > { %5405 = vmatpush1.bf16.msra.mxu1 %v3198_v23  ;;  %5160 = vmatprep.subr.bf16.mxu0 %v3214_v40  ;;  %v1785_v23 = vld [vmem:[%s6711_s8 + $0x1738] sm:$0xff]  ;;  %v3335_v40 = vunpack.c.l.s8.bf16 %v1788_v35 }
 0x69b   : > { %5406 = vmatprep.subr.bf16.mxu1 %v3216_v42  ;;  %v1787_v42 = vld [vmem:[%s6711_s8 + $0x1748] sm:$0xff]  ;;  %v3332_v44 = vunpack.c.l.s8.bf16 %v1785_v23 }
 0x69c   : > { %v3334_v46 = vunpack.c.l.s8.bf16 %v1787_v42  ;;  %v3351_v51 = vunpack.c.h.s8.bf16 %v1787_v42 }
 0x69d   : > { %5161 = vmatpush1.bf16.msra.mxu0 %v3213_v62  ;;  %v3350_v62 = vunpack.c.h.s8.bf16 %v1786_v34 }
 0x69e   : > { %5407 = vmatpush1.bf16.msra.mxu1 %v3215_v17  ;;  %5171 = vmatprep.subr.bf16.mxu0 %v3231_v48  ;;  %v3352_v17 = vunpack.c.h.s8.bf16 %v1788_v35  ;;  %v1803_v48 = vld [vmem:[%s6711_s8 + $0x17c8] sm:$0xff] }
 0x69f   : > { %5417 = vmatprep.subr.bf16.mxu1 %v3233_v49  ;;  %v3349_v49 = vunpack.c.h.s8.bf16 %v1785_v23  ;;  %v1856_v23 = vld [vmem:[%s6711_s8 + $0x1970] sm:$0xff] }
 0x6a0   : > { %5163 = vmatmul.mubr.bf16.vlgmr.msra.gmra.mrb[20].mxu0 %v7069_v39 }
 0x6a1   : > { %5409 = vmatmul.mubr.bf16.vlgmr.msra.gmra.mrb[20].mxu1 %v7069_v39  ;;  %5172 = vmatpush1.bf16.msra.mxu0 %v3230_v6  ;;  %v3367_v6 = vunpack.c.l.s8.bf16 %v1803_v48 }
 0x6a2   : > { %5203 = vmatprep.mubr.bf16.mxu0 %v7072_v45  ;;  %5418 = vmatpush1.bf16.msra.mxu1 %v3232_v52  ;;  %v1802_v52 = vld [vmem:[%s6711_s8 + $0x17c0] sm:$0xff] }
 0x6a3   : > { %5449 = vmatprep.mubr.bf16.mxu1 %v7072_v45  ;;  %5173 = vmatprep.subr.bf16.mxu0 %v3248_v54  ;;  %v3369_v54 = vunpack.c.l.s8.bf16 %v1805_v19 }
 0x6a4   : > { %5419 = vmatprep.subr.bf16.mxu1 %v3250_v50  ;;  %v3366_v50 = vunpack.c.l.s8.bf16 %v1802_v52 }
 0x6a5   : > { %5174 = vmatpush1.bf16.msra.mxu0 %v3247_v1  ;;  %v3384_v1 = vunpack.c.h.s8.bf16 %v1803_v48 }
 0x6a6   : > { %5420 = vmatpush1.bf16.msra.mxu1 %v3249_v2  ;;  %5175 = vmatprep.subr.bf16.mxu0 %v3265_v4  ;;  %v3386_v2 = vunpack.c.h.s8.bf16 %v1805_v19  ;;  %v1820_v4 = vld [vmem:[%s6711_s8 + $0x1850] sm:$0xff] }
 0x6a7   : > { %5421 = vmatprep.subr.bf16.mxu1 %v3267_v10  ;;  %v3383_v10 = vunpack.c.h.s8.bf16 %v1802_v52  ;;  %v1262_v52 = vld [vmem:[%s6711_s8 + $0x6e0] sm:$0xff] }
 0x6a9   : > { %5176 = vmatpush1.bf16.msra.mxu0 %v3264_v12  ;;  %v3401_v12 = vunpack.c.l.s8.bf16 %v1820_v4 }
 0x6aa   : > { %5422 = vmatpush1.bf16.msra.mxu1 %v3266_v56  ;;  %5177 = vmatprep.subr.bf16.mxu0 %v3282_v13  ;;  %v1819_v56 = vld [vmem:[%s6711_s8 + $0x1848] sm:$0xff]  ;;  %v3403_v13 = vunpack.c.l.s8.bf16 %v1822_v9 }
 0x6ab   : > { %5423 = vmatprep.subr.bf16.mxu1 %v3284_v14  ;;  %v1821_v14 = vld [vmem:[%s6711_s8 + $0x1858] sm:$0xff]  ;;  %v3400_v47 = vunpack.c.l.s8.bf16 %v1819_v56 }
 0x6ac   : > { %v3402_v16 = vunpack.c.l.s8.bf16 %v1821_v14  ;;  %v3419_v30 = vunpack.c.h.s8.bf16 %v1821_v14 }
 0x6ad   : > { %5178 = vmatpush1.bf16.msra.mxu0 %v3281_v21  ;;  %v3418_v21 = vunpack.c.h.s8.bf16 %v1820_v4 }
 0x6ae   : > { %5424 = vmatpush1.bf16.msra.mxu1 %v3283_v22  ;;  %5179 = vmatprep.subr.bf16.mxu0 %v3299_v24  ;;  %v3420_v22 = vunpack.c.h.s8.bf16 %v1822_v9  ;;  %v1837_v24 = vld [vmem:[%s6711_s8 + $0x18d8] sm:$0xff] }
 0x6af   : > { %5425 = vmatprep.subr.bf16.mxu1 %v3301_v28  ;;  %v3417_v28 = vunpack.c.h.s8.bf16 %v1819_v56  ;;  %v1279_v56 = vld [vmem:[%s6711_s8 + $0x768] sm:$0xff] }
 0x6b1   : > { %5180 = vmatpush1.bf16.msra.mxu0 %v3298_v31  ;;  %v3435_v31 = vunpack.c.l.s8.bf16 %v1837_v24 }
 0x6b2   : > { %5426 = vmatpush1.bf16.msra.mxu1 %v3300_v32  ;;  %5181 = vmatprep.subr.bf16.mxu0 %v3316_v8  ;;  %v1836_v32 = vld [vmem:[%s6711_s8 + $0x18d0] sm:$0xff]  ;;  %v3437_v8 = vunpack.c.l.s8.bf16 %v1839_v25 }
 0x6b3   : > { %5427 = vmatprep.subr.bf16.mxu1 %v3318_v33  ;;  %v1838_v33 = vld [vmem:[%s6711_s8 + $0x18e0] sm:$0xff]  ;;  %v3434_v34 = vunpack.c.l.s8.bf16 %v1836_v32 }
 0x6b4   : > { %v3436_v35 = vunpack.c.l.s8.bf16 %v1838_v33  ;;  %v3453_v42 = vunpack.c.h.s8.bf16 %v1838_v33  ;;  %v1092_v33 = vld [vmem:[%s6711_s8 + $0x190] sm:$0xff] }
 0x6b5   : > { %5182 = vmatpush1.bf16.msra.mxu0 %v3315_v57  ;;  %v3452_v57 = vunpack.c.h.s8.bf16 %v1837_v24 }
 0x6b6   : > { %5428 = vmatpush1.bf16.msra.mxu1 %v3317_v36  ;;  %5183 = vmatprep.subr.bf16.mxu0 %v3333_v38  ;;  %v3454_v36 = vunpack.c.h.s8.bf16 %v1839_v25  ;;  %v1854_v38 = vld [vmem:[%s6711_s8 + $0x1960] sm:$0xff] }
 0x6b7   : > { %5429 = vmatprep.subr.bf16.mxu1 %v3335_v40  ;;  %v3451_v40 = vunpack.c.h.s8.bf16 %v1836_v32 }
 0x6b9   : > { %5184 = vmatpush1.bf16.msra.mxu0 %v3332_v44  ;;  %v3469_v44 = vunpack.c.l.s8.bf16 %v1854_v38 }
 0x6ba   : > { %5430 = vmatpush1.bf16.msra.mxu1 %v3334_v46  ;;  %5185 = vmatprep.subr.bf16.mxu0 %v3350_v62  ;;  %v1853_v46 = vld [vmem:[%s6711_s8 + $0x1958] sm:$0xff]  ;;  %v3471_v62 = vunpack.c.l.s8.bf16 %v1856_v23 }
 0x6bb   : > { %5431 = vmatprep.subr.bf16.mxu1 %v3352_v17  ;;  %v1855_v17 = vld [vmem:[%s6711_s8 + $0x1968] sm:$0xff]  ;;  %v3468_v48 = vunpack.c.l.s8.bf16 %v1853_v46 }
 0x6bc   : > { %v3470_v19 = vunpack.c.l.s8.bf16 %v1855_v17  ;;  %v3487_v58 = vunpack.c.h.s8.bf16 %v1855_v17  ;;  %v1109_v17 = vld [vmem:[%s6711_s8 + $0x218] sm:$0xff] }
 0x6bd   : > { %5186 = vmatpush1.bf16.msra.mxu0 %v3349_v49  ;;  %v3486_v49 = vunpack.c.h.s8.bf16 %v1854_v38 }
 0x6be   : > { %5432 = vmatpush1.bf16.msra.mxu1 %v3351_v51  ;;  %5187 = vmatprep.subr.bf16.mxu0 %v3367_v6  ;;  %v3488_v51 = vunpack.c.h.s8.bf16 %v1856_v23  ;;  %v1126_v6 = vld [vmem:[%s6711_s8 + $0x2a0] sm:$0xff] }
 0x6bf   : > { %5433 = vmatprep.subr.bf16.mxu1 %v3369_v54  ;;  %v3485_v54 = vunpack.c.h.s8.bf16 %v1853_v46 }
 0x6c1   : > { %5188 = vmatpush1.bf16.msra.mxu0 %v3366_v50  ;;  %v2010_v50 = vunpack.c.l.s8.bf16 %v1126_v6 }
 0x6c2   : > { %5434 = vmatpush1.bf16.msra.mxu1 %v3368_v59  ;;  %5189 = vmatprep.subr.bf16.mxu0 %v3384_v1  ;;  %v1058_v59 = vld [vmem:[%s6711_s8 + $0x80] sm:$0xff]  ;;  %v2282_v1 = vunpack.c.l.s8.bf16 %v1262_v52 }
 0x6c3   : > { %5435 = vmatprep.subr.bf16.mxu1 %v3386_v2  ;;  %v1194_v2 = vld [vmem:[%s6711_s8 + $0x4c0] sm:$0xff]  ;;  %v1874_v4 = vunpack.c.l.s8.bf16 %v1058_v59 }
 0x6c4   : > { %v2146_v9 = vunpack.c.l.s8.bf16 %v1194_v2  ;;  %v2163_v14 = vunpack.c.h.s8.bf16 %v1194_v2  ;;  %v1330_v2 = vld [vmem:[%s6711_s8 + $0x900] sm:$0xff] }
 0x6c5   : > { %5190 = vmatpush1.bf16.msra.mxu0 %v3383_v10  ;;  %v2027_v10 = vunpack.c.h.s8.bf16 %v1126_v6 }
 0x6c6   : > { %5436 = vmatpush1.bf16.msra.mxu1 %v3385_v11  ;;  %5191 = vmatprep.subr.bf16.mxu0 %v3401_v12  ;;  %v1143_v11 = vld [vmem:[%s6711_s8 + $0x328] sm:$0xff]  ;;  %v2299_v12 = vunpack.c.h.s8.bf16 %v1262_v52 }
 0x6c7   : > { %5437 = vmatprep.subr.bf16.mxu1 %v3403_v13  ;;  %v1891_v13 = vunpack.c.h.s8.bf16 %v1058_v59 }
 0x6c9   : > { %5192 = vmatpush1.bf16.msra.mxu0 %v3400_v47  ;;  %v2044_v47 = vunpack.c.l.s8.bf16 %v1143_v11 }
 0x6ca   : > { %5438 = vmatpush1.bf16.msra.mxu1 %v3402_v16  ;;  %5193 = vmatprep.subr.bf16.mxu0 %v3418_v21  ;;  %v1075_v16 = vld [vmem:[%s6711_s8 + $0x108] sm:$0xff]  ;;  %v2316_v21 = vunpack.c.l.s8.bf16 %v1279_v56 }
 0x6cb   : > { %5439 = vmatprep.subr.bf16.mxu1 %v3420_v22  ;;  %v1211_v22 = vld [vmem:[%s6711_s8 + $0x548] sm:$0xff]  ;;  %v1908_v24 = vunpack.c.l.s8.bf16 %v1075_v16  ;;  %v1925_v32 = vunpack.c.h.s8.bf16 %v1075_v16 }
 0x6cc   : > { %v2180_v25 = vunpack.c.l.s8.bf16 %v1211_v22 }
 0x6cd   : > { %5194 = vmatpush1.bf16.msra.mxu0 %v3417_v28  ;;  %v2333_v28 = vunpack.c.h.s8.bf16 %v1279_v56  ;;  %v1415_v56 = vld [vmem:[%s6711_s8 + $0xba8] sm:$0xff] }
 0x6ce   : > { %5440 = vmatpush1.bf16.msra.mxu1 %v3419_v30  ;;  %5195 = vmatprep.subr.bf16.mxu0 %v3435_v31  ;;  %v1160_v30 = vld [vmem:[%s6711_s8 + $0x3b0] sm:$0xff] }
 0x6cf   : > { %5441 = vmatprep.subr.bf16.mxu1 %v3437_v8  ;;  %v1296_v31 = vld [vmem:[%s6711_s8 + $0x7f0] sm:$0xff]  ;;  %v2078_v8 = vunpack.c.l.s8.bf16 %v1160_v30  ;;  %v2095_v38 = vunpack.c.h.s8.bf16 %v1160_v30 }
 0x6d0   : > { %v2367_v23 = vunpack.c.h.s8.bf16 %v1296_v31  ;;  %v1568_v30 = vld [vmem:[%s6711_s8 + $0x1070] sm:$0xff] }
 0x6d1   : > { %5196 = vmatpush1.bf16.msra.mxu0 %v3434_v34  ;;  %v2350_v34 = vunpack.c.l.s8.bf16 %v1296_v31 }
 0x6d2   : > { %5442 = vmatpush1.bf16.msra.mxu1 %v3436_v35  ;;  %5197 = vmatprep.subr.bf16.mxu0 %v3452_v57  ;;  %v1228_v35 = vld [vmem:[%s6711_s8 + $0x5d0] sm:$0xff]  ;;  %v1942_v57 = vunpack.c.l.s8.bf16 %v1092_v33 }
 0x6d3   : > { %5443 = vmatprep.subr.bf16.mxu1 %v3454_v36  ;;  %v2214_v36 = vunpack.c.l.s8.bf16 %v1228_v35  ;;  %v2231_v46 = vunpack.c.h.s8.bf16 %v1228_v35 }
 0x6d5   : > { %5198 = vmatpush1.bf16.msra.mxu0 %v3451_v40  ;;  %v1177_v40 = vld [vmem:[%s6711_s8 + $0x438] sm:$0xff] }
 0x6d6   : > { %5444 = vmatpush1.bf16.msra.mxu1 %v3453_v42  ;;  %5199 = vmatprep.subr.bf16.mxu0 %v3469_v44  ;;  %v1313_v42 = vld [vmem:[%s6711_s8 + $0x878] sm:$0xff]  ;;  %v1959_v44 = vunpack.c.h.s8.bf16 %v1092_v33  ;;  %v2129_v6 = vunpack.c.h.s8.bf16 %v1177_v40  ;;  %v1500_v33 = vld [vmem:[%s6711_s8 + $0xe50] sm:$0xff] }
 0x6d7   : > { %5445 = vmatprep.subr.bf16.mxu1 %v3471_v62  ;;  %v2112_v62 = vunpack.c.l.s8.bf16 %v1177_v40  ;;  %v2401_v52 = vunpack.c.h.s8.bf16 %v1313_v42  ;;  %v2758_v35 = vunpack.c.l.s8.bf16 %v1500_v33 }
 0x6d9   : > { %5200 = vmatpush1.bf16.msra.mxu0 %v3468_v48  ;;  %v2384_v48 = vunpack.c.l.s8.bf16 %v1313_v42  ;;  %v2775_v42 = vunpack.c.h.s8.bf16 %v1500_v33  ;;  %v1857_v33 = vld [vmem:[%s6711_s8 + $0x1978] sm:$0xff] }
 0x6da   : > { %5446 = vmatpush1.bf16.msra.mxu1 %v3470_v19  ;;  %5201 = vmatprep.subr.bf16.mxu0 %v3486_v49  ;;  %v1245_v19 = vld [vmem:[%s6711_s8 + $0x658] sm:$0xff]  ;;  %v1976_v49 = vunpack.c.l.s8.bf16 %v1109_v17 }
 0x6db   : > { %5447 = vmatprep.subr.bf16.mxu1 %v3488_v51  ;;  %v2248_v51 = vunpack.c.l.s8.bf16 %v1245_v19  ;;  %v2265_v59 = vunpack.c.h.s8.bf16 %v1245_v19 }
 0x6dd   : > { %5202 = vmatpush1.bf16.msra.mxu0 %v3485_v54  ;;  %v1398_v54 = vld [vmem:[%s6711_s8 + $0xb20] sm:$0xff] }
 0x6de   : > { %5448 = vmatpush1.bf16.msra.mxu1 %v3487_v58  ;;  %6100 = vmatprep.subr.bf16.mxu0 %v2010_v50  ;;  %v1534_v58 = vld [vmem:[%s6711_s8 + $0xf60] sm:$0xff]  ;;  %v1993_v50 = vunpack.c.h.s8.bf16 %v1109_v17  ;;  %v1517_v17 = vld [vmem:[%s6711_s8 + $0xed8] sm:$0xff] }
 0x6df   : > { %6122 = vmatprep.subr.bf16.mxu1 %v2282_v1  ;;  %v2554_v1 = vunpack.c.l.s8.bf16 %v1398_v54  ;;  %v2792_v19 = vunpack.c.l.s8.bf16 %v1517_v17 }
 0x6e0   : > { %5204 = vmatmul.mubr.bf16.vlgmr.msra.gmra.mrb[20].mxu0 %v7110_v60 }
 0x6e1   : > { %5450 = vmatmul.mubr.bf16.vlgmr.msra.gmra.mrb[20].mxu1 %v7110_v60  ;;  %6101 = vmatpush3.bf16.msra.mxu0 %v1874_v4  ;;  %v2826_v4 = vunpack.c.l.s8.bf16 %v1534_v58 }
 0x6e2   : > { %5490 = vmatprep.mubr.bf16.mxu0 %v6845_v15  ;;  %6123 = vmatpush3.bf16.msra.mxu1 %v2146_v9  ;;  %v2061_v15 = vunpack.c.h.s8.bf16 %v1143_v11  ;;  %v1466_v9 = vld [vmem:[%s6711_s8 + $0xd40] sm:$0xff] }
 0x6e3   : > { %5530 = vmatprep.mubr.bf16.mxu1 %v6857_v26  ;;  %6102 = vmatprep.subr.bf16.mxu0 %v2027_v10  ;;  %v2197_v26 = vunpack.c.h.s8.bf16 %v1211_v22  ;;  %v2418_v10 = vunpack.c.l.s8.bf16 %v1330_v2  ;;  %v2690_v11 = vunpack.c.l.s8.bf16 %v1466_v9  ;;  %v2707_v16 = vunpack.c.h.s8.bf16 %v1466_v9  ;;  %v1347_v22 = vld [vmem:[%s6711_s8 + $0x988] sm:$0xff] }
 0x6e4   : > { %6124 = vmatprep.subr.bf16.mxu1 %v2299_v12  ;;  %v2571_v12 = vunpack.c.h.s8.bf16 %v1398_v54  ;;  %v2469_v31 = vunpack.c.h.s8.bf16 %v1347_v22 }
 0x6e5   : > { %6103 = vmatpush3.bf16.msra.mxu0 %v1891_v13  ;;  %v2843_v13 = vunpack.c.h.s8.bf16 %v1534_v58  ;;  %v2809_v58 = vunpack.c.h.s8.bf16 %v1517_v17 }
 0x6e6   : > { %6125 = vmatpush3.bf16.msra.mxu1 %v2163_v14  ;;  %6104 = vmatprep.subr.bf16.mxu0 %v2044_v47  ;;  %v1551_v14 = vld [vmem:[%s6711_s8 + $0xfe8] sm:$0xff]  ;;  %v2435_v47 = vunpack.c.h.s8.bf16 %v1330_v2  ;;  %v1738_v2 = vld [vmem:[%s6711_s8 + $0x15c0] sm:$0xff] }
 0x6e7   : > { %6126 = vmatprep.subr.bf16.mxu1 %v2316_v21  ;;  %v2588_v21 = vunpack.c.l.s8.bf16 %v1415_v56  ;;  %v3234_v9 = vunpack.c.l.s8.bf16 %v1738_v2 }
 0x6e9   : > { %6105 = vmatpush3.bf16.msra.mxu0 %v1908_v24  ;;  %v2860_v24 = vunpack.c.l.s8.bf16 %v1551_v14 }
 0x6ea   : > { %6127 = vmatpush3.bf16.msra.mxu1 %v2180_v25  ;;  %6106 = vmatprep.subr.bf16.mxu0 %v2061_v15  ;;  %v1483_v25 = vld [vmem:[%s6711_s8 + $0xdc8] sm:$0xff]  ;;  %v2877_v15 = vunpack.c.h.s8.bf16 %v1551_v14  ;;  %v3251_v14 = vunpack.c.h.s8.bf16 %v1738_v2 }
 0x6eb   : > { %6128 = vmatprep.subr.bf16.mxu1 %v2333_v28  ;;  %v1432_v28 = vld [vmem:[%s6711_s8 + $0xc30] sm:$0xff] }
 0x6ed   : > { %6107 = vmatpush3.bf16.msra.mxu0 %v1925_v32  ;;  %v2622_v32 = vunpack.c.l.s8.bf16 %v1432_v28 }
 0x6ee   : > { %6129 = vmatpush3.bf16.msra.mxu1 %v2197_v26  ;;  %6108 = vmatprep.subr.bf16.mxu0 %v2078_v8  ;;  %v1364_v26 = vld [vmem:[%s6711_s8 + $0xa10] sm:$0xff]  ;;  %v2894_v8 = vunpack.c.l.s8.bf16 %v1568_v30 }
 0x6ef   : > { %6130 = vmatprep.subr.bf16.mxu1 %v2350_v34  ;;  %v2486_v34 = vunpack.c.l.s8.bf16 %v1364_v26  ;;  %v2503_v40 = vunpack.c.h.s8.bf16 %v1364_v26 }
 0x6f1   : > { %6109 = vmatpush3.bf16.msra.mxu0 %v1942_v57  ;;  %v2639_v57 = vunpack.c.h.s8.bf16 %v1432_v28 }
 0x6f2   : > { %6131 = vmatpush3.bf16.msra.mxu1 %v2214_v36  ;;  %6110 = vmatprep.subr.bf16.mxu0 %v2095_v38  ;;  %v2911_v36 = vunpack.c.h.s8.bf16 %v1568_v30  ;;  %v1449_v38 = vld [vmem:[%s6711_s8 + $0xcb8] sm:$0xff]  ;;  %v1772_v30 = vld [vmem:[%s6711_s8 + $0x16d0] sm:$0xff] }
 0x6f3   : > { %6132 = vmatprep.subr.bf16.mxu1 %v2367_v23  ;;  %v1585_v23 = vld [vmem:[%s6711_s8 + $0x10f8] sm:$0xff] }
 0x6f5   : > { %6111 = vmatpush3.bf16.msra.mxu0 %v1959_v44  ;;  %v2656_v44 = vunpack.c.l.s8.bf16 %v1449_v38 }
 0x6f6   : > { %6133 = vmatpush3.bf16.msra.mxu1 %v2231_v46  ;;  %6112 = vmatprep.subr.bf16.mxu0 %v2112_v62  ;;  %v1381_v46 = vld [vmem:[%s6711_s8 + $0xa98] sm:$0xff]  ;;  %v2928_v62 = vunpack.c.l.s8.bf16 %v1585_v23 }
 0x6f7   : > { %6134 = vmatprep.subr.bf16.mxu1 %v2384_v48  ;;  %v2520_v48 = vunpack.c.l.s8.bf16 %v1381_v46  ;;  %v2537_v54 = vunpack.c.h.s8.bf16 %v1381_v46  ;;  %v3489_v46 = vunpack.c.h.s8.bf16 %v1857_v33 }
 0x6f9   : > { %6113 = vmatpush3.bf16.msra.mxu0 %v1976_v49  ;;  %v2673_v49 = vunpack.c.h.s8.bf16 %v1449_v38  ;;  %v3472_v38 = vunpack.c.l.s8.bf16 %v1857_v33 }
 0x6fa   : > { %6135 = vmatpush3.bf16.msra.mxu1 %v2248_v51  ;;  %6114 = vmatprep.subr.bf16.mxu0 %v2129_v6  ;;  %v2945_v51 = vunpack.c.h.s8.bf16 %v1585_v23  ;;  %v1670_v6 = vld [vmem:[%s6711_s8 + $0x13a0] sm:$0xff]  ;;  %v1789_v23 = vld [vmem:[%s6711_s8 + $0x1758] sm:$0xff] }
 0x6fb   : > { %6136 = vmatprep.subr.bf16.mxu1 %v2401_v52  ;;  %v1806_v52 = vld [vmem:[%s6711_s8 + $0x17e0] sm:$0xff]  ;;  %v3353_v17 = vunpack.c.h.s8.bf16 %v1789_v23 }
 0x6fd   : > { %6115 = vmatpush3.bf16.msra.mxu0 %v1993_v50  ;;  %v3098_v50 = vunpack.c.l.s8.bf16 %v1670_v6 }
 0x6fe   : > { %6137 = vmatpush3.bf16.msra.mxu1 %v2265_v59  ;;  %6144 = vmatprep.subr.bf16.mxu0 %v2554_v1  ;;  %v1602_v59 = vld [vmem:[%s6711_s8 + $0x1180] sm:$0xff]  ;;  %v3370_v1 = vunpack.c.l.s8.bf16 %v1806_v52 }
 0x6ff   : > { %6166 = vmatprep.subr.bf16.mxu1 %v2826_v4  ;;  %v2962_v4 = vunpack.c.l.s8.bf16 %v1602_v59 }
 0x700   : > { %5491 = vmatmul.mubr.bf16.vlgmr.msra.gmra.mrb[24].mxu0 %v6849_v20  ;;  %v2452_v20 = vunpack.c.l.s8.bf16 %v1347_v22  ;;  %v1755_v22 = vld [vmem:[%s6711_s8 + $0x1648] sm:$0xff] }
 0x701   : > { %5531 = vmatmul.mubr.bf16.vlgmr.msra.gmra.mrb[24].mxu1 %v6924_v37  ;;  %6145 = vmatpush3.bf16.msra.mxu0 %v2418_v10  ;;  %v2724_v37 = vunpack.c.l.s8.bf16 %v1483_v25  ;;  %v3115_v10 = vunpack.c.h.s8.bf16 %v1670_v6 }
 0x702   : > { %5570 = vmatprep.mubr.bf16.mxu0 %v6928_v43  ;;  %6167 = vmatpush3.bf16.msra.mxu1 %v2690_v11  ;;  %v2605_v43 = vunpack.c.h.s8.bf16 %v1415_v56  ;;  %v1687_v11 = vld [vmem:[%s6711_s8 + $0x1428] sm:$0xff] }
 0x703   : > { %5610 = vmatprep.mubr.bf16.mxu1 %v6980_v7  ;;  %6146 = vmatprep.subr.bf16.mxu0 %v2571_v12  ;;  %v2741_v7 = vunpack.c.h.s8.bf16 %v1483_v25  ;;  %v3387_v12 = vunpack.c.h.s8.bf16 %v1806_v52  ;;  %v1823_v56 = vld [vmem:[%s6711_s8 + $0x1868] sm:$0xff]  ;;  %v1704_v25 = vld [vmem:[%s6711_s8 + $0x14b0] sm:$0xff]  ;;  %v1028_v52 = vld [vmem:[#allocation3 + $0x38] sm:$0xff] }
 0x704   : > { %6168 = vmatprep.subr.bf16.mxu1 %v2843_v13  ;;  %v2979_v13 = vunpack.c.h.s8.bf16 %v1602_v59 }
 0x705   : > { %6147 = vmatpush3.bf16.msra.mxu0 %v2435_v47  ;;  %v3132_v47 = vunpack.c.l.s8.bf16 %v1687_v11 }
 0x706   : > { %6169 = vmatpush3.bf16.msra.mxu1 %v2707_v16  ;;  %6148 = vmatprep.subr.bf16.mxu0 %v2588_v21  ;;  %v1619_v16 = vld [vmem:[%s6711_s8 + $0x1208] sm:$0xff]  ;;  %v3404_v21 = vunpack.c.l.s8.bf16 %v1823_v56 }
 0x707   : > { %6170 = vmatprep.subr.bf16.mxu1 %v2860_v24  ;;  %v3421_v24 = vunpack.c.h.s8.bf16 %v1823_v56 }
 0x709   : > { %6149 = vmatpush3.bf16.msra.mxu0 %v2452_v20  ;;  %v1840_v20 = vld [vmem:[%s6711_s8 + $0x18f0] sm:$0xff] }
 0x70a   : > { %6171 = vmatpush3.bf16.msra.mxu1 %v2724_v37  ;;  %6150 = vmatprep.subr.bf16.mxu0 %v2605_v43  ;;  %v3013_v37 = vunpack.c.h.s8.bf16 %v1619_v16  ;;  %v3166_v43 = vunpack.c.l.s8.bf16 %v1704_v25  ;;  %v3438_v28 = vunpack.c.l.s8.bf16 %v1840_v20  ;;  %v3455_v26 = vunpack.c.h.s8.bf16 %v1840_v20 }
 0x70b   : > { %6172 = vmatprep.subr.bf16.mxu1 %v2877_v15  ;;  %v1636_v15 = vld [vmem:[%s6711_s8 + $0x1290] sm:$0xff] }
 0x70d   : > { %6151 = vmatpush3.bf16.msra.mxu0 %v2469_v31  ;;  %v3030_v31 = vunpack.c.l.s8.bf16 %v1636_v15 }
 0x70e   : > { %6173 = vmatpush3.bf16.msra.mxu1 %v2741_v7  ;;  %6152 = vmatprep.subr.bf16.mxu0 %v2622_v32  ;;  %v3302_v7 = vunpack.c.l.s8.bf16 %v1772_v30  ;;  %v3183_v32 = vunpack.c.h.s8.bf16 %v1704_v25 }
 0x70f   : > { %6174 = vmatprep.subr.bf16.mxu1 %v2894_v8  ;;  %v1721_v8 = vld [vmem:[%s6711_s8 + $0x1538] sm:$0xff] }
 0x711   : > { %6153 = vmatpush3.bf16.msra.mxu0 %v2486_v34  ;;  %v3047_v34 = vunpack.c.h.s8.bf16 %v1636_v15 }
 0x712   : > { %6175 = vmatpush3.bf16.msra.mxu1 %v2758_v35  ;;  %6154 = vmatprep.subr.bf16.mxu0 %v2639_v57  ;;  %v3319_v35 = vunpack.c.h.s8.bf16 %v1772_v30  ;;  %v3200_v57 = vunpack.c.l.s8.bf16 %v1721_v8 }
 0x713   : > { %6176 = vmatprep.subr.bf16.mxu1 %v2911_v36  ;;  %v1653_v36 = vld [vmem:[%s6711_s8 + $0x1318] sm:$0xff] }
 0x715   : > { %6155 = vmatpush3.bf16.msra.mxu0 %v2503_v40  ;;  %v3064_v40 = vunpack.c.l.s8.bf16 %v1653_v36 }
 0x716   : > { %6177 = vmatpush3.bf16.msra.mxu1 %v2775_v42  ;;  %6156 = vmatprep.subr.bf16.mxu0 %v2656_v44  ;;  %v3336_v42 = vunpack.c.l.s8.bf16 %v1789_v23  ;;  %v3217_v44 = vunpack.c.h.s8.bf16 %v1721_v8 }
 0x717   : > { %6178 = vmatprep.subr.bf16.mxu1 %v2928_v62  ;;  %v3081_v62 = vunpack.c.h.s8.bf16 %v1653_v36 }
 0x719   : > { %6157 = vmatpush3.bf16.msra.mxu0 %v2520_v48 }
 0x71a   : > { %6179 = vmatpush3.bf16.msra.mxu1 %v2792_v19  ;;  %6158 = vmatprep.subr.bf16.mxu0 %v2673_v49  ;;  %v1027_v49 = vld [vmem:[#allocation3 + $0x30] sm:$0xff] }
 0x71b   : > { %6180 = vmatprep.subr.bf16.mxu1 %v2945_v51 }
 0x71d   : > { %6159 = vmatpush3.bf16.msra.mxu0 %v2537_v54 }
 0x71e   : > { %6181 = vmatpush3.bf16.msra.mxu1 %v2809_v58  ;;  %6188 = vmatprep.subr.bf16.mxu0 %v3098_v50 }
 0x71f   : > { %6210 = vmatprep.subr.bf16.mxu1 %v3370_v1 }
 0x720   : > { %5571 = vmatmul.mubr.bf16.vlgmr.msra.gmra.mrb[28].mxu0 %v6976_v55  ;;  %v2996_v55 = vunpack.c.l.s8.bf16 %v1619_v16 }
 0x721   : > { %5611 = vmatmul.mubr.bf16.vlgmr.msra.gmra.mrb[28].mxu1 %v7025_v3  ;;  %6189 = vmatpush3.bf16.msra.mxu0 %v2962_v4  ;;  %v3268_v3 = vunpack.c.l.s8.bf16 %v1755_v22 }
 0x722   : > { %5650 = vmatprep.mubr.bf16.mxu0 %v7027_v27  ;;  %6211 = vmatpush3.bf16.msra.mxu1 %v3234_v9  ;;  %v3149_v27 = vunpack.c.h.s8.bf16 %v1687_v11 }
 0x723   : > { %5690 = vmatprep.mubr.bf16.mxu1 %v7072_v45  ;;  %6190 = vmatprep.subr.bf16.mxu0 %v3115_v10  ;;  %v3285_v45 = vunpack.c.h.s8.bf16 %v1755_v22 }
 0x724   : > { %6212 = vmatprep.subr.bf16.mxu1 %v3387_v12 }
 0x725   : > { %6191 = vmatpush3.bf16.msra.mxu0 %v2979_v13 }
 0x726   : > { %6213 = vmatpush3.bf16.msra.mxu1 %v3251_v14  ;;  %6192 = vmatprep.subr.bf16.mxu0 %v3132_v47 }
 0x727   : > { %6214 = vmatprep.subr.bf16.mxu1 %v3404_v21 }
 0x729   : > { %6193 = vmatpush3.bf16.msra.mxu0 %v2996_v55 }
 0x72a   : > { %6215 = vmatpush3.bf16.msra.mxu1 %v3268_v3  ;;  %6194 = vmatprep.subr.bf16.mxu0 %v3149_v27 }
 0x72b   : > { %6216 = vmatprep.subr.bf16.mxu1 %v3421_v24 }
 0x72d   : > { %6195 = vmatpush3.bf16.msra.mxu0 %v3013_v37 }
 0x72e   : > { %6217 = vmatpush3.bf16.msra.mxu1 %v3285_v45  ;;  %6196 = vmatprep.subr.bf16.mxu0 %v3166_v43 }
 0x72f   : > { %6218 = vmatprep.subr.bf16.mxu1 %v3438_v28 }
 0x731   : > { %6197 = vmatpush3.bf16.msra.mxu0 %v3030_v31 }
 0x732   : > { %6219 = vmatpush3.bf16.msra.mxu1 %v3302_v7  ;;  %6198 = vmatprep.subr.bf16.mxu0 %v3183_v32 }
 0x733   : > { %6220 = vmatprep.subr.bf16.mxu1 %v3455_v26 }
 0x735   : > { %6199 = vmatpush3.bf16.msra.mxu0 %v3047_v34 }
 0x736   : > { %6221 = vmatpush3.bf16.msra.mxu1 %v3319_v35  ;;  %6200 = vmatprep.subr.bf16.mxu0 %v3200_v57 }
 0x737   : > { %6222 = vmatprep.subr.bf16.mxu1 %v3472_v38  ;;  %v1029_v38 = vld [vmem:[#allocation3 + $0x40] sm:$0xf] }
 0x739   : > { %6201 = vmatpush3.bf16.msra.mxu0 %v3064_v40 }
 0x73a   : > { %6223 = vmatpush3.bf16.msra.mxu1 %v3336_v42  ;;  %6202 = vmatprep.subr.bf16.mxu0 %v3217_v44  ;;  %v5754_v42 = vld [vmem:[%s7919_s5] sm:$0xff] (!%p6092_p12) }
 0x73b   : > { %6224 = vmatprep.subr.bf16.mxu1 %v3489_v46  ;;  %v5772_v44 = vld [vmem:[%s7918_s4] sm:$0xff] (!%p6092_p12) }
 0x73c   : > { %v5781_v46 = vrot.slane (!%p6092_p12), %v5772_v44, %v6824_v61 }
 0x73d   : > { %6203 = vmatpush3.bf16.msra.mxu0 %v3081_v62  ;;  %v5785_v62 = vrot.slane (!%p6092_p12), %v5772_v44, %v6830_v63 }
 0x73e   : > { %6225 = vmatpush3.bf16.msra.mxu1 %v3353_v17  ;;  %v5878_v17 = vrot.slane (!%p6092_p12), %v5754_v42, %v6824_v61 }
 0x740   : > { %5651 = vmatmul.mubr.bf16.vlgmr.msra.gmra.mrb[32].mxu0 %v7069_v39 }
 0x741   : > { %5691 = vmatmul.mubr.bf16.vlgmr.msra.gmra.mrb[32].mxu1 %v7110_v60 }
 0x7b3   : > { %v5205_v48 = vpop.f32.mrb[20].mxu0 }
 0x7b4   : > { %v5451_v19 = vpop.f32.mrb[20].mxu1  ;;  %v5207_v51 = vpop.f32.mrb[21].mxu0 }
 0x7b5   : > { %v5720_v6 = vcombine.low %v5205_v48, %v5207_v51  ;;  %v5453_v54 = vpop.f32.mrb[21].mxu1  ;;  %v5209_v58 = vpop.f32.mrb[22].mxu0  ;;  %v5882_v48 = vrot.slane (!%p6092_p12), %v5754_v42, %v6830_v63  ;;  %v5793_v51 = vrot.slane (!%p6092_p12), %v5772_v44, %v6833_v0 }
 0x7b6   : > { %v5721_v50 = vcombine.low %v5451_v19, %v5453_v54  ;;  %v5455_v59 = vpop.f32.mrb[22].mxu1  ;;  %v5210_v1 = vpop.f32.mrb[23].mxu0  ;;  %v5763_v19 = vld [vmem:[#allocation3] sm:$0xff] (!%p6092_p12)  ;;  %v5847_v54 = vcombine.low (!%p6092_p12), %v5781_v46, %v5785_v62 }
 0x7b7   : > { %v5736_v2 = vadd.f32 %v5720_v6, %v1027_v49  ;;  %v5456_v4 = vpop.f32.mrb[23].mxu1  ;;  %v5789_v49 = vrot.slane (!%p6092_p12), %v5772_v44, %v6876_v53  ;;  %v5886_v6 = vrot.slane (!%p6092_p12), %v5754_v42, %v6876_v53  ;;  %v5944_v58 = vcombine.low (!%p6092_p12), %v5878_v17, %v5882_v48 }
 0x7b8   : > { %v5737_v9 = vadd.f32 %v5721_v50, %v1028_v52  ;;  %v5890_v52 = vrot.slane (!%p6092_p12), %v5754_v42, %v6833_v0  ;;  %v5764_v50 = vld [vmem:[#allocation3 + $0x8] sm:$0xff] (!%p6092_p12)  ;;  %v5797_v59 = vrot.slane (!%p6092_p12), %v5772_v44, %v6957_v18  ;;  %v5801_v1 = vrot.slane (!%p6092_p12), %v5772_v44, %v6910_v5 }
 0x7b9   : > { %5745 = vst [vmem:[#allocation3 + $0x30] sm:$0xff] %v5736_v2  ;;  %v5848_v2 = vcombine.low (!%p6092_p12), %v5789_v49, %v5793_v51 }
 0x7ba   : > { %5746 = vst [vmem:[#allocation3 + $0x38] sm:$0xff] %v5737_v9  ;;  %v5945_v4 = vcombine.low (!%p6092_p12), %v5886_v6, %v5890_v52  ;;  %v5765_v9 = vld [vmem:[#allocation3 + $0x10] sm:$0xff] (!%p6092_p12) }
 0x7bb   : > { %v6094_v6 = vld [vmem:[%s7919_s5 + $0x10] ss:$0 sm:$0xff] (!%p6092_p12) }
 0x7c1   : > { %v5770_v49 = vld [vmem:[#allocation3 + $0x38] sm:$0xff] (!%p6092_p12) }
 0x7d3   : > { %v6116_v10 = vpop.f32.mrb[24].mxu0 }
 0x7d4   : > { %v6138_v39 = vpop.f32.mrb[24].mxu1  ;;  %v6117_v11 = vpop.f32.mrb[25].mxu0 }
 0x7d5   : > { %v6118_v60 = vadd.f32 %v6117_v11, %v6116_v10  ;;  %v6139_v12 = vpop.f32.mrb[25].mxu1  ;;  %v6119_v56 = vpop.f32.mrb[26].mxu0  ;;  %v5894_v10 = vrot.slane (!%p6092_p12), %v5754_v42, %v6957_v18  ;;  %v5773_v11 = vld [vmem:[%s7918_s4 + $0x8] sm:$0xff] (!%p6092_p12) }
 0x7d6   : > { %v6140_v13 = vadd.f32 %v6139_v12, %v6138_v39  ;;  %v6141_v14 = vpop.f32.mrb[26].mxu1  ;;  %v6120_v47 = vpop.f32.mrb[27].mxu0  ;;  %v5898_v39 = vrot.slane (!%p6092_p12), %v5754_v42, %v6910_v5  ;;  %v5849_v12 = vcombine.low (!%p6092_p12), %v5797_v59, %v5801_v1  ;;  %v5805_v56 = vrot.slane (!%p6092_p12), %v5772_v44, %v7009_v41 }
 0x7d7   : > { %v6142_v16 = vpop.f32.mrb[27].mxu1  ;;  %v5755_v14 = vld [vmem:[%s7919_s5 + $0x8] sm:$0xff] (!%p6092_p12)  ;;  %v5864_v47 = vmul.f32 (!%p6092_p12), %v5848_v2, %v5764_v50  ;;  %v5837_v62 = vrot.slane (!%p6092_p12), %v5773_v11, %v7009_v41  ;;  %v5841_v17 = vrot.slane (!%p6092_p12), %v5773_v11, %v6962_v29 }
 0x7d8   : > { %v5533_v21 = vadd.f32 %v6140_v13, %v6118_v60  ;;  %v5863_v60 = vmul.f32 (!%p6092_p12), %v5847_v54, %v5763_v19  ;;  %v5809_v13 = vrot.slane (!%p6092_p12), %v5772_v44, %v6962_v29  ;;  %v5946_v16 = vcombine.low (!%p6092_p12), %v5894_v10, %v5898_v39 }
 0x7d9   : > { %v5930_v46 = vrot.slane (!%p6092_p12), %v5755_v14, %v6910_v5  ;;  %v5934_v51 = vrot.slane (!%p6092_p12), %v5755_v14, %v7009_v41 }
 0x7f3   : > { %v6160_v22 = vpop.f32.mrb[28].mxu0 }
 0x7f4   : > { %v6182_v55 = vpop.f32.mrb[28].mxu1  ;;  %v6161_v3 = vpop.f32.mrb[29].mxu0 }
 0x7f5   : > { %v6162_v27 = vadd.f32 %v6161_v3, %v6160_v22  ;;  %v6183_v24 = vpop.f32.mrb[29].mxu1  ;;  %v6163_v25 = vpop.f32.mrb[30].mxu0  ;;  %v5902_v22 = vrot.slane (!%p6092_p12), %v5754_v42, %v7009_v41  ;;  %v5960_v3 = vadd.f32 (!%p6092_p12), %v5944_v58, %v5863_v60  ;;  %v5854_v58 = vcombine.low (!%p6092_p12), %v5837_v62, %v5841_v17 }
 0x7f6   : > { %v6184_v20 = vadd.f32 %v6183_v24, %v6182_v55  ;;  %v6185_v37 = vpop.f32.mrb[30].mxu1  ;;  %v6164_v45 = vpop.f32.mrb[31].mxu0  ;;  %v5906_v55 = vrot.slane (!%p6092_p12), %v5754_v42, %v6962_v29  ;;  %v5850_v24 = vcombine.low (!%p6092_p12), %v5805_v56, %v5809_v13  ;;  %v5813_v25 = vrot.slane (!%p6092_p12), %v5773_v11, %v6824_v61 }
 0x7f7   : > { %v5573_v43 = vadd.f32 %v6162_v27, %v5533_v21  ;;  %v6186_v15 = vpop.f32.mrb[31].mxu1  ;;  %v5766_v21 = vld [vmem:[#allocation3 + $0x18] sm:$0xff] (!%p6092_p12)  ;;  %v5865_v27 = vmul.f32 (!%p6092_p12), %v5849_v12, %v5765_v9  ;;  %v5817_v45 = vrot.slane (!%p6092_p12), %v5773_v11, %v6830_v63  ;;  %5969 = vst [vmem:[#allocation3] sm:$0xff] (!%p6092_p12), %v5960_v3  ;;  %v5926_v42 = vrot.slane (!%p6092_p12), %v5755_v14, %v6957_v18 }
 0x7f8   : > { %v5947_v37 = vcombine.low (!%p6092_p12), %v5902_v22, %v5906_v55  ;;  %v5870_v2 = vmul.f32 (!%p6092_p12), %v5854_v58, %v5770_v49 }
 0x7f9   : > { %v5613_v28 = vadd.f32 %v6184_v20, %v5573_v43  ;;  %v5961_v20 = vadd.f32 (!%p6092_p12), %v5945_v4, %v5864_v47  ;;  %v5910_v43 = vrot.slane (!%p6092_p12), %v5755_v14, %v6824_v61  ;;  %v5962_v15 = vadd.f32 (!%p6092_p12), %v5946_v16, %v5865_v27  ;;  %v5768_v61 = vld [vmem:[#allocation3 + $0x28] sm:$0xff] (!%p6092_p12) }
 0x7fa   : > { %v5950_v54 = vcombine.low (!%p6092_p12), %v5926_v42, %v5930_v46 }
 0x7fb   : > { %5970 = vst [vmem:[#allocation3 + $0x8] sm:$0xff] (!%p6092_p12), %v5961_v20  ;;  %5971 = vst [vmem:[#allocation3 + $0x10] sm:$0xff] (!%p6092_p12), %v5962_v15 }
 0x813   : > { %v6204_v30 = vpop.f32.mrb[32].mxu0 }
 0x814   : > { %v6226_v31 = vpop.f32.mrb[32].mxu1  ;;  %v6205_v7 = vpop.f32.mrb[33].mxu0 }
 0x815   : > { %v6206_v32 = vadd.f32 %v6205_v7, %v6204_v30  ;;  %v6227_v26 = vpop.f32.mrb[33].mxu1  ;;  %v6207_v8 = vpop.f32.mrb[34].mxu0  ;;  %v5767_v30 = vld [vmem:[#allocation3 + $0x20] sm:$0xff] (!%p6092_p12)  ;;  %v5821_v7 = vrot.slane (!%p6092_p12), %v5773_v11, %v6876_v53 }
 0x816   : > { %v6228_v33 = vadd.f32 %v6227_v26, %v6226_v31  ;;  %v6229_v34 = vpop.f32.mrb[34].mxu1  ;;  %v6208_v35 = vpop.f32.mrb[35].mxu0  ;;  %v5914_v31 = vrot.slane (!%p6092_p12), %v5755_v14, %v6830_v63  ;;  %v5825_v26 = vrot.slane (!%p6092_p12), %v5773_v11, %v6833_v0  ;;  %v5918_v8 = vrot.slane (!%p6092_p12), %v5755_v14, %v6876_v53  ;;  %v6093_v53 = vld [vmem:[%s7918_s4 + $0x10] ss:$0 sm:$0xff] (!%p6092_p12) }
 0x817   : > { %v5653_v57 = vadd.f32 %v6206_v32, %v5613_v28  ;;  %v6230_v36 = vpop.f32.mrb[35].mxu1  ;;  %5752 = sbr.rel (%p6092_p12) target bundleno = 2090 (0x82a), region = 75  ;;  %v5866_v28 = vmul.f32 (!%p6092_p12), %v5850_v24, %v5766_v21  ;;  %v5851_v32 = vcombine.low (!%p6092_p12), %v5813_v25, %v5817_v45 }
 0x818   : > { %v5948_v35 = vcombine.low (!%p6092_p12), %v5910_v43, %v5914_v31  ;;  %v5833_v36 = vrot.slane (!%p6092_p12), %v5773_v11, %v6910_v5  ;;  %v5852_v63 = vcombine.low (!%p6092_p12), %v5821_v7, %v5825_v26 }
 0x819   : > { %v5693_v23 = vadd.f32 %v6228_v33, %v5653_v57  ;;  %v5922_v33 = vrot.slane (!%p6092_p12), %v5755_v14, %v6833_v0  ;;  %v5963_v34 = vadd.f32 (!%p6092_p12), %v5947_v37, %v5866_v28  ;;  %v5829_v57 = vrot.slane (!%p6092_p12), %v5773_v11, %v6957_v18 }
 0x81a   : > { %v5868_v19 = vmul.f32 (!%p6092_p12), %v5852_v63, %v5768_v61  ;;  %v5938_v18 = vrot.slane (!%p6092_p12), %v5755_v14, %v6962_v29 }
 0x81b   : > { %v5738_v40 = vadd.f32 %v5693_v23, %v1029_v38  ;;  %v5867_v38 = vmul.f32 (!%p6092_p12), %v5851_v32, %v5767_v30  ;;  %v5949_v23 = vcombine.low (!%p6092_p12), %v5918_v8, %v5922_v33  ;;  %5972 = vst [vmem:[#allocation3 + $0x18] sm:$0xff] (!%p6092_p12), %v5963_v34  ;;  %v5853_v0 = vcombine.low (!%p6092_p12), %v5829_v57, %v5833_v36 }
 0x81c   : > { %v5951_v59 = vcombine.low (!%p6092_p12), %v5934_v51, %v5938_v18 }
 0x81d   : > { %5748 = vst.msk [vmem:[#allocation3 + $0x40] sm:$0xf] %vm5747_vm3, %v5738_v40  ;;  %v5769_v40 = vld [vmem:[#allocation3 + $0x30] sm:$0xff] (!%p6092_p12)  ;;  %v5964_v48 = vadd.f32 (!%p6092_p12), %v5948_v35, %v5867_v38  ;;  %v5965_v5 = vadd.f32 (!%p6092_p12), %v5949_v23, %v5868_v19 }
 0x81e   : > { %v5869_v52 = vmul.f32 %v5853_v0, %v5769_v40  ;;  %v5967_v9 = vadd.f32 %v5951_v59, %v5870_v2 }
 0x81f   : > { %5973 = vst [vmem:[#allocation3 + $0x20] sm:$0xff] %v5964_v48  ;;  %5974 = vst [vmem:[#allocation3 + $0x28] sm:$0xff] %v5965_v5 }
 0x820   : > { %v5966_v1 = vadd.f32 %v5950_v54, %v5869_v52  ;;  %5976 = vst [vmem:[#allocation3 + $0x38] sm:$0xff] %v5967_v9 }
 0x822   : > { %5975 = vst [vmem:[#allocation3 + $0x30] sm:$0xff] %v5966_v1 }
 0x824   : > { %v5771_v44 = vld [vmem:[#allocation3 + $0x40] sm:$0xf] }
 0x825   : > { %v5871_v50 = vmul.f32 %v6093_v53, %v5771_v44 }
 0x827   : > { %v5968_v4 = vadd.f32 %v6094_v6, %v5871_v50 }
 0x829   : > { %5977 = vst.msk [vmem:[#allocation3 + $0x40] sm:$0xf] %vm5747_vm3, %v5968_v4 }
 0x82a PF: > { %p7873_p13 = scmp.eq.s32.totalorder %s6067_s26, 1  ;;  %s6542_s7 = smov [#allocation3]  }
 0x82b   : > { %s5988_s8 = sshll.u32 %s6542_s7, 4  ;;  %s5989_s8 = int_to_ptr.vmem [resolvable:$true] %s5988_s8 }
 0x82c   : > { %s6470_s9 = scalar_lea.vmem %s5989_s8, 1088  ;;  %p6477_p3 = scmp.lt.s32.totalorder %s5989_s8, %s5989_s8 }
 0x82d   : > { %p6471_p0 = scmp.ne.s32.totalorder %s5989_s8, %s6470_s9  ;;  %p6478_p4 = scmp.lt.s32.totalorder %s6470_s9, %s6470_s9 }
 0x82f   : > { %p6472_p1 = pnand %p6471_p0, %p7873_p13  ;;  %p6479_p5 = por %p6478_p4, %p6477_p3 }
 0x831   : > { %p6473_p2 = pneg %p6472_p1 }
 0x833   : > { %p6480_p6 = pnand %p6479_p5, %p6473_p2 }
 0x835   : > { %6483 = shalt.err (!%p6480_p6)
}
 0x836   : > { %s6484_s26 = scalar_lea.hbm %s7920_s6, 1088 }
 0x837   : > { %p6485_p7 = scmp.ne.s32.totalorder %s7920_s6, %s6484_s26  ;;  %p6490_p10 = scmp.lt.u32.totalorder %s6484_s26, %s7920_s6 }
 0x839   : > { %p6486_p8 = pnand %p6485_p7, %p7873_p13 }
 0x83b   : > { %p6487_p9 = pneg %p6486_p8 }
 0x83d   : > { %p6492_p11 = pnand %p6490_p10, %p6487_p9 }
 0x83f   : > { %6495 = shalt.err (!%p6492_p11)
}
 0x840   : > { %6420 = dma.vmem_to_hbm [thread:$0]  (%p7873_p13), %s5989_s8, 1088, %s7920_s6, [#allocation4]  }
 0x841   : > { %6517 = dma.done.wait (%p7873_p13), [#allocation4], 1088  }
 0x842   : > { %6519 = vsyncadd (%p7873_p13), [#allocation4], 4294966208 }
 0x843 PF: > { %s17_s25 = sadd.s32 1, %s6538_s25   ;;  %s7922_s21 = smov %s6526_s22 }
 0x844   : > { %p14_p12 = scmp.ge.s32.totalorder %s17_s25, 4   ;;  %s7923_s22 = smov %s6614_s30 }
 0x845   : > { %s7924_s23 = smov %s6534_s24  ;;  %s7925_s24 = smov %s7927_s27 }
 0x846   :  { %16 = sbr.rel (!%p14_p12) target bundleno = 3 (0x3), region = 114 }
 0x84d   :  { %6001 = vsyncpa [#allocation4], 1 }
 0x84e   :  { %6003 = vsyncpa [#allocation4 + $0x1], 1 }

</bundles_post_ra>
